<compile_context>
chip_gen: v7x
topology: tpu7x:2x2x1
jax: 0.10.0
libtpu: 0.0.40
codegen_flags: <defaults>
</compile_context>

<pallas_src>
import numpy as np

import jax
import jax.numpy as jnp
from jax.experimental import pallas as pl
from jax.experimental.pallas import tpu as pltpu


def _leaky_relu(x, slope=0.2):
    return jnp.where(x >= 0.0, x, slope * x)


def _round_up(x, m):
    return ((x + m - 1) // m) * m


def build_discriminator_forward(N, in_c, nf, S, p=1):
    """Forward for Discriminator(p, patch_size not in {34,70}, in_c, nf),
    specialised to NCDHW inputs of shape (N, in_c, S, S, S)."""
    k = 4
    C0, C1 = nf, 2 * nf                       # channels after layer 0 / 1
    D0 = (S + 2 * p - k) // 2 + 1             # layer-0 output spatial size
    D1 = D0 + 2 * p - (k - 1)                 # layer-1 output spatial size
    D2 = D1 + 2 * p - (k - 1)                 # layer-2 output spatial size
    assert min(D0, D1, D2) >= 1, "input too small for this architecture"
    P1 = D0 + 2 * p                           # zero-padded layer-1 input grid
    P2 = D1 + 2 * p                           # zero-padded layer-2 input grid
    M0 = N * D0 ** 3                          # layer-0 output positions
    S1 = N * P1 ** 3                          # flattened padded grid, layer 1
    S2 = N * P2 ** 3                          # flattened padded grid, layer 2
    K0, K1, K2 = k ** 3 * in_c, k ** 3 * C0, k ** 3 * C1
    inv_cnt1 = 1.0 / float(N * D1 ** 3)       # BatchNorm element count

    LANE = 256                                 # full MXU result tiles (v6e/v7x)
    S1P = _round_up(S1, LANE)                  # padded lane width, layer-1 grid
    S2P = _round_up(S2, LANE)                  # padded lane width, layer-2 grid
    # Right-padded activation widths so every tap read a[:, off:off+S*P] is
    # in-bounds (max tap offset = (k-1)*(P^2+P+1)).
    A1 = _round_up(S1P + (k - 1) * (P1 * P1 + P1 + 1), LANE)
    A2 = _round_up(S2P + (k - 1) * (P2 * P2 + P2 + 1), LANE)

    # Host-precomputed constants:
    #  mask1: 0/1 mask of the valid output columns on the padded layer-1 grid.
    #  sc0:   0/1 scatter matrix, layer-0 outputs -> padded layer-1 grid (A1).
    #  sc1:   0/1 scatter matrix, valid layer-1 outputs -> padded layer-2 grid.
    mask_np = np.zeros((1, S1P), np.float32)
    sc0_np = np.zeros((M0, A1), np.float32)
    sc1_np = np.zeros((S1P, A2), np.float32)
    for n in range(N):
        for d in range(D0):
            for h in range(D0):
                for w in range(D0):
                    src = ((n * D0 + d) * D0 + h) * D0 + w
                    dst = ((n * P1 + d + p) * P1 + h + p) * P1 + (w + p)
                    sc0_np[src, dst] = 1.0
        for d in range(D1):
            for h in range(D1):
                for w in range(D1):
                    src = ((n * P1 + d) * P1 + h) * P1 + w
                    dst = ((n * P2 + d + p) * P2 + h + p) * P2 + (w + p)
                    mask_np[0, src] = 1.0
                    sc1_np[src, dst] = 1.0
    mask1 = jnp.asarray(mask_np)
    sc0 = jnp.asarray(sc0_np)
    sc1 = jnp.asarray(sc1_np)

    def kernel(cols0_ref, w0_ref, b0_ref, sc0_ref,
               w1_ref, b1_ref, g1_ref, bt1_ref, mask_ref, sc1_ref,
               w2_ref, b2_ref,
               out0_ref, out1_ref, out2_ref,
               cols1_ref, cols2_ref):
        f32 = jnp.float32

        # ---------------- layer 0: conv(stride 2) + LeakyReLU ---------------
        # y0[c, (n,do,ho,wo)]; lane dim = M0 output positions (lane dense).
        y0 = jnp.dot(w0_ref[...], cols0_ref[...], preferred_element_type=f32)
        y0 = _leaky_relu(y0 + b0_ref[...])
        out0_ref[...] = y0

        # Scatter onto the zero-padded (and right-padded) layer-1 grid on the
        # MXU; columns not hit by a valid output come out exactly zero.
        a0 = jnp.dot(y0, sc0_ref[...], preferred_element_type=f32)   # (C0, A1)

        # ------------- in-kernel im2col for layer 1 (stride 1) --------------
        # Each tap is a uniform full-width column shift; destination row block
        # t*C0 is f32 sublane-tile aligned, stores are full 512-lane width.
        for kd in range(k):
            for kh in range(k):
                for kw in range(k):
                    t = (kd * k + kh) * k + kw
                    off = (kd * P1 + kh) * P1 + kw
                    cols1_ref[t * C0:(t + 1) * C0, :] = a0[:, off:off + S1P]

        # --------- layer 1: conv + bias + BatchNorm(batch stats) + LReLU ----
        y1 = jnp.dot(w1_ref[...], cols1_ref[...], preferred_element_type=f32)
        y1 = y1 + b1_ref[...]
        valid = mask_ref[...] > 0.5                 # hoisted: computed once
        y1v = jnp.where(valid, y1, 0.0)
        mean = jnp.sum(y1v, axis=1, keepdims=True) * inv_cnt1
        dev = y1 - mean
        devv = jnp.where(valid, dev, 0.0)
        var = jnp.sum(devv * devv, axis=1, keepdims=True) * inv_cnt1
        y1a = _leaky_relu(dev * jax.lax.rsqrt(var + 1e-5) * g1_ref[...]
                          + bt1_ref[...])
        out1_ref[...] = y1a            # host slices out the valid columns

        # Scatter valid layer-1 outputs onto the padded layer-2 grid (MXU).
        a1 = jnp.dot(y1a, sc1_ref[...], preferred_element_type=f32)  # (C1, A2)

        # ------------- in-kernel im2col for layer 2 (stride 1) --------------
        for kd in range(k):
            for kh in range(k):
                for kw in range(k):
                    t = (kd * k + kh) * k + kw
                    off = (kd * P2 + kh) * P2 + kw
                    cols2_ref[t * C1:(t + 1) * C1, :] = a1[:, off:off + S2P]

        # ---------------- layer 2: conv (1 output channel) ------------------
        y2 = jnp.dot(w2_ref[...], cols2_ref[...], preferred_element_type=f32)
        out2_ref[...] = y2 + b2_ref[...]

    vmem = pl.BlockSpec(memory_space=pltpu.MemorySpace.VMEM)
    fused = pl.pallas_call(
        kernel,
        out_shape=(
            jax.ShapeDtypeStruct((C0, M0), jnp.float32),   # layer-0 fmap (C-major)
            jax.ShapeDtypeStruct((C1, S1P), jnp.float32),  # layer-1 fmap, padded grid
            jax.ShapeDtypeStruct((1, S2P), jnp.float32),   # final map, padded grid
        ),
        in_specs=[vmem] * 12,
        out_specs=(vmem, vmem, vmem),
        scratch_shapes=[
            pltpu.VMEM((K1, S1P), jnp.float32),   # im2col matrix, layer 1
            pltpu.VMEM((K2, S2P), jnp.float32),   # im2col matrix, layer 2
        ],
    )

    def forward(params, x_ncdhw):
        f32 = jnp.float32

        # Host side (one fused XLA gather under jit): im2col of the HBM input
        # for the stride-2 first layer, already in transposed (K0, M0) layout.
        xp = jnp.pad(x_ncdhw, ((0, 0), (0, 0), (p, p), (p, p), (p, p)))
        hi = 2 * (D0 - 1) + 1
        slabs = []
        for kd in range(k):
            for kh in range(k):
                for kw in range(k):
                    slabs.append(
                        xp[:, :, kd:kd + hi:2, kh:kh + hi:2, kw:kw + hi:2])
        pat = jnp.stack(slabs, axis=0)                 # (k^3, N, in_c, D0,D0,D0)
        pat = jnp.transpose(pat, (0, 2, 1, 3, 4, 5))   # (k^3, in_c, N, D0,D0,D0)
        cols0 = pat.reshape(K0, M0).astype(f32)

        # Weights / affine params in the transposed matmul layouts
        # (rows = out channels, cols = (kd,kh,kw,cin)  -- PyTorch OIDHW weights).
        w0T = jnp.transpose(params["w0"], (0, 2, 3, 4, 1)).reshape(C0, K0).astype(f32)
        w1T = jnp.transpose(params["w1"], (0, 2, 3, 4, 1)).reshape(C1, K1).astype(f32)
        w2T = jnp.transpose(params["w2"], (0, 2, 3, 4, 1)).reshape(1, K2).astype(f32)
        b0 = params["b0"].reshape(C0, 1).astype(f32)
        b1 = params["b1"].reshape(C1, 1).astype(f32)
        b2 = params["b2"].reshape(1, 1).astype(f32)
        g1 = params["gamma1"].reshape(C1, 1).astype(f32)
        bt1 = params["beta1"].reshape(C1, 1).astype(f32)

        out0T, out1T, out2T = fused(cols0, w0T, b0, sc0,
                                    w1T, b1, g1, bt1, mask1, sc1,
                                    w2T, b2)

        # Back to PyTorch NCDHW (cheap layout plumbing of tiny arrays).
        fmap0 = jnp.transpose(out0T.reshape(C0, N, D0, D0, D0), (1, 0, 2, 3, 4))
        fmap1 = jnp.transpose(
            out1T[:, :S1].reshape(C1, N, P1, P1, P1)[:, :, :D1, :D1, :D1],
            (1, 0, 2, 3, 4))
        out = jnp.transpose(
            out2T[:, :S2].reshape(1, N, P2, P2, P2)[:, :, :D2, :D2, :D2],
            (1, 0, 2, 3, 4))
        return [out, [fmap0, fmap1]]

    return jax.jit(forward)


# ---------------------------------------------------------------------------
# Pure-JAX f32 reference (same math as the PyTorch module, train-mode BN)
# ---------------------------------------------------------------------------
def _conv3d_ref(x, w, b, stride, pad):
    y = jax.lax.conv_general_dilated(
        x, w, window_strides=(stride,) * 3, padding=[(pad, pad)] * 3,
        dimension_numbers=("NCDHW", "OIDHW", "NCDHW"),
        precision=jax.lax.Precision.HIGHEST)
    return y + b.reshape(1, -1, 1, 1, 1)


def reference_forward(params, x, p=1):
    f0 = _leaky_relu(_conv3d_ref(x, params["w0"], params["b0"], 2, p))
    y1 = _conv3d_ref(f0, params["w1"], params["b1"], 1, p)
    mean = jnp.mean(y1, axis=(0, 2, 3, 4), keepdims=True)
    var = jnp.mean((y1 - mean) ** 2, axis=(0, 2, 3, 4), keepdims=True)
    y1 = (y1 - mean) * jax.lax.rsqrt(var + 1e-5)
    y1 = (y1 * params["gamma1"].reshape(1, -1, 1, 1, 1)
          + params["beta1"].reshape(1, -1, 1, 1, 1))
    f1 = _leaky_relu(y1)
    out = _conv3d_ref(f1, params["w2"], params["b2"], 1, p)
    return [out, [f0, f1]]


# ---------------------------------------------------------------------------
# Deterministic parameters + example run
# ---------------------------------------------------------------------------
def make_params(key, in_c=2, nf=8, k=4):
    ks = jax.random.split(key, 6)
    scale = 0.05
    return {
        "w0": scale * jax.random.normal(ks[0], (nf, in_c, k, k, k), jnp.float32),
        "b0": scale * jax.random.normal(ks[1], (nf,), jnp.float32),
        "w1": scale * jax.random.normal(ks[2], (2 * nf, nf, k, k, k), jnp.float32),
        "b1": scale * jax.random.normal(ks[3], (2 * nf,), jnp.float32),
        "gamma1": jnp.ones((2 * nf,), jnp.float32),   # BatchNorm3d affine defaults
        "beta1": jnp.zeros((2 * nf,), jnp.float32),
        "w2": scale * jax.random.normal(ks[4], (1, 2 * nf, k, k, k), jnp.float32),
        "b2": scale * jax.random.normal(ks[5], (1,), jnp.float32),
    }


if __name__ == "__main__":
    key = jax.random.PRNGKey(0)
    pkey, xkey = jax.random.split(key)

    # Discriminator(p=1, patch_size=16, in_c=2, nf=8)  ->  N_layers = 3 branch
    N, in_c, nf, S, p = 2, 2, 8, 8, 1
    params = make_params(pkey, in_c=in_c, nf=nf)
    x = jax.random.normal(xkey, (N, in_c, S, S, S), jnp.float32)

    forward = build_discriminator_forward(N=N, in_c=in_c, nf=nf, S=S, p=p)
    out, fmaps = forward(params, x)
    jax.block_until_ready(out)
    for f in fmaps:
        jax.block_until_ready(f)

    # shape sanity: (2,8,4,4,4) -> (2,16,3,3,3) -> (2,1,2,2,2)
    assert fmaps[0].shape == (N, nf, 4, 4, 4)
    assert fmaps[1].shape == (N, 2 * nf, 3, 3, 3)
    assert out.shape == (N, 1, 2, 2, 2)

    # Numerical sanity vs a pure-JAX f32 reference.  Tolerances account for
    # MXU matmul rounding (intermediates are no longer stored in bf16, so real
    # error is well inside these bounds; indexing bugs would be O(1) off).
    ref_out, (ref_f0, ref_f1) = reference_forward(params, x, p=p)
    np.testing.assert_allclose(np.asarray(fmaps[0]), np.asarray(ref_f0),
                               rtol=0.05, atol=0.05)
    np.testing.assert_allclose(np.asarray(fmaps[1]), np.asarray(ref_f1),
                               rtol=0.25, atol=0.25)
    np.testing.assert_allclose(np.asarray(out), np.asarray(ref_out),
                               rtol=0.25, atol=0.40)

    print("KERNEL_OK")
</pallas_src>

<mosaic_0001>
module attributes {stable_mosaic.version = 11 : i64} {
  func.func @kernel(%arg0: memref<128x128xf32, #tpu.memory_space<vmem>>, %arg1: memref<8x128xf32, #tpu.memory_space<vmem>>, %arg2: memref<8x1xf32, #tpu.memory_space<vmem>>, %arg3: memref<128x768xf32, #tpu.memory_space<vmem>>, %arg4: memref<16x512xf32, #tpu.memory_space<vmem>>, %arg5: memref<16x1xf32, #tpu.memory_space<vmem>>, %arg6: memref<16x1xf32, #tpu.memory_space<vmem>>, %arg7: memref<16x1xf32, #tpu.memory_space<vmem>>, %arg8: memref<1x512xf32, #tpu.memory_space<vmem>>, %arg9: memref<512x512xf32, #tpu.memory_space<vmem>>, %arg10: memref<1x1024xf32, #tpu.memory_space<vmem>>, %arg11: memref<1x1xf32, #tpu.memory_space<vmem>>, %arg12: memref<8x128xf32, #tpu.memory_space<vmem>>, %arg13: memref<16x512xf32, #tpu.memory_space<vmem>>, %arg14: memref<1x256xf32, #tpu.memory_space<vmem>>, %arg15: memref<512x512xf32, #tpu.memory_space<vmem>>, %arg16: memref<1024x256xf32, #tpu.memory_space<vmem>>) attributes {dimension_semantics = [], scalar_prefetch = 0 : i64, scratch_operands = 2 : i64, tpu.core_type = #tpu.core_type<tc>} {
    %c0 = arith.constant 0 : index
    %c0_0 = arith.constant 0 : index
    %0 = vector.load %arg1[%c0, %c0_0] : memref<8x128xf32, #tpu.memory_space<vmem>>, vector<8x128xf32>
    %c0_1 = arith.constant 0 : index
    %c0_2 = arith.constant 0 : index
    %1 = vector.load %arg0[%c0_1, %c0_2] : memref<128x128xf32, #tpu.memory_space<vmem>>, vector<128x128xf32>
    %cst = arith.constant dense<0.000000e+00> : vector<8x128xf32>
    %2 = tpu.matmul %0, %1, %cst {dimension_numbers = #tpu.dot_dimension_numbers<[1], [0], [0], [1], [0, 0, 1, 1], [], []>} : vector<8x128xf32>, vector<128x128xf32>, vector<8x128xf32> -> vector<8x128xf32>
    %c0_3 = arith.constant 0 : index
    %c0_4 = arith.constant 0 : index
    %3 = vector.load %arg2[%c0_3, %c0_4] : memref<8x1xf32, #tpu.memory_space<vmem>>, vector<8x1xf32>
    %4 = vector.broadcast %3 : vector<8x1xf32> to vector<8x128xf32>
    %5 = arith.addf %2, %4 : vector<8x128xf32>
    %cst_5 = arith.constant 0.000000e+00 : f32
    %6 = vector.broadcast %cst_5 : f32 to vector<8x128xf32>
    %7 = arith.cmpf oge, %5, %6 : vector<8x128xf32>
    %cst_6 = arith.constant 2.000000e-01 : f32
    %8 = vector.broadcast %cst_6 : f32 to vector<8x128xf32>
    %9 = arith.mulf %8, %5 : vector<8x128xf32>
    %10 = arith.select %7, %5, %9 : vector<8x128xi1>, vector<8x128xf32>
    %c0_7 = arith.constant 0 : index
    %c0_8 = arith.constant 0 : index
    %11 = vector.load %arg12[%c0_7, %c0_8] : memref<8x128xf32, #tpu.memory_space<vmem>>, vector<8x128xf32>
    tpu.vector_store %arg12[%c0_7, %c0_8], %10 {strides = array<i32>} : memref<8x128xf32, #tpu.memory_space<vmem>>, vector<8x128xf32>,
    %c0_9 = arith.constant 0 : index
    %c0_10 = arith.constant 0 : index
    %12 = vector.load %arg3[%c0_9, %c0_10] : memref<128x768xf32, #tpu.memory_space<vmem>>, vector<128x768xf32>
    %cst_11 = arith.constant dense<0.000000e+00> : vector<8x768xf32>
    %13 = tpu.matmul %10, %12, %cst_11 {dimension_numbers = #tpu.dot_dimension_numbers<[1], [0], [0], [1], [0, 0, 1, 1], [], []>} : vector<8x128xf32>, vector<128x768xf32>, vector<8x768xf32> -> vector<8x768xf32>
    %14 = vector.extract_strided_slice %13 {offsets = [0, 0], sizes = [8, 512], strides = [1, 1]} : vector<8x768xf32> to vector<8x512xf32>
    %c0_12 = arith.constant 0 : index
    %c0_13 = arith.constant 0 : index
    %15 = vector.load %arg15[%c0_12, %c0_13] : memref<512x512xf32, #tpu.memory_space<vmem>>, vector<8x512xf32>
    tpu.vector_store %arg15[%c0_12, %c0_13], %14 {strides = array<i32>} : memref<512x512xf32, #tpu.memory_space<vmem>>, vector<8x512xf32>,
    %16 = vector.extract_strided_slice %13 {offsets = [0, 1], sizes = [8, 512], strides = [1, 1]} : vector<8x768xf32> to vector<8x512xf32>
    %c8 = arith.constant 8 : index
    %c0_14 = arith.constant 0 : index
    %17 = vector.load %arg15[%c8, %c0_14] : memref<512x512xf32, #tpu.memory_space<vmem>>, vector<8x512xf32>
    tpu.vector_store %arg15[%c8, %c0_14], %16 {strides = array<i32>} : memref<512x512xf32, #tpu.memory_space<vmem>>, vector<8x512xf32>,
    %18 = vector.extract_strided_slice %13 {offsets = [0, 2], sizes = [8, 512], strides = [1, 1]} : vector<8x768xf32> to vector<8x512xf32>
    %c16 = arith.constant 16 : index
    %c0_15 = arith.constant 0 : index
    %19 = vector.load %arg15[%c16, %c0_15] : memref<512x512xf32, #tpu.memory_space<vmem>>, vector<8x512xf32>
    tpu.vector_store %arg15[%c16, %c0_15], %18 {strides = array<i32>} : memref<512x512xf32, #tpu.memory_space<vmem>>, vector<8x512xf32>,
    %20 = vector.extract_strided_slice %13 {offsets = [0, 3], sizes = [8, 512], strides = [1, 1]} : vector<8x768xf32> to vector<8x512xf32>
    %c24 = arith.constant 24 : index
    %c0_16 = arith.constant 0 : index
    %21 = vector.load %arg15[%c24, %c0_16] : memref<512x512xf32, #tpu.memory_space<vmem>>, vector<8x512xf32>
    tpu.vector_store %arg15[%c24, %c0_16], %20 {strides = array<i32>} : memref<512x512xf32, #tpu.memory_space<vmem>>, vector<8x512xf32>,
    %22 = vector.extract_strided_slice %13 {offsets = [0, 6], sizes = [8, 512], strides = [1, 1]} : vector<8x768xf32> to vector<8x512xf32>
    %c32 = arith.constant 32 : index
    %c0_17 = arith.constant 0 : index
    %23 = vector.load %arg15[%c32, %c0_17] : memref<512x512xf32, #tpu.memory_space<vmem>>, vector<8x512xf32>
    tpu.vector_store %arg15[%c32, %c0_17], %22 {strides = array<i32>} : memref<512x512xf32, #tpu.memory_space<vmem>>, vector<8x512xf32>,
    %24 = vector.extract_strided_slice %13 {offsets = [0, 7], sizes = [8, 512], strides = [1, 1]} : vector<8x768xf32> to vector<8x512xf32>
    %c40 = arith.constant 40 : index
    %c0_18 = arith.constant 0 : index
    %25 = vector.load %arg15[%c40, %c0_18] : memref<512x512xf32, #tpu.memory_space<vmem>>, vector<8x512xf32>
    tpu.vector_store %arg15[%c40, %c0_18], %24 {strides = array<i32>} : memref<512x512xf32, #tpu.memory_space<vmem>>, vector<8x512xf32>,
    %26 = vector.extract_strided_slice %13 {offsets = [0, 8], sizes = [8, 512], strides = [1, 1]} : vector<8x768xf32> to vector<8x512xf32>
    %c48 = arith.constant 48 : index
    %c0_19 = arith.constant 0 : index
    %27 = vector.load %arg15[%c48, %c0_19] : memref<512x512xf32, #tpu.memory_space<vmem>>, vector<8x512xf32>
    tpu.vector_store %arg15[%c48, %c0_19], %26 {strides = array<i32>} : memref<512x512xf32, #tpu.memory_space<vmem>>, vector<8x512xf32>,
    %28 = vector.extract_strided_slice %13 {offsets = [0, 9], sizes = [8, 512], strides = [1, 1]} : vector<8x768xf32> to vector<8x512xf32>
    %c56 = arith.constant 56 : index
    %c0_20 = arith.constant 0 : index
    %29 = vector.load %arg15[%c56, %c0_20] : memref<512x512xf32, #tpu.memory_space<vmem>>, vector<8x512xf32>
    tpu.vector_store %arg15[%c56, %c0_20], %28 {strides = array<i32>} : memref<512x512xf32, #tpu.memory_space<vmem>>, vector<8x512xf32>,
    %30 = vector.extract_strided_slice %13 {offsets = [0, 12], sizes = [8, 512], strides = [1, 1]} : vector<8x768xf32> to vector<8x512xf32>
    %c64 = arith.constant 64 : index
    %c0_21 = arith.constant 0 : index
    %31 = vector.load %arg15[%c64, %c0_21] : memref<512x512xf32, #tpu.memory_space<vmem>>, vector<8x512xf32>
    tpu.vector_store %arg15[%c64, %c0_21], %30 {strides = array<i32>} : memref<512x512xf32, #tpu.memory_space<vmem>>, vector<8x512xf32>,
    %32 = vector.extract_strided_slice %13 {offsets = [0, 13], sizes = [8, 512], strides = [1, 1]} : vector<8x768xf32> to vector<8x512xf32>
    %c72 = arith.constant 72 : index
    %c0_22 = arith.constant 0 : index
    %33 = vector.load %arg15[%c72, %c0_22] : memref<512x512xf32, #tpu.memory_space<vmem>>, vector<8x512xf32>
    tpu.vector_store %arg15[%c72, %c0_22], %32 {strides = array<i32>} : memref<512x512xf32, #tpu.memory_space<vmem>>, vector<8x512xf32>,
    %34 = vector.extract_strided_slice %13 {offsets = [0, 14], sizes = [8, 512], strides = [1, 1]} : vector<8x768xf32> to vector<8x512xf32>
    %c80 = arith.constant 80 : index
    %c0_23 = arith.constant 0 : index
    %35 = vector.load %arg15[%c80, %c0_23] : memref<512x512xf32, #tpu.memory_space<vmem>>, vector<8x512xf32>
    tpu.vector_store %arg15[%c80, %c0_23], %34 {strides = array<i32>} : memref<512x512xf32, #tpu.memory_space<vmem>>, vector<8x512xf32>,
    %36 = vector.extract_strided_slice %13 {offsets = [0, 15], sizes = [8, 512], strides = [1, 1]} : vector<8x768xf32> to vector<8x512xf32>
    %c88 = arith.constant 88 : index
    %c0_24 = arith.constant 0 : index
    %37 = vector.load %arg15[%c88, %c0_24] : memref<512x512xf32, #tpu.memory_space<vmem>>, vector<8x512xf32>
    tpu.vector_store %arg15[%c88, %c0_24], %36 {strides = array<i32>} : memref<512x512xf32, #tpu.memory_space<vmem>>, vector<8x512xf32>,
    %38 = vector.extract_strided_slice %13 {offsets = [0, 18], sizes = [8, 512], strides = [1, 1]} : vector<8x768xf32> to vector<8x512xf32>
    %c96 = arith.constant 96 : index
    %c0_25 = arith.constant 0 : index
    %39 = vector.load %arg15[%c96, %c0_25] : memref<512x512xf32, #tpu.memory_space<vmem>>, vector<8x512xf32>
    tpu.vector_store %arg15[%c96, %c0_25], %38 {strides = array<i32>} : memref<512x512xf32, #tpu.memory_space<vmem>>, vector<8x512xf32>,
    %40 = vector.extract_strided_slice %13 {offsets = [0, 19], sizes = [8, 512], strides = [1, 1]} : vector<8x768xf32> to vector<8x512xf32>
    %c104 = arith.constant 104 : index
    %c0_26 = arith.constant 0 : index
    %41 = vector.load %arg15[%c104, %c0_26] : memref<512x512xf32, #tpu.memory_space<vmem>>, vector<8x512xf32>
    tpu.vector_store %arg15[%c104, %c0_26], %40 {strides = array<i32>} : memref<512x512xf32, #tpu.memory_space<vmem>>, vector<8x512xf32>,
    %42 = vector.extract_strided_slice %13 {offsets = [0, 20], sizes = [8, 512], strides = [1, 1]} : vector<8x768xf32> to vector<8x512xf32>
    %c112 = arith.constant 112 : index
    %c0_27 = arith.constant 0 : index
    %43 = vector.load %arg15[%c112, %c0_27] : memref<512x512xf32, #tpu.memory_space<vmem>>, vector<8x512xf32>
    tpu.vector_store %arg15[%c112, %c0_27], %42 {strides = array<i32>} : memref<512x512xf32, #tpu.memory_space<vmem>>, vector<8x512xf32>,
    %44 = vector.extract_strided_slice %13 {offsets = [0, 21], sizes = [8, 512], strides = [1, 1]} : vector<8x768xf32> to vector<8x512xf32>
    %c120 = arith.constant 120 : index
    %c0_28 = arith.constant 0 : index
    %45 = vector.load %arg15[%c120, %c0_28] : memref<512x512xf32, #tpu.memory_space<vmem>>, vector<8x512xf32>
    tpu.vector_store %arg15[%c120, %c0_28], %44 {strides = array<i32>} : memref<512x512xf32, #tpu.memory_space<vmem>>, vector<8x512xf32>,
    %46 = vector.extract_strided_slice %13 {offsets = [0, 36], sizes = [8, 512], strides = [1, 1]} : vector<8x768xf32> to vector<8x512xf32>
    %c128 = arith.constant 128 : index
    %c0_29 = arith.constant 0 : index
    %47 = vector.load %arg15[%c128, %c0_29] : memref<512x512xf32, #tpu.memory_space<vmem>>, vector<8x512xf32>
    tpu.vector_store %arg15[%c128, %c0_29], %46 {strides = array<i32>} : memref<512x512xf32, #tpu.memory_space<vmem>>, vector<8x512xf32>,
    %48 = vector.extract_strided_slice %13 {offsets = [0, 37], sizes = [8, 512], strides = [1, 1]} : vector<8x768xf32> to vector<8x512xf32>
    %c136 = arith.constant 136 : index
    %c0_30 = arith.constant 0 : index
    %49 = vector.load %arg15[%c136, %c0_30] : memref<512x512xf32, #tpu.memory_space<vmem>>, vector<8x512xf32>
    tpu.vector_store %arg15[%c136, %c0_30], %48 {strides = array<i32>} : memref<512x512xf32, #tpu.memory_space<vmem>>, vector<8x512xf32>,
    %50 = vector.extract_strided_slice %13 {offsets = [0, 38], sizes = [8, 512], strides = [1, 1]} : vector<8x768xf32> to vector<8x512xf32>
    %c144 = arith.constant 144 : index
    %c0_31 = arith.constant 0 : index
    %51 = vector.load %arg15[%c144, %c0_31] : memref<512x512xf32, #tpu.memory_space<vmem>>, vector<8x512xf32>
    tpu.vector_store %arg15[%c144, %c0_31], %50 {strides = array<i32>} : memref<512x512xf32, #tpu.memory_space<vmem>>, vector<8x512xf32>,
    %52 = vector.extract_strided_slice %13 {offsets = [0, 39], sizes = [8, 512], strides = [1, 1]} : vector<8x768xf32> to vector<8x512xf32>
    %c152 = arith.constant 152 : index
    %c0_32 = arith.constant 0 : index
    %53 = vector.load %arg15[%c152, %c0_32] : memref<512x512xf32, #tpu.memory_space<vmem>>, vector<8x512xf32>
    tpu.vector_store %arg15[%c152, %c0_32], %52 {strides = array<i32>} : memref<512x512xf32, #tpu.memory_space<vmem>>, vector<8x512xf32>,
    %54 = vector.extract_strided_slice %13 {offsets = [0, 42], sizes = [8, 512], strides = [1, 1]} : vector<8x768xf32> to vector<8x512xf32>
    %c160 = arith.constant 160 : index
    %c0_33 = arith.constant 0 : index
    %55 = vector.load %arg15[%c160, %c0_33] : memref<512x512xf32, #tpu.memory_space<vmem>>, vector<8x512xf32>
    tpu.vector_store %arg15[%c160, %c0_33], %54 {strides = array<i32>} : memref<512x512xf32, #tpu.memory_space<vmem>>, vector<8x512xf32>,
    %56 = vector.extract_strided_slice %13 {offsets = [0, 43], sizes = [8, 512], strides = [1, 1]} : vector<8x768xf32> to vector<8x512xf32>
    %c168 = arith.constant 168 : index
    %c0_34 = arith.constant 0 : index
    %57 = vector.load %arg15[%c168, %c0_34] : memref<512x512xf32, #tpu.memory_space<vmem>>, vector<8x512xf32>
    tpu.vector_store %arg15[%c168, %c0_34], %56 {strides = array<i32>} : memref<512x512xf32, #tpu.memory_space<vmem>>, vector<8x512xf32>,
    %58 = vector.extract_strided_slice %13 {offsets = [0, 44], sizes = [8, 512], strides = [1, 1]} : vector<8x768xf32> to vector<8x512xf32>
    %c176 = arith.constant 176 : index
    %c0_35 = arith.constant 0 : index
    %59 = vector.load %arg15[%c176, %c0_35] : memref<512x512xf32, #tpu.memory_space<vmem>>, vector<8x512xf32>
    tpu.vector_store %arg15[%c176, %c0_35], %58 {strides = array<i32>} : memref<512x512xf32, #tpu.memory_space<vmem>>, vector<8x512xf32>,
    %60 = vector.extract_strided_slice %13 {offsets = [0, 45], sizes = [8, 512], strides = [1, 1]} : vector<8x768xf32> to vector<8x512xf32>
    %c184 = arith.constant 184 : index
    %c0_36 = arith.constant 0 : index
    %61 = vector.load %arg15[%c184, %c0_36] : memref<512x512xf32, #tpu.memory_space<vmem>>, vector<8x512xf32>
    tpu.vector_store %arg15[%c184, %c0_36], %60 {strides = array<i32>} : memref<512x512xf32, #tpu.memory_space<vmem>>, vector<8x512xf32>,
    %62 = vector.extract_strided_slice %13 {offsets = [0, 48], sizes = [8, 512], strides = [1, 1]} : vector<8x768xf32> to vector<8x512xf32>
    %c192 = arith.constant 192 : index
    %c0_37 = arith.constant 0 : index
    %63 = vector.load %arg15[%c192, %c0_37] : memref<512x512xf32, #tpu.memory_space<vmem>>, vector<8x512xf32>
    tpu.vector_store %arg15[%c192, %c0_37], %62 {strides = array<i32>} : memref<512x512xf32, #tpu.memory_space<vmem>>, vector<8x512xf32>,
    %64 = vector.extract_strided_slice %13 {offsets = [0, 49], sizes = [8, 512], strides = [1, 1]} : vector<8x768xf32> to vector<8x512xf32>
    %c200 = arith.constant 200 : index
    %c0_38 = arith.constant 0 : index
    %65 = vector.load %arg15[%c200, %c0_38] : memref<512x512xf32, #tpu.memory_space<vmem>>, vector<8x512xf32>
    tpu.vector_store %arg15[%c200, %c0_38], %64 {strides = array<i32>} : memref<512x512xf32, #tpu.memory_space<vmem>>, vector<8x512xf32>,
    %66 = vector.extract_strided_slice %13 {offsets = [0, 50], sizes = [8, 512], strides = [1, 1]} : vector<8x768xf32> to vector<8x512xf32>
    %c208 = arith.constant 208 : index
    %c0_39 = arith.constant 0 : index
    %67 = vector.load %arg15[%c208, %c0_39] : memref<512x512xf32, #tpu.memory_space<vmem>>, vector<8x512xf32>
    tpu.vector_store %arg15[%c208, %c0_39], %66 {strides = array<i32>} : memref<512x512xf32, #tpu.memory_space<vmem>>, vector<8x512xf32>,
    %68 = vector.extract_strided_slice %13 {offsets = [0, 51], sizes = [8, 512], strides = [1, 1]} : vector<8x768xf32> to vector<8x512xf32>
    %c216 = arith.constant 216 : index
    %c0_40 = arith.constant 0 : index
    %69 = vector.load %arg15[%c216, %c0_40] : memref<512x512xf32, #tpu.memory_space<vmem>>, vector<8x512xf32>
    tpu.vector_store %arg15[%c216, %c0_40], %68 {strides = array<i32>} : memref<512x512xf32, #tpu.memory_space<vmem>>, vector<8x512xf32>,
    %70 = vector.extract_strided_slice %13 {offsets = [0, 54], sizes = [8, 512], strides = [1, 1]} : vector<8x768xf32> to vector<8x512xf32>
    %c224 = arith.constant 224 : index
    %c0_41 = arith.constant 0 : index
    %71 = vector.load %arg15[%c224, %c0_41] : memref<512x512xf32, #tpu.memory_space<vmem>>, vector<8x512xf32>
    tpu.vector_store %arg15[%c224, %c0_41], %70 {strides = array<i32>} : memref<512x512xf32, #tpu.memory_space<vmem>>, vector<8x512xf32>,
    %72 = vector.extract_strided_slice %13 {offsets = [0, 55], sizes = [8, 512], strides = [1, 1]} : vector<8x768xf32> to vector<8x512xf32>
    %c232 = arith.constant 232 : index
    %c0_42 = arith.constant 0 : index
    %73 = vector.load %arg15[%c232, %c0_42] : memref<512x512xf32, #tpu.memory_space<vmem>>, vector<8x512xf32>
    tpu.vector_store %arg15[%c232, %c0_42], %72 {strides = array<i32>} : memref<512x512xf32, #tpu.memory_space<vmem>>, vector<8x512xf32>,
    %74 = vector.extract_strided_slice %13 {offsets = [0, 56], sizes = [8, 512], strides = [1, 1]} : vector<8x768xf32> to vector<8x512xf32>
    %c240 = arith.constant 240 : index
    %c0_43 = arith.constant 0 : index
    %75 = vector.load %arg15[%c240, %c0_43] : memref<512x512xf32, #tpu.memory_space<vmem>>, vector<8x512xf32>
    tpu.vector_store %arg15[%c240, %c0_43], %74 {strides = array<i32>} : memref<512x512xf32, #tpu.memory_space<vmem>>, vector<8x512xf32>,
    %76 = vector.extract_strided_slice %13 {offsets = [0, 57], sizes = [8, 512], strides = [1, 1]} : vector<8x768xf32> to vector<8x512xf32>
    %c248 = arith.constant 248 : index
    %c0_44 = arith.constant 0 : index
    %77 = vector.load %arg15[%c248, %c0_44] : memref<512x512xf32, #tpu.memory_space<vmem>>, vector<8x512xf32>
    tpu.vector_store %arg15[%c248, %c0_44], %76 {strides = array<i32>} : memref<512x512xf32, #tpu.memory_space<vmem>>, vector<8x512xf32>,
    %78 = vector.extract_strided_slice %13 {offsets = [0, 72], sizes = [8, 512], strides = [1, 1]} : vector<8x768xf32> to vector<8x512xf32>
    %c256 = arith.constant 256 : index
    %c0_45 = arith.constant 0 : index
    %79 = vector.load %arg15[%c256, %c0_45] : memref<512x512xf32, #tpu.memory_space<vmem>>, vector<8x512xf32>
    tpu.vector_store %arg15[%c256, %c0_45], %78 {strides = array<i32>} : memref<512x512xf32, #tpu.memory_space<vmem>>, vector<8x512xf32>,
    %80 = vector.extract_strided_slice %13 {offsets = [0, 73], sizes = [8, 512], strides = [1, 1]} : vector<8x768xf32> to vector<8x512xf32>
    %c264 = arith.constant 264 : index
    %c0_46 = arith.constant 0 : index
    %81 = vector.load %arg15[%c264, %c0_46] : memref<512x512xf32, #tpu.memory_space<vmem>>, vector<8x512xf32>
    tpu.vector_store %arg15[%c264, %c0_46], %80 {strides = array<i32>} : memref<512x512xf32, #tpu.memory_space<vmem>>, vector<8x512xf32>,
    %82 = vector.extract_strided_slice %13 {offsets = [0, 74], sizes = [8, 512], strides = [1, 1]} : vector<8x768xf32> to vector<8x512xf32>
    %c272 = arith.constant 272 : index
    %c0_47 = arith.constant 0 : index
    %83 = vector.load %arg15[%c272, %c0_47] : memref<512x512xf32, #tpu.memory_space<vmem>>, vector<8x512xf32>
    tpu.vector_store %arg15[%c272, %c0_47], %82 {strides = array<i32>} : memref<512x512xf32, #tpu.memory_space<vmem>>, vector<8x512xf32>,
    %84 = vector.extract_strided_slice %13 {offsets = [0, 75], sizes = [8, 512], strides = [1, 1]} : vector<8x768xf32> to vector<8x512xf32>
    %c280 = arith.constant 280 : index
    %c0_48 = arith.constant 0 : index
    %85 = vector.load %arg15[%c280, %c0_48] : memref<512x512xf32, #tpu.memory_space<vmem>>, vector<8x512xf32>
    tpu.vector_store %arg15[%c280, %c0_48], %84 {strides = array<i32>} : memref<512x512xf32, #tpu.memory_space<vmem>>, vector<8x512xf32>,
    %86 = vector.extract_strided_slice %13 {offsets = [0, 78], sizes = [8, 512], strides = [1, 1]} : vector<8x768xf32> to vector<8x512xf32>
    %c288 = arith.constant 288 : index
    %c0_49 = arith.constant 0 : index
    %87 = vector.load %arg15[%c288, %c0_49] : memref<512x512xf32, #tpu.memory_space<vmem>>, vector<8x512xf32>
    tpu.vector_store %arg15[%c288, %c0_49], %86 {strides = array<i32>} : memref<512x512xf32, #tpu.memory_space<vmem>>, vector<8x512xf32>,
    %88 = vector.extract_strided_slice %13 {offsets = [0, 79], sizes = [8, 512], strides = [1, 1]} : vector<8x768xf32> to vector<8x512xf32>
    %c296 = arith.constant 296 : index
    %c0_50 = arith.constant 0 : index
    %89 = vector.load %arg15[%c296, %c0_50] : memref<512x512xf32, #tpu.memory_space<vmem>>, vector<8x512xf32>
    tpu.vector_store %arg15[%c296, %c0_50], %88 {strides = array<i32>} : memref<512x512xf32, #tpu.memory_space<vmem>>, vector<8x512xf32>,
    %90 = vector.extract_strided_slice %13 {offsets = [0, 80], sizes = [8, 512], strides = [1, 1]} : vector<8x768xf32> to vector<8x512xf32>
    %c304 = arith.constant 304 : index
    %c0_51 = arith.constant 0 : index
    %91 = vector.load %arg15[%c304, %c0_51] : memref<512x512xf32, #tpu.memory_space<vmem>>, vector<8x512xf32>
    tpu.vector_store %arg15[%c304, %c0_51], %90 {strides = array<i32>} : memref<512x512xf32, #tpu.memory_space<vmem>>, vector<8x512xf32>,
    %92 = vector.extract_strided_slice %13 {offsets = [0, 81], sizes = [8, 512], strides = [1, 1]} : vector<8x768xf32> to vector<8x512xf32>
    %c312 = arith.constant 312 : index
    %c0_52 = arith.constant 0 : index
    %93 = vector.load %arg15[%c312, %c0_52] : memref<512x512xf32, #tpu.memory_space<vmem>>, vector<8x512xf32>
    tpu.vector_store %arg15[%c312, %c0_52], %92 {strides = array<i32>} : memref<512x512xf32, #tpu.memory_space<vmem>>, vector<8x512xf32>,
    %94 = vector.extract_strided_slice %13 {offsets = [0, 84], sizes = [8, 512], strides = [1, 1]} : vector<8x768xf32> to vector<8x512xf32>
    %c320 = arith.constant 320 : index
    %c0_53 = arith.constant 0 : index
    %95 = vector.load %arg15[%c320, %c0_53] : memref<512x512xf32, #tpu.memory_space<vmem>>, vector<8x512xf32>
    tpu.vector_store %arg15[%c320, %c0_53], %94 {strides = array<i32>} : memref<512x512xf32, #tpu.memory_space<vmem>>, vector<8x512xf32>,
    %96 = vector.extract_strided_slice %13 {offsets = [0, 85], sizes = [8, 512], strides = [1, 1]} : vector<8x768xf32> to vector<8x512xf32>
    %c328 = arith.constant 328 : index
    %c0_54 = arith.constant 0 : index
    %97 = vector.load %arg15[%c328, %c0_54] : memref<512x512xf32, #tpu.memory_space<vmem>>, vector<8x512xf32>
    tpu.vector_store %arg15[%c328, %c0_54], %96 {strides = array<i32>} : memref<512x512xf32, #tpu.memory_space<vmem>>, vector<8x512xf32>,
    %98 = vector.extract_strided_slice %13 {offsets = [0, 86], sizes = [8, 512], strides = [1, 1]} : vector<8x768xf32> to vector<8x512xf32>
    %c336 = arith.constant 336 : index
    %c0_55 = arith.constant 0 : index
    %99 = vector.load %arg15[%c336, %c0_55] : memref<512x512xf32, #tpu.memory_space<vmem>>, vector<8x512xf32>
    tpu.vector_store %arg15[%c336, %c0_55], %98 {strides = array<i32>} : memref<512x512xf32, #tpu.memory_space<vmem>>, vector<8x512xf32>,
    %100 = vector.extract_strided_slice %13 {offsets = [0, 87], sizes = [8, 512], strides = [1, 1]} : vector<8x768xf32> to vector<8x512xf32>
    %c344 = arith.constant 344 : index
    %c0_56 = arith.constant 0 : index
    %101 = vector.load %arg15[%c344, %c0_56] : memref<512x512xf32, #tpu.memory_space<vmem>>, vector<8x512xf32>
    tpu.vector_store %arg15[%c344, %c0_56], %100 {strides = array<i32>} : memref<512x512xf32, #tpu.memory_space<vmem>>, vector<8x512xf32>,
    %102 = vector.extract_strided_slice %13 {offsets = [0, 90], sizes = [8, 512], strides = [1, 1]} : vector<8x768xf32> to vector<8x512xf32>
    %c352 = arith.constant 352 : index
    %c0_57 = arith.constant 0 : index
    %103 = vector.load %arg15[%c352, %c0_57] : memref<512x512xf32, #tpu.memory_space<vmem>>, vector<8x512xf32>
    tpu.vector_store %arg15[%c352, %c0_57], %102 {strides = array<i32>} : memref<512x512xf32, #tpu.memory_space<vmem>>, vector<8x512xf32>,
    %104 = vector.extract_strided_slice %13 {offsets = [0, 91], sizes = [8, 512], strides = [1, 1]} : vector<8x768xf32> to vector<8x512xf32>
    %c360 = arith.constant 360 : index
    %c0_58 = arith.constant 0 : index
    %105 = vector.load %arg15[%c360, %c0_58] : memref<512x512xf32, #tpu.memory_space<vmem>>, vector<8x512xf32>
    tpu.vector_store %arg15[%c360, %c0_58], %104 {strides = array<i32>} : memref<512x512xf32, #tpu.memory_space<vmem>>, vector<8x512xf32>,
    %106 = vector.extract_strided_slice %13 {offsets = [0, 92], sizes = [8, 512], strides = [1, 1]} : vector<8x768xf32> to vector<8x512xf32>
    %c368 = arith.constant 368 : index
    %c0_59 = arith.constant 0 : index
    %107 = vector.load %arg15[%c368, %c0_59] : memref<512x512xf32, #tpu.memory_space<vmem>>, vector<8x512xf32>
    tpu.vector_store %arg15[%c368, %c0_59], %106 {strides = array<i32>} : memref<512x512xf32, #tpu.memory_space<vmem>>, vector<8x512xf32>,
    %108 = vector.extract_strided_slice %13 {offsets = [0, 93], sizes = [8, 512], strides = [1, 1]} : vector<8x768xf32> to vector<8x512xf32>
    %c376 = arith.constant 376 : index
    %c0_60 = arith.constant 0 : index
    %109 = vector.load %arg15[%c376, %c0_60] : memref<512x512xf32, #tpu.memory_space<vmem>>, vector<8x512xf32>
    tpu.vector_store %arg15[%c376, %c0_60], %108 {strides = array<i32>} : memref<512x512xf32, #tpu.memory_space<vmem>>, vector<8x512xf32>,
    %110 = vector.extract_strided_slice %13 {offsets = [0, 108], sizes = [8, 512], strides = [1, 1]} : vector<8x768xf32> to vector<8x512xf32>
    %c384 = arith.constant 384 : index
    %c0_61 = arith.constant 0 : index
    %111 = vector.load %arg15[%c384, %c0_61] : memref<512x512xf32, #tpu.memory_space<vmem>>, vector<8x512xf32>
    tpu.vector_store %arg15[%c384, %c0_61], %110 {strides = array<i32>} : memref<512x512xf32, #tpu.memory_space<vmem>>, vector<8x512xf32>,
    %112 = vector.extract_strided_slice %13 {offsets = [0, 109], sizes = [8, 512], strides = [1, 1]} : vector<8x768xf32> to vector<8x512xf32>
    %c392 = arith.constant 392 : index
    %c0_62 = arith.constant 0 : index
    %113 = vector.load %arg15[%c392, %c0_62] : memref<512x512xf32, #tpu.memory_space<vmem>>, vector<8x512xf32>
    tpu.vector_store %arg15[%c392, %c0_62], %112 {strides = array<i32>} : memref<512x512xf32, #tpu.memory_space<vmem>>, vector<8x512xf32>,
    %114 = vector.extract_strided_slice %13 {offsets = [0, 110], sizes = [8, 512], strides = [1, 1]} : vector<8x768xf32> to vector<8x512xf32>
    %c400 = arith.constant 400 : index
    %c0_63 = arith.constant 0 : index
    %115 = vector.load %arg15[%c400, %c0_63] : memref<512x512xf32, #tpu.memory_space<vmem>>, vector<8x512xf32>
    tpu.vector_store %arg15[%c400, %c0_63], %114 {strides = array<i32>} : memref<512x512xf32, #tpu.memory_space<vmem>>, vector<8x512xf32>,
    %116 = vector.extract_strided_slice %13 {offsets = [0, 111], sizes = [8, 512], strides = [1, 1]} : vector<8x768xf32> to vector<8x512xf32>
    %c408 = arith.constant 408 : index
    %c0_64 = arith.constant 0 : index
    %117 = vector.load %arg15[%c408, %c0_64] : memref<512x512xf32, #tpu.memory_space<vmem>>, vector<8x512xf32>
    tpu.vector_store %arg15[%c408, %c0_64], %116 {strides = array<i32>} : memref<512x512xf32, #tpu.memory_space<vmem>>, vector<8x512xf32>,
    %118 = vector.extract_strided_slice %13 {offsets = [0, 114], sizes = [8, 512], strides = [1, 1]} : vector<8x768xf32> to vector<8x512xf32>
    %c416 = arith.constant 416 : index
    %c0_65 = arith.constant 0 : index
    %119 = vector.load %arg15[%c416, %c0_65] : memref<512x512xf32, #tpu.memory_space<vmem>>, vector<8x512xf32>
    tpu.vector_store %arg15[%c416, %c0_65], %118 {strides = array<i32>} : memref<512x512xf32, #tpu.memory_space<vmem>>, vector<8x512xf32>,
    %120 = vector.extract_strided_slice %13 {offsets = [0, 115], sizes = [8, 512], strides = [1, 1]} : vector<8x768xf32> to vector<8x512xf32>
    %c424 = arith.constant 424 : index
    %c0_66 = arith.constant 0 : index
    %121 = vector.load %arg15[%c424, %c0_66] : memref<512x512xf32, #tpu.memory_space<vmem>>, vector<8x512xf32>
    tpu.vector_store %arg15[%c424, %c0_66], %120 {strides = array<i32>} : memref<512x512xf32, #tpu.memory_space<vmem>>, vector<8x512xf32>,
    %122 = vector.extract_strided_slice %13 {offsets = [0, 116], sizes = [8, 512], strides = [1, 1]} : vector<8x768xf32> to vector<8x512xf32>
    %c432 = arith.constant 432 : index
    %c0_67 = arith.constant 0 : index
    %123 = vector.load %arg15[%c432, %c0_67] : memref<512x512xf32, #tpu.memory_space<vmem>>, vector<8x512xf32>
    tpu.vector_store %arg15[%c432, %c0_67], %122 {strides = array<i32>} : memref<512x512xf32, #tpu.memory_space<vmem>>, vector<8x512xf32>,
    %124 = vector.extract_strided_slice %13 {offsets = [0, 117], sizes = [8, 512], strides = [1, 1]} : vector<8x768xf32> to vector<8x512xf32>
    %c440 = arith.constant 440 : index
    %c0_68 = arith.constant 0 : index
    %125 = vector.load %arg15[%c440, %c0_68] : memref<512x512xf32, #tpu.memory_space<vmem>>, vector<8x512xf32>
    tpu.vector_store %arg15[%c440, %c0_68], %124 {strides = array<i32>} : memref<512x512xf32, #tpu.memory_space<vmem>>, vector<8x512xf32>,
    %126 = vector.extract_strided_slice %13 {offsets = [0, 120], sizes = [8, 512], strides = [1, 1]} : vector<8x768xf32> to vector<8x512xf32>
    %c448 = arith.constant 448 : index
    %c0_69 = arith.constant 0 : index
    %127 = vector.load %arg15[%c448, %c0_69] : memref<512x512xf32, #tpu.memory_space<vmem>>, vector<8x512xf32>
    tpu.vector_store %arg15[%c448, %c0_69], %126 {strides = array<i32>} : memref<512x512xf32, #tpu.memory_space<vmem>>, vector<8x512xf32>,
    %128 = vector.extract_strided_slice %13 {offsets = [0, 121], sizes = [8, 512], strides = [1, 1]} : vector<8x768xf32> to vector<8x512xf32>
    %c456 = arith.constant 456 : index
    %c0_70 = arith.constant 0 : index
    %129 = vector.load %arg15[%c456, %c0_70] : memref<512x512xf32, #tpu.memory_space<vmem>>, vector<8x512xf32>
    tpu.vector_store %arg15[%c456, %c0_70], %128 {strides = array<i32>} : memref<512x512xf32, #tpu.memory_space<vmem>>, vector<8x512xf32>,
    %130 = vector.extract_strided_slice %13 {offsets = [0, 122], sizes = [8, 512], strides = [1, 1]} : vector<8x768xf32> to vector<8x512xf32>
    %c464 = arith.constant 464 : index
    %c0_71 = arith.constant 0 : index
    %131 = vector.load %arg15[%c464, %c0_71] : memref<512x512xf32, #tpu.memory_space<vmem>>, vector<8x512xf32>
    tpu.vector_store %arg15[%c464, %c0_71], %130 {strides = array<i32>} : memref<512x512xf32, #tpu.memory_space<vmem>>, vector<8x512xf32>,
    %132 = vector.extract_strided_slice %13 {offsets = [0, 123], sizes = [8, 512], strides = [1, 1]} : vector<8x768xf32> to vector<8x512xf32>
    %c472 = arith.constant 472 : index
    %c0_72 = arith.constant 0 : index
    %133 = vector.load %arg15[%c472, %c0_72] : memref<512x512xf32, #tpu.memory_space<vmem>>, vector<8x512xf32>
    tpu.vector_store %arg15[%c472, %c0_72], %132 {strides = array<i32>} : memref<512x512xf32, #tpu.memory_space<vmem>>, vector<8x512xf32>,
    %134 = vector.extract_strided_slice %13 {offsets = [0, 126], sizes = [8, 512], strides = [1, 1]} : vector<8x768xf32> to vector<8x512xf32>
    %c480 = arith.constant 480 : index
    %c0_73 = arith.constant 0 : index
    %135 = vector.load %arg15[%c480, %c0_73] : memref<512x512xf32, #tpu.memory_space<vmem>>, vector<8x512xf32>
    tpu.vector_store %arg15[%c480, %c0_73], %134 {strides = array<i32>} : memref<512x512xf32, #tpu.memory_space<vmem>>, vector<8x512xf32>,
    %136 = vector.extract_strided_slice %13 {offsets = [0, 127], sizes = [8, 512], strides = [1, 1]} : vector<8x768xf32> to vector<8x512xf32>
    %c488 = arith.constant 488 : index
    %c0_74 = arith.constant 0 : index
    %137 = vector.load %arg15[%c488, %c0_74] : memref<512x512xf32, #tpu.memory_space<vmem>>, vector<8x512xf32>
    tpu.vector_store %arg15[%c488, %c0_74], %136 {strides = array<i32>} : memref<512x512xf32, #tpu.memory_space<vmem>>, vector<8x512xf32>,
    %138 = vector.extract_strided_slice %13 {offsets = [0, 128], sizes = [8, 512], strides = [1, 1]} : vector<8x768xf32> to vector<8x512xf32>
    %c496 = arith.constant 496 : index
    %c0_75 = arith.constant 0 : index
    %139 = vector.load %arg15[%c496, %c0_75] : memref<512x512xf32, #tpu.memory_space<vmem>>, vector<8x512xf32>
    tpu.vector_store %arg15[%c496, %c0_75], %138 {strides = array<i32>} : memref<512x512xf32, #tpu.memory_space<vmem>>, vector<8x512xf32>,
    %140 = vector.extract_strided_slice %13 {offsets = [0, 129], sizes = [8, 512], strides = [1, 1]} : vector<8x768xf32> to vector<8x512xf32>
    %c504 = arith.constant 504 : index
    %c0_76 = arith.constant 0 : index
    %141 = vector.load %arg15[%c504, %c0_76] : memref<512x512xf32, #tpu.memory_space<vmem>>, vector<8x512xf32>
    tpu.vector_store %arg15[%c504, %c0_76], %140 {strides = array<i32>} : memref<512x512xf32, #tpu.memory_space<vmem>>, vector<8x512xf32>,
    %c0_77 = arith.constant 0 : index
    %c0_78 = arith.constant 0 : index
    %142 = vector.load %arg4[%c0_77, %c0_78] : memref<16x512xf32, #tpu.memory_space<vmem>>, vector<16x512xf32>
    %c0_79 = arith.constant 0 : index
    %c0_80 = arith.constant 0 : index
    %143 = vector.load %arg15[%c0_79, %c0_80] : memref<512x512xf32, #tpu.memory_space<vmem>>, vector<512x512xf32>
    %cst_81 = arith.constant dense<0.000000e+00> : vector<16x512xf32>
    %144 = tpu.matmul %142, %143, %cst_81 {dimension_numbers = #tpu.dot_dimension_numbers<[1], [0], [0], [1], [0, 0, 1, 1], [], []>} : vector<16x512xf32>, vector<512x512xf32>, vector<16x512xf32> -> vector<16x512xf32>
    %c0_82 = arith.constant 0 : index
    %c0_83 = arith.constant 0 : index
    %145 = vector.load %arg5[%c0_82, %c0_83] : memref<16x1xf32, #tpu.memory_space<vmem>>, vector<16x1xf32>
    %146 = vector.broadcast %145 : vector<16x1xf32> to vector<16x512xf32>
    %147 = arith.addf %144, %146 : vector<16x512xf32>
    %c0_84 = arith.constant 0 : index
    %c0_85 = arith.constant 0 : index
    %148 = vector.load %arg8[%c0_84, %c0_85] : memref<1x512xf32, #tpu.memory_space<vmem>>, vector<1x512xf32>
    %cst_86 = arith.constant 5.000000e-01 : f32
    %149 = vector.broadcast %cst_86 : f32 to vector<1x512xf32>
    %150 = arith.cmpf ogt, %148, %149 : vector<1x512xf32>
    %cst_87 = arith.constant 0.000000e+00 : f32
    %151 = vector.shape_cast %150 : vector<1x512xi1> to vector<1x512xi1>
    %152 = vector.broadcast %151 : vector<1x512xi1> to vector<16x512xi1>
    %153 = vector.broadcast %cst_87 : f32 to vector<16x512xf32>
    %154 = arith.select %152, %147, %153 : vector<16x512xi1>, vector<16x512xf32>
    %cst_88 = arith.constant dense<0.000000e+00> : vector<16xf32>
    %155 = vector.multi_reduction <add>, %154, %cst_88 [1] : vector<16x512xf32> to vector<16xf32>
    %156 = vector.shape_cast %155 : vector<16xf32> to vector<16x1xf32>
    %cst_89 = arith.constant 0.0185185187 : f32
    %157 = vector.broadcast %cst_89 : f32 to vector<16x1xf32>
    %158 = arith.mulf %156, %157 : vector<16x1xf32>
    %159 = vector.broadcast %158 : vector<16x1xf32> to vector<16x512xf32>
    %160 = arith.subf %147, %159 : vector<16x512xf32>
    %cst_90 = arith.constant 0.000000e+00 : f32
    %161 = vector.shape_cast %150 : vector<1x512xi1> to vector<1x512xi1>
    %162 = vector.broadcast %161 : vector<1x512xi1> to vector<16x512xi1>
    %163 = vector.broadcast %cst_90 : f32 to vector<16x512xf32>
    %164 = arith.select %162, %160, %163 : vector<16x512xi1>, vector<16x512xf32>
    %165 = arith.mulf %164, %164 : vector<16x512xf32>
    %cst_91 = arith.constant dense<0.000000e+00> : vector<16xf32>
    %166 = vector.multi_reduction <add>, %165, %cst_91 [1] : vector<16x512xf32> to vector<16xf32>
    %167 = vector.shape_cast %166 : vector<16xf32> to vector<16x1xf32>
    %cst_92 = arith.constant 0.0185185187 : f32
    %168 = vector.broadcast %cst_92 : f32 to vector<16x1xf32>
    %169 = arith.mulf %167, %168 : vector<16x1xf32>
    %cst_93 = arith.constant 9.99999974E-6 : f32
    %170 = vector.broadcast %cst_93 : f32 to vector<16x1xf32>
    %171 = arith.addf %169, %170 : vector<16x1xf32>
    %172 = math.rsqrt %171 : vector<16x1xf32>
    %173 = vector.broadcast %172 : vector<16x1xf32> to vector<16x512xf32>
    %174 = arith.mulf %160, %173 : vector<16x512xf32>
    %c0_94 = arith.constant 0 : index
    %c0_95 = arith.constant 0 : index
    %175 = vector.load %arg6[%c0_94, %c0_95] : memref<16x1xf32, #tpu.memory_space<vmem>>, vector<16x1xf32>
    %176 = vector.broadcast %175 : vector<16x1xf32> to vector<16x512xf32>
    %177 = arith.mulf %174, %176 : vector<16x512xf32>
    %c0_96 = arith.constant 0 : index
    %c0_97 = arith.constant 0 : index
    %178 = vector.load %arg7[%c0_96, %c0_97] : memref<16x1xf32, #tpu.memory_space<vmem>>, vector<16x1xf32>
    %179 = vector.broadcast %178 : vector<16x1xf32> to vector<16x512xf32>
    %180 = arith.addf %177, %179 : vector<16x512xf32>
    %cst_98 = arith.constant 0.000000e+00 : f32
    %181 = vector.broadcast %cst_98 : f32 to vector<16x512xf32>
    %182 = arith.cmpf oge, %180, %181 : vector<16x512xf32>
    %cst_99 = arith.constant 2.000000e-01 : f32
    %183 = vector.broadcast %cst_99 : f32 to vector<16x512xf32>
    %184 = arith.mulf %183, %180 : vector<16x512xf32>
    %185 = arith.select %182, %180, %184 : vector<16x512xi1>, vector<16x512xf32>
    %c0_100 = arith.constant 0 : index
    %c0_101 = arith.constant 0 : index
    %186 = vector.load %arg13[%c0_100, %c0_101] : memref<16x512xf32, #tpu.memory_space<vmem>>, vector<16x512xf32>
    tpu.vector_store %arg13[%c0_100, %c0_101], %185 {strides = array<i32>} : memref<16x512xf32, #tpu.memory_space<vmem>>, vector<16x512xf32>,
    %c0_102 = arith.constant 0 : index
    %c0_103 = arith.constant 0 : index
    %187 = vector.load %arg9[%c0_102, %c0_103] : memref<512x512xf32, #tpu.memory_space<vmem>>, vector<512x512xf32>
    %cst_104 = arith.constant dense<0.000000e+00> : vector<16x512xf32>
    %188 = tpu.matmul %185, %187, %cst_104 {dimension_numbers = #tpu.dot_dimension_numbers<[1], [0], [0], [1], [0, 0, 1, 1], [], []>} : vector<16x512xf32>, vector<512x512xf32>, vector<16x512xf32> -> vector<16x512xf32>
    %189 = vector.extract_strided_slice %188 {offsets = [0, 0], sizes = [16, 256], strides = [1, 1]} : vector<16x512xf32> to vector<16x256xf32>
    %c0_105 = arith.constant 0 : index
    %c0_106 = arith.constant 0 : index
    %190 = vector.load %arg16[%c0_105, %c0_106] : memref<1024x256xf32, #tpu.memory_space<vmem>>, vector<16x256xf32>
    tpu.vector_store %arg16[%c0_105, %c0_106], %189 {strides = array<i32>} : memref<1024x256xf32, #tpu.memory_space<vmem>>, vector<16x256xf32>,
    %191 = vector.extract_strided_slice %188 {offsets = [0, 1], sizes = [16, 256], strides = [1, 1]} : vector<16x512xf32> to vector<16x256xf32>
    %c16_107 = arith.constant 16 : index
    %c0_108 = arith.constant 0 : index
    %192 = vector.load %arg16[%c16_107, %c0_108] : memref<1024x256xf32, #tpu.memory_space<vmem>>, vector<16x256xf32>
    tpu.vector_store %arg16[%c16_107, %c0_108], %191 {strides = array<i32>} : memref<1024x256xf32, #tpu.memory_space<vmem>>, vector<16x256xf32>,
    %193 = vector.extract_strided_slice %188 {offsets = [0, 2], sizes = [16, 256], strides = [1, 1]} : vector<16x512xf32> to vector<16x256xf32>
    %c32_109 = arith.constant 32 : index
    %c0_110 = arith.constant 0 : index
    %194 = vector.load %arg16[%c32_109, %c0_110] : memref<1024x256xf32, #tpu.memory_space<vmem>>, vector<16x256xf32>
    tpu.vector_store %arg16[%c32_109, %c0_110], %193 {strides = array<i32>} : memref<1024x256xf32, #tpu.memory_space<vmem>>, vector<16x256xf32>,
    %195 = vector.extract_strided_slice %188 {offsets = [0, 3], sizes = [16, 256], strides = [1, 1]} : vector<16x512xf32> to vector<16x256xf32>
    %c48_111 = arith.constant 48 : index
    %c0_112 = arith.constant 0 : index
    %196 = vector.load %arg16[%c48_111, %c0_112] : memref<1024x256xf32, #tpu.memory_space<vmem>>, vector<16x256xf32>
    tpu.vector_store %arg16[%c48_111, %c0_112], %195 {strides = array<i32>} : memref<1024x256xf32, #tpu.memory_space<vmem>>, vector<16x256xf32>,
    %197 = vector.extract_strided_slice %188 {offsets = [0, 5], sizes = [16, 256], strides = [1, 1]} : vector<16x512xf32> to vector<16x256xf32>
    %c64_113 = arith.constant 64 : index
    %c0_114 = arith.constant 0 : index
    %198 = vector.load %arg16[%c64_113, %c0_114] : memref<1024x256xf32, #tpu.memory_space<vmem>>, vector<16x256xf32>
    tpu.vector_store %arg16[%c64_113, %c0_114], %197 {strides = array<i32>} : memref<1024x256xf32, #tpu.memory_space<vmem>>, vector<16x256xf32>,
    %199 = vector.extract_strided_slice %188 {offsets = [0, 6], sizes = [16, 256], strides = [1, 1]} : vector<16x512xf32> to vector<16x256xf32>
    %c80_115 = arith.constant 80 : index
    %c0_116 = arith.constant 0 : index
    %200 = vector.load %arg16[%c80_115, %c0_116] : memref<1024x256xf32, #tpu.memory_space<vmem>>, vector<16x256xf32>
    tpu.vector_store %arg16[%c80_115, %c0_116], %199 {strides = array<i32>} : memref<1024x256xf32, #tpu.memory_space<vmem>>, vector<16x256xf32>,
    %201 = vector.extract_strided_slice %188 {offsets = [0, 7], sizes = [16, 256], strides = [1, 1]} : vector<16x512xf32> to vector<16x256xf32>
    %c96_117 = arith.constant 96 : index
    %c0_118 = arith.constant 0 : index
    %202 = vector.load %arg16[%c96_117, %c0_118] : memref<1024x256xf32, #tpu.memory_space<vmem>>, vector<16x256xf32>
    tpu.vector_store %arg16[%c96_117, %c0_118], %201 {strides = array<i32>} : memref<1024x256xf32, #tpu.memory_space<vmem>>, vector<16x256xf32>,
    %203 = vector.extract_strided_slice %188 {offsets = [0, 8], sizes = [16, 256], strides = [1, 1]} : vector<16x512xf32> to vector<16x256xf32>
    %c112_119 = arith.constant 112 : index
    %c0_120 = arith.constant 0 : index
    %204 = vector.load %arg16[%c112_119, %c0_120] : memref<1024x256xf32, #tpu.memory_space<vmem>>, vector<16x256xf32>
    tpu.vector_store %arg16[%c112_119, %c0_120], %203 {strides = array<i32>} : memref<1024x256xf32, #tpu.memory_space<vmem>>, vector<16x256xf32>,
    %205 = vector.extract_strided_slice %188 {offsets = [0, 10], sizes = [16, 256], strides = [1, 1]} : vector<16x512xf32> to vector<16x256xf32>
    %c128_121 = arith.constant 128 : index
    %c0_122 = arith.constant 0 : index
    %206 = vector.load %arg16[%c128_121, %c0_122] : memref<1024x256xf32, #tpu.memory_space<vmem>>, vector<16x256xf32>
    tpu.vector_store %arg16[%c128_121, %c0_122], %205 {strides = array<i32>} : memref<1024x256xf32, #tpu.memory_space<vmem>>, vector<16x256xf32>,
    %207 = vector.extract_strided_slice %188 {offsets = [0, 11], sizes = [16, 256], strides = [1, 1]} : vector<16x512xf32> to vector<16x256xf32>
    %c144_123 = arith.constant 144 : index
    %c0_124 = arith.constant 0 : index
    %208 = vector.load %arg16[%c144_123, %c0_124] : memref<1024x256xf32, #tpu.memory_space<vmem>>, vector<16x256xf32>
    tpu.vector_store %arg16[%c144_123, %c0_124], %207 {strides = array<i32>} : memref<1024x256xf32, #tpu.memory_space<vmem>>, vector<16x256xf32>,
    %209 = vector.extract_strided_slice %188 {offsets = [0, 12], sizes = [16, 256], strides = [1, 1]} : vector<16x512xf32> to vector<16x256xf32>
    %c160_125 = arith.constant 160 : index
    %c0_126 = arith.constant 0 : index
    %210 = vector.load %arg16[%c160_125, %c0_126] : memref<1024x256xf32, #tpu.memory_space<vmem>>, vector<16x256xf32>
    tpu.vector_store %arg16[%c160_125, %c0_126], %209 {strides = array<i32>} : memref<1024x256xf32, #tpu.memory_space<vmem>>, vector<16x256xf32>,
    %211 = vector.extract_strided_slice %188 {offsets = [0, 13], sizes = [16, 256], strides = [1, 1]} : vector<16x512xf32> to vector<16x256xf32>
    %c176_127 = arith.constant 176 : index
    %c0_128 = arith.constant 0 : index
    %212 = vector.load %arg16[%c176_127, %c0_128] : memref<1024x256xf32, #tpu.memory_space<vmem>>, vector<16x256xf32>
    tpu.vector_store %arg16[%c176_127, %c0_128], %211 {strides = array<i32>} : memref<1024x256xf32, #tpu.memory_space<vmem>>, vector<16x256xf32>,
    %213 = vector.extract_strided_slice %188 {offsets = [0, 15], sizes = [16, 256], strides = [1, 1]} : vector<16x512xf32> to vector<16x256xf32>
    %c192_129 = arith.constant 192 : index
    %c0_130 = arith.constant 0 : index
    %214 = vector.load %arg16[%c192_129, %c0_130] : memref<1024x256xf32, #tpu.memory_space<vmem>>, vector<16x256xf32>
    tpu.vector_store %arg16[%c192_129, %c0_130], %213 {strides = array<i32>} : memref<1024x256xf32, #tpu.memory_space<vmem>>, vector<16x256xf32>,
    %215 = vector.extract_strided_slice %188 {offsets = [0, 16], sizes = [16, 256], strides = [1, 1]} : vector<16x512xf32> to vector<16x256xf32>
    %c208_131 = arith.constant 208 : index
    %c0_132 = arith.constant 0 : index
    %216 = vector.load %arg16[%c208_131, %c0_132] : memref<1024x256xf32, #tpu.memory_space<vmem>>, vector<16x256xf32>
    tpu.vector_store %arg16[%c208_131, %c0_132], %215 {strides = array<i32>} : memref<1024x256xf32, #tpu.memory_space<vmem>>, vector<16x256xf32>,
    %217 = vector.extract_strided_slice %188 {offsets = [0, 17], sizes = [16, 256], strides = [1, 1]} : vector<16x512xf32> to vector<16x256xf32>
    %c224_133 = arith.constant 224 : index
    %c0_134 = arith.constant 0 : index
    %218 = vector.load %arg16[%c224_133, %c0_134] : memref<1024x256xf32, #tpu.memory_space<vmem>>, vector<16x256xf32>
    tpu.vector_store %arg16[%c224_133, %c0_134], %217 {strides = array<i32>} : memref<1024x256xf32, #tpu.memory_space<vmem>>, vector<16x256xf32>,
    %219 = vector.extract_strided_slice %188 {offsets = [0, 18], sizes = [16, 256], strides = [1, 1]} : vector<16x512xf32> to vector<16x256xf32>
    %c240_135 = arith.constant 240 : index
    %c0_136 = arith.constant 0 : index
    %220 = vector.load %arg16[%c240_135, %c0_136] : memref<1024x256xf32, #tpu.memory_space<vmem>>, vector<16x256xf32>
    tpu.vector_store %arg16[%c240_135, %c0_136], %219 {strides = array<i32>} : memref<1024x256xf32, #tpu.memory_space<vmem>>, vector<16x256xf32>,
    %221 = vector.extract_strided_slice %188 {offsets = [0, 25], sizes = [16, 256], strides = [1, 1]} : vector<16x512xf32> to vector<16x256xf32>
    %c256_137 = arith.constant 256 : index
    %c0_138 = arith.constant 0 : index
    %222 = vector.load %arg16[%c256_137, %c0_138] : memref<1024x256xf32, #tpu.memory_space<vmem>>, vector<16x256xf32>
    tpu.vector_store %arg16[%c256_137, %c0_138], %221 {strides = array<i32>} : memref<1024x256xf32, #tpu.memory_space<vmem>>, vector<16x256xf32>,
    %223 = vector.extract_strided_slice %188 {offsets = [0, 26], sizes = [16, 256], strides = [1, 1]} : vector<16x512xf32> to vector<16x256xf32>
    %c272_139 = arith.constant 272 : index
    %c0_140 = arith.constant 0 : index
    %224 = vector.load %arg16[%c272_139, %c0_140] : memref<1024x256xf32, #tpu.memory_space<vmem>>, vector<16x256xf32>
    tpu.vector_store %arg16[%c272_139, %c0_140], %223 {strides = array<i32>} : memref<1024x256xf32, #tpu.memory_space<vmem>>, vector<16x256xf32>,
    %225 = vector.extract_strided_slice %188 {offsets = [0, 27], sizes = [16, 256], strides = [1, 1]} : vector<16x512xf32> to vector<16x256xf32>
    %c288_141 = arith.constant 288 : index
    %c0_142 = arith.constant 0 : index
    %226 = vector.load %arg16[%c288_141, %c0_142] : memref<1024x256xf32, #tpu.memory_space<vmem>>, vector<16x256xf32>
    tpu.vector_store %arg16[%c288_141, %c0_142], %225 {strides = array<i32>} : memref<1024x256xf32, #tpu.memory_space<vmem>>, vector<16x256xf32>,
    %227 = vector.extract_strided_slice %188 {offsets = [0, 28], sizes = [16, 256], strides = [1, 1]} : vector<16x512xf32> to vector<16x256xf32>
    %c304_143 = arith.constant 304 : index
    %c0_144 = arith.constant 0 : index
    %228 = vector.load %arg16[%c304_143, %c0_144] : memref<1024x256xf32, #tpu.memory_space<vmem>>, vector<16x256xf32>
    tpu.vector_store %arg16[%c304_143, %c0_144], %227 {strides = array<i32>} : memref<1024x256xf32, #tpu.memory_space<vmem>>, vector<16x256xf32>,
    %229 = vector.extract_strided_slice %188 {offsets = [0, 30], sizes = [16, 256], strides = [1, 1]} : vector<16x512xf32> to vector<16x256xf32>
    %c320_145 = arith.constant 320 : index
    %c0_146 = arith.constant 0 : index
    %230 = vector.load %arg16[%c320_145, %c0_146] : memref<1024x256xf32, #tpu.memory_space<vmem>>, vector<16x256xf32>
    tpu.vector_store %arg16[%c320_145, %c0_146], %229 {strides = array<i32>} : memref<1024x256xf32, #tpu.memory_space<vmem>>, vector<16x256xf32>,
    %231 = vector.extract_strided_slice %188 {offsets = [0, 31], sizes = [16, 256], strides = [1, 1]} : vector<16x512xf32> to vector<16x256xf32>
    %c336_147 = arith.constant 336 : index
    %c0_148 = arith.constant 0 : index
    %232 = vector.load %arg16[%c336_147, %c0_148] : memref<1024x256xf32, #tpu.memory_space<vmem>>, vector<16x256xf32>
    tpu.vector_store %arg16[%c336_147, %c0_148], %231 {strides = array<i32>} : memref<1024x256xf32, #tpu.memory_space<vmem>>, vector<16x256xf32>,
    %233 = vector.extract_strided_slice %188 {offsets = [0, 32], sizes = [16, 256], strides = [1, 1]} : vector<16x512xf32> to vector<16x256xf32>
    %c352_149 = arith.constant 352 : index
    %c0_150 = arith.constant 0 : index
    %234 = vector.load %arg16[%c352_149, %c0_150] : memref<1024x256xf32, #tpu.memory_space<vmem>>, vector<16x256xf32>
    tpu.vector_store %arg16[%c352_149, %c0_150], %233 {strides = array<i32>} : memref<1024x256xf32, #tpu.memory_space<vmem>>, vector<16x256xf32>,
    %235 = vector.extract_strided_slice %188 {offsets = [0, 33], sizes = [16, 256], strides = [1, 1]} : vector<16x512xf32> to vector<16x256xf32>
    %c368_151 = arith.constant 368 : index
    %c0_152 = arith.constant 0 : index
    %236 = vector.load %arg16[%c368_151, %c0_152] : memref<1024x256xf32, #tpu.memory_space<vmem>>, vector<16x256xf32>
    tpu.vector_store %arg16[%c368_151, %c0_152], %235 {strides = array<i32>} : memref<1024x256xf32, #tpu.memory_space<vmem>>, vector<16x256xf32>,
    %237 = vector.extract_strided_slice %188 {offsets = [0, 35], sizes = [16, 256], strides = [1, 1]} : vector<16x512xf32> to vector<16x256xf32>
    %c384_153 = arith.constant 384 : index
    %c0_154 = arith.constant 0 : index
    %238 = vector.load %arg16[%c384_153, %c0_154] : memref<1024x256xf32, #tpu.memory_space<vmem>>, vector<16x256xf32>
    tpu.vector_store %arg16[%c384_153, %c0_154], %237 {strides = array<i32>} : memref<1024x256xf32, #tpu.memory_space<vmem>>, vector<16x256xf32>,
    %239 = vector.extract_strided_slice %188 {offsets = [0, 36], sizes = [16, 256], strides = [1, 1]} : vector<16x512xf32> to vector<16x256xf32>
    %c400_155 = arith.constant 400 : index
    %c0_156 = arith.constant 0 : index
    %240 = vector.load %arg16[%c400_155, %c0_156] : memref<1024x256xf32, #tpu.memory_space<vmem>>, vector<16x256xf32>
    tpu.vector_store %arg16[%c400_155, %c0_156], %239 {strides = array<i32>} : memref<1024x256xf32, #tpu.memory_space<vmem>>, vector<16x256xf32>,
    %241 = vector.extract_strided_slice %188 {offsets = [0, 37], sizes = [16, 256], strides = [1, 1]} : vector<16x512xf32> to vector<16x256xf32>
    %c416_157 = arith.constant 416 : index
    %c0_158 = arith.constant 0 : index
    %242 = vector.load %arg16[%c416_157, %c0_158] : memref<1024x256xf32, #tpu.memory_space<vmem>>, vector<16x256xf32>
    tpu.vector_store %arg16[%c416_157, %c0_158], %241 {strides = array<i32>} : memref<1024x256xf32, #tpu.memory_space<vmem>>, vector<16x256xf32>,
    %243 = vector.extract_strided_slice %188 {offsets = [0, 38], sizes = [16, 256], strides = [1, 1]} : vector<16x512xf32> to vector<16x256xf32>
    %c432_159 = arith.constant 432 : index
    %c0_160 = arith.constant 0 : index
    %244 = vector.load %arg16[%c432_159, %c0_160] : memref<1024x256xf32, #tpu.memory_space<vmem>>, vector<16x256xf32>
    tpu.vector_store %arg16[%c432_159, %c0_160], %243 {strides = array<i32>} : memref<1024x256xf32, #tpu.memory_space<vmem>>, vector<16x256xf32>,
    %245 = vector.extract_strided_slice %188 {offsets = [0, 40], sizes = [16, 256], strides = [1, 1]} : vector<16x512xf32> to vector<16x256xf32>
    %c448_161 = arith.constant 448 : index
    %c0_162 = arith.constant 0 : index
    %246 = vector.load %arg16[%c448_161, %c0_162] : memref<1024x256xf32, #tpu.memory_space<vmem>>, vector<16x256xf32>
    tpu.vector_store %arg16[%c448_161, %c0_162], %245 {strides = array<i32>} : memref<1024x256xf32, #tpu.memory_space<vmem>>, vector<16x256xf32>,
    %247 = vector.extract_strided_slice %188 {offsets = [0, 41], sizes = [16, 256], strides = [1, 1]} : vector<16x512xf32> to vector<16x256xf32>
    %c464_163 = arith.constant 464 : index
    %c0_164 = arith.constant 0 : index
    %248 = vector.load %arg16[%c464_163, %c0_164] : memref<1024x256xf32, #tpu.memory_space<vmem>>, vector<16x256xf32>
    tpu.vector_store %arg16[%c464_163, %c0_164], %247 {strides = array<i32>} : memref<1024x256xf32, #tpu.memory_space<vmem>>, vector<16x256xf32>,
    %249 = vector.extract_strided_slice %188 {offsets = [0, 42], sizes = [16, 256], strides = [1, 1]} : vector<16x512xf32> to vector<16x256xf32>
    %c480_165 = arith.constant 480 : index
    %c0_166 = arith.constant 0 : index
    %250 = vector.load %arg16[%c480_165, %c0_166] : memref<1024x256xf32, #tpu.memory_space<vmem>>, vector<16x256xf32>
    tpu.vector_store %arg16[%c480_165, %c0_166], %249 {strides = array<i32>} : memref<1024x256xf32, #tpu.memory_space<vmem>>, vector<16x256xf32>,
    %251 = vector.extract_strided_slice %188 {offsets = [0, 43], sizes = [16, 256], strides = [1, 1]} : vector<16x512xf32> to vector<16x256xf32>
    %c496_167 = arith.constant 496 : index
    %c0_168 = arith.constant 0 : index
    %252 = vector.load %arg16[%c496_167, %c0_168] : memref<1024x256xf32, #tpu.memory_space<vmem>>, vector<16x256xf32>
    tpu.vector_store %arg16[%c496_167, %c0_168], %251 {strides = array<i32>} : memref<1024x256xf32, #tpu.memory_space<vmem>>, vector<16x256xf32>,
    %253 = vector.extract_strided_slice %188 {offsets = [0, 50], sizes = [16, 256], strides = [1, 1]} : vector<16x512xf32> to vector<16x256xf32>
    %c512 = arith.constant 512 : index
    %c0_169 = arith.constant 0 : index
    %254 = vector.load %arg16[%c512, %c0_169] : memref<1024x256xf32, #tpu.memory_space<vmem>>, vector<16x256xf32>
    tpu.vector_store %arg16[%c512, %c0_169], %253 {strides = array<i32>} : memref<1024x256xf32, #tpu.memory_space<vmem>>, vector<16x256xf32>,
    %255 = vector.extract_strided_slice %188 {offsets = [0, 51], sizes = [16, 256], strides = [1, 1]} : vector<16x512xf32> to vector<16x256xf32>
    %c528 = arith.constant 528 : index
    %c0_170 = arith.constant 0 : index
    %256 = vector.load %arg16[%c528, %c0_170] : memref<1024x256xf32, #tpu.memory_space<vmem>>, vector<16x256xf32>
    tpu.vector_store %arg16[%c528, %c0_170], %255 {strides = array<i32>} : memref<1024x256xf32, #tpu.memory_space<vmem>>, vector<16x256xf32>,
    %257 = vector.extract_strided_slice %188 {offsets = [0, 52], sizes = [16, 256], strides = [1, 1]} : vector<16x512xf32> to vector<16x256xf32>
    %c544 = arith.constant 544 : index
    %c0_171 = arith.constant 0 : index
    %258 = vector.load %arg16[%c544, %c0_171] : memref<1024x256xf32, #tpu.memory_space<vmem>>, vector<16x256xf32>
    tpu.vector_store %arg16[%c544, %c0_171], %257 {strides = array<i32>} : memref<1024x256xf32, #tpu.memory_space<vmem>>, vector<16x256xf32>,
    %259 = vector.extract_strided_slice %188 {offsets = [0, 53], sizes = [16, 256], strides = [1, 1]} : vector<16x512xf32> to vector<16x256xf32>
    %c560 = arith.constant 560 : index
    %c0_172 = arith.constant 0 : index
    %260 = vector.load %arg16[%c560, %c0_172] : memref<1024x256xf32, #tpu.memory_space<vmem>>, vector<16x256xf32>
    tpu.vector_store %arg16[%c560, %c0_172], %259 {strides = array<i32>} : memref<1024x256xf32, #tpu.memory_space<vmem>>, vector<16x256xf32>,
    %261 = vector.extract_strided_slice %188 {offsets = [0, 55], sizes = [16, 256], strides = [1, 1]} : vector<16x512xf32> to vector<16x256xf32>
    %c576 = arith.constant 576 : index
    %c0_173 = arith.constant 0 : index
    %262 = vector.load %arg16[%c576, %c0_173] : memref<1024x256xf32, #tpu.memory_space<vmem>>, vector<16x256xf32>
    tpu.vector_store %arg16[%c576, %c0_173], %261 {strides = array<i32>} : memref<1024x256xf32, #tpu.memory_space<vmem>>, vector<16x256xf32>,
    %263 = vector.extract_strided_slice %188 {offsets = [0, 56], sizes = [16, 256], strides = [1, 1]} : vector<16x512xf32> to vector<16x256xf32>
    %c592 = arith.constant 592 : index
    %c0_174 = arith.constant 0 : index
    %264 = vector.load %arg16[%c592, %c0_174] : memref<1024x256xf32, #tpu.memory_space<vmem>>, vector<16x256xf32>
    tpu.vector_store %arg16[%c592, %c0_174], %263 {strides = array<i32>} : memref<1024x256xf32, #tpu.memory_space<vmem>>, vector<16x256xf32>,
    %265 = vector.extract_strided_slice %188 {offsets = [0, 57], sizes = [16, 256], strides = [1, 1]} : vector<16x512xf32> to vector<16x256xf32>
    %c608 = arith.constant 608 : index
    %c0_175 = arith.constant 0 : index
    %266 = vector.load %arg16[%c608, %c0_175] : memref<1024x256xf32, #tpu.memory_space<vmem>>, vector<16x256xf32>
    tpu.vector_store %arg16[%c608, %c0_175], %265 {strides = array<i32>} : memref<1024x256xf32, #tpu.memory_space<vmem>>, vector<16x256xf32>,
    %267 = vector.extract_strided_slice %188 {offsets = [0, 58], sizes = [16, 256], strides = [1, 1]} : vector<16x512xf32> to vector<16x256xf32>
    %c624 = arith.constant 624 : index
    %c0_176 = arith.constant 0 : index
    %268 = vector.load %arg16[%c624, %c0_176] : memref<1024x256xf32, #tpu.memory_space<vmem>>, vector<16x256xf32>
    tpu.vector_store %arg16[%c624, %c0_176], %267 {strides = array<i32>} : memref<1024x256xf32, #tpu.memory_space<vmem>>, vector<16x256xf32>,
    %269 = vector.extract_strided_slice %188 {offsets = [0, 60], sizes = [16, 256], strides = [1, 1]} : vector<16x512xf32> to vector<16x256xf32>
    %c640 = arith.constant 640 : index
    %c0_177 = arith.constant 0 : index
    %270 = vector.load %arg16[%c640, %c0_177] : memref<1024x256xf32, #tpu.memory_space<vmem>>, vector<16x256xf32>
    tpu.vector_store %arg16[%c640, %c0_177], %269 {strides = array<i32>} : memref<1024x256xf32, #tpu.memory_space<vmem>>, vector<16x256xf32>,
    %271 = vector.extract_strided_slice %188 {offsets = [0, 61], sizes = [16, 256], strides = [1, 1]} : vector<16x512xf32> to vector<16x256xf32>
    %c656 = arith.constant 656 : index
    %c0_178 = arith.constant 0 : index
    %272 = vector.load %arg16[%c656, %c0_178] : memref<1024x256xf32, #tpu.memory_space<vmem>>, vector<16x256xf32>
    tpu.vector_store %arg16[%c656, %c0_178], %271 {strides = array<i32>} : memref<1024x256xf32, #tpu.memory_space<vmem>>, vector<16x256xf32>,
    %273 = vector.extract_strided_slice %188 {offsets = [0, 62], sizes = [16, 256], strides = [1, 1]} : vector<16x512xf32> to vector<16x256xf32>
    %c672 = arith.constant 672 : index
    %c0_179 = arith.constant 0 : index
    %274 = vector.load %arg16[%c672, %c0_179] : memref<1024x256xf32, #tpu.memory_space<vmem>>, vector<16x256xf32>
    tpu.vector_store %arg16[%c672, %c0_179], %273 {strides = array<i32>} : memref<1024x256xf32, #tpu.memory_space<vmem>>, vector<16x256xf32>,
    %275 = vector.extract_strided_slice %188 {offsets = [0, 63], sizes = [16, 256], strides = [1, 1]} : vector<16x512xf32> to vector<16x256xf32>
    %c688 = arith.constant 688 : index
    %c0_180 = arith.constant 0 : index
    %276 = vector.load %arg16[%c688, %c0_180] : memref<1024x256xf32, #tpu.memory_space<vmem>>, vector<16x256xf32>
    tpu.vector_store %arg16[%c688, %c0_180], %275 {strides = array<i32>} : memref<1024x256xf32, #tpu.memory_space<vmem>>, vector<16x256xf32>,
    %277 = vector.extract_strided_slice %188 {offsets = [0, 65], sizes = [16, 256], strides = [1, 1]} : vector<16x512xf32> to vector<16x256xf32>
    %c704 = arith.constant 704 : index
    %c0_181 = arith.constant 0 : index
    %278 = vector.load %arg16[%c704, %c0_181] : memref<1024x256xf32, #tpu.memory_space<vmem>>, vector<16x256xf32>
    tpu.vector_store %arg16[%c704, %c0_181], %277 {strides = array<i32>} : memref<1024x256xf32, #tpu.memory_space<vmem>>, vector<16x256xf32>,
    %279 = vector.extract_strided_slice %188 {offsets = [0, 66], sizes = [16, 256], strides = [1, 1]} : vector<16x512xf32> to vector<16x256xf32>
    %c720 = arith.constant 720 : index
    %c0_182 = arith.constant 0 : index
    %280 = vector.load %arg16[%c720, %c0_182] : memref<1024x256xf32, #tpu.memory_space<vmem>>, vector<16x256xf32>
    tpu.vector_store %arg16[%c720, %c0_182], %279 {strides = array<i32>} : memref<1024x256xf32, #tpu.memory_space<vmem>>, vector<16x256xf32>,
    %281 = vector.extract_strided_slice %188 {offsets = [0, 67], sizes = [16, 256], strides = [1, 1]} : vector<16x512xf32> to vector<16x256xf32>
    %c736 = arith.constant 736 : index
    %c0_183 = arith.constant 0 : index
    %282 = vector.load %arg16[%c736, %c0_183] : memref<1024x256xf32, #tpu.memory_space<vmem>>, vector<16x256xf32>
    tpu.vector_store %arg16[%c736, %c0_183], %281 {strides = array<i32>} : memref<1024x256xf32, #tpu.memory_space<vmem>>, vector<16x256xf32>,
    %283 = vector.extract_strided_slice %188 {offsets = [0, 68], sizes = [16, 256], strides = [1, 1]} : vector<16x512xf32> to vector<16x256xf32>
    %c752 = arith.constant 752 : index
    %c0_184 = arith.constant 0 : index
    %284 = vector.load %arg16[%c752, %c0_184] : memref<1024x256xf32, #tpu.memory_space<vmem>>, vector<16x256xf32>
    tpu.vector_store %arg16[%c752, %c0_184], %283 {strides = array<i32>} : memref<1024x256xf32, #tpu.memory_space<vmem>>, vector<16x256xf32>,
    %285 = vector.extract_strided_slice %188 {offsets = [0, 75], sizes = [16, 256], strides = [1, 1]} : vector<16x512xf32> to vector<16x256xf32>
    %c768 = arith.constant 768 : index
    %c0_185 = arith.constant 0 : index
    %286 = vector.load %arg16[%c768, %c0_185] : memref<1024x256xf32, #tpu.memory_space<vmem>>, vector<16x256xf32>
    tpu.vector_store %arg16[%c768, %c0_185], %285 {strides = array<i32>} : memref<1024x256xf32, #tpu.memory_space<vmem>>, vector<16x256xf32>,
    %287 = vector.extract_strided_slice %188 {offsets = [0, 76], sizes = [16, 256], strides = [1, 1]} : vector<16x512xf32> to vector<16x256xf32>
    %c784 = arith.constant 784 : index
    %c0_186 = arith.constant 0 : index
    %288 = vector.load %arg16[%c784, %c0_186] : memref<1024x256xf32, #tpu.memory_space<vmem>>, vector<16x256xf32>
    tpu.vector_store %arg16[%c784, %c0_186], %287 {strides = array<i32>} : memref<1024x256xf32, #tpu.memory_space<vmem>>, vector<16x256xf32>,
    %289 = vector.extract_strided_slice %188 {offsets = [0, 77], sizes = [16, 256], strides = [1, 1]} : vector<16x512xf32> to vector<16x256xf32>
    %c800 = arith.constant 800 : index
    %c0_187 = arith.constant 0 : index
    %290 = vector.load %arg16[%c800, %c0_187] : memref<1024x256xf32, #tpu.memory_space<vmem>>, vector<16x256xf32>
    tpu.vector_store %arg16[%c800, %c0_187], %289 {strides = array<i32>} : memref<1024x256xf32, #tpu.memory_space<vmem>>, vector<16x256xf32>,
    %291 = vector.extract_strided_slice %188 {offsets = [0, 78], sizes = [16, 256], strides = [1, 1]} : vector<16x512xf32> to vector<16x256xf32>
    %c816 = arith.constant 816 : index
    %c0_188 = arith.constant 0 : index
    %292 = vector.load %arg16[%c816, %c0_188] : memref<1024x256xf32, #tpu.memory_space<vmem>>, vector<16x256xf32>
    tpu.vector_store %arg16[%c816, %c0_188], %291 {strides = array<i32>} : memref<1024x256xf32, #tpu.memory_space<vmem>>, vector<16x256xf32>,
    %293 = vector.extract_strided_slice %188 {offsets = [0, 80], sizes = [16, 256], strides = [1, 1]} : vector<16x512xf32> to vector<16x256xf32>
    %c832 = arith.constant 832 : index
    %c0_189 = arith.constant 0 : index
    %294 = vector.load %arg16[%c832, %c0_189] : memref<1024x256xf32, #tpu.memory_space<vmem>>, vector<16x256xf32>
    tpu.vector_store %arg16[%c832, %c0_189], %293 {strides = array<i32>} : memref<1024x256xf32, #tpu.memory_space<vmem>>, vector<16x256xf32>,
    %295 = vector.extract_strided_slice %188 {offsets = [0, 81], sizes = [16, 256], strides = [1, 1]} : vector<16x512xf32> to vector<16x256xf32>
    %c848 = arith.constant 848 : index
    %c0_190 = arith.constant 0 : index
    %296 = vector.load %arg16[%c848, %c0_190] : memref<1024x256xf32, #tpu.memory_space<vmem>>, vector<16x256xf32>
    tpu.vector_store %arg16[%c848, %c0_190], %295 {strides = array<i32>} : memref<1024x256xf32, #tpu.memory_space<vmem>>, vector<16x256xf32>,
    %297 = vector.extract_strided_slice %188 {offsets = [0, 82], sizes = [16, 256], strides = [1, 1]} : vector<16x512xf32> to vector<16x256xf32>
    %c864 = arith.constant 864 : index
    %c0_191 = arith.constant 0 : index
    %298 = vector.load %arg16[%c864, %c0_191] : memref<1024x256xf32, #tpu.memory_space<vmem>>, vector<16x256xf32>
    tpu.vector_store %arg16[%c864, %c0_191], %297 {strides = array<i32>} : memref<1024x256xf32, #tpu.memory_space<vmem>>, vector<16x256xf32>,
    %299 = vector.extract_strided_slice %188 {offsets = [0, 83], sizes = [16, 256], strides = [1, 1]} : vector<16x512xf32> to vector<16x256xf32>
    %c880 = arith.constant 880 : index
    %c0_192 = arith.constant 0 : index
    %300 = vector.load %arg16[%c880, %c0_192] : memref<1024x256xf32, #tpu.memory_space<vmem>>, vector<16x256xf32>
    tpu.vector_store %arg16[%c880, %c0_192], %299 {strides = array<i32>} : memref<1024x256xf32, #tpu.memory_space<vmem>>, vector<16x256xf32>,
    %301 = vector.extract_strided_slice %188 {offsets = [0, 85], sizes = [16, 256], strides = [1, 1]} : vector<16x512xf32> to vector<16x256xf32>
    %c896 = arith.constant 896 : index
    %c0_193 = arith.constant 0 : index
    %302 = vector.load %arg16[%c896, %c0_193] : memref<1024x256xf32, #tpu.memory_space<vmem>>, vector<16x256xf32>
    tpu.vector_store %arg16[%c896, %c0_193], %301 {strides = array<i32>} : memref<1024x256xf32, #tpu.memory_space<vmem>>, vector<16x256xf32>,
    %303 = vector.extract_strided_slice %188 {offsets = [0, 86], sizes = [16, 256], strides = [1, 1]} : vector<16x512xf32> to vector<16x256xf32>
    %c912 = arith.constant 912 : index
    %c0_194 = arith.constant 0 : index
    %304 = vector.load %arg16[%c912, %c0_194] : memref<1024x256xf32, #tpu.memory_space<vmem>>, vector<16x256xf32>
    tpu.vector_store %arg16[%c912, %c0_194], %303 {strides = array<i32>} : memref<1024x256xf32, #tpu.memory_space<vmem>>, vector<16x256xf32>,
    %305 = vector.extract_strided_slice %188 {offsets = [0, 87], sizes = [16, 256], strides = [1, 1]} : vector<16x512xf32> to vector<16x256xf32>
    %c928 = arith.constant 928 : index
    %c0_195 = arith.constant 0 : index
    %306 = vector.load %arg16[%c928, %c0_195] : memref<1024x256xf32, #tpu.memory_space<vmem>>, vector<16x256xf32>
    tpu.vector_store %arg16[%c928, %c0_195], %305 {strides = array<i32>} : memref<1024x256xf32, #tpu.memory_space<vmem>>, vector<16x256xf32>,
    %307 = vector.extract_strided_slice %188 {offsets = [0, 88], sizes = [16, 256], strides = [1, 1]} : vector<16x512xf32> to vector<16x256xf32>
    %c944 = arith.constant 944 : index
    %c0_196 = arith.constant 0 : index
    %308 = vector.load %arg16[%c944, %c0_196] : memref<1024x256xf32, #tpu.memory_space<vmem>>, vector<16x256xf32>
    tpu.vector_store %arg16[%c944, %c0_196], %307 {strides = array<i32>} : memref<1024x256xf32, #tpu.memory_space<vmem>>, vector<16x256xf32>,
    %309 = vector.extract_strided_slice %188 {offsets = [0, 90], sizes = [16, 256], strides = [1, 1]} : vector<16x512xf32> to vector<16x256xf32>
    %c960 = arith.constant 960 : index
    %c0_197 = arith.constant 0 : index
    %310 = vector.load %arg16[%c960, %c0_197] : memref<1024x256xf32, #tpu.memory_space<vmem>>, vector<16x256xf32>
    tpu.vector_store %arg16[%c960, %c0_197], %309 {strides = array<i32>} : memref<1024x256xf32, #tpu.memory_space<vmem>>, vector<16x256xf32>,
    %311 = vector.extract_strided_slice %188 {offsets = [0, 91], sizes = [16, 256], strides = [1, 1]} : vector<16x512xf32> to vector<16x256xf32>
    %c976 = arith.constant 976 : index
    %c0_198 = arith.constant 0 : index
    %312 = vector.load %arg16[%c976, %c0_198] : memref<1024x256xf32, #tpu.memory_space<vmem>>, vector<16x256xf32>
    tpu.vector_store %arg16[%c976, %c0_198], %311 {strides = array<i32>} : memref<1024x256xf32, #tpu.memory_space<vmem>>, vector<16x256xf32>,
    %313 = vector.extract_strided_slice %188 {offsets = [0, 92], sizes = [16, 256], strides = [1, 1]} : vector<16x512xf32> to vector<16x256xf32>
    %c992 = arith.constant 992 : index
    %c0_199 = arith.constant 0 : index
    %314 = vector.load %arg16[%c992, %c0_199] : memref<1024x256xf32, #tpu.memory_space<vmem>>, vector<16x256xf32>
    tpu.vector_store %arg16[%c992, %c0_199], %313 {strides = array<i32>} : memref<1024x256xf32, #tpu.memory_space<vmem>>, vector<16x256xf32>,
    %315 = vector.extract_strided_slice %188 {offsets = [0, 93], sizes = [16, 256], strides = [1, 1]} : vector<16x512xf32> to vector<16x256xf32>
    %c1008 = arith.constant 1008 : index
    %c0_200 = arith.constant 0 : index
    %316 = vector.load %arg16[%c1008, %c0_200] : memref<1024x256xf32, #tpu.memory_space<vmem>>, vector<16x256xf32>
    tpu.vector_store %arg16[%c1008, %c0_200], %315 {strides = array<i32>} : memref<1024x256xf32, #tpu.memory_space<vmem>>, vector<16x256xf32>,
    %c0_201 = arith.constant 0 : index
    %c0_202 = arith.constant 0 : index
    %317 = vector.load %arg10[%c0_201, %c0_202] : memref<1x1024xf32, #tpu.memory_space<vmem>>, vector<1x1024xf32>
    %c0_203 = arith.constant 0 : index
    %c0_204 = arith.constant 0 : index
    %318 = vector.load %arg16[%c0_203, %c0_204] : memref<1024x256xf32, #tpu.memory_space<vmem>>, vector<1024x256xf32>
    %cst_205 = arith.constant dense<0.000000e+00> : vector<1x256xf32>
    %319 = tpu.matmul %317, %318, %cst_205 {dimension_numbers = #tpu.dot_dimension_numbers<[1], [0], [0], [1], [0, 0, 1, 1], [], []>} : vector<1x1024xf32>, vector<1024x256xf32>, vector<1x256xf32> -> vector<1x256xf32>
    %c0_206 = arith.constant 0 : index
    %c0_207 = arith.constant 0 : index
    %320 = vector.load %arg11[%c0_206, %c0_207] : memref<1x1xf32, #tpu.memory_space<vmem>>, vector<1x1xf32>
    %321 = vector.broadcast %320 : vector<1x1xf32> to vector<1x256xf32>
    %322 = arith.addf %319, %321 : vector<1x256xf32>
    %c0_208 = arith.constant 0 : index
    %c0_209 = arith.constant 0 : index
    %323 = vector.load %arg14[%c0_208, %c0_209] : memref<1x256xf32, #tpu.memory_space<vmem>>, vector<1x256xf32>
    tpu.vector_store %arg14[%c0_208, %c0_209], %322 {strides = array<i32>} : memref<1x256xf32, #tpu.memory_space<vmem>>, vector<1x256xf32>,
    return
  }
}

</mosaic_0001>

<bundles_post_ra>
// kernel: forward.1
= control target key start
LH: loop header
LB: loop body
LE: loop exit
PB: predicated region body
PF: predicated region fallthrough
CT: control target
= control target key end

     0   :  { %v8001_v0 = vmov 0.0|0.0   ;;  %vm8002_vm0 = vmmov 0   ;;  %v8003_v4 = vmov 0.0   ;;  %v12564_v7 = vmov 0   ;;  %s12761_s22 = smov 126   ;;  %s12773_s23 = smov 125   ;;  %s12515_s0 = inlined_call_operand.vmem [shape: f32[128,128], index: 0, kind: input, shape index: {}]   ;;  %s12516_s2 = inlined_call_operand.vmem [shape: f32[8,1], index: 2, kind: input, shape index: {}]   ;;  %s12517_s3 = inlined_call_operand.vmem [shape: f32[128,768], index: 3, kind: input, shape index: {}]   ;;  %s12518_s1 = inlined_call_operand.vmem [shape: f32[8,128], index: 1, kind: input, shape index: {}]   ;;  %s12519_s12 = inlined_call_operand.vmem [shape: f32[8,128], index: 12, kind: output, shape index: {0}]   ;;  %s12520_s4 = inlined_call_operand.vmem [shape: f32[16,512], index: 4, kind: input, shape index: {}]   ;;  %s12521_s5 = inlined_call_operand.vmem [shape: f32[16,1], index: 5, kind: input, shape index: {}]   ;;  %s12522_s8 = inlined_call_operand.vmem [shape: f32[1,512], index: 8, kind: input, shape index: {}]   ;;  %s12523_s6 = inlined_call_operand.vmem [shape: f32[16,1], index: 6, kind: input, shape index: {}]   ;;  %s12524_s9 = inlined_call_operand.vmem [shape: f32[512,512], index: 9, kind: input, shape index: {}]   ;;  %s12525_s7 = inlined_call_operand.vmem [shape: f32[16,1], index: 7, kind: input, shape index: {}]   ;;  %s12526_s13 = inlined_call_operand.vmem [shape: f32[16,512], index: 13, kind: output, shape index: {1}]   ;;  %s12527_s10 = inlined_call_operand.vmem [shape: f32[1,1024], index: 10, kind: input, shape index: {}]   ;;  %s12528_s11 = inlined_call_operand.<no memory space> [shape: f32[1,1], index: 11, kind: input, shape index: {}]   ;;  %s12529_s14 = inlined_call_operand.vmem [shape: f32[1,256], index: 14, kind: output, shape index: {2}]  }
   0x1   :  { %12911 = sst [smem:[#allocation81_spill]] %s12528_s11  ;;  %5417 = vmatprep.subr.bf16.mxu0 %v8001_v0  ;;  %v47_v1 = vld [vmem:[%s12515_s0] sm:$0xff]  ;;  %v48_v2 = vld [vmem:[%s12515_s0 + $0x8] sm:$0xff]  ;;  %v49_v3 = vld [vmem:[%s12515_s0 + $0x10] sm:$0xff]  ;;  %5414 = vmatprep.mubr.msk.f32.mxu0 %vm8002_vm0, %v8003_v4  ;;  %s12771_s24 = smov 121   ;;  %vm471_vm2 = vcmask 1039360  }
   0x2   :  { %12912 = sst [smem:[#allocation82_spill]] %s12529_s14  ;;  %v5418_v5 = vpack.c.bf16 %v48_v2, %v47_v1  ;;  %v50_v6 = vld [vmem:[%s12515_s0 + $0x18] sm:$0xff]  ;;  %6435 = vset.pattern.permute.xlu0 %v12564_v7  ;;  %303 = vmatprep.mubr.f32.mxu1 %v8003_v4  ;;  %v51_v9 = vld [vmem:[%s12515_s0 + $0x20] sm:$0xff]  ;;  %v52_v10 = vld [vmem:[%s12515_s0 + $0x28] sm:$0xff]  ;;  %s12745_s25 = smov 120   ;;  %vm494_vm3 = vcmask 1031168  }
   0x3   :  { %7046 = vset.pattern.permute.xlu1 %v12564_v7  ;;  %v5421_v8 = vpack.c.bf16 %v50_v6, %v49_v3  ;;  %v63_v11 = vld [vmem:[%s12516_s2] sm:$0xff]  ;;  %v144_v12 = vld [vmem:[%s12517_s3 + $0x8] sm:$0xff]  ;;  %v150_v13 = vld [vmem:[%s12517_s3 + $0x38] sm:$0xff]  ;;  %v5424_v14 = vpack.c.bf16 %v52_v10, %v51_v9  ;;  %s8011_s26 = smov 119   ;;  %s12759_s27 = smov 116   ;;  %vm517_vm4 = vcmask 1022976  }
   0x4   :  { %5419 = vmatpush3.bf16.msra.mxu0 %v5418_v5  ;;  %66 = vperm.xlu0 %6435, %v63_v11   ;;  %v5441_v15 = vpack.c.bf16 %v150_v13, %v144_v12  ;;  %v143_v16 = vld [vmem:[%s12517_s3] sm:$0xff]  ;;  %v149_v17 = vld [vmem:[%s12517_s3 + $0x30] sm:$0xff]  ;;  %v54_v19 = vld [vmem:[%s12515_s0 + $0x38] sm:$0xff]  ;;  %s12743_s28 = smov 115   ;;  %s8014_s29 = smov 114   ;;  %vm540_vm5 = vcmask 998400  }
   0x5   :  { %5420 = vmatprep.subr.bf16.mxu0 %v8001_v0  ;;  %v53_v18 = vld [vmem:[%s12515_s0 + $0x30] sm:$0xff]  ;;  %v5443_v20 = vpack.c.bf16 %v149_v17, %v143_v16  ;;  %v156_v21 = vld [vmem:[%s12517_s3 + $0x68] sm:$0xff]  ;;  %v162_v22 = vld [vmem:[%s12517_s3 + $0x98] sm:$0xff]  ;;  %s12755_s30 = smov 113   ;;  %s12733_s15 = smov 110   ;;  %vm563_vm6 = vcmask 990208  }
   0x6   :  { %5442 = vmatprep.subr.bf16.mxu1 %v5441_v15  ;;  %v155_v23 = vld [vmem:[%s12517_s3 + $0x60] sm:$0xff]  ;;  %v5445_v24 = vpack.c.bf16 %v162_v22, %v156_v21  ;;  %v161_v25 = vld [vmem:[%s12517_s3 + $0x90] sm:$0xff]  ;;  %v5427_v26 = vpack.c.bf16 %v54_v19, %v53_v18  ;;  %v56_v28 = vld [vmem:[%s12515_s0 + $0x48] sm:$0xff]  ;;  %s8017_s16 = smov 109   ;;  %s8018_s17 = smov 108   ;;  %vm586_vm7 = vcmask 982016  }
   0x7   :  { %5444 = vmatpush1.bf16.msra.mxu1 %v5443_v20  ;;  %v55_v27 = vld [vmem:[%s12515_s0 + $0x40] sm:$0xff]  ;;  %v5447_v29 = vpack.c.bf16 %v161_v25, %v155_v23  ;;  %v168_v30 = vld [vmem:[%s12517_s3 + $0xc8] sm:$0xff]  ;;  %v174_v31 = vld [vmem:[%s12517_s3 + $0xf8] sm:$0xff]  ;;  %s8019_s18 = smov 107   ;;  %s12530_s2 = smov 91   ;;  %vm609_vm8 = vcmask 973824  }
   0x8   :  { %5422 = vmatpush3.bf16.msra.mxu0 %v5421_v8  ;;  %5446 = vmatprep.subr.bf16.mxu1 %v5445_v24  ;;  %v167_v32 = vld [vmem:[%s12517_s3 + $0xc0] sm:$0xff]  ;;  %v173_v33 = vld [vmem:[%s12517_s3 + $0xf0] sm:$0xff]  ;;  %v5449_v34 = vpack.c.bf16 %v174_v31, %v168_v30  ;;  %v180_v36 = vld [vmem:[%s12517_s3 + $0x128] sm:$0xff]  ;;  %v5430_v38 = vpack.c.bf16 %v56_v28, %v55_v27  ;;  %s12532_s19 = smov 90   ;;  %s12534_s20 = smov 89   ;;  %vm632_vm9 = vcmask 949248  }
   0x9   :  { %5423 = vmatprep.subr.bf16.mxu0 %v8001_v0  ;;  %v5451_v35 = vpack.c.bf16 %v173_v33, %v167_v32  ;;  %v186_v37 = vld [vmem:[%s12517_s3 + $0x158] sm:$0xff]  ;;  %v179_v40 = vld [vmem:[%s12517_s3 + $0x120] sm:$0xff]  ;;  %v185_v41 = vld [vmem:[%s12517_s3 + $0x150] sm:$0xff]  ;;  %s12537_s21 = smov 85   ;;  %vm12797_vm10 = vcmask 941056   ;;  %vm678_vm11 = vcmask 932864  }
   0xa   :  { %v5453_v39 = vpack.c.bf16 %v186_v37, %v180_v36  ;;  %v57_v42 = vld [vmem:[%s12515_s0 + $0x50] sm:$0xff]  ;;  %v58_v43 = vld [vmem:[%s12515_s0 + $0x58] sm:$0xff]  ;;  %v192_v44 = vld [vmem:[%s12517_s3 + $0x188] sm:$0xff]  ;;  %v5455_v46 = vpack.c.bf16 %v185_v41, %v179_v40  ;;  %vm701_vm12 = vcmask 924672   ;;  %vm12798_vm13 = vcmask 900096   ;;  %s12807_s14 = smov 117  }
   0xb   :  { %5448 = vmatpush1.bf16.msra.mxu1 %v5447_v29  ;;  %v198_v45 = vld [vmem:[%s12517_s3 + $0x1b8] sm:$0xff]  ;;  %v5433_v47 = vpack.c.bf16 %v58_v43, %v57_v42  ;;  %v59_v48 = vld [vmem:[%s12515_s0 + $0x60] sm:$0xff]  ;;  %v197_v51 = vld [vmem:[%s12517_s3 + $0x1b0] sm:$0xff]  ;;  %vm12572_vm14 = vcmask 891904   ;;  %vm12583_vm15 = vcmask 883712   ;;  %vm12582_vm0 = vcmask 875520  }
   0xc   :  { %5425 = vmatpush3.bf16.msra.mxu0 %v5424_v14  ;;  %5450 = vmatprep.subr.bf16.mxu1 %v5449_v34  ;;  %v5457_v49 = vpack.c.bf16 %v198_v45, %v192_v44  ;;  %v191_v50 = vld [vmem:[%s12517_s3 + $0x180] sm:$0xff]  ;;  %v60_v52 = vld [vmem:[%s12515_s0 + $0x68] sm:$0xff]  ;;  %v210_v54 = vld [vmem:[%s12517_s3 + $0x218] sm:$0xff]  ;;  %s13268_s11 = smov 111  }
   0xd   :  { %5426 = vmatprep.subr.bf16.mxu0 %v8001_v0  ;;  %v204_v53 = vld [vmem:[%s12517_s3 + $0x1e8] sm:$0xff]  ;;  %v5459_v55 = vpack.c.bf16 %v197_v51, %v191_v50  ;;  %v5436_v56 = vpack.c.bf16 %v60_v52, %v59_v48  ;;  %v61_v57 = vld [vmem:[%s12515_s0 + $0x70] sm:$0xff]  ;;  %v203_v59 = vld [vmem:[%s12517_s3 + $0x1e0] sm:$0xff] }
   0xe   :  { %v5461_v58 = vpack.c.bf16 %v210_v54, %v204_v53  ;;  %v209_v60 = vld [vmem:[%s12517_s3 + $0x210] sm:$0xff]  ;;  %v62_v61 = vld [vmem:[%s12515_s0 + $0x78] sm:$0xff]  ;;  %v216_v62 = vld [vmem:[%s12517_s3 + $0x248] sm:$0xff]  ;;  %s12731_s0 = smov 92  }
   0xf   :  { %5452 = vmatpush1.bf16.msra.mxu1 %v5451_v35  ;;  %v222_v63 = vld [vmem:[%s12517_s3 + $0x278] sm:$0xff]  ;;  %v152_v2 = vld [vmem:[%s12517_s3 + $0x48] sm:$0xff]  ;;  %v5463_v3 = vpack.c.bf16 %v209_v60, %v203_v59  ;;  %v5439_v5 = vpack.c.bf16 %v62_v61, %v61_v57  ;;  %v215_v8 = vld [vmem:[%s12517_s3 + $0x240] sm:$0xff] }
  0x10   :  { %5428 = vmatpush3.bf16.msra.mxu0 %v5427_v26  ;;  %5454 = vmatprep.subr.bf16.mxu1 %v5453_v39  ;;  %v146_v1 = vld [vmem:[%s12517_s3 + $0x18] sm:$0xff]  ;;  %v5465_v6 = vpack.c.bf16 %v222_v63, %v216_v62  ;;  %v221_v9 = vld [vmem:[%s12517_s3 + $0x270] sm:$0xff]  ;;  %v151_v12 = vld [vmem:[%s12517_s3 + $0x40] sm:$0xff] }
  0x11   :  { %5429 = vmatprep.subr.bf16.mxu0 %v8001_v0  ;;  %v5473_v10 = vpack.c.bf16 %v152_v2, %v146_v1  ;;  %v145_v11 = vld [vmem:[%s12517_s3 + $0x10] sm:$0xff]  ;;  %v158_v13 = vld [vmem:[%s12517_s3 + $0x78] sm:$0xff]  ;;  %v164_v14 = vld [vmem:[%s12517_s3 + $0xa8] sm:$0xff]  ;;  %v5467_v15 = vpack.c.bf16 %v221_v9, %v215_v8 }
  0x12   :  { %v5475_v16 = vpack.c.bf16 %v151_v12, %v145_v11  ;;  %v5477_v17 = vpack.c.bf16 %v164_v14, %v158_v13  ;;  %v157_v18 = vld [vmem:[%s12517_s3 + $0x70] sm:$0xff]  ;;  %v163_v19 = vld [vmem:[%s12517_s3 + $0xa0] sm:$0xff]  ;;  %v170_v20 = vld [vmem:[%s12517_s3 + $0xd8] sm:$0xff] }
  0x13   :  { %5456 = vmatpush1.bf16.msra.mxu1 %v5455_v46  ;;  %v176_v21 = vld [vmem:[%s12517_s3 + $0x108] sm:$0xff]  ;;  %v5479_v22 = vpack.c.bf16 %v163_v19, %v157_v18  ;;  %v169_v24 = vld [vmem:[%s12517_s3 + $0xd0] sm:$0xff]  ;;  %v175_v25 = vld [vmem:[%s12517_s3 + $0x100] sm:$0xff] }
  0x14   :  { %5431 = vmatpush3.bf16.msra.mxu0 %v5430_v38  ;;  %5458 = vmatprep.subr.bf16.mxu1 %v5457_v49  ;;  %v5481_v23 = vpack.c.bf16 %v176_v21, %v170_v20  ;;  %v182_v26 = vld [vmem:[%s12517_s3 + $0x138] sm:$0xff]  ;;  %v188_v27 = vld [vmem:[%s12517_s3 + $0x168] sm:$0xff]  ;;  %v5483_v28 = vpack.c.bf16 %v175_v25, %v169_v24  ;;  %v181_v30 = vld [vmem:[%s12517_s3 + $0x130] sm:$0xff] }
  0x15   :  { %5432 = vmatprep.subr.bf16.mxu0 %v8001_v0  ;;  %v5485_v29 = vpack.c.bf16 %v188_v27, %v182_v26  ;;  %v187_v31 = vld [vmem:[%s12517_s3 + $0x160] sm:$0xff]  ;;  %v194_v32 = vld [vmem:[%s12517_s3 + $0x198] sm:$0xff]  ;;  %v200_v33 = vld [vmem:[%s12517_s3 + $0x1c8] sm:$0xff] }
  0x16   :  { %v5487_v34 = vpack.c.bf16 %v187_v31, %v181_v30  ;;  %v5489_v35 = vpack.c.bf16 %v200_v33, %v194_v32  ;;  %v193_v36 = vld [vmem:[%s12517_s3 + $0x190] sm:$0xff]  ;;  %v199_v37 = vld [vmem:[%s12517_s3 + $0x1c0] sm:$0xff]  ;;  %v206_v38 = vld [vmem:[%s12517_s3 + $0x1f8] sm:$0xff] }
  0x17   :  { %5460 = vmatpush1.bf16.msra.mxu1 %v5459_v55  ;;  %v212_v39 = vld [vmem:[%s12517_s3 + $0x228] sm:$0xff]  ;;  %v5491_v40 = vpack.c.bf16 %v199_v37, %v193_v36  ;;  %v205_v42 = vld [vmem:[%s12517_s3 + $0x1f0] sm:$0xff]  ;;  %v211_v43 = vld [vmem:[%s12517_s3 + $0x220] sm:$0xff] }
  0x18   :  { %5434 = vmatpush3.bf16.msra.mxu0 %v5433_v47  ;;  %5462 = vmatprep.subr.bf16.mxu1 %v5461_v58  ;;  %v5493_v41 = vpack.c.bf16 %v212_v39, %v206_v38  ;;  %v218_v44 = vld [vmem:[%s12517_s3 + $0x258] sm:$0xff]  ;;  %v224_v45 = vld [vmem:[%s12517_s3 + $0x288] sm:$0xff]  ;;  %v5495_v46 = vpack.c.bf16 %v211_v43, %v205_v42  ;;  %v217_v48 = vld [vmem:[%s12517_s3 + $0x250] sm:$0xff] }
  0x19   :  { %5435 = vmatprep.subr.bf16.mxu0 %v8001_v0  ;;  %v5497_v47 = vpack.c.bf16 %v224_v45, %v218_v44  ;;  %v223_v49 = vld [vmem:[%s12517_s3 + $0x280] sm:$0xff]  ;;  %v228_v51 = vld [vmem:[%s12517_s3 + $0x2a8] sm:$0xff]  ;;  %v234_v52 = vld [vmem:[%s12517_s3 + $0x2d8] sm:$0xff] }
  0x1a   :  { %v5499_v50 = vpack.c.bf16 %v223_v49, %v217_v48  ;;  %v5469_v53 = vpack.c.bf16 %v234_v52, %v228_v51  ;;  %v227_v54 = vld [vmem:[%s12517_s3 + $0x2a0] sm:$0xff]  ;;  %v233_v55 = vld [vmem:[%s12517_s3 + $0x2d0] sm:$0xff]  ;;  %v236_v58 = vld [vmem:[%s12517_s3 + $0x2e8] sm:$0xff] }
  0x1b   :  { %5464 = vmatpush1.bf16.msra.mxu1 %v5463_v3  ;;  %v5471_v57 = vpack.c.bf16 %v233_v55, %v227_v54  ;;  %v229_v59 = vld [vmem:[%s12517_s3 + $0x2b0] sm:$0xff]  ;;  %v235_v60 = vld [vmem:[%s12517_s3 + $0x2e0] sm:$0xff]  ;;  %v148_v63 = vld [vmem:[%s12517_s3 + $0x28] sm:$0xff] }
  0x1c   :  { %5437 = vmatpush3.bf16.msra.mxu0 %v5436_v56  ;;  %5466 = vmatprep.subr.bf16.mxu1 %v5465_v6  ;;  %v230_v56 = vld [vmem:[%s12517_s3 + $0x2b8] sm:$0xff]  ;;  %v5503_v62 = vpack.c.bf16 %v235_v60, %v229_v59  ;;  %v147_v6 = vld [vmem:[%s12517_s3 + $0x20] sm:$0xff]  ;;  %v153_v8 = vld [vmem:[%s12517_s3 + $0x50] sm:$0xff] }
  0x1d   :  { %5438 = vmatprep.subr.bf16.mxu0 %v8001_v0  ;;  %v46_v0 = vld [vmem:[%s12518_s1] sm:$0xff]  ;;  %v5501_v61 = vpack.c.bf16 %v236_v58, %v230_v56  ;;  %v154_v1 = vld [vmem:[%s12517_s3 + $0x58] sm:$0xff]  ;;  %v160_v11 = vld [vmem:[%s12517_s3 + $0x88] sm:$0xff]  ;;  %v5507_v14 = vpack.c.bf16 %v153_v8, %v147_v6  ;;  %s12535_s1 = smov 86  }
  0x1e   :  { %v5505_v2 = vpack.c.bf16 %v154_v1, %v148_v63  ;;  %v166_v12 = vld [vmem:[%s12517_s3 + $0xb8] sm:$0xff]  ;;  %v172_v18 = vld [vmem:[%s12517_s3 + $0xe8] sm:$0xff]  ;;  %v183_v27 = vld [vmem:[%s12517_s3 + $0x140] sm:$0xff] }
  0x1f   :  { %5468 = vmatpush1.bf16.msra.mxu1 %v5467_v15  ;;  %v5509_v15 = vpack.c.bf16 %v166_v12, %v160_v11  ;;  %v178_v19 = vld [vmem:[%s12517_s3 + $0x118] sm:$0xff]  ;;  %v184_v24 = vld [vmem:[%s12517_s3 + $0x148] sm:$0xff]  ;;  %v195_v33 = vld [vmem:[%s12517_s3 + $0x1a0] sm:$0xff] }
  0x20   :  { %5440 = vmatpush3.bf16.msra.mxu0 %v5439_v5  ;;  %5470 = vmatprep.subr.bf16.mxu1 %v5469_v53  ;;  %v5513_v21 = vpack.c.bf16 %v178_v19, %v172_v18  ;;  %v190_v25 = vld [vmem:[%s12517_s3 + $0x178] sm:$0xff]  ;;  %v207_v39 = vld [vmem:[%s12517_s3 + $0x200] sm:$0xff]  ;;  %v237_v52 = vld [vmem:[%s12517_s3 + $0x2f0] sm:$0xff] }
  0x21   :  { %5474 = vmatprep.subr.bf16.mxu0 %v5473_v10  ;;  %v5517_v26 = vpack.c.bf16 %v190_v25, %v184_v24  ;;  %v202_v30 = vld [vmem:[%s12517_s3 + $0x1d8] sm:$0xff]  ;;  %v219_v45 = vld [vmem:[%s12517_s3 + $0x260] sm:$0xff] }
  0x22   :  { %v214_v36 = vld [vmem:[%s12517_s3 + $0x238] sm:$0xff]  ;;  %v231_v51 = vld [vmem:[%s12517_s3 + $0x2c0] sm:$0xff] }
  0x23   :  { %5415 = vmatmul.mubr.f32.vlgmr.msra.gmra.mrb[0].mxu0 %v46_v0  ;;  %5472 = vmatpush1.bf16.msra.mxu1 %v5471_v57  ;;  %v159_v0 = vld [vmem:[%s12517_s3 + $0x80] sm:$0xff]  ;;  %v226_v42 = vld [vmem:[%s12517_s3 + $0x298] sm:$0xff]  ;;  %v5535_v53 = vpack.c.bf16 %v237_v52, %v231_v51 }
  0x24   :  { %5476 = vmatpush1.bf16.msra.mxu0 %v5475_v16  ;;  %374 = vmatprep.mubr.f32.mxu0 %v8003_v4  ;;  %v165_v16 = vld [vmem:[%s12517_s3 + $0xb0] sm:$0xff]  ;;  %v238_v48 = vld [vmem:[%s12517_s3 + $0x2f8] sm:$0xff] }
  0x25   :  { %5478 = vmatprep.subr.bf16.mxu0 %v5477_v17  ;;  %5506 = vmatprep.subr.bf16.mxu1 %v5505_v2  ;;  %v5511_v20 = vpack.c.bf16 %v165_v16, %v159_v0 }
  0x28   :  { %5480 = vmatpush1.bf16.msra.mxu0 %v5479_v22  ;;  %v171_v22 = vld [vmem:[%s12517_s3 + $0xe0] sm:$0xff] }
  0x29   :  { %5482 = vmatprep.subr.bf16.mxu0 %v5481_v23  ;;  %v177_v23 = vld [vmem:[%s12517_s3 + $0x110] sm:$0xff] }
  0x2c   :  { %5484 = vmatpush1.bf16.msra.mxu0 %v5483_v28  ;;  %v189_v28 = vld [vmem:[%s12517_s3 + $0x170] sm:$0xff] }
  0x2d   :  { %5486 = vmatprep.subr.bf16.mxu0 %v5485_v29  ;;  %v196_v29 = vld [vmem:[%s12517_s3 + $0x1a8] sm:$0xff]  ;;  %v5519_v31 = vpack.c.bf16 %v189_v28, %v183_v27 }
  0x2e   :  { %v5521_v32 = vpack.c.bf16 %v202_v30, %v196_v29 }
  0x30   :  { %5488 = vmatpush1.bf16.msra.mxu0 %v5487_v34  ;;  %v201_v34 = vld [vmem:[%s12517_s3 + $0x1d0] sm:$0xff] }
  0x31   :  { %5490 = vmatprep.subr.bf16.mxu0 %v5489_v35  ;;  %v208_v35 = vld [vmem:[%s12517_s3 + $0x208] sm:$0xff]  ;;  %v5523_v37 = vpack.c.bf16 %v201_v34, %v195_v33 }
  0x32   :  { %v5525_v38 = vpack.c.bf16 %v214_v36, %v208_v35 }
  0x34   :  { %5492 = vmatpush1.bf16.msra.mxu0 %v5491_v40  ;;  %v213_v40 = vld [vmem:[%s12517_s3 + $0x230] sm:$0xff] }
  0x35   :  { %5494 = vmatprep.subr.bf16.mxu0 %v5493_v41  ;;  %v220_v41 = vld [vmem:[%s12517_s3 + $0x268] sm:$0xff]  ;;  %v5527_v43 = vpack.c.bf16 %v213_v40, %v207_v39 }
  0x36   :  { %v5529_v44 = vpack.c.bf16 %v226_v42, %v220_v41 }
  0x38   :  { %5496 = vmatpush1.bf16.msra.mxu0 %v5495_v46  ;;  %v225_v46 = vld [vmem:[%s12517_s3 + $0x290] sm:$0xff] }
  0x39   :  { %5498 = vmatprep.subr.bf16.mxu0 %v5497_v47  ;;  %v232_v47 = vld [vmem:[%s12517_s3 + $0x2c8] sm:$0xff]  ;;  %v5531_v49 = vpack.c.bf16 %v225_v46, %v219_v45  ;;  %s12775_s3 = smov 127  }
  0x3c   :  { %5500 = vmatpush1.bf16.msra.mxu0 %v5499_v50  ;;  %v5533_v50 = vpack.c.bf16 %v238_v48, %v232_v47 }
  0x3d   :  { %5502 = vmatprep.subr.bf16.mxu0 %v5501_v61 }
  0x40   :  { %5504 = vmatpush1.bf16.msra.mxu0 %v5503_v62 }
  0x83   :  { %v67_v3 = vpop.permute.xlu0 %66 }
  0xf6   :  { %v135_v5 = vpop.f32.mrb[0].mxu0 }
  0xf7   :  { %v136_v9 = vadd.f32 %v135_v5, %v67_v3  ;;  %v5416_v10 = vpop.f32.mrb[1].mxu0 }
  0xf9   :  { %vm139_vm1 = vcmp.ge.f32.partialorder %v136_v9, 0.0  ;;  %v140_v13 = vmul.f32 0.2, %v136_v9 }
  0xfb   :  { %v141_v17 = vsel %vm139_vm1, %v136_v9, %v140_v13  ;;  %vm12593_vm1 = vcmask 752640  }
  0xfc   :  { %142 = vst [vmem:[%s12519_s12] sm:$0xff] %v141_v17  ;;  %304 = vmatmul.mubr.f32.vlgmr.msra.gmra.mrb[0].mxu1 %v141_v17  ;;  %375 = vmatmul.mubr.f32.vlgmr.msra.gmra.mrb[2].mxu0 %v141_v17  ;;  %s12757_s12 = smov 122  }
  0xfd   :  { %5508 = vmatpush1.bf16.msra.mxu1 %v5507_v14  ;;  %445 = vmatprep.mubr.f32.mxu1 %v8003_v4  ;;  %v5515_v4 = vpack.c.bf16 %v177_v23, %v171_v22 }
  0xfe   :  { %5510 = vmatprep.subr.bf16.mxu1 %v5509_v15 }
 0x101   :  { %5512 = vmatpush1.bf16.msra.mxu1 %v5511_v20 }
 0x102   :  { %5514 = vmatprep.subr.bf16.mxu1 %v5513_v21 }
 0x105   :  { %5516 = vmatpush1.bf16.msra.mxu1 %v5515_v4 }
 0x106   :  { %5518 = vmatprep.subr.bf16.mxu1 %v5517_v26 }
 0x109   :  { %5520 = vmatpush1.bf16.msra.mxu1 %v5519_v31 }
 0x10a   :  { %5522 = vmatprep.subr.bf16.mxu1 %v5521_v32 }
 0x10d   :  { %5524 = vmatpush1.bf16.msra.mxu1 %v5523_v37 }
 0x10e   :  { %5526 = vmatprep.subr.bf16.mxu1 %v5525_v38 }
 0x111   :  { %5528 = vmatpush1.bf16.msra.mxu1 %v5527_v43 }
 0x112   :  { %5530 = vmatprep.subr.bf16.mxu1 %v5529_v44 }
 0x115   :  { %5532 = vmatpush1.bf16.msra.mxu1 %v5531_v49 }
 0x116   :  { %5534 = vmatprep.subr.bf16.mxu1 %v5533_v50 }
 0x119   :  { %5536 = vmatpush1.bf16.msra.mxu1 %v5535_v53 }
 0x11c   :  { %446 = vmatmul.mubr.f32.vlgmr.msra.gmra.mrb[2].mxu1 %v141_v17 }
 0x1cf   :  { %v8533_v54 = vpop.f32.mrb[0].mxu1  ;;  %v8535_v55 = vpop.f32.mrb[2].mxu0 }
 0x1d0   :  { %v8537_v56 = vpop.f32.mrb[1].mxu1  ;;  %v8539_v57 = vpop.f32.mrb[3].mxu0 }
 0x1d1   :  { %v6436_v58 = vpack.i.bf16 %v8537_v56, %v8533_v54  ;;  %v6441_v59 = vpack.i.bf16 %v8539_v57, %v8535_v55  ;;  %v8549_v60 = vpack.i.bf16 %v8535_v55, %v8537_v56  ;;  %v8553_v61 = vpack.i.bf16 %v8539_v57, %v8533_v54 }
 0x1d3   :  { %6437 = vrot.lane.b32.xlu0 %v6436_v58, %s12775_s3  ;;  %6442 = vrot.lane.b32.xlu1 %v6441_v59, %s12775_s3 }
 0x1d7   :  { %6447 = vrot.lane.b32.xlu0 %v6436_v58, %s12761_s22  ;;  %6452 = vrot.lane.b32.xlu1 %v6441_v59, %s12761_s22 }
 0x1db   :  { %6462 = vrot.lane.b32.xlu0 %v6441_v59, %s12773_s23  ;;  %6457 = vrot.lane.b32.xlu1 %v6436_v58, %s12773_s23 }
 0x1df   :  { %6467 = vrot.lane.b32.xlu0 %v6436_v58, %s12757_s12  ;;  %6472 = vrot.lane.b32.xlu1 %v6441_v59, %s12757_s12 }
 0x1e3   :  { %6477 = vrot.lane.b32.xlu0 %v8549_v60, %s12771_s24  ;;  %6482 = vrot.lane.b32.xlu1 %v8553_v61, %s12771_s24 }
 0x1e7   :  { %6487 = vrot.lane.b32.xlu0 %v8549_v60, %s12745_s25  ;;  %6492 = vrot.lane.b32.xlu1 %v8549_v60, %s8011_s26 }
 0x1eb   :  { %6497 = vrot.lane.b32.xlu0 %v8553_v61, %s12745_s25  ;;  %6502 = vrot.lane.b32.xlu1 %v8553_v61, %s8011_s26 }
 0x1ef   :  { %v8573_v62 = vpop.f32.mrb[2].mxu1  ;;  %6507 = vrot.lane.b32.xlu0 %v8549_v60, %s12759_s27  ;;  %6512 = vrot.lane.b32.xlu1 %v8549_v60, %s12743_s28 }
 0x1f0   :  { %v8579_v63 = vpop.f32.mrb[3].mxu1 }
 0x1f3   :  { %6517 = vrot.lane.b32.xlu0 %v8553_v61, %s12759_s27  ;;  %6522 = vrot.lane.b32.xlu1 %v8553_v61, %s12743_s28 }
 0x1f7   :  { %6527 = vrot.lane.b32.xlu0 %v8549_v60, %s8014_s29  ;;  %6532 = vrot.lane.b32.xlu1 %v8549_v60, %s12755_s30 }
 0x1fb   :  { %6537 = vrot.lane.b32.xlu0 %v8553_v61, %s8014_s29  ;;  %6542 = vrot.lane.b32.xlu1 %v8553_v61, %s12755_s30 }
 0x1ff   :  { %6547 = vrot.lane.b32.xlu0 %v8549_v60, %s12733_s15  ;;  %6552 = vrot.lane.b32.xlu1 %v8549_v60, %s8017_s16 }
 0x203   :  { %6557 = vrot.lane.b32.xlu0 %v8553_v61, %s12733_s15  ;;  %6562 = vrot.lane.b32.xlu1 %v8553_v61, %s8017_s16 }
 0x207   :  { %6567 = vrot.lane.b32.xlu0 %v8549_v60, %s8018_s17  ;;  %6572 = vrot.lane.b32.xlu1 %v8549_v60, %s8019_s18 }
 0x20b   :  { %6577 = vrot.lane.b32.xlu0 %v8553_v61, %s8018_s17  ;;  %6582 = vrot.lane.b32.xlu1 %v8553_v61, %s8019_s18 }
 0x20f   :  { %6587 = vrot.lane.b32.xlu0 %v8549_v60, %s12731_s0  ;;  %6592 = vrot.lane.b32.xlu1 %v8549_v60, %s12530_s2 }
 0x213   :  { %6597 = vrot.lane.b32.xlu0 %v8553_v61, %s12731_s0  ;;  %6602 = vrot.lane.b32.xlu1 %v8553_v61, %s12530_s2  ;;  %s12539_s2 = smov 84  }
 0x217   :  { %6607 = vrot.lane.b32.xlu0 %v8549_v60, %s12532_s19  ;;  %6612 = vrot.lane.b32.xlu1 %v8549_v60, %s12534_s20 }
 0x21b   :  { %6617 = vrot.lane.b32.xlu0 %v8553_v61, %s12532_s19  ;;  %6622 = vrot.lane.b32.xlu1 %v8553_v61, %s12534_s20  ;;  %s12540_s19 = smov 83   ;;  %s12541_s20 = smov 80  }
 0x21f   :  { %6627 = vrot.lane.b32.xlu0 %v8549_v60, %s12535_s1  ;;  %6632 = vrot.lane.b32.xlu1 %v8549_v60, %s12537_s21 }
 0x223   :  { %6637 = vrot.lane.b32.xlu0 %v8553_v61, %s12535_s1  ;;  %6642 = vrot.lane.b32.xlu1 %v8553_v61, %s12537_s21  ;;  %s12544_s1 = smov 79   ;;  %s12721_s21 = smov 78  }
 0x227   :  { %6647 = vrot.lane.b32.xlu0 %v8549_v60, %s12539_s2  ;;  %6652 = vrot.lane.b32.xlu1 %v8549_v60, %s12540_s19 }
 0x22b   :  { %6657 = vrot.lane.b32.xlu0 %v8553_v61, %s12539_s2  ;;  %6662 = vrot.lane.b32.xlu1 %v8553_v61, %s12540_s19  ;;  %s12542_s2 = smov 77   ;;  %s12559_s19 = smov 74  }
 0x22f   :  { %6667 = vrot.lane.b32.xlu0 %v8549_v60, %s12541_s20  ;;  %6672 = vrot.lane.b32.xlu1 %v8549_v60, %s12544_s1 }
 0x233   :  { %6677 = vrot.lane.b32.xlu0 %v8553_v61, %s12541_s20  ;;  %6682 = vrot.lane.b32.xlu1 %v8553_v61, %s12544_s1  ;;  %s12547_s20 = smov 73   ;;  %s12545_s1 = smov 71  }
 0x237   :  { %6687 = vrot.lane.b32.xlu0 %v8549_v60, %s12721_s21  ;;  %6692 = vrot.lane.b32.xlu1 %v8549_v60, %s12542_s2 }
 0x23b   :  { %6697 = vrot.lane.b32.xlu0 %v8553_v61, %s12721_s21  ;;  %6702 = vrot.lane.b32.xlu1 %v8553_v61, %s12542_s2  ;;  %s12557_s2 = smov 72  }
 0x23f   :  { %6707 = vrot.lane.b32.xlu0 %v8549_v60, %s12559_s19  ;;  %6712 = vrot.lane.b32.xlu1 %v8549_v60, %s12547_s20 }
 0x243   :  { %6717 = vrot.lane.b32.xlu0 %v8553_v61, %s12559_s19  ;;  %6722 = vrot.lane.b32.xlu1 %v8553_v61, %s12547_s20  ;;  %s12549_s20 = smov 55   ;;  %s12562_s19 = smov 43  }
 0x245   :  { %v6438_v1 = vpop.permute.xlu0 %6437  ;;  %v8665_v2 = vpop.permute.xlu1 %6442 }
 0x246   :  { %v6440_v3 = vunpack.i.h.bf16 %v6438_v1  ;;  %v6439_v5 = vunpack.i.l.bf16 %v6438_v1  ;;  %v12604_v6 = vunpack.i.h.bf16 %v8665_v2  ;;  %v6444_v8 = vunpack.i.l.bf16 %v8665_v2 }
 0x247   :  { %6727 = vrot.lane.b32.xlu0 %v8549_v60, %s12557_s2  ;;  %6732 = vrot.lane.b32.xlu1 %v8549_v60, %s12545_s1 }
 0x248   :  { %v472_v9 = vsel %vm471_vm2, %v6439_v5, %v6440_v3  ;;  %v473_v10 = vsel %vm471_vm2, %v6440_v3, %v6444_v8  ;;  %v474_v11 = vsel %vm471_vm2, %v6444_v8, %v12604_v6 }
 0x249   :  { %v6448_v12 = vpop.permute.xlu0 %6447  ;;  %v8678_v13 = vpop.permute.xlu1 %6452  ;;  %v8681_v14 = vpack.c.bf16 %v473_v10, %v8537_v56  ;;  %v5539_v15 = vpack.c.bf16 %v472_v9, %v8533_v54  ;;  %v8685_v0 = vpack.c.bf16 %v474_v11, %v8535_v55 }
 0x24a   :  { %v6450_v16 = vunpack.i.h.bf16 %v6448_v12  ;;  %v6449_v17 = vunpack.i.l.bf16 %v6448_v12  ;;  %v12601_v18 = vunpack.i.h.bf16 %v8678_v13  ;;  %v6454_v19 = vunpack.i.l.bf16 %v8678_v13 }
 0x24b   :  { %6737 = vrot.lane.b32.xlu0 %v8553_v61, %s12557_s2  ;;  %6742 = vrot.lane.b32.xlu1 %v8553_v61, %s12545_s1  ;;  %s12550_s1 = smov 56   ;;  %s12649_s2 = smov 44  }
 0x24c   :  { %5538 = vmatprep.subr.bf16.mxu1 %v8681_v14  ;;  %v495_v4 = vsel %vm494_vm3, %v6449_v17, %v6450_v16  ;;  %v8702_v26 = vsel %vm494_vm3, %v6454_v19, %v12601_v18  ;;  %v496_v29 = vsel %vm494_vm3, %v6450_v16, %v6454_v19 }
 0x24d   :  { %5540 = vmatpush1.bf16.msra.mxu1 %v5539_v15  ;;  %v8694_v20 = vpop.permute.xlu0 %6462  ;;  %v6458_v21 = vpop.permute.xlu1 %6457 }
 0x24e   :  { %v12600_v22 = vunpack.i.h.bf16 %v8694_v20  ;;  %v6464_v23 = vunpack.i.l.bf16 %v8694_v20  ;;  %v6460_v24 = vunpack.i.h.bf16 %v6458_v21  ;;  %v6459_v25 = vunpack.i.l.bf16 %v6458_v21 }
 0x24f   :  { %6747 = vrot.lane.b32.xlu0 %v8549_v60, %s12550_s1  ;;  %6752 = vrot.lane.b32.xlu1 %v8549_v60, %s12549_s20 }
 0x250   :  { %v8711_v27 = vsel %vm517_vm4, %v6464_v23, %v12600_v22  ;;  %v518_v28 = vsel %vm517_vm4, %v6459_v25, %v6460_v24  ;;  %v519_v30 = vsel %vm517_vm4, %v6460_v24, %v6464_v23 }
 0x251   :  { %v6468_v31 = vpop.permute.xlu0 %6467  ;;  %v8716_v32 = vpop.permute.xlu1 %6472  ;;  %v5541_v33 = vpack.c.bf16 %v519_v30, %v496_v29  ;;  %v5543_v34 = vpack.c.bf16 %v518_v28, %v495_v4 }
 0x252   :  { %v6470_v36 = vunpack.i.h.bf16 %v6468_v31  ;;  %v6469_v37 = vunpack.i.l.bf16 %v6468_v31  ;;  %v12599_v38 = vunpack.i.h.bf16 %v8716_v32  ;;  %v6474_v39 = vunpack.i.l.bf16 %v8716_v32 }
 0x253   :  { %6757 = vrot.lane.b32.xlu0 %v8553_v61, %s12550_s1  ;;  %6762 = vrot.lane.b32.xlu1 %v8553_v61, %s12549_s20  ;;  %s12553_s20 = smov 54   ;;  %s12551_s1 = smov 53  }
 0x254   :  { %5542 = vmatprep.subr.bf16.mxu1 %v5541_v33  ;;  %v541_v46 = vsel %vm540_vm5, %v6469_v37, %v6470_v36  ;;  %v8734_v47 = vsel %vm540_vm5, %v6474_v39, %v12599_v38  ;;  %v542_v50 = vsel %vm540_vm5, %v6470_v36, %v6474_v39 }
 0x255   :  { %5544 = vmatpush1.bf16.msra.mxu1 %v5543_v34  ;;  %v6478_v40 = vpop.permute.xlu0 %6477  ;;  %v8726_v41 = vpop.permute.xlu1 %6482 }
 0x256   :  { %v6480_v42 = vunpack.i.h.bf16 %v6478_v40  ;;  %v6479_v43 = vunpack.i.l.bf16 %v6478_v40  ;;  %v12594_v44 = vunpack.i.h.bf16 %v8726_v41  ;;  %v6484_v45 = vunpack.i.l.bf16 %v8726_v41 }
 0x257   :  { %6767 = vrot.lane.b32.xlu0 %v8549_v60, %s12553_s20  ;;  %6772 = vrot.lane.b32.xlu1 %v8549_v60, %s12551_s1 }
 0x258   :  { %v8743_v48 = vsel %vm563_vm6, %v6480_v42, %v12594_v44  ;;  %v564_v49 = vsel %vm563_vm6, %v6484_v45, %v6479_v43  ;;  %v565_v51 = vsel %vm563_vm6, %v6479_v43, %v6480_v42 }
 0x259   :  { %v6488_v52 = vpop.permute.xlu0 %6487  ;;  %v6493_v53 = vpop.permute.xlu1 %6492  ;;  %v5545_v54 = vpack.c.bf16 %v565_v51, %v542_v50  ;;  %v5547_v55 = vpack.c.bf16 %v564_v49, %v541_v46 }
 0x25a   :  { %v6490_v58 = vunpack.i.h.bf16 %v6488_v52  ;;  %v6489_v59 = vunpack.i.l.bf16 %v6488_v52  ;;  %v6495_v1 = vunpack.i.h.bf16 %v6493_v53  ;;  %v6494_v3 = vunpack.i.l.bf16 %v6493_v53 }
 0x25b   :  { %6777 = vrot.lane.b32.xlu0 %v8553_v61, %s12553_s20  ;;  %6782 = vrot.lane.b32.xlu1 %v8553_v61, %s12551_s1  ;;  %s12554_s1 = smov 50   ;;  %s12556_s20 = smov 49  }
 0x25c   :  { %5546 = vmatprep.subr.bf16.mxu1 %v5545_v54  ;;  %v588_v5 = vsel %vm586_vm7, %v6489_v59, %v6490_v58  ;;  %v611_v8 = vsel %vm609_vm8, %v6494_v3, %v6495_v1 }
 0x25d   :  { %5548 = vmatpush1.bf16.msra.mxu1 %v5547_v55  ;;  %v8756_v9 = vpop.permute.xlu0 %6497  ;;  %v8758_v10 = vpop.permute.xlu1 %6502  ;;  %v5549_v11 = vpack.c.bf16 %v611_v8, %v588_v5 }
 0x25e   :  { %v12591_v12 = vunpack.i.h.bf16 %v8756_v9  ;;  %v6499_v15 = vunpack.i.l.bf16 %v8756_v9  ;;  %v12590_v16 = vunpack.i.h.bf16 %v8758_v10  ;;  %v6504_v17 = vunpack.i.l.bf16 %v8758_v10 }
 0x25f   :  { %6787 = vrot.lane.b32.xlu0 %v8549_v60, %s12554_s1  ;;  %6792 = vrot.lane.b32.xlu1 %v8549_v60, %s12556_s20 }
 0x260   :  { %v587_v19 = vsel %vm586_vm7, %v6499_v15, %v6489_v59  ;;  %v8772_v21 = vsel %vm586_vm7, %v6490_v58, %v12591_v12  ;;  %v610_v23 = vsel %vm609_vm8, %v6504_v17, %v6494_v3  ;;  %v8778_v24 = vsel %vm609_vm8, %v6495_v1, %v12590_v16  ;;  %5550 = vmatprep.subr.bf16.mxu1 %v5549_v11  ;;  %v8815_v59 = vld [vmem:[%s12520_s4 + $0x8] sm:$0xff] }
 0x261   :  { %v6508_v25 = vpop.permute.xlu0 %6507  ;;  %v6513_v4 = vpop.permute.xlu1 %6512  ;;  %v5551_v28 = vpack.c.bf16 %v610_v23, %v587_v19  ;;  %2217 = vmatprep.mubr.f32.mxu1 %v8815_v59 }
 0x262   :  { %v6510_v30 = vunpack.i.h.bf16 %v6508_v25  ;;  %v6509_v31 = vunpack.i.l.bf16 %v6508_v25  ;;  %v6515_v33 = vunpack.i.h.bf16 %v6513_v4  ;;  %v6514_v34 = vunpack.i.l.bf16 %v6513_v4 }
 0x263   :  { %6797 = vrot.lane.b32.xlu0 %v8553_v61, %s12554_s1  ;;  %6802 = vrot.lane.b32.xlu1 %v8553_v61, %s12556_s20  ;;  %s12650_s1 = smov 48   ;;  %s12560_s20 = smov 47  }
 0x264   :  { %5552 = vmatpush1.bf16.msra.mxu1 %v5551_v28  ;;  %v634_v36 = vsel %vm632_vm9, %v6509_v31, %v6510_v30  ;;  %v657_v37 = vsel %vm12797_vm10, %v6514_v34, %v6515_v33 }
 0x265   :  { %v8788_v39 = vpop.permute.xlu0 %6517  ;;  %v8790_v40 = vpop.permute.xlu1 %6522  ;;  %v5553_v42 = vpack.c.bf16 %v657_v37, %v634_v36 }
 0x266   :  { %v12581_v43 = vunpack.i.h.bf16 %v8788_v39  ;;  %v6519_v45 = vunpack.i.l.bf16 %v8788_v39  ;;  %v12580_v46 = vunpack.i.h.bf16 %v8790_v40  ;;  %v6524_v49 = vunpack.i.l.bf16 %v8790_v40 }
 0x267   :  { %6807 = vrot.lane.b32.xlu0 %v8549_v60, %s12650_s1  ;;  %6812 = vrot.lane.b32.xlu1 %v8549_v60, %s12560_s20 }
 0x268   :  { %v633_v50 = vsel %vm632_vm9, %v6519_v45, %v6509_v31  ;;  %v8804_v51 = vsel %vm632_vm9, %v6510_v30, %v12581_v43  ;;  %v656_v52 = vsel %vm12797_vm10, %v6524_v49, %v6514_v34  ;;  %v8810_v53 = vsel %vm12797_vm10, %v6515_v33, %v12580_v46  ;;  %5554 = vmatprep.subr.bf16.mxu1 %v5553_v42 }
 0x269   :  { %v6528_v54 = vpop.permute.xlu0 %6527  ;;  %v6533_v55 = vpop.permute.xlu1 %6532  ;;  %v5555_v58 = vpack.c.bf16 %v656_v52, %v633_v50 }
 0x26a   :  { %v6530_v3 = vunpack.i.h.bf16 %v6528_v54  ;;  %v6529_v5 = vunpack.i.l.bf16 %v6528_v54  ;;  %v6535_v8 = vunpack.i.h.bf16 %v6533_v55  ;;  %v6534_v11 = vunpack.i.l.bf16 %v6533_v55 }
 0x26b   :  { %6817 = vrot.lane.b32.xlu0 %v8553_v61, %s12650_s1  ;;  %6822 = vrot.lane.b32.xlu1 %v8553_v61, %s12560_s20  ;;  %s12565_s20 = smov 42   ;;  %s12961_s1 = smov 85  }
 0x26c   :  { %5556 = vmatpush1.bf16.msra.mxu1 %v5555_v58  ;;  %v680_v15 = vsel %vm678_vm11, %v6529_v5, %v6530_v3  ;;  %v703_v17 = vsel %vm701_vm12, %v6534_v11, %v6535_v8 }
 0x26d   :  { %v8826_v19 = vpop.permute.xlu0 %6537  ;;  %v8828_v23 = vpop.permute.xlu1 %6542  ;;  %v5557_v25 = vpack.c.bf16 %v703_v17, %v680_v15 }
 0x26e   :  { %v12573_v4 = vunpack.i.h.bf16 %v8826_v19  ;;  %v6539_v28 = vunpack.i.l.bf16 %v8826_v19  ;;  %v12571_v30 = vunpack.i.h.bf16 %v8828_v23  ;;  %v6544_v31 = vunpack.i.l.bf16 %v8828_v23 }
 0x26f   :  { %6827 = vrot.lane.b32.xlu0 %v8549_v60, %s12649_s2  ;;  %6832 = vrot.lane.b32.xlu1 %v8549_v60, %s12562_s19 }
 0x270   :  { %v679_v33 = vsel %vm678_vm11, %v6539_v28, %v6529_v5  ;;  %v8842_v34 = vsel %vm678_vm11, %v6530_v3, %v12573_v4  ;;  %v702_v36 = vsel %vm701_vm12, %v6544_v31, %v6534_v11  ;;  %v8848_v37 = vsel %vm701_vm12, %v6535_v8, %v12571_v30  ;;  %5558 = vmatprep.subr.bf16.mxu1 %v5557_v25 }
 0x271   :  { %v6548_v42 = vpop.permute.xlu0 %6547  ;;  %v6553_v45 = vpop.permute.xlu1 %6552  ;;  %v5559_v49 = vpack.c.bf16 %v702_v36, %v679_v33 }
 0x272   :  { %v6550_v52 = vunpack.i.h.bf16 %v6548_v42  ;;  %v6549_v54 = vunpack.i.l.bf16 %v6548_v42  ;;  %v6555_v55 = vunpack.i.h.bf16 %v6553_v45  ;;  %v6554_v58 = vunpack.i.l.bf16 %v6553_v45 }
 0x273   :  { %6837 = vrot.lane.b32.xlu0 %v8553_v61, %s12649_s2  ;;  %6842 = vrot.lane.b32.xlu1 %v8553_v61, %s12562_s19  ;;  %s12567_s19 = smov 41   ;;  %s12964_s2 = smov 80  }
 0x274   :  { %5560 = vmatpush1.bf16.msra.mxu1 %v5559_v49  ;;  %v726_v3 = vsel %vm12798_vm13, %v6549_v54, %v6550_v52  ;;  %v749_v5 = vsel %vm12572_vm14, %v6554_v58, %v6555_v55 }
 0x275   :  { %v8858_v8 = vpop.permute.xlu0 %6557  ;;  %v8860_v11 = vpop.permute.xlu1 %6562  ;;  %v5561_v15 = vpack.c.bf16 %v749_v5, %v726_v3 }
 0x276   :  { %v12570_v17 = vunpack.i.h.bf16 %v8858_v8  ;;  %v6559_v25 = vunpack.i.l.bf16 %v8858_v8  ;;  %v12569_v28 = vunpack.i.h.bf16 %v8860_v11  ;;  %v6564_v31 = vunpack.i.l.bf16 %v8860_v11 }
 0x277   :  { %6847 = vrot.lane.b32.xlu0 %v8549_v60, %s12565_s20  ;;  %6852 = vrot.lane.b32.xlu1 %v8549_v60, %s12567_s19 }
 0x278   :  { %v725_v33 = vsel %vm12798_vm13, %v6559_v25, %v6549_v54  ;;  %v8874_v36 = vsel %vm12798_vm13, %v6550_v52, %v12570_v17  ;;  %v748_v42 = vsel %vm12572_vm14, %v6564_v31, %v6554_v58  ;;  %v8880_v45 = vsel %vm12572_vm14, %v6555_v55, %v12569_v28  ;;  %5562 = vmatprep.subr.bf16.mxu1 %v5561_v15 }
 0x279   :  { %v6568_v49 = vpop.permute.xlu0 %6567  ;;  %v6573_v3 = vpop.permute.xlu1 %6572  ;;  %v5563_v5 = vpack.c.bf16 %v748_v42, %v725_v33  ;;  %vm12592_vm14 = vcmask 744448  }
 0x27a   :  { %v6570_v25 = vunpack.i.h.bf16 %v6568_v49  ;;  %v6569_v7 = vunpack.i.l.bf16 %v6568_v49  ;;  %v6575_v52 = vunpack.i.h.bf16 %v6573_v3  ;;  %v6574_v50 = vunpack.i.l.bf16 %v6573_v3 }
 0x27b   :  { %6857 = vrot.lane.b32.xlu0 %v8553_v61, %s12565_s20  ;;  %6862 = vrot.lane.b32.xlu1 %v8553_v61, %s12567_s19  ;;  %s12575_s20 = smov 38   ;;  %s12577_s19 = smov 37  }
 0x27c   :  { %5564 = vmatpush1.bf16.msra.mxu1 %v5563_v5  ;;  %v772_v55 = vsel %vm12583_vm15, %v6569_v7, %v6570_v25  ;;  %v795_v58 = vsel %vm12582_vm0, %v6574_v50, %v6575_v52 }
 0x27d   :  { %v8890_v15 = vpop.permute.xlu0 %6577  ;;  %v8892_v31 = vpop.permute.xlu1 %6582  ;;  %v5565_v33 = vpack.c.bf16 %v795_v58, %v772_v55 }
 0x27e   :  { %v12574_v42 = vunpack.i.h.bf16 %v8890_v15  ;;  %v6579_v49 = vunpack.i.l.bf16 %v8890_v15  ;;  %v12579_v3 = vunpack.i.h.bf16 %v8892_v31  ;;  %v6584_v54 = vunpack.i.l.bf16 %v8892_v31 }
 0x27f   :  { %6867 = vrot.lane.b32.xlu0 %v8549_v60, %s12575_s20  ;;  %6872 = vrot.lane.b32.xlu1 %v8549_v60, %s12577_s19 }
 0x280   :  { %v771_v5 = vsel %vm12583_vm15, %v6579_v49, %v6569_v7  ;;  %v8906_v55 = vsel %vm12583_vm15, %v6570_v25, %v12574_v42  ;;  %v794_v58 = vsel %vm12582_vm0, %v6584_v54, %v6574_v50  ;;  %v8912_v28 = vsel %vm12582_vm0, %v6575_v52, %v12579_v3  ;;  %5566 = vmatprep.subr.bf16.mxu1 %v5565_v33 }
 0x281   :  { %v6588_v17 = vpop.permute.xlu0 %6587  ;;  %v6593_v1 = vpop.permute.xlu1 %6592  ;;  %v5567_v30 = vpack.c.bf16 %v794_v58, %v771_v5  ;;  %vm12603_vm0 = vcmask 736256   ;;  %vm12602_vm15 = vcmask 728064  }
 0x282   :  { %v6590_v49 = vunpack.i.h.bf16 %v6588_v17  ;;  %v6589_v4 = vunpack.i.l.bf16 %v6588_v17  ;;  %v6595_v25 = vunpack.i.h.bf16 %v6593_v1  ;;  %v6594_v42 = vunpack.i.l.bf16 %v6593_v1 }
 0x283   :  { %6877 = vrot.lane.b32.xlu0 %v8553_v61, %s12575_s20  ;;  %6882 = vrot.lane.b32.xlu1 %v8553_v61, %s12577_s19  ;;  %s12585_s20 = smov 36   ;;  %s12587_s19 = smov 35  }
 0x284   :  { %5568 = vmatpush1.bf16.msra.mxu1 %v5567_v30  ;;  %v818_v50 = vsel %vm12593_vm1, %v6589_v4, %v6590_v49  ;;  %v841_v54 = vsel %vm12592_vm14, %v6594_v42, %v6595_v25 }
 0x285   :  { %v8922_v52 = vpop.permute.xlu0 %6597  ;;  %v8924_v33 = vpop.permute.xlu1 %6602  ;;  %v5569_v5 = vpack.c.bf16 %v841_v54, %v818_v50 }
 0x286   :  { %v12584_v17 = vunpack.i.h.bf16 %v8922_v52  ;;  %v6599_v1 = vunpack.i.l.bf16 %v8922_v52  ;;  %v12589_v58 = vunpack.i.h.bf16 %v8924_v33  ;;  %v6604_v7 = vunpack.i.l.bf16 %v8924_v33 }
 0x287   :  { %6887 = vrot.lane.b32.xlu0 %v8549_v60, %s12585_s20  ;;  %6892 = vrot.lane.b32.xlu1 %v8549_v60, %s12587_s19 }
 0x288   :  { %v817_v30 = vsel %vm12593_vm1, %v6599_v1, %v6589_v4  ;;  %v8938_v50 = vsel %vm12593_vm1, %v6590_v49, %v12584_v17  ;;  %v840_v54 = vsel %vm12592_vm14, %v6604_v7, %v6594_v42  ;;  %v8944_v3 = vsel %vm12592_vm14, %v6595_v25, %v12589_v58  ;;  %5570 = vmatprep.subr.bf16.mxu1 %v5569_v5 }
 0x289   :  { %v6608_v29 = vpop.permute.xlu0 %6607  ;;  %v6613_v46 = vpop.permute.xlu1 %6612  ;;  %v5571_v43 = vpack.c.bf16 %v840_v54, %v817_v30  ;;  %vm12613_vm14 = vcmask 703488   ;;  %vm12612_vm1 = vcmask 695296  }
 0x28a   :  { %v6610_v1 = vunpack.i.h.bf16 %v6608_v29  ;;  %v6609_v56 = vunpack.i.l.bf16 %v6608_v29  ;;  %v6615_v49 = vunpack.i.h.bf16 %v6613_v46  ;;  %v6614_v17 = vunpack.i.l.bf16 %v6613_v46 }
 0x28b   :  { %6897 = vrot.lane.b32.xlu0 %v8553_v61, %s12585_s20  ;;  %6902 = vrot.lane.b32.xlu1 %v8553_v61, %s12587_s19  ;;  %s12596_s20 = smov 20   ;;  %s12597_s19 = smov 19  }
 0x28c   :  { %5572 = vmatpush1.bf16.msra.mxu1 %v5571_v43  ;;  %v864_v42 = vsel %vm12603_vm0, %v6609_v56, %v6610_v1  ;;  %v887_v7 = vsel %vm12602_vm15, %v6614_v17, %v6615_v49 }
 0x28d   :  { %v8954_v25 = vpop.permute.xlu0 %6617  ;;  %v8956_v5 = vpop.permute.xlu1 %6622  ;;  %v5573_v30 = vpack.c.bf16 %v887_v7, %v864_v42 }
 0x28e   :  { %v12595_v29 = vunpack.i.h.bf16 %v8954_v25  ;;  %v6619_v46 = vunpack.i.l.bf16 %v8954_v25  ;;  %v12598_v54 = vunpack.i.h.bf16 %v8956_v5  ;;  %v6624_v4 = vunpack.i.l.bf16 %v8956_v5 }
 0x28f   :  { %6907 = vrot.lane.b32.xlu0 %v8549_v60, %s12596_s20  ;;  %6912 = vrot.lane.b32.xlu1 %v8549_v60, %s12597_s19 }
 0x290   :  { %v863_v43 = vsel %vm12603_vm0, %v6619_v46, %v6609_v56  ;;  %v8970_v42 = vsel %vm12603_vm0, %v6610_v1, %v12595_v29  ;;  %v886_v7 = vsel %vm12602_vm15, %v6624_v4, %v6614_v17  ;;  %v8976_v58 = vsel %vm12602_vm15, %v6615_v49, %v12598_v54  ;;  %5574 = vmatprep.subr.bf16.mxu1 %v5573_v30 }
 0x291   :  { %12913 = vst [vmem:[#allocation5_spill] sm:$0xff] %v8970_v42  ;;  %v6628_v16 = vpop.permute.xlu0 %6627  ;;  %v6633_v12 = vpop.permute.xlu1 %6632  ;;  %v5575_v35 = vpack.c.bf16 %v886_v7, %v863_v43  ;;  %vm12623_vm15 = vcmask 687104   ;;  %vm12622_vm0 = vcmask 678912  }
 0x292   :  { %v6630_v46 = vunpack.i.h.bf16 %v6628_v16  ;;  %v6629_v44 = vunpack.i.l.bf16 %v6628_v16  ;;  %v6635_v1 = vunpack.i.h.bf16 %v6633_v12  ;;  %v6634_v29 = vunpack.i.l.bf16 %v6633_v12 }
 0x293   :  { %6917 = vrot.lane.b32.xlu0 %v8553_v61, %s12596_s20  ;;  %6922 = vrot.lane.b32.xlu1 %v8553_v61, %s12597_s19  ;;  %s12606_s20 = smov 18   ;;  %s12607_s19 = smov 17  }
 0x294   :  { %5576 = vmatpush1.bf16.msra.mxu1 %v5575_v35  ;;  %v910_v17 = vsel %vm12613_vm14, %v6629_v44, %v6630_v46  ;;  %v933_v4 = vsel %vm12612_vm1, %v6634_v29, %v6635_v1 }
 0x295   :  { %v8986_v49 = vpop.permute.xlu0 %6637  ;;  %v8988_v30 = vpop.permute.xlu1 %6642  ;;  %v5577_v43 = vpack.c.bf16 %v933_v4, %v910_v17 }
 0x296   :  { %v12605_v16 = vunpack.i.h.bf16 %v8986_v49  ;;  %v6639_v12 = vunpack.i.l.bf16 %v8986_v49  ;;  %v12608_v7 = vunpack.i.h.bf16 %v8988_v30  ;;  %v6644_v56 = vunpack.i.l.bf16 %v8988_v30 }
 0x297   :  { %6927 = vrot.lane.b32.xlu0 %v8549_v60, %s12606_s20  ;;  %6932 = vrot.lane.b32.xlu1 %v8549_v60, %s12607_s19 }
 0x298   :  { %v909_v35 = vsel %vm12613_vm14, %v6639_v12, %v6629_v44  ;;  %v9002_v17 = vsel %vm12613_vm14, %v6630_v46, %v12605_v16  ;;  %v932_v4 = vsel %vm12612_vm1, %v6644_v56, %v6634_v29  ;;  %v9008_v54 = vsel %vm12612_vm1, %v6635_v1, %v12608_v7  ;;  %5578 = vmatprep.subr.bf16.mxu1 %v5577_v43 }
 0x299   :  { %12914 = vst [vmem:[#allocation6_spill] sm:$0xff] %v9002_v17  ;;  %12915 = vst [vmem:[#allocation7_spill] sm:$0xff] %v9008_v54  ;;  %v6648_v38 = vpop.permute.xlu0 %6647  ;;  %v6653_v22 = vpop.permute.xlu1 %6652  ;;  %v5579_v18 = vpack.c.bf16 %v932_v4, %v909_v35  ;;  %vm12633_vm1 = vcmask 654336   ;;  %vm12632_vm14 = vcmask 646144  }
 0x29a   :  { %v6650_v12 = vunpack.i.h.bf16 %v6648_v38  ;;  %v6649_v6 = vunpack.i.l.bf16 %v6648_v38  ;;  %v6655_v46 = vunpack.i.h.bf16 %v6653_v22  ;;  %v6654_v16 = vunpack.i.l.bf16 %v6653_v22 }
 0x29b   :  { %6937 = vrot.lane.b32.xlu0 %v8553_v61, %s12606_s20  ;;  %6942 = vrot.lane.b32.xlu1 %v8553_v61, %s12607_s19  ;;  %s12616_s20 = smov 14   ;;  %s12617_s19 = smov 13  }
 0x29c   :  { %5580 = vmatpush1.bf16.msra.mxu1 %v5579_v18  ;;  %v956_v29 = vsel %vm12623_vm15, %v6649_v6, %v6650_v12  ;;  %v979_v56 = vsel %vm12622_vm0, %v6654_v16, %v6655_v46 }
 0x29d   :  { %v9018_v1 = vpop.permute.xlu0 %6657  ;;  %v9020_v43 = vpop.permute.xlu1 %6662  ;;  %v5581_v35 = vpack.c.bf16 %v979_v56, %v956_v29 }
 0x29e   :  { %12916 = vst [vmem:[#allocation8_spill] sm:$0xff] %v9018_v1  ;;  %12917 = vst [vmem:[#allocation9_spill] sm:$0xff] %v9020_v43  ;;  %v12615_v38 = vunpack.i.h.bf16 %v9018_v1  ;;  %v6659_v22 = vunpack.i.l.bf16 %v9018_v1  ;;  %v12618_v4 = vunpack.i.h.bf16 %v9020_v43  ;;  %v6664_v44 = vunpack.i.l.bf16 %v9020_v43 }
 0x29f   :  { %6947 = vrot.lane.b32.xlu0 %v8549_v60, %s12616_s20  ;;  %6952 = vrot.lane.b32.xlu1 %v8549_v60, %s12617_s19 }
 0x2a0   :  { %v955_v18 = vsel %vm12623_vm15, %v6659_v22, %v6649_v6  ;;  %v9034_v29 = vsel %vm12623_vm15, %v6650_v12, %v12615_v38  ;;  %v978_v56 = vsel %vm12622_vm0, %v6664_v44, %v6654_v16  ;;  %v9040_v7 = vsel %vm12622_vm0, %v6655_v46, %v12618_v4  ;;  %5582 = vmatprep.subr.bf16.mxu1 %v5581_v35 }
 0x2a1   :  { %12918 = vst [vmem:[#allocation10_spill] sm:$0xff] %v9034_v29  ;;  %12919 = vst [vmem:[#allocation11_spill] sm:$0xff] %v9040_v7  ;;  %v6668_v17 = vpop.permute.xlu0 %6667  ;;  %v6673_v54 = vpop.permute.xlu1 %6672  ;;  %v5583_v42 = vpack.c.bf16 %v978_v56, %v955_v18  ;;  %vm12643_vm0 = vcmask 637952   ;;  %vm12642_vm15 = vcmask 629760  }
 0x2a2   :  { %v6670_v22 = vunpack.i.h.bf16 %v6668_v17  ;;  %v6669_v1 = vunpack.i.l.bf16 %v6668_v17  ;;  %v6675_v12 = vunpack.i.h.bf16 %v6673_v54  ;;  %v6674_v38 = vunpack.i.l.bf16 %v6673_v54 }
 0x2a3   :  { %6957 = vrot.lane.b32.xlu0 %v8553_v61, %s12616_s20  ;;  %6962 = vrot.lane.b32.xlu1 %v8553_v61, %s12617_s19  ;;  %s12626_s20 = smov 12   ;;  %s12627_s19 = smov 11  }
 0x2a4   :  { %5584 = vmatpush1.bf16.msra.mxu1 %v5583_v42  ;;  %v1002_v16 = vsel %vm12633_vm1, %v6669_v1, %v6670_v22  ;;  %v1025_v44 = vsel %vm12632_vm14, %v6674_v38, %v6675_v12 }
 0x2a5   :  { %v9050_v46 = vpop.permute.xlu0 %6677  ;;  %v9052_v35 = vpop.permute.xlu1 %6682  ;;  %v5585_v18 = vpack.c.bf16 %v1025_v44, %v1002_v16 }
 0x2a6   :  { %12920 = vst [vmem:[#allocation12_spill] sm:$0xff] %v9050_v46  ;;  %12921 = vst [vmem:[#allocation13_spill] sm:$0xff] %v9052_v35  ;;  %v12625_v17 = vunpack.i.h.bf16 %v9050_v46  ;;  %v6679_v54 = vunpack.i.l.bf16 %v9050_v46  ;;  %v12628_v56 = vunpack.i.h.bf16 %v9052_v35  ;;  %v6684_v6 = vunpack.i.l.bf16 %v9052_v35 }
 0x2a7   :  { %6967 = vrot.lane.b32.xlu0 %v8549_v60, %s12626_s20  ;;  %6972 = vrot.lane.b32.xlu1 %v8549_v60, %s12627_s19 }
 0x2a8   :  { %v1001_v42 = vsel %vm12633_vm1, %v6679_v54, %v6669_v1  ;;  %v9066_v16 = vsel %vm12633_vm1, %v6670_v22, %v12625_v17  ;;  %v1024_v44 = vsel %vm12632_vm14, %v6684_v6, %v6674_v38  ;;  %v9072_v4 = vsel %vm12632_vm14, %v6675_v12, %v12628_v56  ;;  %5586 = vmatprep.subr.bf16.mxu1 %v5585_v18 }
 0x2a9   :  { %12922 = vst [vmem:[#allocation14_spill] sm:$0xff] %v9066_v16  ;;  %12923 = vst [vmem:[#allocation15_spill] sm:$0xff] %v9072_v4  ;;  %v6688_v29 = vpop.permute.xlu0 %6687  ;;  %v6693_v7 = vpop.permute.xlu1 %6692  ;;  %v5587_v43 = vpack.c.bf16 %v1024_v44, %v1001_v42  ;;  %vm12655_vm14 = vcmask 605184   ;;  %vm12654_vm1 = vcmask 596992  }
 0x2aa   :  { %v6690_v54 = vunpack.i.h.bf16 %v6688_v29  ;;  %v6689_v46 = vunpack.i.l.bf16 %v6688_v29  ;;  %v6695_v22 = vunpack.i.h.bf16 %v6693_v7  ;;  %v6694_v17 = vunpack.i.l.bf16 %v6693_v7 }
 0x2ab   :  { %6977 = vrot.lane.b32.xlu0 %v8553_v61, %s12626_s20  ;;  %6982 = vrot.lane.b32.xlu1 %v8553_v61, %s12627_s19  ;;  %s12636_s20 = smov 8   ;;  %s12637_s19 = smov 7  }
 0x2ac   :  { %5588 = vmatpush1.bf16.msra.mxu1 %v5587_v43  ;;  %v1048_v38 = vsel %vm12643_vm0, %v6689_v46, %v6690_v54  ;;  %v1071_v6 = vsel %vm12642_vm15, %v6694_v17, %v6695_v22 }
 0x2ad   :  { %v9082_v12 = vpop.permute.xlu0 %6697  ;;  %v9084_v18 = vpop.permute.xlu1 %6702  ;;  %v5589_v42 = vpack.c.bf16 %v1071_v6, %v1048_v38 }
 0x2ae   :  { %12924 = vst [vmem:[#allocation16_spill] sm:$0xff] %v9082_v12  ;;  %12925 = vst [vmem:[#allocation17_spill] sm:$0xff] %v9084_v18  ;;  %v12635_v29 = vunpack.i.h.bf16 %v9082_v12  ;;  %v6699_v7 = vunpack.i.l.bf16 %v9082_v12  ;;  %v12638_v44 = vunpack.i.h.bf16 %v9084_v18  ;;  %v6704_v1 = vunpack.i.l.bf16 %v9084_v18 }
 0x2af   :  { %6987 = vrot.lane.b32.xlu0 %v8549_v60, %s12636_s20  ;;  %6992 = vrot.lane.b32.xlu1 %v8549_v60, %s12637_s19 }
 0x2b0   :  { %v1047_v43 = vsel %vm12643_vm0, %v6699_v7, %v6689_v46  ;;  %v9098_v38 = vsel %vm12643_vm0, %v6690_v54, %v12635_v29  ;;  %v1070_v6 = vsel %vm12642_vm15, %v6704_v1, %v6694_v17  ;;  %v9104_v56 = vsel %vm12642_vm15, %v6695_v22, %v12638_v44  ;;  %5590 = vmatprep.subr.bf16.mxu1 %v5589_v42 }
 0x2b1   :  { %12926 = vst [vmem:[#allocation18_spill] sm:$0xff] %v9098_v38  ;;  %12927 = vst [vmem:[#allocation19_spill] sm:$0xff] %v9104_v56  ;;  %v6708_v16 = vpop.permute.xlu0 %6707  ;;  %v6713_v4 = vpop.permute.xlu1 %6712  ;;  %v5591_v35 = vpack.c.bf16 %v1070_v6, %v1047_v43  ;;  %vm12666_vm15 = vcmask 588800   ;;  %vm12665_vm0 = vcmask 580608  }
 0x2b2   :  { %v6710_v7 = vunpack.i.h.bf16 %v6708_v16  ;;  %v6709_v12 = vunpack.i.l.bf16 %v6708_v16  ;;  %v6715_v54 = vunpack.i.h.bf16 %v6713_v4  ;;  %v6714_v29 = vunpack.i.l.bf16 %v6713_v4 }
 0x2b3   :  { %6997 = vrot.lane.b32.xlu0 %v8553_v61, %s12636_s20  ;;  %7002 = vrot.lane.b32.xlu1 %v8553_v61, %s12637_s19  ;;  %s12646_s20 = smov 6   ;;  %s12647_s19 = smov 5  }
 0x2b4   :  { %5592 = vmatpush1.bf16.msra.mxu1 %v5591_v35  ;;  %v1094_v17 = vsel %vm12655_vm14, %v6709_v12, %v6710_v7  ;;  %v1117_v1 = vsel %vm12654_vm1, %v6714_v29, %v6715_v54 }
 0x2b5   :  { %v9114_v22 = vpop.permute.xlu0 %6717  ;;  %v9116_v42 = vpop.permute.xlu1 %6722  ;;  %v5593_v43 = vpack.c.bf16 %v1117_v1, %v1094_v17 }
 0x2b6   :  { %12928 = vst [vmem:[#allocation20_spill] sm:$0xff] %v9114_v22  ;;  %12929 = vst [vmem:[#allocation21_spill] sm:$0xff] %v9116_v42  ;;  %v12645_v16 = vunpack.i.h.bf16 %v9114_v22  ;;  %v6719_v4 = vunpack.i.l.bf16 %v9114_v22  ;;  %v12648_v6 = vunpack.i.h.bf16 %v9116_v42  ;;  %v6724_v46 = vunpack.i.l.bf16 %v9116_v42 }
 0x2b7   :  { %7007 = vrot.lane.b32.xlu0 %v8549_v60, %s12646_s20  ;;  %7012 = vrot.lane.b32.xlu1 %v8549_v60, %s12647_s19 }
 0x2b8   :  { %v1093_v35 = vsel %vm12655_vm14, %v6719_v4, %v6709_v12  ;;  %v9130_v17 = vsel %vm12655_vm14, %v6710_v7, %v12645_v16  ;;  %v1116_v1 = vsel %vm12654_vm1, %v6724_v46, %v6714_v29  ;;  %v9136_v44 = vsel %vm12654_vm1, %v6715_v54, %v12648_v6  ;;  %5594 = vmatprep.subr.bf16.mxu1 %v5593_v43 }
 0x2b9   :  { %12930 = vst [vmem:[#allocation22_spill] sm:$0xff] %v9130_v17  ;;  %12931 = vst [vmem:[#allocation23_spill] sm:$0xff] %v9136_v44  ;;  %v6728_v38 = vpop.permute.xlu0 %6727  ;;  %v6733_v56 = vpop.permute.xlu1 %6732  ;;  %v5595_v18 = vpack.c.bf16 %v1116_v1, %v1093_v35  ;;  %v1880_v17 = vld [vmem:[%s12520_s4 + $0x18] sm:$0xff]  ;;  %vm12670_vm1 = vcmask 457728   ;;  %vm12669_vm14 = vcmask 449536  }
 0x2ba   :  { %v6730_v4 = vunpack.i.h.bf16 %v6728_v38  ;;  %v6729_v22 = vunpack.i.l.bf16 %v6728_v38  ;;  %v6735_v7 = vunpack.i.h.bf16 %v6733_v56  ;;  %v6734_v16 = vunpack.i.l.bf16 %v6733_v56  ;;  %2294 = vmatprep.mubr.f32.mxu0 %v1880_v17 }
 0x2bb   :  { %7017 = vrot.lane.b32.xlu0 %v8553_v61, %s12646_s20  ;;  %7022 = vrot.lane.b32.xlu1 %v8553_v61, %s12647_s19  ;;  %s12659_s20 = smov 2   ;;  %s12658_s19 = smov 1  }
 0x2bc   :  { %5596 = vmatpush1.bf16.msra.mxu1 %v5595_v18  ;;  %v1140_v29 = vsel %vm12666_vm15, %v6729_v22, %v6730_v4  ;;  %v1163_v46 = vsel %vm12665_vm0, %v6734_v16, %v6735_v7 }
 0x2bd   :  { %v9146_v54 = vpop.permute.xlu0 %6737  ;;  %v9148_v43 = vpop.permute.xlu1 %6742  ;;  %v5597_v35 = vpack.c.bf16 %v1163_v46, %v1140_v29 }
 0x2be   :  { %12932 = vst [vmem:[#allocation24_spill] sm:$0xff] %v9146_v54  ;;  %12933 = vst [vmem:[#allocation25_spill] sm:$0xff] %v9148_v43  ;;  %v12656_v38 = vunpack.i.h.bf16 %v9146_v54  ;;  %v6739_v56 = vunpack.i.l.bf16 %v9146_v54  ;;  %v12657_v1 = vunpack.i.h.bf16 %v9148_v43  ;;  %v6744_v12 = vunpack.i.l.bf16 %v9148_v43 }
 0x2bf   :  { %7027 = vrot.lane.b32.xlu0 %v8549_v60, %s12659_s20  ;;  %7032 = vrot.lane.b32.xlu1 %v8549_v60, %s12658_s19 }
 0x2c0   :  { %v1139_v18 = vsel %vm12666_vm15, %v6739_v56, %v6729_v22  ;;  %v9162_v29 = vsel %vm12666_vm15, %v6730_v4, %v12656_v38  ;;  %v1162_v46 = vsel %vm12665_vm0, %v6744_v12, %v6734_v16  ;;  %v9168_v6 = vsel %vm12665_vm0, %v6735_v7, %v12657_v1  ;;  %5598 = vmatprep.subr.bf16.mxu1 %v5597_v35 }
 0x2c1   :  { %12934 = vst [vmem:[#allocation26_spill] sm:$0xff] %v9162_v29  ;;  %12935 = vst [vmem:[#allocation27_spill] sm:$0xff] %v9168_v6  ;;  %v6748_v60 = vpop.permute.xlu0 %6747  ;;  %v6753_v44 = vpop.permute.xlu1 %6752  ;;  %v5599_v22 = vpack.c.bf16 %v1162_v46, %v1139_v18  ;;  %vm12678_vm0 = vcmask 441344   ;;  %vm12677_vm15 = vcmask 433152  }
 0x2c2   :  { %v6750_v16 = vunpack.i.h.bf16 %v6748_v60  ;;  %v6749_v12 = vunpack.i.l.bf16 %v6748_v60  ;;  %v6755_v56 = vunpack.i.h.bf16 %v6753_v44  ;;  %v6754_v38 = vunpack.i.l.bf16 %v6753_v44 }
 0x2c3   :  { %7037 = vrot.lane.b32.xlu0 %v8553_v61, %s12659_s20  ;;  %7042 = vrot.lane.b32.xlu1 %v8553_v61, %s12658_s19  ;;  %v1877_v61 = vld [vmem:[%s12520_s4] sm:$0xff]  ;;  %s12965_s20 = smov 83   ;;  %s12968_s19 = smov 79  }
 0x2c4   :  { %5600 = vmatpush1.bf16.msra.mxu1 %v5599_v22  ;;  %v1186_v7 = vsel %vm12670_vm1, %v6749_v12, %v6750_v16  ;;  %v1209_v35 = vsel %vm12669_vm14, %v6754_v38, %v6755_v56  ;;  %v1882_v22 = vld [vmem:[%s12520_s4 + $0x28] sm:$0xff] }
 0x2c5   :  { %v9181_v18 = vpop.permute.xlu0 %6757  ;;  %v9183_v17 = vpop.permute.xlu1 %6762  ;;  %v5601_v46 = vpack.c.bf16 %v1209_v35, %v1186_v7 }
 0x2c6   :  { %12936 = vst [vmem:[#allocation28_spill] sm:$0xff] %v9181_v18  ;;  %v12667_v60 = vunpack.i.h.bf16 %v9181_v18  ;;  %v6759_v44 = vunpack.i.l.bf16 %v9181_v18  ;;  %v6764_v1 = vunpack.i.l.bf16 %v9183_v17  ;;  %v12938_v29 = vunpack.i.h.bf16 %v9183_v17 }
 0x2c7   :  { %492 = vrot.lane.b32.xlu0 %v8573_v62, %s12761_s22  ;;  %469 = vrot.lane.b32.xlu1 %v8573_v62, %s12775_s3  ;;  %s13008_s22 = smov 37   ;;  %s13016_s3 = smov 19  }
 0x2c8   :  { %v1185_v7 = vsel %vm12670_vm1, %v6759_v44, %v6749_v12  ;;  %v9203_v35 = vsel %vm12670_vm1, %v6750_v16, %v12667_v60  ;;  %v1208_v4 = vsel %vm12669_vm14, %v6764_v1, %v6754_v38  ;;  %v9209_v6 = vsel %vm12669_vm14, %v6755_v56, %v12938_v29  ;;  %5602 = vmatprep.subr.bf16.mxu0 %v5601_v46  ;;  %v1881_v38 = vld [vmem:[%s12520_s4 + $0x20] sm:$0xff] }
 0x2c9   :  { %12937 = vst [vmem:[#allocation29_spill] sm:$0xff] %v9203_v35  ;;  %12939 = vst [vmem:[#allocation30_spill] sm:$0xff] %v9209_v6  ;;  %v6768_v43 = vpop.permute.xlu0 %6767  ;;  %v6773_v54 = vpop.permute.xlu1 %6772  ;;  %v5603_v42 = vpack.c.bf16 %v1208_v4, %v1185_v7  ;;  %2218 = vmatmul.mubr.f32.vlgmr.msra.gmra.mrb[4].mxu1 %v1877_v61  ;;  %vm12686_vm14 = vcmask 408576   ;;  %vm12685_vm1 = vcmask 400384  }
 0x2ca   :  { %v6770_v44 = vunpack.i.h.bf16 %v6768_v43  ;;  %v6769_v16 = vunpack.i.l.bf16 %v6768_v43  ;;  %v6775_v60 = vunpack.i.h.bf16 %v6773_v54  ;;  %v6774_v18 = vunpack.i.l.bf16 %v6773_v54  ;;  %2223 = vmatprep.mubr.f32.mxu1 %v1882_v22 }
 0x2cb   :  { %538 = vrot.lane.b32.xlu0 %v8573_v62, %s12757_s12  ;;  %515 = vrot.lane.b32.xlu1 %v8573_v62, %s12773_s23  ;;  %s13004_s12 = smov 41   ;;  %s13012_s23 = smov 35  }
 0x2cc   :  { %5604 = vmatpush1.bf16.msra.mxu0 %v5603_v42  ;;  %v1232_v1 = vsel %vm12678_vm0, %v6769_v16, %v6770_v44  ;;  %v1255_v29 = vsel %vm12677_vm15, %v6774_v18, %v6775_v60 }
 0x2cd   :  { %v9222_v4 = vpop.permute.xlu0 %6777  ;;  %v9224_v43 = vpop.permute.xlu1 %6782  ;;  %v5605_v54 = vpack.c.bf16 %v1255_v29, %v1232_v1  ;;  %2224 = vmatmul.mubr.f32.gmra.mrb[6].mxu1 %v1881_v38 }
 0x2ce   :  { %v12672_v56 = vunpack.i.h.bf16 %v9222_v4  ;;  %v6779_v46 = vunpack.i.l.bf16 %v9222_v4  ;;  %v12673_v61 = vunpack.i.h.bf16 %v9224_v43  ;;  %v6784_v22 = vunpack.i.l.bf16 %v9224_v43  ;;  %2371 = vmatprep.mubr.f32.mxu1 %v8815_v59 }
 0x2cf   :  { %584 = vrot.lane.b32.xlu0 %v8573_v62, %s12745_s25  ;;  %561 = vrot.lane.b32.xlu1 %v8573_v62, %s12771_s24  ;;  %s13000_s25 = smov 43   ;;  %s13011_s24 = smov 20  }
 0x2d0   :  { %v1231_v42 = vsel %vm12678_vm0, %v6779_v46, %v6769_v16  ;;  %v9239_v7 = vsel %vm12678_vm0, %v6770_v44, %v12672_v56  ;;  %v1254_v38 = vsel %vm12677_vm15, %v6784_v22, %v6774_v18  ;;  %v9245_v1 = vsel %vm12677_vm15, %v6775_v60, %v12673_v61  ;;  %5606 = vmatprep.subr.bf16.mxu0 %v5605_v54 }
 0x2d1   :  { %12940 = vst [vmem:[#allocation31_spill] sm:$0xff] %v9239_v7  ;;  %12941 = vst [vmem:[#allocation32_spill] sm:$0xff] %v9245_v1  ;;  %v6788_v59 = vpop.permute.xlu0 %6787  ;;  %v6793_v29 = vpop.permute.xlu1 %6792  ;;  %v5607_v12 = vpack.c.bf16 %v1254_v38, %v1231_v42  ;;  %vm12694_vm15 = vcmask 392192   ;;  %vm12693_vm0 = vcmask 384000  }
 0x2d2   :  { %v6790_v46 = vunpack.i.h.bf16 %v6788_v59  ;;  %v6789_v35 = vunpack.i.l.bf16 %v6788_v59  ;;  %v6795_v44 = vunpack.i.h.bf16 %v6793_v29  ;;  %v6794_v56 = vunpack.i.l.bf16 %v6793_v29 }
 0x2d3   :  { %630 = vrot.lane.b32.xlu0 %v8573_v62, %s12759_s27  ;;  %607 = vrot.lane.b32.xlu1 %v8573_v62, %s8011_s26  ;;  %s12952_s26 = smov 90   ;;  %s13007_s27 = smov 36  }
 0x2d4   :  { %5608 = vmatpush1.bf16.msra.mxu0 %v5607_v12  ;;  %v1278_v18 = vsel %vm12686_vm14, %v6789_v35, %v6790_v46  ;;  %v1301_v60 = vsel %vm12685_vm1, %v6794_v56, %v6795_v44 }
 0x2d5   :  { %v9255_v54 = vpop.permute.xlu0 %6797  ;;  %v9257_v22 = vpop.permute.xlu1 %6802  ;;  %v5609_v42 = vpack.c.bf16 %v1301_v60, %v1278_v18 }
 0x2d6   :  { %12942 = vst [vmem:[#allocation33_spill] sm:$0xff] %v9255_v54  ;;  %12943 = vst [vmem:[#allocation34_spill] sm:$0xff] %v9257_v22  ;;  %v12680_v38 = vunpack.i.h.bf16 %v9255_v54  ;;  %v6799_v59 = vunpack.i.l.bf16 %v9255_v54  ;;  %v12681_v29 = vunpack.i.h.bf16 %v9257_v22  ;;  %v6804_v16 = vunpack.i.l.bf16 %v9257_v22 }
 0x2d7   :  { %676 = vrot.lane.b32.xlu0 %v8573_v62, %s8014_s29  ;;  %653 = vrot.lane.b32.xlu1 %v8573_v62, %s12743_s28  ;;  %s12953_s29 = smov 91   ;;  %s12996_s28 = smov 47  }
 0x2d8   :  { %v1277_v12 = vsel %vm12686_vm14, %v6799_v59, %v6789_v35  ;;  %v9271_v18 = vsel %vm12686_vm14, %v6790_v46, %v12680_v38  ;;  %v1300_v60 = vsel %vm12685_vm1, %v6804_v16, %v6794_v56  ;;  %v9277_v61 = vsel %vm12685_vm1, %v6795_v44, %v12681_v29  ;;  %5610 = vmatprep.subr.bf16.mxu0 %v5609_v42 }
 0x2d9   :  { %12944 = vst [vmem:[#allocation35_spill] sm:$0xff] %v9271_v18  ;;  %12945 = vst [vmem:[#allocation36_spill] sm:$0xff] %v9277_v61  ;;  %v6808_v7 = vpop.permute.xlu0 %6807  ;;  %v6813_v1 = vpop.permute.xlu1 %6812  ;;  %v5611_v6 = vpack.c.bf16 %v1300_v60, %v1277_v12  ;;  %vm12702_vm1 = vcmask 359424   ;;  %vm12701_vm14 = vcmask 351232  }
 0x2da   :  { %v6810_v59 = vunpack.i.h.bf16 %v6808_v7  ;;  %v6809_v54 = vunpack.i.l.bf16 %v6808_v7  ;;  %v6815_v46 = vunpack.i.h.bf16 %v6813_v1  ;;  %v6814_v38 = vunpack.i.l.bf16 %v6813_v1 }
 0x2db   :  { %722 = vrot.lane.b32.xlu0 %v8573_v62, %s12733_s15  ;;  %699 = vrot.lane.b32.xlu1 %v8573_v62, %s12755_s30  ;;  %s12992_s15 = smov 49   ;;  %s13003_s30 = smov 38  }
 0x2dc   :  { %5612 = vmatpush1.bf16.msra.mxu0 %v5611_v6  ;;  %v1324_v56 = vsel %vm12694_vm15, %v6809_v54, %v6810_v59  ;;  %v1347_v16 = vsel %vm12693_vm0, %v6814_v38, %v6815_v46 }
 0x2dd   :  { %v9287_v44 = vpop.permute.xlu0 %6817  ;;  %v9289_v42 = vpop.permute.xlu1 %6822  ;;  %v5613_v12 = vpack.c.bf16 %v1347_v16, %v1324_v56 }
 0x2de   :  { %12946 = vst [vmem:[#allocation37_spill] sm:$0xff] %v9287_v44  ;;  %12947 = vst [vmem:[#allocation38_spill] sm:$0xff] %v9289_v42  ;;  %v12688_v7 = vunpack.i.h.bf16 %v9287_v44  ;;  %v6819_v1 = vunpack.i.l.bf16 %v9287_v44  ;;  %v12689_v60 = vunpack.i.h.bf16 %v9289_v42  ;;  %v6824_v35 = vunpack.i.l.bf16 %v9289_v42 }
 0x2df   :  { %768 = vrot.lane.b32.xlu0 %v8573_v62, %s8018_s17  ;;  %745 = vrot.lane.b32.xlu1 %v8573_v62, %s8017_s16  ;;  %s12956_s16 = smov 86   ;;  %s12957_s17 = smov 89  }
 0x2e0   :  { %v1323_v6 = vsel %vm12694_vm15, %v6819_v1, %v6809_v54  ;;  %v9303_v56 = vsel %vm12694_vm15, %v6810_v59, %v12688_v7  ;;  %v1346_v16 = vsel %vm12693_vm0, %v6824_v35, %v6814_v38  ;;  %v9309_v29 = vsel %vm12693_vm0, %v6815_v46, %v12689_v60  ;;  %5614 = vmatprep.subr.bf16.mxu0 %v5613_v12 }
 0x2e1   :  { %12948 = vst [vmem:[#allocation39_spill] sm:$0xff] %v9303_v56  ;;  %12949 = vst [vmem:[#allocation40_spill] sm:$0xff] %v9309_v29  ;;  %v6828_v18 = vpop.permute.xlu0 %6827  ;;  %v6833_v61 = vpop.permute.xlu1 %6832  ;;  %v5615_v22 = vpack.c.bf16 %v1346_v16, %v1323_v6  ;;  %vm12710_vm0 = vcmask 343040   ;;  %vm12709_vm15 = vcmask 334848  }
 0x2e2   :  { %v6830_v1 = vunpack.i.h.bf16 %v6828_v18  ;;  %v6829_v44 = vunpack.i.l.bf16 %v6828_v18  ;;  %v6835_v59 = vunpack.i.h.bf16 %v6833_v61  ;;  %v6834_v7 = vunpack.i.l.bf16 %v6833_v61 }
 0x2e3   :  { %814 = vrot.lane.b32.xlu0 %v8573_v62, %s12731_s0  ;;  %791 = vrot.lane.b32.xlu1 %v8573_v62, %s8019_s18  ;;  %s12960_s18 = smov 84   ;;  %s12991_s0 = smov 48  }
 0x2e4   :  { %5616 = vmatpush1.bf16.msra.mxu0 %v5615_v22  ;;  %v1370_v38 = vsel %vm12702_vm1, %v6829_v44, %v6830_v1  ;;  %v1393_v35 = vsel %vm12701_vm14, %v6834_v7, %v6835_v59 }
 0x2e5   :  { %v9319_v46 = vpop.permute.xlu0 %6837  ;;  %v9321_v12 = vpop.permute.xlu1 %6842  ;;  %v5617_v6 = vpack.c.bf16 %v1393_v35, %v1370_v38 }
 0x2e6   :  { %12950 = vst [vmem:[#allocation41_spill] sm:$0xff] %v9319_v46  ;;  %12951 = vst [vmem:[#allocation42_spill] sm:$0xff] %v9321_v12  ;;  %v12696_v18 = vunpack.i.h.bf16 %v9319_v46  ;;  %v6839_v61 = vunpack.i.l.bf16 %v9319_v46  ;;  %v12697_v16 = vunpack.i.h.bf16 %v9321_v12  ;;  %v6844_v54 = vunpack.i.l.bf16 %v9321_v12 }
 0x2e7   :  { %860 = vrot.lane.b32.xlu0 %v8573_v62, %s12952_s26  ;;  %837 = vrot.lane.b32.xlu1 %v8573_v62, %s12953_s29 }
 0x2e8   :  { %v1369_v22 = vsel %vm12702_vm1, %v6839_v61, %v6829_v44  ;;  %v9335_v38 = vsel %vm12702_vm1, %v6830_v1, %v12696_v18  ;;  %v1392_v35 = vsel %vm12701_vm14, %v6844_v54, %v6834_v7  ;;  %v9341_v60 = vsel %vm12701_vm14, %v6835_v59, %v12697_v16  ;;  %5618 = vmatprep.subr.bf16.mxu0 %v5617_v6 }
 0x2e9   :  { %12954 = vst [vmem:[#allocation43_spill] sm:$0xff] %v9335_v38  ;;  %12955 = vst [vmem:[#allocation44_spill] sm:$0xff] %v9341_v60  ;;  %v6848_v56 = vpop.permute.xlu0 %6847  ;;  %v6853_v29 = vpop.permute.xlu1 %6852  ;;  %v5619_v42 = vpack.c.bf16 %v1392_v35, %v1369_v22  ;;  %vm12718_vm14 = vcmask 310272   ;;  %vm12717_vm1 = vcmask 302080  }
 0x2ea   :  { %v6850_v61 = vunpack.i.h.bf16 %v6848_v56  ;;  %v6849_v46 = vunpack.i.l.bf16 %v6848_v56  ;;  %v6855_v1 = vunpack.i.h.bf16 %v6853_v29  ;;  %v6854_v18 = vunpack.i.l.bf16 %v6853_v29 }
 0x2eb   :  { %906 = vrot.lane.b32.xlu0 %v8573_v62, %s12956_s16  ;;  %883 = vrot.lane.b32.xlu1 %v8573_v62, %s12957_s17  ;;  %s12971_s17 = smov 74  }
 0x2ec   :  { %5620 = vmatpush1.bf16.msra.mxu0 %v5619_v42  ;;  %v1416_v7 = vsel %vm12710_vm0, %v6849_v46, %v6850_v61  ;;  %v1439_v54 = vsel %vm12709_vm15, %v6854_v18, %v6855_v1 }
 0x2ed   :  { %v9351_v59 = vpop.permute.xlu0 %6857  ;;  %v9353_v6 = vpop.permute.xlu1 %6862  ;;  %v5621_v22 = vpack.c.bf16 %v1439_v54, %v1416_v7 }
 0x2ee   :  { %12958 = vst [vmem:[#allocation45_spill] sm:$0xff] %v9351_v59  ;;  %12959 = vst [vmem:[#allocation46_spill] sm:$0xff] %v9353_v6  ;;  %v12704_v56 = vunpack.i.h.bf16 %v9351_v59  ;;  %v6859_v29 = vunpack.i.l.bf16 %v9351_v59  ;;  %v12705_v35 = vunpack.i.h.bf16 %v9353_v6  ;;  %v6864_v44 = vunpack.i.l.bf16 %v9353_v6 }
 0x2ef   :  { %952 = vrot.lane.b32.xlu0 %v8573_v62, %s12960_s18  ;;  %929 = vrot.lane.b32.xlu1 %v8573_v62, %s12961_s1  ;;  %s12972_s18 = smov 77  }
 0x2f0   :  { %v1415_v42 = vsel %vm12710_vm0, %v6859_v29, %v6849_v46  ;;  %v9367_v7 = vsel %vm12710_vm0, %v6850_v61, %v12704_v56  ;;  %v1438_v54 = vsel %vm12709_vm15, %v6864_v44, %v6854_v18  ;;  %v9373_v16 = vsel %vm12709_vm15, %v6855_v1, %v12705_v35  ;;  %5622 = vmatprep.subr.bf16.mxu0 %v5621_v22 }
 0x2f1   :  { %12962 = vst [vmem:[#allocation47_spill] sm:$0xff] %v9367_v7  ;;  %12963 = vst [vmem:[#allocation48_spill] sm:$0xff] %v9373_v16  ;;  %v6868_v38 = vpop.permute.xlu0 %6867  ;;  %v6873_v60 = vpop.permute.xlu1 %6872  ;;  %v5623_v12 = vpack.c.bf16 %v1438_v54, %v1415_v42  ;;  %vm12728_vm15 = vcmask 293888   ;;  %vm12727_vm0 = vcmask 285696  }
 0x2f2   :  { %v6870_v29 = vunpack.i.h.bf16 %v6868_v38  ;;  %v6869_v59 = vunpack.i.l.bf16 %v6868_v38  ;;  %v6875_v61 = vunpack.i.h.bf16 %v6873_v60  ;;  %v6874_v56 = vunpack.i.l.bf16 %v6873_v60 }
 0x2f3   :  { %998 = vrot.lane.b32.xlu0 %v8573_v62, %s12964_s2  ;;  %975 = vrot.lane.b32.xlu1 %v8573_v62, %s12965_s20  ;;  %s12975_s2 = smov 72   ;;  %s12976_s20 = smov 73  }
 0x2f4   :  { %5624 = vmatpush1.bf16.msra.mxu0 %v5623_v12  ;;  %v1462_v18 = vsel %vm12718_vm14, %v6869_v59, %v6870_v29  ;;  %v1485_v44 = vsel %vm12717_vm1, %v6874_v56, %v6875_v61 }
 0x2f5   :  { %v9383_v1 = vpop.permute.xlu0 %6877  ;;  %v9385_v22 = vpop.permute.xlu1 %6882  ;;  %v5625_v42 = vpack.c.bf16 %v1485_v44, %v1462_v18 }
 0x2f6   :  { %12966 = vst [vmem:[#allocation49_spill] sm:$0xff] %v9383_v1  ;;  %12967 = vst [vmem:[#allocation50_spill] sm:$0xff] %v9385_v22  ;;  %v12712_v38 = vunpack.i.h.bf16 %v9383_v1  ;;  %v6879_v60 = vunpack.i.l.bf16 %v9383_v1  ;;  %v12713_v54 = vunpack.i.h.bf16 %v9385_v22  ;;  %v6884_v46 = vunpack.i.l.bf16 %v9385_v22 }
 0x2f7   :  { %1044 = vrot.lane.b32.xlu0 %v8573_v62, %s12721_s21  ;;  %1021 = vrot.lane.b32.xlu1 %v8573_v62, %s12968_s19  ;;  %s12979_s19 = smov 56   ;;  %s12984_s21 = smov 55  }
 0x2f8   :  { %v1461_v12 = vsel %vm12718_vm14, %v6879_v60, %v6869_v59  ;;  %v9399_v18 = vsel %vm12718_vm14, %v6870_v29, %v12712_v38  ;;  %v1484_v44 = vsel %vm12717_vm1, %v6884_v46, %v6874_v56  ;;  %v9405_v35 = vsel %vm12717_vm1, %v6875_v61, %v12713_v54  ;;  %5626 = vmatprep.subr.bf16.mxu0 %v5625_v42 }
 0x2f9   :  { %12969 = vst [vmem:[#allocation51_spill] sm:$0xff] %v9399_v18  ;;  %12970 = vst [vmem:[#allocation52_spill] sm:$0xff] %v9405_v35  ;;  %v6888_v7 = vpop.permute.xlu0 %6887  ;;  %v6893_v16 = vpop.permute.xlu1 %6892  ;;  %v5627_v6 = vpack.c.bf16 %v1484_v44, %v1461_v12  ;;  %vm12740_vm1 = vcmask 162816   ;;  %vm12739_vm14 = vcmask 154624  }
 0x2fa   :  { %v6890_v60 = vunpack.i.h.bf16 %v6888_v7  ;;  %v6889_v1 = vunpack.i.l.bf16 %v6888_v7  ;;  %v6895_v29 = vunpack.i.h.bf16 %v6893_v16  ;;  %v6894_v38 = vunpack.i.l.bf16 %v6893_v16 }
 0x2fb   :  { %1090 = vrot.lane.b32.xlu0 %v8573_v62, %s12971_s17  ;;  %1067 = vrot.lane.b32.xlu1 %v8573_v62, %s12972_s18  ;;  %s12980_s17 = smov 71  }
 0x2fc   :  { %5628 = vmatpush1.bf16.msra.mxu0 %v5627_v6  ;;  %v1508_v56 = vsel %vm12728_vm15, %v6889_v1, %v6890_v60  ;;  %v1531_v46 = vsel %vm12727_vm0, %v6894_v38, %v6895_v29 }
 0x2fd   :  { %v9415_v61 = vpop.permute.xlu0 %6897  ;;  %v9417_v42 = vpop.permute.xlu1 %6902  ;;  %v5629_v12 = vpack.c.bf16 %v1531_v46, %v1508_v56 }
 0x2fe   :  { %12973 = vst [vmem:[#allocation53_spill] sm:$0xff] %v9415_v61  ;;  %12974 = vst [vmem:[#allocation54_spill] sm:$0xff] %v9417_v42  ;;  %v12720_v7 = vunpack.i.h.bf16 %v9415_v61  ;;  %v6899_v16 = vunpack.i.l.bf16 %v9415_v61  ;;  %v12723_v44 = vunpack.i.h.bf16 %v9417_v42  ;;  %v6904_v59 = vunpack.i.l.bf16 %v9417_v42 }
 0x2ff   :  { %1136 = vrot.lane.b32.xlu0 %v8573_v62, %s12975_s2  ;;  %1113 = vrot.lane.b32.xlu1 %v8573_v62, %s12976_s20 }
 0x300   :  { %v1507_v6 = vsel %vm12728_vm15, %v6899_v16, %v6889_v1  ;;  %v9431_v56 = vsel %vm12728_vm15, %v6890_v60, %v12720_v7  ;;  %v1530_v46 = vsel %vm12727_vm0, %v6904_v59, %v6894_v38  ;;  %v9437_v54 = vsel %vm12727_vm0, %v6895_v29, %v12723_v44  ;;  %5630 = vmatprep.subr.bf16.mxu0 %v5629_v12 }
 0x301   :  { %12977 = vst [vmem:[#allocation55_spill] sm:$0xff] %v9431_v56  ;;  %12978 = vst [vmem:[#allocation56_spill] sm:$0xff] %v9437_v54  ;;  %v6908_v18 = vpop.permute.xlu0 %6907  ;;  %v6913_v35 = vpop.permute.xlu1 %6912  ;;  %v5631_v22 = vpack.c.bf16 %v1530_v46, %v1507_v6  ;;  %vm12752_vm0 = vcmask 146432   ;;  %vm12751_vm15 = vcmask 138240  }
 0x302   :  { %v6910_v16 = vunpack.i.h.bf16 %v6908_v18  ;;  %v6909_v61 = vunpack.i.l.bf16 %v6908_v18  ;;  %v6915_v60 = vunpack.i.h.bf16 %v6913_v35  ;;  %v6914_v7 = vunpack.i.l.bf16 %v6913_v35 }
 0x303   :  { %1182 = vrot.lane.b32.xlu0 %v8573_v62, %s12979_s19  ;;  %1159 = vrot.lane.b32.xlu1 %v8573_v62, %s12980_s17  ;;  %s12983_s19 = smov 54  }
 0x304   :  { %5632 = vmatpush1.bf16.msra.mxu0 %v5631_v22  ;;  %v1554_v38 = vsel %vm12740_vm1, %v6909_v61, %v6910_v16  ;;  %v1577_v59 = vsel %vm12739_vm14, %v6914_v7, %v6915_v60 }
 0x305   :  { %v9447_v29 = vpop.permute.xlu0 %6917  ;;  %v9449_v12 = vpop.permute.xlu1 %6922  ;;  %v5633_v6 = vpack.c.bf16 %v1577_v59, %v1554_v38 }
 0x306   :  { %12981 = vst [vmem:[#allocation57_spill] sm:$0xff] %v9447_v29  ;;  %12982 = vst [vmem:[#allocation58_spill] sm:$0xff] %v9449_v12  ;;  %v12730_v18 = vunpack.i.h.bf16 %v9447_v29  ;;  %v6919_v35 = vunpack.i.l.bf16 %v9447_v29  ;;  %v12735_v46 = vunpack.i.h.bf16 %v9449_v12  ;;  %v6924_v1 = vunpack.i.l.bf16 %v9449_v12 }
 0x307   :  { %1228 = vrot.lane.b32.xlu0 %v8573_v62, %s12983_s19  ;;  %1205 = vrot.lane.b32.xlu1 %v8573_v62, %s12984_s21  ;;  %s12987_s21 = smov 50   ;;  %s12988_s19 = smov 53  }
 0x308   :  { %v1553_v22 = vsel %vm12740_vm1, %v6919_v35, %v6909_v61  ;;  %v9463_v38 = vsel %vm12740_vm1, %v6910_v16, %v12730_v18  ;;  %v1576_v59 = vsel %vm12739_vm14, %v6924_v1, %v6914_v7  ;;  %v9469_v44 = vsel %vm12739_vm14, %v6915_v60, %v12735_v46  ;;  %5634 = vmatprep.subr.bf16.mxu0 %v5633_v6 }
 0x309   :  { %12985 = vst [vmem:[#allocation59_spill] sm:$0xff] %v9463_v38  ;;  %12986 = vst [vmem:[#allocation60_spill] sm:$0xff] %v9469_v44  ;;  %v6928_v56 = vpop.permute.xlu0 %6927  ;;  %v6933_v54 = vpop.permute.xlu1 %6932  ;;  %v5635_v42 = vpack.c.bf16 %v1576_v59, %v1553_v22  ;;  %vm12768_vm14 = vcmask 113664   ;;  %vm12767_vm1 = vcmask 105472  }
 0x30a   :  { %v6930_v35 = vunpack.i.h.bf16 %v6928_v56  ;;  %v6929_v29 = vunpack.i.l.bf16 %v6928_v56  ;;  %v6935_v16 = vunpack.i.h.bf16 %v6933_v54  ;;  %v6934_v18 = vunpack.i.l.bf16 %v6933_v54 }
 0x30b   :  { %1274 = vrot.lane.b32.xlu0 %v8573_v62, %s12987_s21  ;;  %1251 = vrot.lane.b32.xlu1 %v8573_v62, %s12988_s19  ;;  %s13266_s21 = smov 95   ;;  %s13273_s19 = smov 76  }
 0x30c   :  { %5636 = vmatpush1.bf16.msra.mxu0 %v5635_v42  ;;  %v1600_v7 = vsel %vm12752_vm0, %v6929_v29, %v6930_v35  ;;  %v1623_v1 = vsel %vm12751_vm15, %v6934_v18, %v6935_v16 }
 0x30d   :  { %v9479_v60 = vpop.permute.xlu0 %6937  ;;  %v9481_v6 = vpop.permute.xlu1 %6942  ;;  %v5637_v22 = vpack.c.bf16 %v1623_v1, %v1600_v7 }
 0x30e   :  { %12989 = vst [vmem:[#allocation61_spill] sm:$0xff] %v9479_v60  ;;  %12990 = vst [vmem:[#allocation62_spill] sm:$0xff] %v9481_v6  ;;  %v12742_v56 = vunpack.i.h.bf16 %v9479_v60  ;;  %v6939_v54 = vunpack.i.l.bf16 %v9479_v60  ;;  %v12747_v59 = vunpack.i.h.bf16 %v9481_v6  ;;  %v6944_v61 = vunpack.i.l.bf16 %v9481_v6 }
 0x30f   :  { %1320 = vrot.lane.b32.xlu0 %v8573_v62, %s12991_s0  ;;  %1297 = vrot.lane.b32.xlu1 %v8573_v62, %s12992_s15  ;;  %s12995_s15 = smov 44   ;;  %s13267_s0 = smov 88  }
 0x310   :  { %v1599_v42 = vsel %vm12752_vm0, %v6939_v54, %v6929_v29  ;;  %v9495_v7 = vsel %vm12752_vm0, %v6930_v35, %v12742_v56  ;;  %v1622_v1 = vsel %vm12751_vm15, %v6944_v61, %v6934_v18  ;;  %v9501_v46 = vsel %vm12751_vm15, %v6935_v16, %v12747_v59  ;;  %5638 = vmatprep.subr.bf16.mxu0 %v5637_v22 }
 0x311   :  { %12993 = vst [vmem:[#allocation63_spill] sm:$0xff] %v9495_v7  ;;  %12994 = vst [vmem:[#allocation64_spill] sm:$0xff] %v9501_v46  ;;  %v6948_v38 = vpop.permute.xlu0 %6947  ;;  %v6953_v44 = vpop.permute.xlu1 %6952  ;;  %v5639_v12 = vpack.c.bf16 %v1622_v1, %v1599_v42  ;;  %vm12782_vm15 = vcmask 97280   ;;  %vm12781_vm0 = vcmask 89088  }
 0x312   :  { %v6950_v54 = vunpack.i.h.bf16 %v6948_v38  ;;  %v6949_v60 = vunpack.i.l.bf16 %v6948_v38  ;;  %v6955_v35 = vunpack.i.h.bf16 %v6953_v44  ;;  %v6954_v56 = vunpack.i.l.bf16 %v6953_v44 }
 0x313   :  { %1366 = vrot.lane.b32.xlu0 %v8573_v62, %s12995_s15  ;;  %1343 = vrot.lane.b32.xlu1 %v8573_v62, %s12996_s28  ;;  %s12999_s15 = smov 42   ;;  %s13251_s28 = smov 126  }
 0x314   :  { %5640 = vmatpush1.bf16.msra.mxu0 %v5639_v12  ;;  %v1646_v18 = vsel %vm12768_vm14, %v6949_v60, %v6950_v54  ;;  %v1669_v61 = vsel %vm12767_vm1, %v6954_v56, %v6955_v35 }
 0x315   :  { %v9511_v16 = vpop.permute.xlu0 %6957  ;;  %v9513_v22 = vpop.permute.xlu1 %6962  ;;  %v5641_v42 = vpack.c.bf16 %v1669_v61, %v1646_v18 }
 0x316   :  { %12997 = vst [vmem:[#allocation65_spill] sm:$0xff] %v9511_v16  ;;  %12998 = vst [vmem:[#allocation66_spill] sm:$0xff] %v9513_v22  ;;  %v12754_v38 = vunpack.i.h.bf16 %v9511_v16  ;;  %v6959_v44 = vunpack.i.l.bf16 %v9511_v16  ;;  %v12763_v1 = vunpack.i.h.bf16 %v9513_v22  ;;  %v6964_v29 = vunpack.i.l.bf16 %v9513_v22 }
 0x317   :  { %1412 = vrot.lane.b32.xlu0 %v8573_v62, %s12999_s15  ;;  %1389 = vrot.lane.b32.xlu1 %v8573_v62, %s13000_s25  ;;  %s13254_s15 = smov 113   ;;  %s13265_s25 = smov 118  }
 0x318   :  { %v1645_v12 = vsel %vm12768_vm14, %v6959_v44, %v6949_v60  ;;  %v9527_v18 = vsel %vm12768_vm14, %v6950_v54, %v12754_v38  ;;  %v1668_v61 = vsel %vm12767_vm1, %v6964_v29, %v6954_v56  ;;  %v9533_v59 = vsel %vm12767_vm1, %v6955_v35, %v12763_v1  ;;  %5642 = vmatprep.subr.bf16.mxu0 %v5641_v42 }
 0x319   :  { %13001 = vst [vmem:[#allocation67_spill] sm:$0xff] %v9527_v18  ;;  %13002 = vst [vmem:[#allocation68_spill] sm:$0xff] %v9533_v59  ;;  %v6968_v7 = vpop.permute.xlu0 %6967  ;;  %v6973_v46 = vpop.permute.xlu1 %6972  ;;  %v5643_v6 = vpack.c.bf16 %v1668_v61, %v1645_v12  ;;  %vm12790_vm1 = vcmask 64512   ;;  %vm12789_vm14 = vcmask 56320  }
 0x31a   :  { %v6970_v44 = vunpack.i.h.bf16 %v6968_v7  ;;  %v6969_v16 = vunpack.i.l.bf16 %v6968_v7  ;;  %v6975_v54 = vunpack.i.h.bf16 %v6973_v46  ;;  %v6974_v38 = vunpack.i.l.bf16 %v6973_v46 }
 0x31b   :  { %1458 = vrot.lane.b32.xlu0 %v8573_v62, %s13003_s30  ;;  %1435 = vrot.lane.b32.xlu1 %v8573_v62, %s13004_s12  ;;  %s12805_s12 = smov 123   ;;  %s13253_s30 = smov 122  }
 0x31c   :  { %5644 = vmatpush1.bf16.msra.mxu0 %v5643_v6  ;;  %v1692_v56 = vsel %vm12782_vm15, %v6969_v16, %v6970_v44  ;;  %v1715_v29 = vsel %vm12781_vm0, %v6974_v38, %v6975_v54 }
 0x31d   :  { %v9543_v35 = vpop.permute.xlu0 %6977  ;;  %v9545_v42 = vpop.permute.xlu1 %6982  ;;  %v5645_v12 = vpack.c.bf16 %v1715_v29, %v1692_v56 }
 0x31e   :  { %13005 = vst [vmem:[#allocation69_spill] sm:$0xff] %v9543_v35  ;;  %13006 = vst [vmem:[#allocation70_spill] sm:$0xff] %v9545_v42  ;;  %v12770_v7 = vunpack.i.h.bf16 %v9543_v35  ;;  %v6979_v46 = vunpack.i.l.bf16 %v9543_v35  ;;  %v12777_v61 = vunpack.i.h.bf16 %v9545_v42  ;;  %v6984_v60 = vunpack.i.l.bf16 %v9545_v42 }
 0x31f   :  { %1504 = vrot.lane.b32.xlu0 %v8573_v62, %s13007_s27  ;;  %1481 = vrot.lane.b32.xlu1 %v8573_v62, %s13008_s22  ;;  %s13252_s27 = smov 116   ;;  %s12811_s22 = smov 98  }
 0x320   :  { %v1691_v6 = vsel %vm12782_vm15, %v6979_v46, %v6969_v16  ;;  %v9559_v56 = vsel %vm12782_vm15, %v6970_v44, %v12770_v7  ;;  %v1714_v29 = vsel %vm12781_vm0, %v6984_v60, %v6974_v38  ;;  %v9565_v1 = vsel %vm12781_vm0, %v6975_v54, %v12777_v61  ;;  %5646 = vmatprep.subr.bf16.mxu0 %v5645_v12 }
 0x321   :  { %13009 = vst [vmem:[#allocation71_spill] sm:$0xff] %v9559_v56  ;;  %13010 = vst [vmem:[#allocation72_spill] sm:$0xff] %v9565_v1  ;;  %v6988_v18 = vpop.permute.xlu0 %6987  ;;  %v6993_v59 = vpop.permute.xlu1 %6992  ;;  %v5647_v22 = vpack.c.bf16 %v1714_v29, %v1691_v6  ;;  %vm1782_vm0 = vcmask 48128   ;;  %vm1805_vm15 = vcmask 39936  }
 0x322   :  { %v6990_v46 = vunpack.i.h.bf16 %v6988_v18  ;;  %v6989_v35 = vunpack.i.l.bf16 %v6988_v18  ;;  %v6995_v44 = vunpack.i.h.bf16 %v6993_v59  ;;  %v6994_v7 = vunpack.i.l.bf16 %v6993_v59 }
 0x323   :  { %1550 = vrot.lane.b32.xlu0 %v8573_v62, %s13011_s24  ;;  %1527 = vrot.lane.b32.xlu1 %v8573_v62, %s13012_s23  ;;  %s13015_s24 = smov 18   ;;  %s12801_s23 = smov 118  }
 0x324   :  { %5648 = vmatpush1.bf16.msra.mxu0 %v5647_v22  ;;  %v1738_v38 = vsel %vm12790_vm1, %v6989_v35, %v6990_v46  ;;  %v1761_v60 = vsel %vm12789_vm14, %v6994_v7, %v6995_v44 }
 0x325   :  { %v9575_v54 = vpop.permute.xlu0 %6997  ;;  %v9577_v12 = vpop.permute.xlu1 %7002  ;;  %v5649_v6 = vpack.c.bf16 %v1761_v60, %v1738_v38 }
 0x326   :  { %13013 = vst [vmem:[#allocation73_spill] sm:$0xff] %v9575_v54  ;;  %13014 = vst [vmem:[#allocation74_spill] sm:$0xff] %v9577_v12  ;;  %v12784_v18 = vunpack.i.h.bf16 %v9575_v54  ;;  %v6999_v59 = vunpack.i.l.bf16 %v9575_v54  ;;  %v12785_v29 = vunpack.i.h.bf16 %v9577_v12  ;;  %v7004_v16 = vunpack.i.l.bf16 %v9577_v12 }
 0x327   :  { %1596 = vrot.lane.b32.xlu0 %v8573_v62, %s13015_s24  ;;  %1573 = vrot.lane.b32.xlu1 %v8573_v62, %s13016_s3  ;;  %s13019_s3 = smov 14   ;;  %s13020_s24 = smov 17  }
 0x328   :  { %v1737_v22 = vsel %vm12790_vm1, %v6999_v59, %v6989_v35  ;;  %v9591_v38 = vsel %vm12790_vm1, %v6990_v46, %v12784_v18  ;;  %v1760_v60 = vsel %vm12789_vm14, %v7004_v16, %v6994_v7  ;;  %v9597_v61 = vsel %vm12789_vm14, %v6995_v44, %v12785_v29  ;;  %5650 = vmatprep.subr.bf16.mxu0 %v5649_v6 }
 0x329   :  { %13017 = vst [vmem:[#allocation75_spill] sm:$0xff] %v9591_v38  ;;  %13018 = vst [vmem:[#allocation76_spill] sm:$0xff] %v9597_v61  ;;  %v7008_v56 = vpop.permute.xlu0 %7007  ;;  %v7013_v1 = vpop.permute.xlu1 %7012  ;;  %v5651_v42 = vpack.c.bf16 %v1760_v60, %v1737_v22  ;;  %vm1828_vm14 = vcmask 15360   ;;  %vm1851_vm1 = vcmask 7168  }
 0x32a   :  { %v7010_v59 = vunpack.i.h.bf16 %v7008_v56  ;;  %v7009_v54 = vunpack.i.l.bf16 %v7008_v56  ;;  %v7015_v46 = vunpack.i.h.bf16 %v7013_v1  ;;  %v7014_v18 = vunpack.i.l.bf16 %v7013_v1 }
 0x32b   :  { %1642 = vrot.lane.b32.xlu0 %v8573_v62, %s13019_s3  ;;  %1619 = vrot.lane.b32.xlu1 %v8573_v62, %s13020_s24  ;;  %s13023_s3 = smov 12   ;;  %s13024_s24 = smov 13  }
 0x32c   :  { %5652 = vmatpush1.bf16.msra.mxu0 %v5651_v42  ;;  %v1784_v7 = vsel %vm1782_vm0, %v7009_v54, %v7010_v59  ;;  %v1807_v16 = vsel %vm1805_vm15, %v7014_v18, %v7015_v46 }
 0x32d   :  { %v9607_v44 = vpop.permute.xlu0 %7017  ;;  %v9609_v6 = vpop.permute.xlu1 %7022  ;;  %v5653_v22 = vpack.c.bf16 %v1807_v16, %v1784_v7 }
 0x32e   :  { %13021 = vst [vmem:[#allocation77_spill] sm:$0xff] %v9607_v44  ;;  %13022 = vst [vmem:[#allocation78_spill] sm:$0xff] %v9609_v6  ;;  %v12792_v56 = vunpack.i.h.bf16 %v9607_v44  ;;  %v7019_v1 = vunpack.i.l.bf16 %v9607_v44  ;;  %v12793_v60 = vunpack.i.h.bf16 %v9609_v6  ;;  %v7024_v35 = vunpack.i.l.bf16 %v9609_v6 }
 0x32f   :  { %1688 = vrot.lane.b32.xlu0 %v8573_v62, %s13023_s3  ;;  %1665 = vrot.lane.b32.xlu1 %v8573_v62, %s13024_s24  ;;  %s13027_s3 = smov 8   ;;  %s13028_s24 = smov 11  }
 0x330   :  { %v1783_v42 = vsel %vm1782_vm0, %v7019_v1, %v7009_v54  ;;  %v9623_v7 = vsel %vm1782_vm0, %v7010_v59, %v12792_v56  ;;  %v1806_v16 = vsel %vm1805_vm15, %v7024_v35, %v7014_v18  ;;  %v9629_v29 = vsel %vm1805_vm15, %v7015_v46, %v12793_v60  ;;  %5654 = vmatprep.subr.bf16.mxu0 %v5653_v22 }
 0x331   :  { %13025 = vst [vmem:[#allocation79_spill] sm:$0xff] %v9623_v7  ;;  %13026 = vst [vmem:[#allocation80_spill] sm:$0xff] %v9629_v29  ;;  %v7028_v38 = vpop.permute.xlu0 %7027  ;;  %v7033_v61 = vpop.permute.xlu1 %7032  ;;  %v5655_v12 = vpack.c.bf16 %v1806_v16, %v1783_v42 }
 0x332   :  { %v7030_v1 = vunpack.i.h.bf16 %v7028_v38  ;;  %v7029_v44 = vunpack.i.l.bf16 %v7028_v38  ;;  %v7035_v59 = vunpack.i.h.bf16 %v7033_v61  ;;  %v7034_v56 = vunpack.i.l.bf16 %v7033_v61 }
 0x333   :  { %1734 = vrot.lane.b32.xlu0 %v8573_v62, %s13027_s3  ;;  %1711 = vrot.lane.b32.xlu1 %v8573_v62, %s13028_s24  ;;  %s13029_s3 = smov 6   ;;  %s13030_s24 = smov 7  }
 0x334   :  { %5656 = vmatpush1.bf16.msra.mxu0 %v5655_v12  ;;  %v1830_v18 = vsel %vm1828_vm14, %v7029_v44, %v7030_v1  ;;  %v1853_v35 = vsel %vm1851_vm1, %v7034_v56, %v7035_v59 }
 0x335   :  { %v9639_v46 = vpop.permute.xlu0 %7037  ;;  %v9641_v22 = vpop.permute.xlu1 %7042  ;;  %v5657_v42 = vpack.c.bf16 %v1853_v35, %v1830_v18 }
 0x336   :  { %v7040_v38 = vunpack.i.h.bf16 %v9639_v46  ;;  %v7039_v61 = vunpack.i.l.bf16 %v9639_v46  ;;  %v7045_v16 = vunpack.i.h.bf16 %v9641_v22  ;;  %v7044_v54 = vunpack.i.l.bf16 %v9641_v22 }
 0x337   :  { %1780 = vrot.lane.b32.xlu0 %v8573_v62, %s13029_s3  ;;  %1757 = vrot.lane.b32.xlu1 %v8573_v62, %s13030_s24  ;;  %s13032_s3 = smov 2   ;;  %s13033_s24 = smov 5  }
 0x338   :  { %v1829_v12 = vsel %vm1828_vm14, %v7039_v61, %v7029_v44  ;;  %v9655_v18 = vsel %vm1828_vm14, %v7030_v1, %v7040_v38  ;;  %v1852_v35 = vsel %vm1851_vm1, %v7044_v54, %v7034_v56  ;;  %v9661_v60 = vsel %vm1851_vm1, %v7035_v59, %v7045_v16  ;;  %5658 = vmatprep.subr.bf16.mxu0 %v5657_v42 }
 0x339   :  { %v493_v7 = vpop.permute.xlu0 %492  ;;  %v9663_v29 = vpop.permute.xlu1 %469  ;;  %v5659_v6 = vpack.c.bf16 %v1852_v35, %v1829_v12  ;;  %v5787_v44 = vpack.c.bf16 %v9661_v60, %v9655_v18  ;;  %v13031_v61 = vunpack.i.h.bf16 %v8665_v2  ;;  %v13034_v2 = vunpack.i.h.bf16 %v8678_v13  ;;  %v2142_v13 = vld [vmem:[%s12521_s5 + $0x8] sm:$0xff] }
 0x33a   :  { %v13035_v12 = vunpack.i.h.bf16 %v8694_v20 }
 0x33b   :  { %v475_v1 = vsel %vm471_vm2, %v13031_v61, %v9663_v29  ;;  %1826 = vrot.lane.b32.xlu0 %v8573_v62, %s13032_s3  ;;  %1803 = vrot.lane.b32.xlu1 %v8573_v62, %s13033_s24  ;;  %v498_v42 = vsel %vm494_vm3, %v13034_v2, %v493_v7  ;;  %s13036_s3 = smov 127   ;;  %s13037_s24 = smov 1   ;;  %v13040_v2 = vpack.c.bf16 %v8711_v27, %v8702_v26  ;;  %v13042_v27 = vunpack.i.h.bf16 %v8758_v10 }
 0x33c   :  { %v9676_v56 = vpack.c.bf16 %v475_v1, %v8539_v57  ;;  %5660 = vmatpush1.bf16.msra.mxu0 %v5659_v6  ;;  %v9695_v57 = vld [vmem:[%s12520_s4 + $0x10] sm:$0xff]  ;;  %v13038_v6 = vunpack.i.h.bf16 %v8716_v32  ;;  %v13039_v1 = vunpack.i.h.bf16 %v8726_v41 }
 0x33d   :  { %5662 = vmatprep.subr.bf16.mxu0 %v8685_v0  ;;  %v539_v54 = vpop.permute.xlu0 %538  ;;  %v516_v59 = vpop.permute.xlu1 %515  ;;  %v9722_v32 = vld [vmem:[%s12520_s4 + $0x30] sm:$0xff] }
 0x33e   :  { %5666 = vmatprep.subr.bf16.mxu1 %v9676_v56  ;;  %v521_v35 = vsel %vm517_vm4, %v13035_v12, %v516_v59  ;;  %v544_v7 = vsel %vm540_vm5, %v13038_v6, %v539_v54  ;;  %v13041_v12 = vunpack.i.h.bf16 %v8756_v9  ;;  %v13044_v6 = vunpack.i.h.bf16 %v8788_v39 }
 0x33f   :  { %5668 = vmatpush1.bf16.msra.mxu1 %v8685_v0  ;;  %v5669_v61 = vpack.c.bf16 %v521_v35, %v498_v42  ;;  %1869 = vrot.lane.b32.xlu0 %v8579_v63, %s13036_s3  ;;  %v9703_v63 = vld [vmem:[%s12520_s4 + $0x38] sm:$0xff]  ;;  %v13048_v39 = vunpack.i.h.bf16 %v8828_v23  ;;  %v13053_v23 = vpack.c.bf16 %v8848_v37, %v8842_v34  ;;  %v13059_v37 = vunpack.i.h.bf16 %v8922_v52 }
 0x340   :  { %1849 = vrot.lane.b32.xlu1 %v8573_v62, %s13037_s24  ;;  %5664 = vmatpush1.bf16.msra.mxu0 %v8681_v14  ;;  %v2141_v14 = vld [vmem:[%s12521_s5] sm:$0xff]  ;;  %v13066_v52 = vunpack.i.h.bf16 %v8956_v5  ;;  %s12799_s24 = smov 111   ;;  %s13256_s5 = smov 115  }
 0x341   :  { %v585_v20 = vpop.permute.xlu0 %584  ;;  %v562_v0 = vpop.permute.xlu1 %561  ;;  %5670 = vmatprep.subr.bf16.mxu1 %v5669_v61  ;;  %v13043_v61 = vpack.c.bf16 %v8743_v48, %v8734_v47  ;;  %v13073_v5 = vld [vmem:[#allocation5_spill] sm:$0xff] }
 0x342   :  { %v567_v59 = vsel %vm563_vm6, %v13039_v1, %v562_v0  ;;  %v590_v26 = vsel %vm586_vm7, %v13041_v12, %v585_v20  ;;  %v13045_v20 = vunpack.i.h.bf16 %v8790_v40  ;;  %v13049_v40 = vpack.c.bf16 %v8810_v53, %v8804_v51 }
 0x343   :  { %5672 = vmatpush1.bf16.msra.mxu1 %v13040_v2  ;;  %v5673_v42 = vpack.c.bf16 %v567_v59, %v544_v7  ;;  %2295 = vmatmul.mubr.f32.vlgmr.msra.gmra.mrb[4].mxu0 %v9695_v57  ;;  %v13046_v7 = vpack.c.bf16 %v8778_v24, %v8772_v21  ;;  %v13047_v59 = vunpack.i.h.bf16 %v8826_v19  ;;  %v13050_v24 = vunpack.i.h.bf16 %v8858_v8 }
 0x344   :  { %2150 = vperm.xlu0 %6435, %v2142_v13   ;;  %2300 = vmatprep.mubr.f32.mxu0 %v9703_v63  ;;  %v13051_v19 = vunpack.i.h.bf16 %v8860_v11  ;;  %v13054_v53 = vunpack.i.h.bf16 %v8890_v15  ;;  %v13056_v8 = vunpack.i.h.bf16 %v8892_v31  ;;  %v13058_v11 = vpack.c.bf16 %v8880_v45, %v8874_v36 }
 0x345   :  { %2145 = vperm.xlu1 %7046, %v2141_v14   ;;  %v631_v54 = vpop.permute.xlu0 %630  ;;  %v608_v41 = vpop.permute.xlu1 %607  ;;  %5674 = vmatprep.subr.bf16.mxu1 %v5673_v42  ;;  %v13061_v15 = vunpack.i.h.bf16 %v8924_v33  ;;  %v13063_v31 = vpack.c.bf16 %v8912_v28, %v8906_v55  ;;  %v13064_v45 = vunpack.i.h.bf16 %v8954_v25  ;;  %v13068_v33 = vpack.c.bf16 %v8944_v3, %v8938_v50  ;;  %v13075_v50 = vld [vmem:[#allocation8_spill] sm:$0xff] }
 0x346   :  { %v613_v35 = vsel %vm609_vm8, %v13042_v27, %v608_v41  ;;  %v636_v9 = vsel %vm632_vm9, %v13044_v6, %v631_v54  ;;  %vm13052_vm8 = vcmask 891904   ;;  %v13069_v55 = vunpack.i.h.bf16 %v8986_v49 }
 0x347   :  { %5676 = vmatpush1.bf16.msra.mxu1 %v13043_v61  ;;  %v5677_v13 = vpack.c.bf16 %v613_v35, %v590_v26  ;;  %2301 = vmatmul.mubr.f32.gmra.mrb[6].mxu0 %v9722_v32  ;;  %v13071_v25 = vunpack.i.h.bf16 %v8988_v30  ;;  %v13082_v30 = vld [vmem:[#allocation6_spill] sm:$0xff] }
 0x349   :  { %v677_v0 = vpop.permute.xlu0 %676  ;;  %v654_v14 = vpop.permute.xlu1 %653  ;;  %5678 = vmatprep.subr.bf16.mxu1 %v5677_v13 }
 0x34a   :  { %v659_v10 = vsel %vm12797_vm10, %v13045_v20, %v654_v14  ;;  %v682_v2 = vsel %vm678_vm11, %v13047_v59, %v677_v0  ;;  %vm13055_vm11 = vcmask 883712   ;;  %vm13057_vm10 = vcmask 875520  }
 0x34b   :  { %5680 = vmatpush1.bf16.msra.mxu1 %v13046_v7  ;;  %v5681_v47 = vpack.c.bf16 %v659_v10, %v636_v9 }
 0x34d   :  { %v723_v48 = vpop.permute.xlu0 %722  ;;  %v700_v1 = vpop.permute.xlu1 %699  ;;  %5682 = vmatprep.subr.bf16.mxu1 %v5681_v47 }
 0x34e   :  { %v705_v42 = vsel %vm701_vm12, %v13048_v39, %v700_v1  ;;  %v728_v12 = vsel %vm12798_vm13, %v13050_v24, %v723_v48  ;;  %vm13062_vm13 = vcmask 744448   ;;  %v13074_v39 = vpack.c.bf16 %v8976_v58, %v13073_v5  ;;  %v13109_v5 = vld [vmem:[#allocation18_spill] sm:$0xff] }
 0x34f   :  { %5684 = vmatpush1.bf16.msra.mxu1 %v13049_v40  ;;  %v5685_v54 = vpack.c.bf16 %v705_v42, %v682_v2 }
 0x351   :  { %v769_v41 = vpop.permute.xlu0 %768  ;;  %v746_v21 = vpop.permute.xlu1 %745  ;;  %5686 = vmatprep.subr.bf16.mxu1 %v5685_v54  ;;  %v13076_v54 = vunpack.i.h.bf16 %v13075_v50  ;;  %v13111_v50 = vld [vmem:[#allocation24_spill] sm:$0xff] }
 0x352   :  { %v751_v26 = vsel %vm13052_vm8, %v13051_v19, %v746_v21  ;;  %v774_v61 = vsel %vm13055_vm11, %v13054_v53, %v769_v41  ;;  %vm13060_vm8 = vcmask 752640   ;;  %vm13067_vm11 = vcmask 728064   ;;  %v13078_v21 = vld [vmem:[#allocation9_spill] sm:$0xff] }
 0x353   :  { %5688 = vmatpush1.bf16.msra.mxu1 %v13053_v23  ;;  %v5689_v27 = vpack.c.bf16 %v751_v26, %v728_v12  ;;  %v13079_v49 = vunpack.i.h.bf16 %v13078_v21  ;;  %v13081_v12 = vld [vmem:[#allocation7_spill] sm:$0xff]  ;;  %v13087_v53 = vld [vmem:[#allocation13_spill] sm:$0xff] }
 0x354   :  { %v13083_v19 = vpack.c.bf16 %v13081_v12, %v13082_v30  ;;  %v13114_v21 = vld [vmem:[#allocation25_spill] sm:$0xff]  ;;  %v13117_v12 = vld [vmem:[#allocation23_spill] sm:$0xff]  ;;  %v13118_v30 = vld [vmem:[#allocation22_spill] sm:$0xff] }
 0x355   :  { %v815_v35 = vpop.permute.xlu0 %814  ;;  %v792_v51 = vpop.permute.xlu1 %791  ;;  %5690 = vmatprep.subr.bf16.mxu1 %v5689_v27  ;;  %v13084_v27 = vld [vmem:[#allocation12_spill] sm:$0xff] }
 0x356   :  { %v797_v13 = vsel %vm13057_vm10, %v13056_v8, %v792_v51  ;;  %v820_v6 = vsel %vm13060_vm8, %v13059_v37, %v815_v35  ;;  %vm13065_vm10 = vcmask 736256   ;;  %vm13072_vm8 = vcmask 695296  }
 0x357   :  { %5692 = vmatpush1.bf16.msra.mxu1 %v13058_v11  ;;  %v5693_v0 = vpack.c.bf16 %v797_v13, %v774_v61  ;;  %v13085_v35 = vunpack.i.h.bf16 %v13084_v27  ;;  %v13088_v61 = vunpack.i.h.bf16 %v13087_v53  ;;  %v13090_v13 = vld [vmem:[#allocation11_spill] sm:$0xff]  ;;  %v13091_v11 = vld [vmem:[#allocation10_spill] sm:$0xff]  ;;  %v13120_v27 = vld [vmem:[#allocation28_spill] sm:$0xff]  ;;  %v13123_v53 = vunpack.i.h.bf16 %v9183_v17 }
 0x358   :  { %v13130_v17 = vunpack.i.h.bf16 %v9224_v43  ;;  %v13135_v43 = vld [vmem:[#allocation33_spill] sm:$0xff] }
 0x359   :  { %v861_v14 = vpop.permute.xlu0 %860  ;;  %v838_v34 = vpop.permute.xlu1 %837  ;;  %5694 = vmatprep.subr.bf16.mxu1 %v5693_v0  ;;  %v13092_v0 = vpack.c.bf16 %v13090_v13, %v13091_v11  ;;  %v13126_v13 = vld [vmem:[#allocation26_spill] sm:$0xff] }
 0x35a   :  { %v843_v9 = vsel %vm13062_vm13, %v13061_v15, %v838_v34  ;;  %v866_v7 = vsel %vm13065_vm10, %v13064_v45, %v861_v14  ;;  %vm13070_vm13 = vcmask 703488   ;;  %vm13077_vm10 = vcmask 687104   ;;  %v13100_v45 = vld [vmem:[#allocation14_spill] sm:$0xff] }
 0x35b   :  { %5696 = vmatpush1.bf16.msra.mxu1 %v13063_v31  ;;  %v5697_v20 = vpack.c.bf16 %v843_v9, %v820_v6  ;;  %v13093_v6 = vld [vmem:[#allocation16_spill] sm:$0xff]  ;;  %v13096_v31 = vld [vmem:[#allocation17_spill] sm:$0xff] }
 0x35c   :  { %v13094_v15 = vunpack.i.h.bf16 %v13093_v6  ;;  %v13128_v6 = vunpack.i.h.bf16 %v9222_v4  ;;  %v7998_v4 = vld [vmem:[%s12520_s4 + $0x20] sm:$0xff] }
 0x35d   :  { %v907_v10 = vpop.permute.xlu0 %906  ;;  %v884_v36 = vpop.permute.xlu1 %883  ;;  %5698 = vmatprep.subr.bf16.mxu1 %v5697_v20  ;;  %v13097_v20 = vunpack.i.h.bf16 %v13096_v31  ;;  %v13132_v31 = vld [vmem:[#allocation30_spill] sm:$0xff] }
 0x35e   :  { %v889_v47 = vsel %vm13067_vm11, %v13066_v52, %v884_v36  ;;  %v912_v59 = vsel %vm13070_vm13, %v13069_v55, %v907_v10  ;;  %vm13080_vm11 = vcmask 678912   ;;  %vm13086_vm13 = vcmask 654336   ;;  %v13099_v36 = vld [vmem:[#allocation15_spill] sm:$0xff]  ;;  %v13105_v55 = vld [vmem:[#allocation21_spill] sm:$0xff] }
 0x35f   :  { %5700 = vmatpush1.bf16.msra.mxu1 %v13068_v33  ;;  %v5701_v48 = vpack.c.bf16 %v889_v47, %v866_v7  ;;  %v13101_v7 = vpack.c.bf16 %v13099_v36, %v13100_v45  ;;  %v7997_v36 = vld [vmem:[%s12520_s4 + $0x28] sm:$0xff] }
 0x361   :  { %v953_v1 = vpop.permute.xlu0 %952  ;;  %v930_v28 = vpop.permute.xlu1 %929  ;;  %5702 = vmatprep.subr.bf16.mxu1 %v5701_v48  ;;  %v13102_v48 = vld [vmem:[#allocation20_spill] sm:$0xff] }
 0x362   :  { %v935_v2 = vsel %vm13072_vm8, %v13071_v25, %v930_v28  ;;  %v958_v41 = vsel %vm13077_vm10, %v13076_v54, %v953_v1  ;;  %vm13089_vm8 = vcmask 646144   ;;  %vm13095_vm10 = vcmask 637952  }
 0x363   :  { %5704 = vmatpush1.bf16.msra.mxu1 %v13074_v39  ;;  %v5705_v42 = vpack.c.bf16 %v935_v2, %v912_v59  ;;  %v13103_v1 = vunpack.i.h.bf16 %v13102_v48  ;;  %v13106_v59 = vunpack.i.h.bf16 %v13105_v55  ;;  %v13108_v2 = vld [vmem:[#allocation19_spill] sm:$0xff]  ;;  %v13112_v54 = vunpack.i.h.bf16 %v13111_v50  ;;  %v13138_v48 = vld [vmem:[#allocation34_spill] sm:$0xff]  ;;  %v13141_v55 = vld [vmem:[#allocation32_spill] sm:$0xff] }
 0x364   :  { %v13110_v39 = vpack.c.bf16 %v13108_v2, %v13109_v5  ;;  %v7999_v2 = vld [vmem:[%s12520_s4 + $0x18] sm:$0xff] }
 0x365   :  { %v999_v40 = vpop.permute.xlu0 %998  ;;  %v976_v3 = vpop.permute.xlu1 %975  ;;  %5706 = vmatprep.subr.bf16.mxu1 %v5705_v42 }
 0x366   :  { %v981_v24 = vsel %vm13080_vm11, %v13079_v49, %v976_v3  ;;  %v1004_v51 = vsel %vm13086_vm13, %v13085_v35, %v999_v40  ;;  %vm13098_vm11 = vcmask 629760   ;;  %vm13104_vm13 = vcmask 605184  }
 0x367   :  { %5708 = vmatpush1.bf16.msra.mxu1 %v13083_v19  ;;  %v5709_v26 = vpack.c.bf16 %v981_v24, %v958_v41  ;;  %v13115_v49 = vunpack.i.h.bf16 %v13114_v21  ;;  %v13119_v19 = vpack.c.bf16 %v13117_v12, %v13118_v30  ;;  %v13121_v35 = vunpack.i.h.bf16 %v13120_v27 }
 0x369   :  { %v1045_v23 = vpop.permute.xlu0 %1044  ;;  %v1022_v58 = vpop.permute.xlu1 %1021  ;;  %5710 = vmatprep.subr.bf16.mxu1 %v5709_v26 }
 0x36a   :  { %v1027_v8 = vsel %vm13089_vm8, %v13088_v61, %v1022_v58  ;;  %v1050_v9 = vsel %vm13095_vm10, %v13094_v15, %v1045_v23  ;;  %vm13107_vm8 = vcmask 596992   ;;  %vm13113_vm10 = vcmask 588800  }
 0x36b   :  { %5712 = vmatpush1.bf16.msra.mxu1 %v13092_v0  ;;  %v5713_v14 = vpack.c.bf16 %v1027_v8, %v1004_v51  ;;  %v13125_v8 = vld [vmem:[#allocation27_spill] sm:$0xff] }
 0x36c   :  { %v13127_v11 = vpack.c.bf16 %v13125_v8, %v13126_v13  ;;  %v13160_v8 = vld [vmem:[#allocation39_spill] sm:$0xff] }
 0x36d   :  { %v1091_v34 = vpop.permute.xlu0 %1090  ;;  %v1068_v37 = vpop.permute.xlu1 %1067  ;;  %5714 = vmatprep.subr.bf16.mxu1 %v5713_v14 }
 0x36e   :  { %v1073_v10 = vsel %vm13098_vm11, %v13097_v20, %v1068_v37  ;;  %v1096_v28 = vsel %vm13104_vm13, %v13103_v1, %v1091_v34  ;;  %vm13116_vm11 = vcmask 580608   ;;  %vm13122_vm13 = vcmask 457728   ;;  %v7996_v37 = vld [vmem:[%s12520_s4] sm:$0xff]  ;;  %s12803_s4 = smov 103  }
 0x36f   :  { %5716 = vmatpush1.bf16.msra.mxu1 %v13101_v7  ;;  %v5717_v52 = vpack.c.bf16 %v1073_v10, %v1050_v9  ;;  %v13133_v20 = vld [vmem:[#allocation29_spill] sm:$0xff]  ;;  %v13139_v1 = vunpack.i.h.bf16 %v13138_v48 }
 0x370   :  { %v13134_v10 = vpack.c.bf16 %v13132_v31, %v13133_v20  ;;  %v13168_v31 = vld [vmem:[#allocation44_spill] sm:$0xff]  ;;  %v13169_v20 = vld [vmem:[#allocation43_spill] sm:$0xff] }
 0x371   :  { %v1137_v47 = vpop.permute.xlu0 %1136  ;;  %v1114_v33 = vpop.permute.xlu1 %1113  ;;  %5718 = vmatprep.subr.bf16.mxu1 %v5717_v52 }
 0x372   :  { %v1119_v25 = vsel %vm13107_vm8, %v13106_v59, %v1114_v33  ;;  %v1142_v41 = vsel %vm13113_vm10, %v13112_v54, %v1137_v47  ;;  %vm13124_vm8 = vcmask 449536   ;;  %vm13129_vm10 = vcmask 441344   ;;  %v13142_v59 = vld [vmem:[#allocation31_spill] sm:$0xff]  ;;  %v13147_v54 = vld [vmem:[#allocation38_spill] sm:$0xff] }
 0x373   :  { %5720 = vmatpush1.bf16.msra.mxu1 %v13110_v39  ;;  %v5721_v42 = vpack.c.bf16 %v1119_v25, %v1096_v28  ;;  %v13136_v47 = vunpack.i.h.bf16 %v13135_v43  ;;  %v13143_v25 = vpack.c.bf16 %v13141_v55, %v13142_v59 }
 0x375   :  { %v1183_v40 = vpop.permute.xlu0 %1182  ;;  %v1160_v3 = vpop.permute.xlu1 %1159  ;;  %5722 = vmatprep.subr.bf16.mxu1 %v5721_v42 }
 0x376   :  { %v1165_v24 = vsel %vm13116_vm11, %v13115_v49, %v1160_v3  ;;  %v1188_v51 = vsel %vm13122_vm13, %v13121_v35, %v1183_v40  ;;  %vm13131_vm11 = vcmask 433152   ;;  %vm13137_vm13 = vcmask 408576   ;;  %v13144_v40 = vld [vmem:[#allocation37_spill] sm:$0xff]  ;;  %v13150_v49 = vld [vmem:[#allocation36_spill] sm:$0xff]  ;;  %v13156_v35 = vld [vmem:[#allocation42_spill] sm:$0xff] }
 0x377   :  { %5724 = vmatpush1.bf16.msra.mxu1 %v13119_v19  ;;  %v5725_v26 = vpack.c.bf16 %v1165_v24, %v1142_v41  ;;  %v13145_v3 = vunpack.i.h.bf16 %v13144_v40  ;;  %v13148_v41 = vunpack.i.h.bf16 %v13147_v54  ;;  %v13151_v24 = vld [vmem:[#allocation35_spill] sm:$0xff]  ;;  %v13183_v40 = vld [vmem:[#allocation54_spill] sm:$0xff]  ;;  %v13186_v54 = vld [vmem:[#allocation52_spill] sm:$0xff] }
 0x378   :  { %v13152_v12 = vpack.c.bf16 %v13150_v49, %v13151_v24 }
 0x379   :  { %v1229_v23 = vpop.permute.xlu0 %1228  ;;  %v1206_v58 = vpop.permute.xlu1 %1205  ;;  %5726 = vmatprep.subr.bf16.mxu1 %v5725_v26 }
 0x37a   :  { %v1211_v61 = vsel %vm13124_vm8, %v13123_v53, %v1206_v58  ;;  %v1234_v15 = vsel %vm13129_vm10, %v13128_v6, %v1229_v23  ;;  %vm13140_vm8 = vcmask 400384   ;;  %vm13146_vm10 = vcmask 392192   ;;  %v13153_v23 = vld [vmem:[#allocation41_spill] sm:$0xff] }
 0x37b   :  { %5728 = vmatpush1.bf16.msra.mxu1 %v13127_v11  ;;  %v5729_v0 = vpack.c.bf16 %v1211_v61, %v1188_v51  ;;  %v13154_v58 = vunpack.i.h.bf16 %v13153_v23  ;;  %v13157_v51 = vunpack.i.h.bf16 %v13156_v35  ;;  %v13159_v61 = vld [vmem:[#allocation40_spill] sm:$0xff]  ;;  %v13192_v23 = vld [vmem:[#allocation58_spill] sm:$0xff] }
 0x37c   :  { %v13161_v13 = vpack.c.bf16 %v13159_v61, %v13160_v8  ;;  %v13195_v35 = vld [vmem:[#allocation56_spill] sm:$0xff] }
 0x37d   :  { %v1275_v14 = vpop.permute.xlu0 %1274  ;;  %v1252_v34 = vpop.permute.xlu1 %1251  ;;  %5730 = vmatprep.subr.bf16.mxu1 %v5729_v0 }
 0x37e   :  { %2372 = vmatmul.mubr.f32.vlgmr.msra.gmra.mrb[8].mxu1 %v7996_v37  ;;  %v1257_v9 = vsel %vm13131_vm11, %v13130_v17, %v1252_v34  ;;  %v1280_v33 = vsel %vm13137_vm13, %v13136_v47, %v1275_v14  ;;  %vm13149_vm11 = vcmask 384000   ;;  %vm13155_vm13 = vcmask 359424   ;;  %v13162_v34 = vld [vmem:[#allocation45_spill] sm:$0xff]  ;;  %v13174_v47 = vld [vmem:[#allocation50_spill] sm:$0xff] }
 0x37f   :  { %5732 = vmatpush1.bf16.msra.mxu1 %v13134_v10  ;;  %2377 = vmatprep.mubr.f32.mxu1 %v7997_v36  ;;  %v5733_v45 = vpack.c.bf16 %v1257_v9, %v1234_v15  ;;  %v13163_v37 = vunpack.i.h.bf16 %v13162_v34  ;;  %v13165_v15 = vld [vmem:[#allocation46_spill] sm:$0xff]  ;;  %v13170_v10 = vpack.c.bf16 %v13168_v31, %v13169_v20 }
 0x380   :  { %v13166_v17 = vunpack.i.h.bf16 %v13165_v15 }
 0x381   :  { %v1321_v7 = vpop.permute.xlu0 %1320  ;;  %v1298_v52 = vpop.permute.xlu1 %1297  ;;  %5734 = vmatprep.subr.bf16.mxu1 %v5733_v45 }
 0x382   :  { %2378 = vmatmul.mubr.f32.gmra.mrb[10].mxu1 %v7998_v4  ;;  %v1303_v28 = vsel %vm13140_vm8, %v13139_v1, %v1298_v52  ;;  %v1326_v50 = vsel %vm13146_vm10, %v13145_v3, %v1321_v7  ;;  %vm13158_vm8 = vcmask 351232   ;;  %vm13164_vm10 = vcmask 343040   ;;  %v13171_v52 = vld [vmem:[#allocation49_spill] sm:$0xff]  ;;  %v13177_v1 = vld [vmem:[#allocation48_spill] sm:$0xff] }
 0x383   :  { %5736 = vmatpush1.bf16.msra.mxu1 %v13143_v25  ;;  %2448 = vmatprep.mubr.f32.mxu1 %v7999_v2  ;;  %v5737_v5 = vpack.c.bf16 %v1303_v28, %v1280_v33  ;;  %v13172_v4 = vunpack.i.h.bf16 %v13171_v52  ;;  %v13175_v33 = vunpack.i.h.bf16 %v13174_v47  ;;  %v13178_v28 = vld [vmem:[#allocation47_spill] sm:$0xff]  ;;  %v13184_v3 = vunpack.i.h.bf16 %v13183_v40  ;;  %v13207_v52 = vld [vmem:[#allocation65_spill] sm:$0xff]  ;;  %v13210_v47 = vld [vmem:[#allocation66_spill] sm:$0xff] }
 0x384   :  { %v13179_v55 = vpack.c.bf16 %v13177_v1, %v13178_v28  ;;  %v13213_v1 = vld [vmem:[#allocation64_spill] sm:$0xff]  ;;  %v13214_v28 = vld [vmem:[#allocation63_spill] sm:$0xff] }
 0x385   :  { %v1367_v39 = vpop.permute.xlu0 %1366  ;;  %v1344_v42 = vpop.permute.xlu1 %1343  ;;  %5738 = vmatprep.subr.bf16.mxu1 %v5737_v5  ;;  %v13180_v5 = vld [vmem:[#allocation53_spill] sm:$0xff] }
 0x386   :  { %v1349_v21 = vsel %vm13149_vm11, %v13148_v41, %v1344_v42  ;;  %v1372_v27 = vsel %vm13155_vm13, %v13154_v58, %v1367_v39  ;;  %vm13167_vm11 = vcmask 334848   ;;  %vm13173_vm13 = vcmask 310272   ;;  %v13187_v41 = vld [vmem:[#allocation51_spill] sm:$0xff] }
 0x387   :  { %5740 = vmatpush1.bf16.msra.mxu1 %v13152_v12  ;;  %v5741_v30 = vpack.c.bf16 %v1349_v21, %v1326_v50  ;;  %v13181_v39 = vunpack.i.h.bf16 %v13180_v5  ;;  %v13188_v21 = vpack.c.bf16 %v13186_v54, %v13187_v41  ;;  %v13193_v58 = vunpack.i.h.bf16 %v13192_v23  ;;  %v13222_v41 = vld [vmem:[#allocation68_spill] sm:$0xff] }
 0x389   :  { %v1413_v19 = vpop.permute.xlu0 %1412  ;;  %v1390_v26 = vpop.permute.xlu1 %1389  ;;  %5742 = vmatprep.subr.bf16.mxu1 %v5741_v30  ;;  %v13189_v30 = vld [vmem:[#allocation57_spill] sm:$0xff] }
 0x38a   :  { %v1395_v53 = vsel %vm13158_vm8, %v13157_v51, %v1390_v26  ;;  %v1418_v6 = vsel %vm13164_vm10, %v13163_v37, %v1413_v19  ;;  %vm13176_vm8 = vcmask 302080   ;;  %vm13182_vm10 = vcmask 293888   ;;  %v13196_v51 = vld [vmem:[#allocation55_spill] sm:$0xff]  ;;  %v13201_v37 = vld [vmem:[#allocation62_spill] sm:$0xff] }
 0x38b   :  { %5744 = vmatpush1.bf16.msra.mxu1 %v13161_v13  ;;  %v5745_v11 = vpack.c.bf16 %v1395_v53, %v1372_v27  ;;  %v13190_v19 = vunpack.i.h.bf16 %v13189_v30  ;;  %v13197_v53 = vpack.c.bf16 %v13195_v35, %v13196_v51  ;;  %v13231_v51 = vld [vmem:[#allocation72_spill] sm:$0xff] }
 0x38d   :  { %v1459_v0 = vpop.permute.xlu0 %1458  ;;  %v1436_v14 = vpop.permute.xlu1 %1435  ;;  %5746 = vmatprep.subr.bf16.mxu1 %v5745_v11 }
 0x38e   :  { %v1441_v9 = vsel %vm13167_vm11, %v13166_v17, %v1436_v14  ;;  %v1464_v43 = vsel %vm13173_vm13, %v13172_v4, %v1459_v0  ;;  %vm13185_vm11 = vcmask 285696   ;;  %vm13191_vm13 = vcmask 162816   ;;  %v13198_v0 = vld [vmem:[#allocation61_spill] sm:$0xff]  ;;  %v13204_v17 = vld [vmem:[#allocation60_spill] sm:$0xff] }
 0x38f   :  { %5748 = vmatpush1.bf16.msra.mxu1 %v13170_v10  ;;  %v5749_v36 = vpack.c.bf16 %v1441_v9, %v1418_v6  ;;  %v13199_v14 = vunpack.i.h.bf16 %v13198_v0  ;;  %v13202_v6 = vunpack.i.h.bf16 %v13201_v37  ;;  %v13205_v9 = vld [vmem:[#allocation59_spill] sm:$0xff]  ;;  %v13208_v4 = vunpack.i.h.bf16 %v13207_v52 }
 0x390   :  { %v13206_v31 = vpack.c.bf16 %v13204_v17, %v13205_v9  ;;  %v13238_v9 = vld [vmem:[#allocation76_spill] sm:$0xff] }
 0x391   :  { %v1505_v45 = vpop.permute.xlu0 %1504  ;;  %v1482_v7 = vpop.permute.xlu1 %1481  ;;  %5750 = vmatprep.subr.bf16.mxu1 %v5749_v36 }
 0x392   :  { %v1487_v48 = vsel %vm13176_vm8, %v13175_v33, %v1482_v7  ;;  %v1510_v42 = vsel %vm13182_vm10, %v13181_v39, %v1505_v45  ;;  %vm13194_vm8 = vcmask 154624   ;;  %vm13200_vm10 = vcmask 146432   ;;  %v13216_v39 = vld [vmem:[#allocation69_spill] sm:$0xff] }
 0x393   :  { %5752 = vmatpush1.bf16.msra.mxu1 %v13179_v55  ;;  %v5753_v59 = vpack.c.bf16 %v1487_v48, %v1464_v43  ;;  %v13211_v33 = vunpack.i.h.bf16 %v13210_v47  ;;  %v13215_v55 = vpack.c.bf16 %v13213_v1, %v13214_v28 }
 0x395   :  { %v1551_v25 = vpop.permute.xlu0 %1550  ;;  %v1528_v2 = vpop.permute.xlu1 %1527  ;;  %5754 = vmatprep.subr.bf16.mxu1 %v5753_v59 }
 0x396   :  { %v1533_v50 = vsel %vm13185_vm11, %v13184_v3, %v1528_v2  ;;  %v1556_v26 = vsel %vm13191_vm13, %v13190_v19, %v1551_v25  ;;  %vm13203_vm11 = vcmask 138240   ;;  %vm13209_vm13 = vcmask 113664   ;;  %v13219_v3 = vld [vmem:[#allocation70_spill] sm:$0xff]  ;;  %v13225_v19 = vld [vmem:[#allocation73_spill] sm:$0xff] }
 0x397   :  { %5756 = vmatpush1.bf16.msra.mxu1 %v13188_v21  ;;  %v5757_v49 = vpack.c.bf16 %v1533_v50, %v1510_v42  ;;  %v13217_v42 = vunpack.i.h.bf16 %v13216_v39  ;;  %v13220_v50 = vunpack.i.h.bf16 %v13219_v3  ;;  %v13223_v21 = vld [vmem:[#allocation67_spill] sm:$0xff] }
 0x399   :  { %v1597_v24 = vpop.permute.xlu0 %1596  ;;  %v1574_v12 = vpop.permute.xlu1 %1573  ;;  %5758 = vmatprep.subr.bf16.mxu1 %v5757_v49  ;;  %v13224_v49 = vpack.c.bf16 %v13222_v41, %v13223_v21 }
 0x39a   :  { %v1579_v27 = vsel %vm13194_vm8, %v13193_v58, %v1574_v12  ;;  %v1602_v34 = vsel %vm13200_vm10, %v13199_v14, %v1597_v24  ;;  %vm13212_vm8 = vcmask 105472   ;;  %vm13218_vm10 = vcmask 97280   ;;  %v13228_v58 = vld [vmem:[#allocation74_spill] sm:$0xff]  ;;  %v13234_v14 = vld [vmem:[#allocation77_spill] sm:$0xff] }
 0x39b   :  { %5760 = vmatpush1.bf16.msra.mxu1 %v13197_v53  ;;  %v5761_v61 = vpack.c.bf16 %v1579_v27, %v1556_v26  ;;  %v13226_v26 = vunpack.i.h.bf16 %v13225_v19  ;;  %v13229_v27 = vunpack.i.h.bf16 %v13228_v58  ;;  %v13232_v53 = vld [vmem:[#allocation71_spill] sm:$0xff] }
 0x39c   :  { %v2219_v8 = vpop.f32.mrb[4].mxu1 }
 0x39d   :  { %v1643_v13 = vpop.permute.xlu0 %1642  ;;  %v1620_v11 = vpop.permute.xlu1 %1619  ;;  %5762 = vmatprep.subr.bf16.mxu1 %v5761_v61  ;;  %v13233_v61 = vpack.c.bf16 %v13231_v51, %v13232_v53 }
 0x39e   :  { %v1625_v15 = vsel %vm13203_vm11, %v13202_v6, %v1620_v11  ;;  %v2221_v20 = vpop.f32.mrb[5].mxu1  ;;  %v1648_v43 = vsel %vm13209_vm13, %v13208_v4, %v1643_v13  ;;  %vm13221_vm11 = vcmask 89088   ;;  %vm13227_vm13 = vcmask 64512   ;;  %v13236_v6 = vld [vmem:[#allocation78_spill] sm:$0xff] }
 0x39f   :  { %5764 = vmatpush1.bf16.msra.mxu1 %v13206_v31  ;;  %v5765_v10 = vpack.c.bf16 %v1625_v15, %v1602_v34  ;;  %v13235_v34 = vunpack.i.h.bf16 %v13234_v14  ;;  %v13237_v15 = vunpack.i.h.bf16 %v13236_v6  ;;  %v13239_v31 = vld [vmem:[#allocation75_spill] sm:$0xff] }
 0x3a0   :  { %v2225_v36 = vpop.f32.mrb[6].mxu1 }
 0x3a1   :  { %v1689_v45 = vpop.permute.xlu0 %1688  ;;  %v1666_v7 = vpop.permute.xlu1 %1665  ;;  %5766 = vmatprep.subr.bf16.mxu1 %v5765_v10  ;;  %v13240_v10 = vpack.c.bf16 %v13238_v9, %v13239_v31  ;;  %v2552_v9 = vld [vmem:[%s12523_s6] sm:$0xff]  ;;  %v2625_v31 = vld [vmem:[%s12524_s9 + $0x8] sm:$0xff] }
 0x3a2   :  { %v1671_v48 = vsel %vm13212_vm8, %v13211_v33, %v1666_v7  ;;  %v2227_v59 = vpop.f32.mrb[7].mxu1  ;;  %v1694_v40 = vsel %vm13218_vm10, %v13217_v42, %v1689_v45  ;;  %vm13230_vm8 = vcmask 56320   ;;  %v13241_v33 = vld [vmem:[#allocation80_spill] sm:$0xff] }
 0x3a3   :  { %5768 = vmatpush1.bf16.msra.mxu1 %v13215_v55  ;;  %v5769_v25 = vpack.c.bf16 %v1671_v48, %v1648_v43  ;;  %v13242_v48 = vld [vmem:[#allocation79_spill] sm:$0xff] }
 0x3a4   :  { %v13243_v1 = vpack.c.bf16 %v13241_v33, %v13242_v48  ;;  %v2626_v48 = vld [vmem:[%s12524_s9 + $0x10] sm:$0xff] }
 0x3a5   :  { %v1735_v2 = vpop.permute.xlu0 %1734  ;;  %v1712_v5 = vpop.permute.xlu1 %1711  ;;  %5770 = vmatprep.subr.bf16.mxu1 %v5769_v25 }
 0x3a6   :  { %v1717_v54 = vsel %vm13221_vm11, %v13220_v50, %v1712_v5  ;;  %v1740_v23 = vsel %vm13227_vm13, %v13226_v26, %v1735_v2 }
 0x3a7   :  { %5772 = vmatpush1.bf16.msra.mxu1 %v13224_v49  ;;  %v5773_v24 = vpack.c.bf16 %v1717_v54, %v1694_v40 }
 0x3a9   :  { %v1781_v12 = vpop.permute.xlu0 %1780  ;;  %v1758_v30 = vpop.permute.xlu1 %1757  ;;  %5774 = vmatprep.subr.bf16.mxu1 %v5773_v24 }
 0x3aa   :  { %v1763_v35 = vsel %vm13230_vm8, %v13229_v27, %v1758_v30  ;;  %v1786_v37 = vsel %vm1782_vm0, %v13235_v34, %v1781_v12 }
 0x3ab   :  { %5776 = vmatpush1.bf16.msra.mxu1 %v13233_v61  ;;  %v5777_v13 = vpack.c.bf16 %v1763_v35, %v1740_v23 }
 0x3ad   :  { %v1827_v11 = vpop.permute.xlu0 %1826  ;;  %v1804_v0 = vpop.permute.xlu1 %1803  ;;  %5778 = vmatprep.subr.bf16.mxu1 %v5777_v13 }
 0x3ae   :  { %v1809_v17 = vsel %vm1805_vm15, %v13237_v15, %v1804_v0  ;;  %v1832_v4 = vsel %vm1828_vm14, %v7040_v38, %v1827_v11 }
 0x3af   :  { %5780 = vmatpush1.bf16.msra.mxu1 %v13240_v10  ;;  %v5781_v45 = vpack.c.bf16 %v1809_v17, %v1786_v37  ;;  %v2629_v10 = vld [vmem:[%s12524_s9 + $0x28] sm:$0xff] }
 0x3b1   :  { %v1870_v7 = vpop.permute.xlu0 %1869  ;;  %5782 = vmatprep.subr.bf16.mxu1 %v5781_v45  ;;  %v2627_v45 = vld [vmem:[%s12524_s9 + $0x18] sm:$0xff] }
 0x3b2   :  { %v1850_v52 = vpop.permute.xlu1 %1849  ;;  %v1871_v43 = vsel %vm471_vm2, %v9663_v29, %v1870_v7  ;;  %v5793_v7 = vpack.c.bf16 %v2629_v10, %v2625_v31  ;;  %v2657_v31 = vld [vmem:[%s12524_s9 + $0x108] sm:$0xff] }
 0x3b3   :  { %v1855_v47 = vsel %vm1851_vm1, %v7045_v16, %v1850_v52  ;;  %5784 = vmatpush1.bf16.msra.mxu1 %v13243_v1  ;;  %v5789_v55 = vpack.c.bf16 %v1871_v43, %v8573_v62  ;;  %v2631_v52 = vld [vmem:[%s12524_s9 + $0x38] sm:$0xff]  ;;  %v2628_v43 = vld [vmem:[%s12524_s9 + $0x20] sm:$0xff]  ;;  %v2630_v1 = vld [vmem:[%s12524_s9 + $0x30] sm:$0xff] }
 0x3b4   :  { %v5785_v28 = vpack.c.bf16 %v1855_v47, %v1832_v4  ;;  %v2624_v4 = vld [vmem:[%s12524_s9] sm:$0xff]  ;;  %v5921_v47 = vpack.c.bf16 %v2631_v52, %v2627_v45  ;;  %5794 = vmatprep.subr.bf16.mxu0 %v5793_v7  ;;  %v2661_v10 = vld [vmem:[%s12524_s9 + $0x128] sm:$0xff]  ;;  %v2659_v45 = vld [vmem:[%s12524_s9 + $0x118] sm:$0xff] }
 0x3b5   :  { %v5795_v33 = vpack.c.bf16 %v2628_v43, %v2624_v4  ;;  %v2663_v7 = vld [vmem:[%s12524_s9 + $0x138] sm:$0xff]  ;;  %v5809_v43 = vpack.c.bf16 %v2661_v10, %v2657_v31  ;;  %v2686_v10 = vld [vmem:[%s12524_s9 + $0x1f0] sm:$0xff] }
 0x3b6   :  { %5786 = vmatprep.subr.bf16.mxu1 %v5785_v28  ;;  %v2633_v28 = vld [vmem:[%s12524_s9 + $0x48] sm:$0xff] }
 0x3b7   :  { %5788 = vmatpush1.bf16.msra.mxu1 %v5787_v44  ;;  %5796 = vmatpush1.bf16.msra.mxu0 %v5795_v33  ;;  %v2660_v33 = vld [vmem:[%s12524_s9 + $0x120] sm:$0xff] }
 0x3b8   :  { %5790 = vmatprep.subr.bf16.mxu1 %v5789_v55  ;;  %v5923_v55 = vpack.c.bf16 %v2630_v1, %v2626_v48  ;;  %v2658_v48 = vld [vmem:[%s12524_s9 + $0x110] sm:$0xff]  ;;  %v5937_v1 = vpack.c.bf16 %v2663_v7, %v2659_v45  ;;  %v2689_v45 = vld [vmem:[%s12524_s9 + $0x208] sm:$0xff] }
 0x3b9   :  { %v2693_v7 = vld [vmem:[%s12524_s9 + $0x228] sm:$0xff] }
 0x3bb   :  { %5792 = vmatpush1.bf16.msra.mxu1 %v9676_v56 }
 0x3bc   :  { %5922 = vmatprep.subr.bf16.mxu1 %v5921_v47  ;;  %v2656_v47 = vld [vmem:[%s12524_s9 + $0x100] sm:$0xff] }
 0x3be   :  { %2449 = vmatmul.mubr.f32.vlgmr.msra.gmra.mrb[8].mxu1 %v9695_v57 }
 0x3bf   :  { %2454 = vmatprep.mubr.f32.mxu1 %v9703_v63  ;;  %v12840_v63 = vlaneseq  ;;  %5924 = vmatpush1.bf16.msra.mxu1 %v5923_v55  ;;  %v2665_v55 = vld [vmem:[%s12524_s9 + $0x148] sm:$0xff] }
 0x3c2   :  { %2455 = vmatmul.mubr.f32.gmra.mrb[10].mxu1 %v9722_v32  ;;  %v2461_v32 = vld [vmem:[%s12522_s8] sm:$0xf]  ;;  %s12835_s8 = smov 112  }
 0x3c3   :  { %v2151_v22 = vpop.permute.xlu0 %2150  ;;  %vm2462_vm14 = vcmp.gt.f32.partialorder %v2461_v32, 0.5  ;;  %v2641_v32 = vld [vmem:[%s12524_s9 + $0x88] sm:$0xff] }
 0x3c4   :  { %v2146_v29 = vpop.permute.xlu1 %2145  ;;  %v2226_v60 = vadd.f32 %v2225_v36, %v2151_v22  ;;  %v2228_v18 = vadd.f32 %v2227_v59, %v2151_v22  ;;  %v13246_v59 = vmov 0  }
 0x3c5   :  { %v2220_v46 = vadd.f32 %v2219_v8, %v2146_v29  ;;  %v2222_v16 = vadd.f32 %v2221_v20, %v2146_v29  ;;  %v10011_v8 = vshrl.u32 %v12840_v63, 7  ;;  %v2463_v39 = vsel %vm2462_vm14, 1, %v13246_v59  ;;  %v2645_v59 = vld [vmem:[%s12524_s9 + $0xa8] sm:$0xff] }
 0x3c7   :  { %13244 = vst [vmem:[#allocation5_spill] sm:$0xff] %v10011_v8  ;;  %v10014_v20 = vsub.s32 0, %v10011_v8  ;;  %v2470_v36 = vsub.s32 1, %v10011_v8  ;;  %v12841_v3 = vsub.s32 2, %v10011_v8  ;;  %v12842_v50 = vsub.s32 3, %v10011_v8 }
 0x3c9   :  { %13245 = vst [vmem:[#allocation8_spill] sm:$0xff] %v10014_v20  ;;  %v2467_v42 = vrot.slane %v2463_v39, %v10014_v20  ;;  %v10021_v40 = vrot.slane %v2463_v39, %v2470_v36  ;;  %v10032_v41 = vrot.slane %v2463_v39, %v12841_v3  ;;  %v10036_v21 = vrot.slane %v2463_v39, %v12842_v50 }
 0x3cb   :  { %vm10025_vm15 = vcmp.eq.s32.totalorder %v2467_v42, 1  ;;  %vm2481_vm0 = vcmp.eq.s32.totalorder %v10021_v40, 1  ;;  %vm2482_vm1 = vcmp.eq.s32.totalorder %v10032_v41, 1  ;;  %vm2483_vm10 = vcmp.eq.s32.totalorder %v10036_v21, 1  ;;  %v2572_v41 = vld [vmem:[%s12525_s7] sm:$0xff]  ;;  %v2709_v21 = vld [vmem:[%s12524_s9 + $0x2a8] sm:$0xff] }
 0x3cc   :  { %v5801_v42 = vpack.c.bf16 %v2645_v59, %v2641_v32  ;;  %v2670_v32 = vld [vmem:[%s12524_s9 + $0x170] sm:$0xff]  ;;  %v2673_v59 = vld [vmem:[%s12524_s9 + $0x188] sm:$0xff] }
 0x416   :  { %v2296_v38 = vpop.f32.mrb[4].mxu0 }
 0x417   :  { %v9999_v62 = vadd.f32 %v2296_v38, %v2220_v46  ;;  %v2298_v25 = vpop.f32.mrb[5].mxu0  ;;  %v2635_v46 = vld [vmem:[%s12524_s9 + $0x58] sm:$0xff] }
 0x418   :  { %v10001_v2 = vadd.f32 %v2298_v25, %v2222_v16  ;;  %v2632_v25 = vld [vmem:[%s12524_s9 + $0x40] sm:$0xff] }
 0x419   :  { %v2484_v49 = vsel %vm10025_vm15, %v9999_v62, 0.0 }
 0x41a   :  { %v2302_v44 = vpop.f32.mrb[6].mxu0  ;;  %v2485_v24 = vsel %vm2481_vm0, %v10001_v2, 0.0 }
 0x41b   :  { %v10003_v56 = vadd.f32 %v2302_v44, %v2226_v60  ;;  %v2304_v57 = vpop.f32.mrb[7].mxu0  ;;  %v2492_v26 = vadd.f32 %v2485_v24, %v2484_v49  ;;  %v2636_v60 = vld [vmem:[%s12524_s9 + $0x60] sm:$0xff]  ;;  %v2643_v49 = vld [vmem:[%s12524_s9 + $0x98] sm:$0xff] }
 0x41c   :  { %v10005_v5 = vadd.f32 %v2304_v57, %v2228_v18  ;;  %v2634_v18 = vld [vmem:[%s12524_s9 + $0x50] sm:$0xff]  ;;  %v5799_v44 = vpack.c.bf16 %v2636_v60, %v2632_v25  ;;  %v2647_v24 = vld [vmem:[%s12524_s9 + $0xb8] sm:$0xff]  ;;  %v2664_v60 = vld [vmem:[%s12524_s9 + $0x140] sm:$0xff] }
 0x41d   :  { %v2488_v58 = vsel %vm10025_vm15, %v10003_v56, 0.0  ;;  %v2638_v57 = vld [vmem:[%s12524_s9 + $0x70] sm:$0xff] }
 0x41e   :  { %v2489_v27 = vsel %vm2481_vm0, %v10005_v5, 0.0  ;;  %v5927_v39 = vpack.c.bf16 %v2638_v57, %v2634_v18  ;;  %v2668_v18 = vld [vmem:[%s12524_s9 + $0x160] sm:$0xff] }
 0x41f   :  { %v2497_v0 = vadd.f32 %v2489_v27, %v2488_v58  ;;  %v2642_v58 = vld [vmem:[%s12524_s9 + $0x90] sm:$0xff] }
 0x420   :  { %v2646_v27 = vld [vmem:[%s12524_s9 + $0xb0] sm:$0xff] }
 0x491   :  { %v2450_v12 = vpop.f32.mrb[8].mxu1 }
 0x492   :  { %v10045_v30 = vadd.f32 %v2450_v12, %v2146_v29  ;;  %v2452_v19 = vpop.f32.mrb[9].mxu1  ;;  %v2640_v12 = vld [vmem:[%s12524_s9 + $0x80] sm:$0xff] }
 0x493   :  { %v10048_v23 = vadd.f32 %v2452_v19, %v2146_v29  ;;  %v2637_v29 = vld [vmem:[%s12524_s9 + $0x68] sm:$0xff]  ;;  %v5929_v19 = vpack.c.bf16 %v2647_v24, %v2643_v49  ;;  %v2679_v49 = vld [vmem:[%s12524_s9 + $0x1b8] sm:$0xff]  ;;  %v5815_v24 = vpack.c.bf16 %v2668_v18, %v2664_v60 }
 0x494   :  { %v2486_v35 = vsel %vm2482_vm1, %v10045_v30, 0.0  ;;  %v5797_v38 = vpack.c.bf16 %v2637_v29, %v2633_v28  ;;  %v2662_v28 = vld [vmem:[%s12524_s9 + $0x130] sm:$0xff]  ;;  %v2669_v29 = vld [vmem:[%s12524_s9 + $0x168] sm:$0xff] }
 0x495   :  { %v2493_v51 = vadd.f32 %v2492_v26, %v2486_v35  ;;  %v2487_v53 = vsel %vm2483_vm10, %v10048_v23, 0.0  ;;  %v2456_v61 = vpop.f32.mrb[10].mxu1  ;;  %v2644_v26 = vld [vmem:[%s12524_s9 + $0xa0] sm:$0xff]  ;;  %v5813_v25 = vpack.c.bf16 %v2669_v29, %v2665_v55  ;;  %v2694_v29 = vld [vmem:[%s12524_s9 + $0x230] sm:$0xff] }
 0x496   :  { %v10062_v13 = vadd.f32 %v2456_v61, %v2151_v22  ;;  %v2458_v11 = vpop.f32.mrb[11].mxu1  ;;  %5798 = vmatprep.subr.bf16.mxu0 %v5797_v38  ;;  %v5803_v35 = vpack.c.bf16 %v2644_v26, %v2640_v12  ;;  %v2651_v61 = vld [vmem:[%s12524_s9 + $0xd8] sm:$0xff]  ;;  %v5811_v38 = vpack.c.bf16 %v2660_v33, %v2656_v47  ;;  %v2672_v26 = vld [vmem:[%s12524_s9 + $0x180] sm:$0xff]  ;;  %v5825_v33 = vpack.c.bf16 %v2693_v7, %v2689_v45 }
 0x497   :  { %v2494_v14 = vadd.f32 %v2493_v51, %v2487_v53  ;;  %v10064_v34 = vadd.f32 %v2458_v11, %v2151_v22  ;;  %v2639_v22 = vld [vmem:[%s12524_s9 + $0x78] sm:$0xff]  ;;  %5800 = vmatpush1.bf16.msra.mxu0 %v5799_v44  ;;  %v2649_v51 = vld [vmem:[%s12524_s9 + $0xc8] sm:$0xff]  ;;  %v5931_v11 = vpack.c.bf16 %v2646_v27, %v2642_v58  ;;  %v2666_v44 = vld [vmem:[%s12524_s9 + $0x150] sm:$0xff] }
 0x498   :  { %v2490_v37 = vsel %vm2482_vm1, %v10062_v13, 0.0  ;;  %v5925_v16 = vpack.c.bf16 %v2639_v22, %v2635_v46  ;;  %v2653_v53 = vld [vmem:[%s12524_s9 + $0xe8] sm:$0xff]  ;;  %5802 = vmatprep.subr.bf16.mxu0 %v5801_v42  ;;  %v2667_v46 = vld [vmem:[%s12524_s9 + $0x158] sm:$0xff]  ;;  %v5943_v12 = vpack.c.bf16 %v2670_v32, %v2666_v44  ;;  %v2676_v58 = vld [vmem:[%s12524_s9 + $0x1a0] sm:$0xff] }
 0x499   :  { %v2498_v6 = vadd.f32 %v2497_v0, %v2490_v37  ;;  %v2491_v15 = vsel %vm2483_vm10, %v10064_v34, 0.0  ;;  %2495 = vadd.xlane.f32.xlu1 %v2494_v14  ;;  %v5805_v0 = vpack.c.bf16 %v2653_v53, %v2649_v51  ;;  %v2655_v14 = vld [vmem:[%s12524_s9 + $0xf8] sm:$0xff]  ;;  %v2648_v37 = vld [vmem:[%s12524_s9 + $0xc0] sm:$0xff]  ;;  %v2674_v27 = vld [vmem:[%s12524_s9 + $0x190] sm:$0xff] }
 0x49a   :  { %5926 = vmatprep.subr.bf16.mxu1 %v5925_v16  ;;  %v2671_v22 = vld [vmem:[%s12524_s9 + $0x178] sm:$0xff]  ;;  %v5939_v16 = vpack.c.bf16 %v2662_v28, %v2658_v48  ;;  %v2678_v51 = vld [vmem:[%s12524_s9 + $0x1b0] sm:$0xff]  ;;  %v2681_v53 = vld [vmem:[%s12524_s9 + $0x1c8] sm:$0xff] }
 0x49b   :  { %v2499_v17 = vadd.f32 %v2498_v6, %v2491_v15  ;;  %5928 = vmatpush1.bf16.msra.mxu1 %v5927_v39  ;;  %v2652_v6 = vld [vmem:[%s12524_s9 + $0xe0] sm:$0xff]  ;;  %v5933_v15 = vpack.c.bf16 %v2655_v14, %v2651_v61  ;;  %5804 = vmatpush1.bf16.msra.mxu0 %v5803_v35  ;;  %v5941_v57 = vpack.c.bf16 %v2671_v22, %v2667_v46  ;;  %v2677_v39 = vld [vmem:[%s12524_s9 + $0x1a8] sm:$0xff]  ;;  %v2675_v42 = vld [vmem:[%s12524_s9 + $0x198] sm:$0xff] }
 0x49c   :  { %5930 = vmatprep.subr.bf16.mxu1 %v5929_v19  ;;  %v5807_v52 = vpack.c.bf16 %v2652_v6, %v2648_v37  ;;  %5806 = vmatprep.subr.bf16.mxu0 %v5805_v0  ;;  %v5817_v19 = vpack.c.bf16 %v2677_v39, %v2673_v59  ;;  %v5945_v35 = vpack.c.bf16 %v2679_v49, %v2675_v42  ;;  %v2685_v61 = vld [vmem:[%s12524_s9 + $0x1e8] sm:$0xff]  ;;  %v2687_v0 = vld [vmem:[%s12524_s9 + $0x1f8] sm:$0xff]  ;;  %v2688_v48 = vld [vmem:[%s12524_s9 + $0x200] sm:$0xff] }
 0x49d   :  { %2500 = vadd.xlane.f32.xlu0 %v2499_v17  ;;  %v2650_v17 = vld [vmem:[%s12524_s9 + $0xd0] sm:$0xff]  ;;  %v5819_v14 = vpack.c.bf16 %v2676_v58, %v2672_v26  ;;  %v5947_v37 = vpack.c.bf16 %v2678_v51, %v2674_v27  ;;  %v5821_v6 = vpack.c.bf16 %v2685_v61, %v2681_v53  ;;  %v2697_v46 = vld [vmem:[%s12524_s9 + $0x248] sm:$0xff]  ;;  %v2696_v44 = vld [vmem:[%s12524_s9 + $0x240] sm:$0xff] }
 0x49e   :  { %v2690_v28 = vld [vmem:[%s12524_s9 + $0x210] sm:$0xff]  ;;  %v2701_v22 = vld [vmem:[%s12524_s9 + $0x268] sm:$0xff] }
 0x49f   :  { %5932 = vmatpush1.bf16.msra.mxu1 %v5931_v11  ;;  %5808 = vmatpush1.bf16.msra.mxu0 %v5807_v52  ;;  %v2683_v11 = vld [vmem:[%s12524_s9 + $0x1d8] sm:$0xff]  ;;  %v5955_v60 = vpack.c.bf16 %v2694_v29, %v2690_v28  ;;  %v5829_v18 = vpack.c.bf16 %v2701_v22, %v2697_v46  ;;  %v2698_v59 = vld [vmem:[%s12524_s9 + $0x250] sm:$0xff]  ;;  %v2708_v28 = vld [vmem:[%s12524_s9 + $0x2a0] sm:$0xff] }
 0x4a0   :  { %5934 = vmatprep.subr.bf16.mxu1 %v5933_v15  ;;  %5810 = vmatprep.subr.bf16.mxu0 %v5809_v43  ;;  %v2680_v15 = vld [vmem:[%s12524_s9 + $0x1c0] sm:$0xff]  ;;  %v5949_v31 = vpack.c.bf16 %v2687_v0, %v2683_v11  ;;  %v2691_v52 = vld [vmem:[%s12524_s9 + $0x218] sm:$0xff]  ;;  %v2702_v39 = vld [vmem:[%s12524_s9 + $0x270] sm:$0xff] }
 0x4a1   :  { %v5959_v49 = vpack.c.bf16 %v2702_v39, %v2698_v59  ;;  %v2706_v46 = vld [vmem:[%s12524_s9 + $0x290] sm:$0xff]  ;;  %v2716_v59 = vld [vmem:[%s12524_s9 + $0x2e0] sm:$0xff] }
 0x4a2   :  { %v2710_v22 = vld [vmem:[%s12524_s9 + $0x2b0] sm:$0xff] }
 0x4a3   :  { %5812 = vmatpush1.bf16.msra.mxu0 %v5811_v38  ;;  %v2699_v38 = vld [vmem:[%s12524_s9 + $0x258] sm:$0xff] }
 0x4a4   :  { %5814 = vmatprep.subr.bf16.mxu0 %v5813_v25 }
 0x4a7   :  { %5816 = vmatpush1.bf16.msra.mxu0 %v5815_v24 }
 0x4a8   :  { %5818 = vmatprep.subr.bf16.mxu0 %v5817_v19 }
 0x4aa   :  { %2556 = vperm.xlu1 %7046, %v2552_v9   ;;  %v2654_v9 = vld [vmem:[%s12524_s9 + $0xf0] sm:$0xff] }
 0x4ab   :  { %v5935_v4 = vpack.c.bf16 %v2654_v9, %v2650_v17  ;;  %v2684_v17 = vld [vmem:[%s12524_s9 + $0x1e0] sm:$0xff]  ;;  %v2682_v9 = vld [vmem:[%s12524_s9 + $0x1d0] sm:$0xff]  ;;  %5820 = vmatpush1.bf16.msra.mxu0 %v5819_v14 }
 0x4ac   :  { %v5823_v43 = vpack.c.bf16 %v2684_v17, %v2680_v15  ;;  %5822 = vmatprep.subr.bf16.mxu0 %v5821_v6  ;;  %v5951_v47 = vpack.c.bf16 %v2686_v10, %v2682_v9 }
 0x4ad   :  { %5936 = vmatpush1.bf16.msra.mxu1 %v5935_v4  ;;  %v2695_v4 = vld [vmem:[%s12524_s9 + $0x238] sm:$0xff] }
 0x4ae   :  { %5938 = vmatprep.subr.bf16.mxu1 %v5937_v1  ;;  %v2692_v1 = vld [vmem:[%s12524_s9 + $0x220] sm:$0xff]  ;;  %v5953_v55 = vpack.c.bf16 %v2695_v4, %v2691_v52 }
 0x4af   :  { %5824 = vmatpush1.bf16.msra.mxu0 %v5823_v43  ;;  %v5827_v25 = vpack.c.bf16 %v2692_v1, %v2688_v48  ;;  %v2705_v43 = vld [vmem:[%s12524_s9 + $0x288] sm:$0xff]  ;;  %v2711_v48 = vld [vmem:[%s12524_s9 + $0x2b8] sm:$0xff]  ;;  %v2704_v1 = vld [vmem:[%s12524_s9 + $0x280] sm:$0xff] }
 0x4b0   :  { %5826 = vmatprep.subr.bf16.mxu0 %v5825_v33  ;;  %v5833_v33 = vpack.c.bf16 %v2709_v21, %v2705_v43  ;;  %v5835_v29 = vpack.c.bf16 %v2708_v28, %v2704_v1  ;;  %v2741_v43 = vld [vmem:[%s12524_s9 + $0x3a8] sm:$0xff]  ;;  %v2736_v1 = vld [vmem:[%s12524_s9 + $0x380] sm:$0xff] }
 0x4b1   :  { %5940 = vmatpush1.bf16.msra.mxu1 %v5939_v16  ;;  %v2703_v16 = vld [vmem:[%s12524_s9 + $0x278] sm:$0xff] }
 0x4b2   :  { %5942 = vmatprep.subr.bf16.mxu1 %v5941_v57  ;;  %v2700_v57 = vld [vmem:[%s12524_s9 + $0x260] sm:$0xff]  ;;  %v5957_v32 = vpack.c.bf16 %v2703_v16, %v2699_v38  ;;  %v2553_v38 = vld [vmem:[%s12523_s6 + $0x8] sm:$0xff]  ;;  %v5963_v16 = vpack.c.bf16 %v2710_v22, %v2706_v46  ;;  %v2742_v46 = vld [vmem:[%s12524_s9 + $0x3b0] sm:$0xff]  ;;  %s13250_s6 = smov 121  }
 0x4b3   :  { %5828 = vmatpush1.bf16.msra.mxu0 %v5827_v25  ;;  %v5831_v42 = vpack.c.bf16 %v2700_v57, %v2696_v44  ;;  %v2713_v25 = vld [vmem:[%s12524_s9 + $0x2c8] sm:$0xff]  ;;  %v2719_v57 = vld [vmem:[%s12524_s9 + $0x2f8] sm:$0xff] }
 0x4b4   :  { %5830 = vmatprep.subr.bf16.mxu0 %v5829_v18  ;;  %v2715_v18 = vld [vmem:[%s12524_s9 + $0x2d8] sm:$0xff] }
 0x4b5   :  { %5944 = vmatpush1.bf16.msra.mxu1 %v5943_v12  ;;  %v5965_v39 = vpack.c.bf16 %v2719_v57, %v2715_v18  ;;  %v2744_v57 = vld [vmem:[%s12524_s9 + $0x3c0] sm:$0xff] }
 0x4b6   :  { %5946 = vmatprep.subr.bf16.mxu1 %v5945_v35 }
 0x4b7   :  { %5832 = vmatpush1.bf16.msra.mxu0 %v5831_v42 }
 0x4b8   :  { %5834 = vmatprep.subr.bf16.mxu0 %v5833_v33  ;;  %v2739_v33 = vld [vmem:[%s12524_s9 + $0x398] sm:$0xff] }
 0x4b9   :  { %5948 = vmatpush1.bf16.msra.mxu1 %v5947_v37 }
 0x4ba   :  { %5950 = vmatprep.subr.bf16.mxu1 %v5949_v31 }
 0x4bb   :  { %5836 = vmatpush1.bf16.msra.mxu0 %v5835_v29  ;;  %v2738_v29 = vld [vmem:[%s12524_s9 + $0x390] sm:$0xff] }
 0x4bd   :  { %5952 = vmatpush1.bf16.msra.mxu1 %v5951_v47  ;;  %v2707_v47 = vld [vmem:[%s12524_s9 + $0x298] sm:$0xff] }
 0x4be   :  { %5954 = vmatprep.subr.bf16.mxu1 %v5953_v55  ;;  %v5961_v55 = vpack.c.bf16 %v2711_v48, %v2707_v47  ;;  %v2743_v48 = vld [vmem:[%s12524_s9 + $0x3b8] sm:$0xff] }
 0x4bf   :  { %v5977_v28 = vpack.c.bf16 %v2743_v48, %v2739_v33 }
 0x4c1   :  { %5956 = vmatpush1.bf16.msra.mxu1 %v5955_v60  ;;  %v2717_v60 = vld [vmem:[%s12524_s9 + $0x2e8] sm:$0xff] }
 0x4c2   :  { %5958 = vmatprep.subr.bf16.mxu1 %v5957_v32  ;;  %v5837_v44 = vpack.c.bf16 %v2717_v60, %v2713_v25  ;;  %v2712_v32 = vld [vmem:[%s12524_s9 + $0x2c0] sm:$0xff]  ;;  %v2747_v25 = vld [vmem:[%s12524_s9 + $0x3d8] sm:$0xff]  ;;  %v5979_v60 = vpack.c.bf16 %v2742_v46, %v2738_v29 }
 0x4c3   :  { %v5839_v42 = vpack.c.bf16 %v2716_v59, %v2712_v32  ;;  %v2748_v32 = vld [vmem:[%s12524_s9 + $0x3e0] sm:$0xff] }
 0x4c4   :  { %5838 = vmatprep.subr.bf16.mxu0 %v5837_v44  ;;  %v2751_v44 = vld [vmem:[%s12524_s9 + $0x3f8] sm:$0xff] }
 0x4c5   :  { %5960 = vmatpush1.bf16.msra.mxu1 %v5959_v49  ;;  %v2714_v49 = vld [vmem:[%s12524_s9 + $0x2d0] sm:$0xff]  ;;  %5840 = vmatpush1.bf16.msra.mxu0 %v5839_v42  ;;  %v5981_v59 = vpack.c.bf16 %v2751_v44, %v2747_v25 }
 0x4c6   :  { %5962 = vmatprep.subr.bf16.mxu1 %v5961_v55  ;;  %v2740_v55 = vld [vmem:[%s12524_s9 + $0x3a0] sm:$0xff]  ;;  %v2750_v42 = vld [vmem:[%s12524_s9 + $0x3f0] sm:$0xff] }
 0x4c7   :  { %v5851_v22 = vpack.c.bf16 %v2740_v55, %v2736_v1 }
 0x4c9   :  { %5964 = vmatpush1.bf16.msra.mxu1 %v5963_v16  ;;  %v2749_v16 = vld [vmem:[%s12524_s9 + $0x3e8] sm:$0xff] }
 0x4ca   :  { %5966 = vmatprep.subr.bf16.mxu1 %v5965_v39  ;;  %v2746_v39 = vld [vmem:[%s12524_s9 + $0x3d0] sm:$0xff] }
 0x526   :  { %v2496_v24 = vpop.xlane.xlu1 %2495 }
 0x527   :  { %v2502_v12 = vmul.f32 0.018518519, %v2496_v24  ;;  %v2718_v24 = vld [vmem:[%s12524_s9 + $0x2f0] sm:$0xff] }
 0x529   :  { %v10316_v19 = vsub.f32 %v9999_v62, %v2502_v12  ;;  %v10319_v26 = vsub.f32 %v10001_v2, %v2502_v12  ;;  %v10322_v58 = vsub.f32 %v10045_v30, %v2502_v12  ;;  %v10325_v27 = vsub.f32 %v10048_v23, %v2502_v12 }
 0x52a   :  { %v2501_v35 = vpop.xlane.xlu0 %2500  ;;  %v5967_v12 = vpack.c.bf16 %v2718_v24, %v2714_v49  ;;  %v2753_v49 = vld [vmem:[%s12524_s9 + $0x408] sm:$0xff] }
 0x52b   :  { %v2503_v51 = vmul.f32 0.018518519, %v2501_v35  ;;  %v2512_v53 = vsel %vm10025_vm15, %v10316_v19, 0.0  ;;  %v2513_v62 = vsel %vm2481_vm0, %v10319_v26, 0.0  ;;  %v2514_v2 = vsel %vm2482_vm1, %v10322_v58, 0.0  ;;  %v2573_v35 = vld [vmem:[%s12525_s7 + $0x8] sm:$0xff] }
 0x52c   :  { %v2520_v61 = vmul.f32 %v2512_v53, %v2512_v53  ;;  %v2521_v30 = vmul.f32 %v2513_v62, %v2513_v62  ;;  %v2515_v14 = vsel %vm2483_vm10, %v10325_v27, 0.0  ;;  %v2522_v37 = vmul.f32 %v2514_v2, %v2514_v2  ;;  %5968 = vmatpush1.bf16.msra.mxu1 %v5967_v12  ;;  %v2725_v53 = vld [vmem:[%s12524_s9 + $0x328] sm:$0xff]  ;;  %v2723_v62 = vld [vmem:[%s12524_s9 + $0x318] sm:$0xff]  ;;  %s13255_s7 = smov 120  }
 0x52d   :  { %v10337_v11 = vsub.f32 %v10003_v56, %v2503_v51  ;;  %v10340_v23 = vsub.f32 %v10005_v5, %v2503_v51  ;;  %v10343_v0 = vsub.f32 %v10062_v13, %v2503_v51  ;;  %v10349_v15 = vsub.f32 %v10064_v34, %v2503_v51  ;;  %v2721_v51 = vld [vmem:[%s12524_s9 + $0x308] sm:$0xff]  ;;  %v2755_v12 = vld [vmem:[%s12524_s9 + $0x418] sm:$0xff] }
 0x52e   :  { %v2528_v6 = vadd.f32 %v2521_v30, %v2520_v61  ;;  %v2523_v17 = vmul.f32 %v2515_v14, %v2515_v14  ;;  %v5841_v2 = vpack.c.bf16 %v2725_v53, %v2721_v51  ;;  %v2727_v61 = vld [vmem:[%s12524_s9 + $0x338] sm:$0xff]  ;;  %v2720_v30 = vld [vmem:[%s12524_s9 + $0x300] sm:$0xff]  ;;  %v2757_v24 = vld [vmem:[%s12524_s9 + $0x428] sm:$0xff]  ;;  %v5855_v51 = vpack.c.bf16 %v2748_v32, %v2744_v57 }
 0x52f   :  { %v2516_v56 = vsel %vm10025_vm15, %v10337_v11, 0.0  ;;  %v2517_v5 = vsel %vm2481_vm0, %v10340_v23, 0.0  ;;  %v2518_v13 = vsel %vm2482_vm1, %v10343_v0, 0.0  ;;  %v2519_v34 = vsel %vm2483_vm10, %v10349_v15, 0.0  ;;  %v2724_v14 = vld [vmem:[%s12524_s9 + $0x320] sm:$0xff] }
 0x530   :  { %v2529_v9 = vadd.f32 %v2528_v6, %v2522_v37  ;;  %v2524_v31 = vmul.f32 %v2516_v56, %v2516_v56  ;;  %v2525_v10 = vmul.f32 %v2517_v5, %v2517_v5  ;;  %v2526_v7 = vmul.f32 %v2518_v13, %v2518_v13  ;;  %v2722_v56 = vld [vmem:[%s12524_s9 + $0x310] sm:$0xff]  ;;  %v2729_v13 = vld [vmem:[%s12524_s9 + $0x348] sm:$0xff]  ;;  %5842 = vmatprep.subr.bf16.mxu0 %v5841_v2 }
 0x531   :  { %v2527_v52 = vmul.f32 %v2519_v34, %v2519_v34  ;;  %v5969_v37 = vpack.c.bf16 %v2727_v61, %v2723_v62  ;;  %v5843_v6 = vpack.c.bf16 %v2724_v14, %v2720_v30  ;;  %v2726_v5 = vld [vmem:[%s12524_s9 + $0x330] sm:$0xff]  ;;  %v5983_v53 = vpack.c.bf16 %v2750_v42, %v2746_v39  ;;  %v2557_v61 = vpop.permute.xlu1 %2556 }
 0x532   :  { %v2530_v45 = vadd.f32 %v2529_v9, %v2523_v17  ;;  %v2533_v54 = vadd.f32 %v2525_v10, %v2524_v31  ;;  %v5971_v17 = vpack.c.bf16 %v2726_v5, %v2722_v56  ;;  %v2733_v9 = vld [vmem:[%s12524_s9 + $0x368] sm:$0xff]  ;;  %v2731_v31 = vld [vmem:[%s12524_s9 + $0x358] sm:$0xff]  ;;  %v5857_v62 = vpack.c.bf16 %v2757_v24, %v2753_v49 }
 0x533   :  { %v2735_v10 = vld [vmem:[%s12524_s9 + $0x378] sm:$0xff]  ;;  %5970 = vmatprep.subr.bf16.mxu1 %v5969_v37  ;;  %5844 = vmatpush1.bf16.msra.mxu0 %v5843_v6  ;;  %v5845_v34 = vpack.c.bf16 %v2733_v9, %v2729_v13  ;;  %v10536_v9 = vld [vmem:[%s12524_s9 + $0x420] sm:$0xff] }
 0x534   :  { %2531 = vadd.xlane.f32.xlu0 %v2530_v45  ;;  %v2534_v4 = vadd.f32 %v2533_v54, %v2526_v7  ;;  %v5973_v45 = vpack.c.bf16 %v2735_v10, %v2731_v31  ;;  %v2728_v7 = vld [vmem:[%s12524_s9 + $0x340] sm:$0xff]  ;;  %5972 = vmatpush1.bf16.msra.mxu1 %v5971_v17  ;;  %v10541_v31 = vld [vmem:[%s12524_s9 + $0x410] sm:$0xff] }
 0x535   :  { %v2732_v54 = vld [vmem:[%s12524_s9 + $0x360] sm:$0xff]  ;;  %5846 = vmatprep.subr.bf16.mxu0 %v5845_v34  ;;  %v10546_v10 = vld [vmem:[%s12524_s9 + $0x430] sm:$0xff] }
 0x536   :  { %v2535_v40 = vadd.f32 %v2534_v4, %v2527_v52  ;;  %v2730_v52 = vld [vmem:[%s12524_s9 + $0x350] sm:$0xff]  ;;  %v5847_v4 = vpack.c.bf16 %v2732_v54, %v2728_v7  ;;  %5974 = vmatprep.subr.bf16.mxu1 %v5973_v45  ;;  %v10531_v17 = vld [vmem:[%s12524_s9 + $0x400] sm:$0xff]  ;;  %v10551_v45 = vld [vmem:[%s12524_s9 + $0x448] sm:$0xff]  ;;  %v5987_v55 = vpack.c.bf16 %v10546_v10, %v10541_v31 }
 0x537   :  { %v10556_v7 = vld [vmem:[%s12524_s9 + $0x468] sm:$0xff]  ;;  %v10561_v54 = vld [vmem:[%s12524_s9 + $0x458] sm:$0xff]  ;;  %v2770_v31 = vld [vmem:[%s12524_s9 + $0x490] sm:$0xff] }
 0x538   :  { %2536 = vadd.xlane.f32.xlu1 %v2535_v40  ;;  %v2734_v40 = vld [vmem:[%s12524_s9 + $0x370] sm:$0xff]  ;;  %5848 = vmatpush1.bf16.msra.mxu0 %v5847_v4  ;;  %v5861_v29 = vpack.c.bf16 %v10556_v7, %v10551_v45 }
 0x539   :  { %v5975_v21 = vpack.c.bf16 %v2734_v40, %v2730_v52  ;;  %v2774_v10 = vld [vmem:[%s12524_s9 + $0x4b0] sm:$0xff] }
 0x53b   :  { %5976 = vmatpush1.bf16.msra.mxu1 %v5975_v21  ;;  %v10579_v21 = vld [vmem:[%s12524_s9 + $0x460] sm:$0xff] }
 0x53c   :  { %5978 = vmatprep.subr.bf16.mxu1 %v5977_v28 }
 0x53f   :  { %5980 = vmatpush1.bf16.msra.mxu1 %v5979_v60 }
 0x540   :  { %5982 = vmatprep.subr.bf16.mxu1 %v5981_v59 }
 0x543   :  { %5984 = vmatpush1.bf16.msra.mxu1 %v5983_v53 }
 0x54a   :  { %2576 = vperm.xlu0 %6435, %v2572_v41   ;;  %v2737_v41 = vld [vmem:[%s12524_s9 + $0x388] sm:$0xff] }
 0x54b   :  { %v5849_v47 = vpack.c.bf16 %v2741_v43, %v2737_v41  ;;  %v10569_v41 = vld [vmem:[%s12524_s9 + $0x478] sm:$0xff]  ;;  %v10574_v43 = vld [vmem:[%s12524_s9 + $0x440] sm:$0xff] }
 0x54c   :  { %v5989_v46 = vpack.c.bf16 %v10569_v41, %v10561_v54  ;;  %v2781_v41 = vld [vmem:[%s12524_s9 + $0x4e8] sm:$0xff] }
 0x54d   :  { %5850 = vmatprep.subr.bf16.mxu0 %v5849_v47 }
 0x54e   :  { %2561 = vperm.xlu0 %6435, %v2553_v38   ;;  %v2745_v38 = vld [vmem:[%s12524_s9 + $0x3c8] sm:$0xff]  ;;  %5852 = vmatpush1.bf16.msra.mxu0 %v5851_v22 }
 0x54f   :  { %v5853_v18 = vpack.c.bf16 %v2749_v16, %v2745_v38 }
 0x551   :  { %5854 = vmatprep.subr.bf16.mxu0 %v5853_v18 }
 0x552   :  { %2581 = vperm.xlu0 %6435, %v2573_v35   ;;  %v2759_v35 = vld [vmem:[%s12524_s9 + $0x438] sm:$0xff]  ;;  %5856 = vmatpush1.bf16.msra.mxu0 %v5855_v51 }
 0x553   :  { %v5985_v2 = vpack.c.bf16 %v2759_v35, %v2755_v12  ;;  %5858 = vmatprep.subr.bf16.mxu0 %v5857_v62  ;;  %v2769_v62 = vld [vmem:[%s12524_s9 + $0x488] sm:$0xff] }
 0x555   :  { %5986 = vmatprep.subr.bf16.mxu1 %v5985_v2  ;;  %v2773_v2 = vld [vmem:[%s12524_s9 + $0x4a8] sm:$0xff] }
 0x5c1   :  { %v2532_v30 = vpop.xlane.xlu0 %2531 }
 0x5c2   :  { %v2538_v14 = vmul.f32 0.018518519, %v2532_v30  ;;  %v2775_v30 = vld [vmem:[%s12524_s9 + $0x4b8] sm:$0xff] }
 0x5c4   :  { %v2540_v37 = vadd.f32 1e-05, %v2538_v14  ;;  %v2768_v14 = vld [vmem:[%s12524_s9 + $0x480] sm:$0xff] }
 0x5c5   :  { %v2537_v6 = vpop.xlane.xlu1 %2536 }
 0x5c6   :  { %7992 = vrsqrt.f32 %v2540_v37  ;;  %v2539_v56 = vmul.f32 0.018518519, %v2537_v6  ;;  %v2772_v37 = vld [vmem:[%s12524_s9 + $0x4a0] sm:$0xff] }
 0x5c8   :  { %v2541_v5 = vadd.f32 1e-05, %v2539_v56 }
 0x5c9   :  { %v2577_v13 = vpop.permute.xlu0 %2576 }
 0x5ca   :  { %7994 = vrsqrt.f32 %v2541_v5 }
 0x5cd   :  { %v2562_v33 = vpop.permute.xlu0 %2561 }
 0x5d0   :  { %v7993_v34 = vpop.eup %7992 }
 0x5d1   :  { %v2544_v52 = vmul.f32 %v7993_v34, %v10316_v19  ;;  %v2546_v4 = vmul.f32 %v7993_v34, %v10322_v58  ;;  %v2545_v40 = vmul.f32 %v7993_v34, %v10319_v26  ;;  %v2547_v19 = vmul.f32 %v7993_v34, %v10325_v27  ;;  %v2582_v24 = vpop.permute.xlu0 %2581  ;;  %v2777_v34 = vld [vmem:[%s12524_s9 + $0x4c8] sm:$0xff] }
 0x5d2   :  { %v5859_v26 = vpack.c.bf16 %v10536_v9, %v10531_v17  ;;  %v5863_v27 = vpack.c.bf16 %v10579_v21, %v10574_v43  ;;  %v2778_v43 = vld [vmem:[%s12524_s9 + $0x4d0] sm:$0xff] }
 0x5d3   :  { %v2564_v58 = vmul.f32 %v2557_v61, %v2544_v52  ;;  %v2566_v47 = vmul.f32 %v2557_v61, %v2546_v4  ;;  %v2565_v48 = vmul.f32 %v2557_v61, %v2545_v40  ;;  %v2567_v1 = vmul.f32 %v2557_v61, %v2547_v19  ;;  %v2771_v61 = vld [vmem:[%s12524_s9 + $0x498] sm:$0xff]  ;;  %v2782_v21 = vld [vmem:[%s12524_s9 + $0x4f0] sm:$0xff] }
 0x5d4   :  { %v7995_v28 = vpop.eup %7994  ;;  %v5865_v4 = vpack.c.bf16 %v2773_v2, %v2769_v62  ;;  %v5993_v40 = vpack.c.bf16 %v2775_v30, %v2771_v61  ;;  %v2779_v19 = vld [vmem:[%s12524_s9 + $0x4d8] sm:$0xff]  ;;  %v2794_v62 = vld [vmem:[%s12524_s9 + $0x550] sm:$0xff]  ;;  %v2801_v61 = vld [vmem:[%s12524_s9 + $0x588] sm:$0xff] }
 0x5d5   :  { %v2584_v22 = vadd.f32 %v2577_v13, %v2564_v58  ;;  %v2586_v38 = vadd.f32 %v2577_v13, %v2566_v47  ;;  %v2585_v16 = vadd.f32 %v2577_v13, %v2565_v48  ;;  %v2549_v25 = vmul.f32 %v7995_v28, %v10340_v23  ;;  %v2766_v23 = vld [vmem:[%s12524_s9 + $0x470] sm:$0xff]  ;;  %v2805_v30 = vld [vmem:[%s12524_s9 + $0x5a8] sm:$0xff] }
 0x5d6   :  { %v2548_v60 = vmul.f32 %v7995_v28, %v10337_v11  ;;  %v2587_v18 = vadd.f32 %v2577_v13, %v2567_v1  ;;  %v2551_v44 = vmul.f32 %v7995_v28, %v10349_v15  ;;  %v2550_v57 = vmul.f32 %v7995_v28, %v10343_v0  ;;  %v2762_v11 = vld [vmem:[%s12524_s9 + $0x450] sm:$0xff]  ;;  %v2776_v1 = vld [vmem:[%s12524_s9 + $0x4c0] sm:$0xff] }
 0x5d7   :  { %vm2593_vm11 = vcmp.ge.f32.partialorder %v2585_v16, 0.0  ;;  %v2601_v32 = vmul.f32 0.2, %v2585_v16  ;;  %vm2592_vm13 = vcmp.ge.f32.partialorder %v2584_v22, 0.0  ;;  %v2600_v59 = vmul.f32 0.2, %v2584_v22 }
 0x5d8   :  { %v2569_v39 = vmul.f32 %v2562_v33, %v2549_v25  ;;  %v2568_v42 = vmul.f32 %v2562_v33, %v2548_v60  ;;  %vm2595_vm8 = vcmp.ge.f32.partialorder %v2587_v18, 0.0  ;;  %v2603_v49 = vmul.f32 0.2, %v2587_v18  ;;  %v2780_v28 = vld [vmem:[%s12524_s9 + $0x4e0] sm:$0xff]  ;;  %v2791_v25 = vld [vmem:[%s12524_s9 + $0x538] sm:$0xff]  ;;  %v2798_v2 = vld [vmem:[%s12524_s9 + $0x570] sm:$0xff] }
 0x5d9   :  { %v2609_v12 = vsel %vm2593_vm11, %v2585_v16, %v2601_v32  ;;  %v2608_v35 = vsel %vm2592_vm13, %v2584_v22, %v2600_v59  ;;  %vm2594_vm14 = vcmp.ge.f32.partialorder %v2586_v38, 0.0  ;;  %v2602_v0 = vmul.f32 0.2, %v2586_v38  ;;  %v2787_v16 = vld [vmem:[%s12524_s9 + $0x518] sm:$0xff] }
 0x5da   :  { %2617 = vst [vmem:[%s12526_s13 + $0x8] sm:$0xff] %v2609_v12  ;;  %2944 = vmatprep.mubr.f32.mxu0 %v2609_v12  ;;  %3098 = vmatprep.mubr.f32.mxu1 %v2609_v12  ;;  %2616 = vst [vmem:[%s12526_s13] sm:$0xff] %v2608_v35  ;;  %v2589_v15 = vadd.f32 %v2582_v24, %v2569_v39  ;;  %v2588_v51 = vadd.f32 %v2582_v24, %v2568_v42  ;;  %v2786_v39 = vld [vmem:[%s12524_s9 + $0x510] sm:$0xff]  ;;  %v2795_v12 = vld [vmem:[%s12524_s9 + $0x558] sm:$0xff]  ;;  %vm3375_vm11 = vcmask 965632   ;;  %vm3278_vm13 = vcmask 1006592  }
 0x5db   :  { %v2611_v53 = vsel %vm2595_vm8, %v2587_v18, %v2603_v49  ;;  %2945 = vmatmul.mubr.f32.vlgmr.msra.gmra.mrb[8].mxu0 %v2608_v35  ;;  %3099 = vmatmul.mubr.f32.vlgmr.msra.gmra.mrb[12].mxu1 %v2608_v35  ;;  %v10630_v6 = vsel %vm2594_vm14, %v2586_v38, %v2602_v0  ;;  %v2571_v56 = vmul.f32 %v2562_v33, %v2551_v44  ;;  %v2789_v38 = vld [vmem:[%s12524_s9 + $0x528] sm:$0xff]  ;;  %v2784_v44 = vld [vmem:[%s12524_s9 + $0x500] sm:$0xff]  ;;  %v2790_v42 = vld [vmem:[%s12524_s9 + $0x530] sm:$0xff]  ;;  %vm12895_vm8 = vcmask 908288  }
 0x5dc   :  { %2619 = vst [vmem:[%s12526_s13 + $0x18] sm:$0xff] %v2611_v53  ;;  %v2570_v5 = vmul.f32 %v2562_v33, %v2550_v57  ;;  %5860 = vmatpush1.bf16.msra.mxu0 %v5859_v26  ;;  %5988 = vmatpush1.bf16.msra.mxu1 %v5987_v55  ;;  %vm2597_vm15 = vcmp.ge.f32.partialorder %v2589_v15, 0.0  ;;  %v2605_v13 = vmul.f32 0.2, %v2589_v15  ;;  %vm2596_vm0 = vcmp.ge.f32.partialorder %v2588_v51, 0.0  ;;  %2618 = vst [vmem:[%s12526_s13 + $0x10] sm:$0xff] %v10630_v6 }
 0x5dd   :  { %v2604_v17 = vmul.f32 0.2, %v2588_v51  ;;  %5862 = vmatprep.subr.bf16.mxu0 %v5861_v29  ;;  %5990 = vmatprep.subr.bf16.mxu1 %v5989_v46  ;;  %v5991_v9 = vpack.c.bf16 %v2766_v23, %v2762_v11  ;;  %v2591_v45 = vadd.f32 %v2582_v24, %v2571_v56  ;;  %v2783_v26 = vld [vmem:[%s12524_s9 + $0x4f8] sm:$0xff]  ;;  %v5867_v33 = vpack.c.bf16 %v2772_v37, %v2768_v14  ;;  %v2788_v57 = vld [vmem:[%s12524_s9 + $0x520] sm:$0xff]  ;;  %v2793_v49 = vld [vmem:[%s12524_s9 + $0x548] sm:$0xff] }
 0x5de   :  { %v2590_v7 = vadd.f32 %v2582_v24, %v2570_v5  ;;  %v2613_v54 = vsel %vm2597_vm15, %v2589_v15, %v2605_v13  ;;  %v5995_v48 = vpack.c.bf16 %v2774_v10, %v2770_v31  ;;  %v5869_v46 = vpack.c.bf16 %v2781_v41, %v2777_v34  ;;  %v2797_v24 = vld [vmem:[%s12524_s9 + $0x568] sm:$0xff]  ;;  %v2799_v35 = vld [vmem:[%s12524_s9 + $0x578] sm:$0xff]  ;;  %v2792_v0 = vld [vmem:[%s12524_s9 + $0x540] sm:$0xff] }
 0x5df   :  { %v2612_v52 = vsel %vm2596_vm0, %v2588_v51, %v2604_v17  ;;  %2621 = vst [vmem:[%s12526_s13 + $0x28] sm:$0xff] %v2613_v54  ;;  %2950 = vmatprep.mubr.f32.mxu0 %v2613_v54  ;;  %3103 = vmatprep.mubr.f32.mxu1 %v2613_v54  ;;  %vm2599_vm1 = vcmp.ge.f32.partialorder %v2591_v45, 0.0  ;;  %v2607_v58 = vmul.f32 0.2, %v2591_v45  ;;  %v5997_v22 = vpack.c.bf16 %v2783_v26, %v2779_v19  ;;  %v2796_v15 = vld [vmem:[%s12524_s9 + $0x560] sm:$0xff]  ;;  %v2803_v14 = vld [vmem:[%s12524_s9 + $0x598] sm:$0xff] }
 0x5e0   :  { %2620 = vst [vmem:[%s12526_s13 + $0x20] sm:$0xff] %v2612_v52  ;;  %vm2598_vm10 = vcmp.ge.f32.partialorder %v2590_v7, 0.0  ;;  %v2606_v47 = vmul.f32 0.2, %v2590_v7  ;;  %2951 = vmatmul.mubr.f32.gmra.mrb[10].mxu0 %v2612_v52  ;;  %3104 = vmatmul.mubr.f32.gmra.mrb[14].mxu1 %v2612_v52  ;;  %v5871_v60 = vpack.c.bf16 %v2780_v28, %v2776_v1  ;;  %v5999_v18 = vpack.c.bf16 %v2782_v21, %v2778_v43  ;;  %v2807_v37 = vld [vmem:[%s12524_s9 + $0x5b8] sm:$0xff]  ;;  %v2800_v13 = vld [vmem:[%s12524_s9 + $0x580] sm:$0xff] }
 0x5e1   :  { %5864 = vmatpush1.bf16.msra.mxu0 %v5863_v27  ;;  %5992 = vmatpush1.bf16.msra.mxu1 %v5991_v9  ;;  %v10669_v55 = vsel %vm2599_vm1, %v2591_v45, %v2607_v58  ;;  %v2785_v27 = vld [vmem:[%s12524_s9 + $0x508] sm:$0xff]  ;;  %v6001_v59 = vpack.c.bf16 %v2791_v25, %v2787_v16  ;;  %v5875_v11 = vpack.c.bf16 %v2788_v57, %v2784_v44  ;;  %v2804_v17 = vld [vmem:[%s12524_s9 + $0x5a0] sm:$0xff]  ;;  %v2802_v10 = vld [vmem:[%s12524_s9 + $0x590] sm:$0xff]  ;;  %vm3571_vm14 = vcmask 842752  }
 0x5e2   :  { %v10671_v29 = vsel %vm2598_vm10, %v2590_v7, %v2606_v47  ;;  %3021 = vmatprep.mubr.f32.mxu0 %v2611_v53  ;;  %3173 = vmatprep.mubr.f32.mxu1 %v2611_v53  ;;  %2623 = vst [vmem:[%s12526_s13 + $0x38] sm:$0xff] %v10669_v55  ;;  %v5873_v32 = vpack.c.bf16 %v2789_v38, %v2785_v27  ;;  %v2806_v34 = vld [vmem:[%s12524_s9 + $0x5b0] sm:$0xff]  ;;  %v2809_v45 = vld [vmem:[%s12524_s9 + $0x5c8] sm:$0xff]  ;;  %v2811_v54 = vld [vmem:[%s12524_s9 + $0x5d8] sm:$0xff]  ;;  %vm3400_vm15 = vcmask 957440   ;;  %vm3621_vm0 = vcmask 826368  }
 0x5e3   :  { %2622 = vst [vmem:[%s12526_s13 + $0x30] sm:$0xff] %v10671_v29  ;;  %5866 = vmatprep.subr.bf16.mxu0 %v5865_v4  ;;  %5994 = vmatprep.subr.bf16.mxu1 %v5993_v40  ;;  %v6003_v23 = vpack.c.bf16 %v2790_v42, %v2786_v39  ;;  %v5877_v51 = vpack.c.bf16 %v2797_v24, %v2793_v49  ;;  %v2813_v7 = vld [vmem:[%s12524_s9 + $0x5e8] sm:$0xff]  ;;  %v2815_v52 = vld [vmem:[%s12524_s9 + $0x5f8] sm:$0xff]  ;;  %v2808_v41 = vld [vmem:[%s12524_s9 + $0x5c0] sm:$0xff]  ;;  %s12809_s13 = smov 101   ;;  %vm3497_vm1 = vcmask 916480  }
 0x5e4   :  { %v6005_v53 = vpack.c.bf16 %v2799_v35, %v2795_v12  ;;  %v5879_v56 = vpack.c.bf16 %v2796_v15, %v2792_v0  ;;  %v6007_v5 = vpack.c.bf16 %v2798_v2, %v2794_v62  ;;  %v5881_v9 = vpack.c.bf16 %v2805_v30, %v2801_v61  ;;  %v2812_v19 = vld [vmem:[%s12524_s9 + $0x5e0] sm:$0xff]  ;;  %v2810_v47 = vld [vmem:[%s12524_s9 + $0x5d0] sm:$0xff]  ;;  %v2821_v1 = vld [vmem:[%s12524_s9 + $0x628] sm:$0xff] }
 0x5e5   :  { %5868 = vmatpush1.bf16.msra.mxu0 %v5867_v33  ;;  %5996 = vmatpush1.bf16.msra.mxu1 %v5995_v48  ;;  %v6009_v31 = vpack.c.bf16 %v2807_v37, %v2803_v14  ;;  %v5883_v4 = vpack.c.bf16 %v2804_v17, %v2800_v13  ;;  %v6011_v40 = vpack.c.bf16 %v2806_v34, %v2802_v10  ;;  %v2814_v33 = vld [vmem:[%s12524_s9 + $0x5f0] sm:$0xff]  ;;  %v2817_v48 = vld [vmem:[%s12524_s9 + $0x608] sm:$0xff]  ;;  %v2819_v28 = vld [vmem:[%s12524_s9 + $0x618] sm:$0xff]  ;;  %vm3671_vm10 = vcmask 801792  }
 0x5e6   :  { %5870 = vmatprep.subr.bf16.mxu0 %v5869_v46  ;;  %5998 = vmatprep.subr.bf16.mxu1 %v5997_v22  ;;  %v5885_v26 = vpack.c.bf16 %v2813_v7, %v2809_v45  ;;  %v6013_v58 = vpack.c.bf16 %v2815_v52, %v2811_v54  ;;  %v2823_v46 = vld [vmem:[%s12524_s9 + $0x638] sm:$0xff]  ;;  %v5887_v22 = vpack.c.bf16 %v2812_v19, %v2808_v41  ;;  %v2816_v21 = vld [vmem:[%s12524_s9 + $0x600] sm:$0xff]  ;;  %v2818_v25 = vld [vmem:[%s12524_s9 + $0x610] sm:$0xff] }
 0x5e7   :  { %v6015_v43 = vpack.c.bf16 %v2814_v33, %v2810_v47  ;;  %v2820_v27 = vld [vmem:[%s12524_s9 + $0x620] sm:$0xff]  ;;  %v5889_v38 = vpack.c.bf16 %v2821_v1, %v2817_v48  ;;  %v6017_v16 = vpack.c.bf16 %v2823_v46, %v2819_v28  ;;  %v2829_v44 = vld [vmem:[%s12524_s9 + $0x668] sm:$0xff]  ;;  %v2827_v57 = vld [vmem:[%s12524_s9 + $0x658] sm:$0xff] }
 0x5e8   :  { %v2824_v42 = vld [vmem:[%s12524_s9 + $0x640] sm:$0xff]  ;;  %v2826_v35 = vld [vmem:[%s12524_s9 + $0x650] sm:$0xff]  ;;  %v2837_v0 = vld [vmem:[%s12524_s9 + $0x6a8] sm:$0xff] }
 0x5e9   :  { %5872 = vmatpush1.bf16.msra.mxu0 %v5871_v60  ;;  %6000 = vmatpush1.bf16.msra.mxu1 %v5999_v18  ;;  %v2822_v60 = vld [vmem:[%s12524_s9 + $0x630] sm:$0xff]  ;;  %v2825_v18 = vld [vmem:[%s12524_s9 + $0x648] sm:$0xff]  ;;  %v2828_v49 = vld [vmem:[%s12524_s9 + $0x660] sm:$0xff] }
 0x5ea   :  { %5874 = vmatprep.subr.bf16.mxu0 %v5873_v32  ;;  %6002 = vmatprep.subr.bf16.mxu1 %v6001_v59  ;;  %v2831_v32 = vld [vmem:[%s12524_s9 + $0x678] sm:$0xff]  ;;  %v5891_v59 = vpack.c.bf16 %v2820_v27, %v2816_v21  ;;  %v6019_v39 = vpack.c.bf16 %v2822_v60, %v2818_v25  ;;  %v5893_v24 = vpack.c.bf16 %v2829_v44, %v2825_v18  ;;  %v2832_v2 = vld [vmem:[%s12524_s9 + $0x680] sm:$0xff]  ;;  %v2834_v37 = vld [vmem:[%s12524_s9 + $0x690] sm:$0xff] }
 0x5eb   :  { %v6021_v12 = vpack.c.bf16 %v2831_v32, %v2827_v57  ;;  %v2835_v15 = vld [vmem:[%s12524_s9 + $0x698] sm:$0xff]  ;;  %v2836_v61 = vld [vmem:[%s12524_s9 + $0x6a0] sm:$0xff]  ;;  %v2845_v13 = vld [vmem:[%s12524_s9 + $0x6e8] sm:$0xff] }
 0x5ec   :  { %v2843_v17 = vld [vmem:[%s12524_s9 + $0x6d8] sm:$0xff]  ;;  %v2840_v34 = vld [vmem:[%s12524_s9 + $0x6c0] sm:$0xff]  ;;  %v2842_v52 = vld [vmem:[%s12524_s9 + $0x6d0] sm:$0xff] }
 0x5ed   :  { %5876 = vmatpush1.bf16.msra.mxu0 %v5875_v11  ;;  %6004 = vmatpush1.bf16.msra.mxu1 %v6003_v23  ;;  %v2830_v11 = vld [vmem:[%s12524_s9 + $0x670] sm:$0xff]  ;;  %v2833_v23 = vld [vmem:[%s12524_s9 + $0x688] sm:$0xff]  ;;  %v2844_v45 = vld [vmem:[%s12524_s9 + $0x6e0] sm:$0xff] }
 0x5ee   :  { %5878 = vmatprep.subr.bf16.mxu0 %v5877_v51  ;;  %6006 = vmatprep.subr.bf16.mxu1 %v6005_v53  ;;  %v2839_v51 = vld [vmem:[%s12524_s9 + $0x6b8] sm:$0xff]  ;;  %v5895_v53 = vpack.c.bf16 %v2828_v49, %v2824_v42  ;;  %v6023_v62 = vpack.c.bf16 %v2830_v11, %v2826_v35  ;;  %v5897_v30 = vpack.c.bf16 %v2837_v0, %v2833_v23  ;;  %v2853_v41 = vld [vmem:[%s12524_s9 + $0x728] sm:$0xff]  ;;  %v2848_v33 = vld [vmem:[%s12524_s9 + $0x700] sm:$0xff] }
 0x5ef   :  { %v6025_v14 = vpack.c.bf16 %v2839_v51, %v2835_v15  ;;  %v2851_v19 = vld [vmem:[%s12524_s9 + $0x718] sm:$0xff]  ;;  %v2852_v48 = vld [vmem:[%s12524_s9 + $0x720] sm:$0xff]  ;;  %v2850_v46 = vld [vmem:[%s12524_s9 + $0x710] sm:$0xff] }
 0x5f0   :  { %v2861_v21 = vld [vmem:[%s12524_s9 + $0x768] sm:$0xff]  ;;  %v2859_v27 = vld [vmem:[%s12524_s9 + $0x758] sm:$0xff]  ;;  %v2856_v60 = vld [vmem:[%s12524_s9 + $0x740] sm:$0xff] }
 0x5f1   :  { %5880 = vmatpush1.bf16.msra.mxu0 %v5879_v56  ;;  %6008 = vmatpush1.bf16.msra.mxu1 %v6007_v5  ;;  %v2838_v56 = vld [vmem:[%s12524_s9 + $0x6b0] sm:$0xff]  ;;  %v2841_v5 = vld [vmem:[%s12524_s9 + $0x6c8] sm:$0xff]  ;;  %v2860_v18 = vld [vmem:[%s12524_s9 + $0x760] sm:$0xff] }
 0x5f2   :  { %5882 = vmatprep.subr.bf16.mxu0 %v5881_v9  ;;  %6010 = vmatprep.subr.bf16.mxu1 %v6009_v31  ;;  %v2847_v9 = vld [vmem:[%s12524_s9 + $0x6f8] sm:$0xff]  ;;  %v5899_v31 = vpack.c.bf16 %v2836_v61, %v2832_v2  ;;  %v6027_v10 = vpack.c.bf16 %v2838_v56, %v2834_v37  ;;  %v5901_v7 = vpack.c.bf16 %v2845_v13, %v2841_v5  ;;  %v2858_v32 = vld [vmem:[%s12524_s9 + $0x750] sm:$0xff]  ;;  %v2869_v42 = vld [vmem:[%s12524_s9 + $0x7a8] sm:$0xff] }
 0x5f3   :  { %v6029_v54 = vpack.c.bf16 %v2847_v9, %v2843_v17  ;;  %v2867_v49 = vld [vmem:[%s12524_s9 + $0x798] sm:$0xff]  ;;  %v2864_v11 = vld [vmem:[%s12524_s9 + $0x780] sm:$0xff]  ;;  %v2866_v51 = vld [vmem:[%s12524_s9 + $0x790] sm:$0xff] }
 0x5f4   :  { %v2868_v23 = vld [vmem:[%s12524_s9 + $0x7a0] sm:$0xff]  ;;  %v2877_v2 = vld [vmem:[%s12524_s9 + $0x7e8] sm:$0xff]  ;;  %v2875_v61 = vld [vmem:[%s12524_s9 + $0x7d8] sm:$0xff] }
 0x5f5   :  { %5884 = vmatpush1.bf16.msra.mxu0 %v5883_v4  ;;  %6012 = vmatpush1.bf16.msra.mxu1 %v6011_v40  ;;  %v2846_v4 = vld [vmem:[%s12524_s9 + $0x6f0] sm:$0xff]  ;;  %v2849_v40 = vld [vmem:[%s12524_s9 + $0x708] sm:$0xff]  ;;  %v2872_v56 = vld [vmem:[%s12524_s9 + $0x7c0] sm:$0xff] }
 0x5f6   :  { %5886 = vmatprep.subr.bf16.mxu0 %v5885_v26  ;;  %6014 = vmatprep.subr.bf16.mxu1 %v6013_v58  ;;  %v2855_v26 = vld [vmem:[%s12524_s9 + $0x738] sm:$0xff]  ;;  %v5903_v58 = vpack.c.bf16 %v2844_v45, %v2840_v34  ;;  %v6031_v47 = vpack.c.bf16 %v2846_v4, %v2842_v52  ;;  %v5905_v1 = vpack.c.bf16 %v2853_v41, %v2849_v40  ;;  %v2876_v17 = vld [vmem:[%s12524_s9 + $0x7e0] sm:$0xff]  ;;  %v2874_v9 = vld [vmem:[%s12524_s9 + $0x7d0] sm:$0xff] }
 0x5f7   :  { %v6033_v28 = vpack.c.bf16 %v2855_v26, %v2851_v19 }
 0x5f9   :  { %5888 = vmatpush1.bf16.msra.mxu0 %v5887_v22  ;;  %6016 = vmatpush1.bf16.msra.mxu1 %v6015_v43  ;;  %v2854_v22 = vld [vmem:[%s12524_s9 + $0x730] sm:$0xff]  ;;  %v2857_v43 = vld [vmem:[%s12524_s9 + $0x748] sm:$0xff] }
 0x5fa   :  { %5890 = vmatprep.subr.bf16.mxu0 %v5889_v38  ;;  %6018 = vmatprep.subr.bf16.mxu1 %v6017_v16  ;;  %v2863_v38 = vld [vmem:[%s12524_s9 + $0x778] sm:$0xff]  ;;  %v5907_v16 = vpack.c.bf16 %v2852_v48, %v2848_v33  ;;  %v6035_v25 = vpack.c.bf16 %v2854_v22, %v2850_v46  ;;  %v5909_v44 = vpack.c.bf16 %v2861_v21, %v2857_v43 }
 0x5fb   :  { %v6037_v57 = vpack.c.bf16 %v2863_v38, %v2859_v27 }
 0x5fd   :  { %5892 = vmatpush1.bf16.msra.mxu0 %v5891_v59  ;;  %6020 = vmatpush1.bf16.msra.mxu1 %v6019_v39  ;;  %v2862_v59 = vld [vmem:[%s12524_s9 + $0x770] sm:$0xff]  ;;  %v2865_v39 = vld [vmem:[%s12524_s9 + $0x788] sm:$0xff] }
 0x5fe   :  { %5894 = vmatprep.subr.bf16.mxu0 %v5893_v24  ;;  %6022 = vmatprep.subr.bf16.mxu1 %v6021_v12  ;;  %v2871_v24 = vld [vmem:[%s12524_s9 + $0x7b8] sm:$0xff]  ;;  %v5911_v12 = vpack.c.bf16 %v2860_v18, %v2856_v60  ;;  %v6039_v35 = vpack.c.bf16 %v2862_v59, %v2858_v32  ;;  %v5913_v0 = vpack.c.bf16 %v2869_v42, %v2865_v39 }
 0x5ff   :  { %v6041_v15 = vpack.c.bf16 %v2871_v24, %v2867_v49 }
 0x601   :  { %5896 = vmatpush1.bf16.msra.mxu0 %v5895_v53  ;;  %6024 = vmatpush1.bf16.msra.mxu1 %v6023_v62  ;;  %v2870_v53 = vld [vmem:[%s12524_s9 + $0x7b0] sm:$0xff]  ;;  %v2873_v62 = vld [vmem:[%s12524_s9 + $0x7c8] sm:$0xff] }
 0x602   :  { %5898 = vmatprep.subr.bf16.mxu0 %v5897_v30  ;;  %6026 = vmatprep.subr.bf16.mxu1 %v6025_v14  ;;  %v2879_v30 = vld [vmem:[%s12524_s9 + $0x7f8] sm:$0xff]  ;;  %v5915_v14 = vpack.c.bf16 %v2868_v23, %v2864_v11  ;;  %v6043_v37 = vpack.c.bf16 %v2870_v53, %v2866_v51  ;;  %v5917_v5 = vpack.c.bf16 %v2877_v2, %v2873_v62 }
 0x603   :  { %v6045_v13 = vpack.c.bf16 %v2879_v30, %v2875_v61 }
 0x605   :  { %5900 = vmatpush1.bf16.msra.mxu0 %v5899_v31  ;;  %6028 = vmatpush1.bf16.msra.mxu1 %v6027_v10  ;;  %v2878_v31 = vld [vmem:[%s12524_s9 + $0x7f0] sm:$0xff]  ;;  %v5919_v10 = vpack.c.bf16 %v2876_v17, %v2872_v56  ;;  %s13249_s9 = smov 125  }
 0x606   :  { %5902 = vmatprep.subr.bf16.mxu0 %v5901_v7  ;;  %6030 = vmatprep.subr.bf16.mxu1 %v6029_v54  ;;  %v6047_v34 = vpack.c.bf16 %v2878_v31, %v2874_v9 }
 0x609   :  { %5904 = vmatpush1.bf16.msra.mxu0 %v5903_v58  ;;  %6032 = vmatpush1.bf16.msra.mxu1 %v6031_v47 }
 0x60a   :  { %5906 = vmatprep.subr.bf16.mxu0 %v5905_v1  ;;  %6034 = vmatprep.subr.bf16.mxu1 %v6033_v28 }
 0x60d   :  { %5908 = vmatpush1.bf16.msra.mxu0 %v5907_v16  ;;  %6036 = vmatpush1.bf16.msra.mxu1 %v6035_v25 }
 0x60e   :  { %5910 = vmatprep.subr.bf16.mxu0 %v5909_v44  ;;  %6038 = vmatprep.subr.bf16.mxu1 %v6037_v57 }
 0x611   :  { %5912 = vmatpush1.bf16.msra.mxu0 %v5911_v12  ;;  %6040 = vmatpush1.bf16.msra.mxu1 %v6039_v35 }
 0x612   :  { %5914 = vmatprep.subr.bf16.mxu0 %v5913_v0  ;;  %6042 = vmatprep.subr.bf16.mxu1 %v6041_v15 }
 0x615   :  { %5916 = vmatpush1.bf16.msra.mxu0 %v5915_v14  ;;  %6044 = vmatpush1.bf16.msra.mxu1 %v6043_v37 }
 0x616   :  { %5918 = vmatprep.subr.bf16.mxu0 %v5917_v5  ;;  %6046 = vmatprep.subr.bf16.mxu1 %v6045_v13 }
 0x619   :  { %5920 = vmatpush1.bf16.msra.mxu0 %v5919_v10  ;;  %6048 = vmatpush1.bf16.msra.mxu1 %v6047_v34 }
 0x61c   :  { %3022 = vmatmul.mubr.f32.vlgmr.msra.gmra.mrb[8].mxu0 %v10630_v6  ;;  %3174 = vmatmul.mubr.f32.vlgmr.msra.gmra.mrb[12].mxu1 %v10630_v6 }
 0x61d   :  { %3027 = vmatprep.mubr.f32.mxu0 %v10669_v55  ;;  %3178 = vmatprep.mubr.f32.mxu1 %v10669_v55 }
 0x620   :  { %3028 = vmatmul.mubr.f32.gmra.mrb[10].mxu0 %v10671_v29  ;;  %3179 = vmatmul.mubr.f32.gmra.mrb[14].mxu1 %v10671_v29 }
 0x6ef   :  { %v3023_v45 = vpop.f32.mrb[8].mxu0  ;;  %v10981_v7 = vpop.f32.mrb[12].mxu1 }
 0x6f0   :  { %v3025_v54 = vpop.f32.mrb[9].mxu0  ;;  %v3177_v52 = vpop.f32.mrb[13].mxu1 }
 0x6f1   :  { %v7057_v4 = vpack.i.bf16 %v3025_v54, %v3023_v45  ;;  %v10996_v26 = vpack.i.bf16 %v10981_v7, %v3025_v54 }
 0x6f3   :  { %v10983_v40 = vpop.f32.mrb[14].mxu1  ;;  %7058 = vrot.lane.b32.xlu1 %v7057_v4, %s13249_s9  ;;  %7048 = vrot.lane.b32.xlu0 %v7057_v4, %s13036_s3  ;;  %v10987_v6 = vpop.f32.mrb[10].mxu0 }
 0x6f4   :  { %v10989_v41 = vpop.f32.mrb[11].mxu0  ;;  %v3182_v55 = vpop.f32.mrb[15].mxu1  ;;  %v6051_v19 = vpack.c.bf16 %v10987_v6, %v3023_v45  ;;  %v11002_v58 = vpack.i.bf16 %v10987_v6, %v10981_v7  ;;  %v11007_v47 = vpack.i.bf16 %v10987_v6, %v3023_v45  ;;  %v7362_v33 = vpack.i.bf16 %v10987_v6, %v10983_v40 }
 0x6f5   :  { %v6049_v29 = vpack.c.bf16 %v10989_v41, %v3025_v54  ;;  %v11015_v48 = vpack.i.bf16 %v10983_v40, %v10989_v41  ;;  %v7602_v1 = vpack.i.bf16 %v10989_v41, %v10981_v7 }
 0x6f7   :  { %7073 = vrot.lane.b32.xlu1 %v7057_v4, %s13250_s6  ;;  %7053 = vrot.lane.b32.xlu0 %v7057_v4, %s13251_s28 }
 0x6f8   :  { %6050 = vmatprep.subr.bf16.mxu1 %v6049_v29 }
 0x6f9   :  { %6052 = vmatpush1.bf16.msra.mxu1 %v6051_v19 }
 0x6fb   :  { %7083 = vrot.lane.b32.xlu1 %v7057_v4, %s12801_s23  ;;  %7063 = vrot.lane.b32.xlu0 %v7057_v4, %s12805_s12  ;;  %s12813_s23 = smov 96   ;;  %s12815_s12 = smov 93  }
 0x6ff   :  { %7093 = vrot.lane.b32.xlu1 %v7057_v4, %s13252_s27  ;;  %7068 = vrot.lane.b32.xlu0 %v7057_v4, %s13253_s30 }
 0x703   :  { %7103 = vrot.lane.b32.xlu1 %v7057_v4, %s13254_s15  ;;  %7078 = vrot.lane.b32.xlu0 %v7057_v4, %s13255_s7 }
 0x707   :  { %7113 = vrot.lane.b32.xlu1 %v7057_v4, %s12799_s24  ;;  %7088 = vrot.lane.b32.xlu0 %v7057_v4, %s12807_s14  ;;  %s13257_s24 = smov 110   ;;  %s12819_s14 = smov 100  }
 0x70b   :  { %7123 = vrot.lane.b32.xlu1 %v7057_v4, %s12803_s4  ;;  %7098 = vrot.lane.b32.xlu0 %v7057_v4, %s13256_s5  ;;  %s12817_s4 = smov 102  }
 0x70f   :  { %7133 = vrot.lane.b32.xlu1 %v7057_v4, %s12809_s13  ;;  %7108 = vrot.lane.b32.xlu0 %v7057_v4, %s12835_s8  ;;  %s12821_s13 = smov 97  }
 0x713   :  { %7143 = vrot.lane.b32.xlu1 %v7057_v4, %s12811_s22  ;;  %7118 = vrot.lane.b32.xlu0 %v7057_v4, %s13257_s24  ;;  %s12823_s22 = smov 88  }
 0x717   :  { %7153 = vrot.lane.b32.xlu1 %v7057_v4, %s12813_s23  ;;  %7128 = vrot.lane.b32.xlu0 %v7057_v4, %s12817_s4  ;;  %s12833_s23 = smov 95   ;;  %s13259_s4 = smov 78  }
 0x71b   :  { %7163 = vrot.lane.b32.xlu1 %v7057_v4, %s12815_s12  ;;  %7138 = vrot.lane.b32.xlu0 %v7057_v4, %s12819_s14  ;;  %s13258_s12 = smov 92   ;;  %s12827_s14 = smov 76  }
 0x71f   :  { %7173 = vrot.lane.b32.xlu1 %v10996_v26, %s12953_s29  ;;  %7148 = vrot.lane.b32.xlu0 %v7057_v4, %s12821_s13  ;;  %s12825_s13 = smov 87  }
 0x723   :  { %7183 = vrot.lane.b32.xlu1 %v10996_v26, %s12823_s22  ;;  %7158 = vrot.lane.b32.xlu0 %v7057_v4, %s12833_s23  ;;  %s12831_s22 = smov 75   ;;  %s13263_s23 = smov 100  }
 0x727   :  { %7193 = vrot.lane.b32.xlu1 %v10996_v26, %s12956_s16  ;;  %7168 = vrot.lane.b32.xlu0 %v7057_v4, %s13258_s12 }
 0x72b   :  { %7203 = vrot.lane.b32.xlu1 %v10996_v26, %s13259_s4  ;;  %7178 = vrot.lane.b32.xlu0 %v10996_v26, %s12952_s26 }
 0x72f   :  { %7213 = vrot.lane.b32.xlu1 %v10996_v26, %s12827_s14  ;;  %7188 = vrot.lane.b32.xlu0 %v10996_v26, %s12825_s13  ;;  %s12829_s13 = smov 70   ;;  %s13260_s14 = smov 117  }
 0x733   :  { %7223 = vrot.lane.b32.xlu1 %v10996_v26, %s12976_s20  ;;  %7198 = vrot.lane.b32.xlu0 %v10996_v26, %s12961_s1 }
 0x737   :  { %7233 = vrot.lane.b32.xlu1 %v10996_v26, %s12980_s17  ;;  %7208 = vrot.lane.b32.xlu0 %v10996_v26, %s12972_s18 }
 0x73b   :  { %7218 = vrot.lane.b32.xlu0 %v10996_v26, %s12831_s22  ;;  %7263 = vrot.lane.b32.xlu1 %v11002_v58, %s13253_s30  ;;  %s13262_s22 = smov 123  }
 0x73f   :  { %7228 = vrot.lane.b32.xlu0 %v10996_v26, %s12975_s2  ;;  %7273 = vrot.lane.b32.xlu1 %v11002_v58, %s13255_s7 }
 0x743   :  { %7238 = vrot.lane.b32.xlu0 %v10996_v26, %s12829_s13  ;;  %7283 = vrot.lane.b32.xlu1 %v11002_v58, %s13260_s14  ;;  %s13261_s13 = smov 102  }
 0x747   :  { %7293 = vrot.lane.b32.xlu1 %v11002_v58, %s13256_s5  ;;  %7243 = vrot.lane.b32.xlu0 %v11002_v58, %s13036_s3 }
 0x74b   :  { %7303 = vrot.lane.b32.xlu1 %v11002_v58, %s12835_s8  ;;  %7248 = vrot.lane.b32.xlu0 %v11002_v58, %s13251_s28  ;;  %s13264_s8 = smov 97  }
 0x74f   :  { %7313 = vrot.lane.b32.xlu1 %v11002_v58, %s13257_s24  ;;  %7253 = vrot.lane.b32.xlu0 %v11002_v58, %s13249_s9 }
 0x753   :  { %7323 = vrot.lane.b32.xlu1 %v11002_v58, %s13261_s13  ;;  %7258 = vrot.lane.b32.xlu0 %v11002_v58, %s13262_s22 }
 0x757   :  { %7333 = vrot.lane.b32.xlu1 %v11002_v58, %s13263_s23  ;;  %7268 = vrot.lane.b32.xlu0 %v11002_v58, %s13250_s6 }
 0x75b   :  { %7343 = vrot.lane.b32.xlu1 %v11002_v58, %s13264_s8  ;;  %7278 = vrot.lane.b32.xlu0 %v11002_v58, %s13265_s25 }
 0x75f   :  { %7353 = vrot.lane.b32.xlu1 %v11002_v58, %s13266_s21  ;;  %7288 = vrot.lane.b32.xlu0 %v11002_v58, %s13252_s27 }
 0x763   :  { %7368 = vrot.lane.b32.xlu1 %v11007_v47, %s12953_s29  ;;  %7298 = vrot.lane.b32.xlu0 %v11002_v58, %s13254_s15  ;;  %s13269_s29 = smov 103  }
 0x765   :  { %v11100_v28 = vpop.permute.xlu1 %7058  ;;  %v11102_v46 = vpop.permute.xlu0 %7048 }
 0x767   :  { %7378 = vrot.lane.b32.xlu1 %v11007_v47, %s13267_s0  ;;  %7308 = vrot.lane.b32.xlu0 %v11002_v58, %s13268_s11  ;;  %s13271_s0 = smov 101  }
 0x769   :  { %v11108_v22 = vpop.permute.xlu1 %7073  ;;  %v11110_v43 = vpop.permute.xlu0 %7053 }
 0x76b   :  { %7388 = vrot.lane.b32.xlu1 %v11007_v47, %s12956_s16  ;;  %7318 = vrot.lane.b32.xlu0 %v11002_v58, %s13269_s29  ;;  %s13274_s16 = smov 98  }
 0x76d   :  { %v11116_v21 = vpop.permute.xlu1 %7083  ;;  %v11118_v27 = vpop.permute.xlu0 %7063 }
 0x76e   :  { %13270 = vst [vmem:[#allocation9_spill] sm:$0xff] %v11116_v21 }
 0x76f   :  { %7398 = vrot.lane.b32.xlu1 %v11007_v47, %s13259_s4  ;;  %7328 = vrot.lane.b32.xlu0 %v11002_v58, %s13271_s0  ;;  %s13276_s4 = smov 96  }
 0x771   :  { %v11124_v38 = vpop.permute.xlu1 %7093  ;;  %v11126_v16 = vpop.permute.xlu0 %7068 }
 0x772   :  { %13272 = vst [vmem:[#allocation7_spill] sm:$0xff] %v11124_v38 }
 0x773   :  { %7408 = vrot.lane.b32.xlu1 %v11007_v47, %s13273_s19  ;;  %7338 = vrot.lane.b32.xlu0 %v11002_v58, %s13274_s16  ;;  %s13277_s19 = smov 93  }
 0x775   :  { %v11132_v25 = vpop.permute.xlu1 %7103  ;;  %v11134_v60 = vpop.permute.xlu0 %7078 }
 0x776   :  { %13275 = vst [vmem:[#allocation6_spill] sm:$0xff] %v11132_v25 }
 0x777   :  { %7418 = vrot.lane.b32.xlu1 %v11007_v47, %s12976_s20  ;;  %7348 = vrot.lane.b32.xlu0 %v11002_v58, %s13276_s4 }
 0x779   :  { %v11140_v18 = vpop.permute.xlu1 %7113  ;;  %v11142_v44 = vpop.permute.xlu0 %7088 }
 0x77b   :  { %7428 = vrot.lane.b32.xlu1 %v11007_v47, %s12980_s17  ;;  %7358 = vrot.lane.b32.xlu0 %v11002_v58, %s13277_s19  ;;  %s13278_s17 = smov 87   ;;  %v11315_v58 = vld [vmem:[%s12527_s10] sm:$0xff] }
 0x77c   :  { %13299 = vst [vmem:[#allocation27_spill] sm:$0xff] %v11315_v58  ;;  %v5013_v63 = vrot.slane %v11315_v58, %v2470_v36 }
 0x77d   :  { %v11148_v57 = vpop.permute.xlu1 %7123  ;;  %v11150_v32 = vpop.permute.xlu0 %7098 }
 0x77e   :  { %5110 = vmatprep.mubr.f32.mxu1 %v5013_v63  ;;  %v7126_v20 = vunpack.i.h.bf16 %v11148_v57 }
 0x77f   :  { %7363 = vrot.lane.b32.xlu0 %v7362_v33, %s13258_s12  ;;  %7448 = vrot.lane.b32.xlu1 %v11015_v48, %s13262_s22  ;;  %s13370_s22 = smov 47  }
 0x781   :  { %v11158_v59 = vpop.permute.xlu1 %7133  ;;  %v11160_v39 = vpop.permute.xlu0 %7108 }
 0x783   :  { %7373 = vrot.lane.b32.xlu0 %v11007_v47, %s12952_s26  ;;  %7458 = vrot.lane.b32.xlu1 %v11015_v48, %s13250_s6  ;;  %s8085_s6 = smov 68  }
 0x785   :  { %v11166_v42 = vpop.permute.xlu1 %7143  ;;  %v11168_v49 = vpop.permute.xlu0 %7118 }
 0x787   :  { %7383 = vrot.lane.b32.xlu0 %v11007_v47, %s13278_s17  ;;  %7468 = vrot.lane.b32.xlu1 %v11015_v48, %s13265_s25  ;;  %s13281_s25 = smov 75  }
 0x789   :  { %v11174_v24 = vpop.permute.xlu1 %7153  ;;  %v11176_v12 = vpop.permute.xlu0 %7128 }
 0x78b   :  { %7393 = vrot.lane.b32.xlu0 %v11007_v47, %s12961_s1  ;;  %7478 = vrot.lane.b32.xlu1 %v11015_v48, %s13252_s27  ;;  %s8092_s27 = smov 51  }
 0x78d   :  { %v11182_v35 = vpop.permute.xlu1 %7163  ;;  %v11184_v11 = vpop.permute.xlu0 %7138 }
 0x78e   :  { %13279 = vst [vmem:[#allocation12_spill] sm:$0xff] %v11182_v35  ;;  %v7085_v35 = vunpack.i.l.bf16 %v11116_v21 }
 0x78f   :  { %7403 = vrot.lane.b32.xlu0 %v11007_v47, %s12972_s18  ;;  %7488 = vrot.lane.b32.xlu1 %v11015_v48, %s13254_s15  ;;  %s13321_s15 = smov 86  }
 0x791   :  { %v11190_v23 = vpop.permute.xlu1 %7173  ;;  %v11192_v0 = vpop.permute.xlu0 %7148 }
 0x792   :  { %13280 = vst [vmem:[#allocation13_spill] sm:$0xff] %v11190_v23  ;;  %v7060_v23 = vunpack.i.l.bf16 %v11100_v28 }
 0x793   :  { %7413 = vrot.lane.b32.xlu0 %v11007_v47, %s13281_s25  ;;  %7498 = vrot.lane.b32.xlu1 %v11015_v48, %s13268_s11  ;;  %s8086_s11 = smov 66  }
 0x795   :  { %v11198_v15 = vpop.permute.xlu1 %7183  ;;  %v11200_v51 = vpop.permute.xlu0 %7158 }
 0x796   :  { %13282 = vst [vmem:[#allocation11_spill] sm:$0xff] %v11198_v15 }
 0x797   :  { %7423 = vrot.lane.b32.xlu0 %v11007_v47, %s12975_s2  ;;  %7508 = vrot.lane.b32.xlu1 %v11015_v48, %s13269_s29  ;;  %s13296_s29 = smov 112  }
 0x799   :  { %v11206_v53 = vpop.permute.xlu1 %7193  ;;  %v11208_v62 = vpop.permute.xlu0 %7168 }
 0x79a   :  { %13283 = vst [vmem:[#allocation10_spill] sm:$0xff] %v11206_v53  ;;  %13284 = vst [vmem:[#allocation16_spill] sm:$0xff] %v11208_v62 }
 0x79b   :  { %7523 = vrot.lane.b32.xlu1 %v10996_v26, %s8085_s6  ;;  %7433 = vrot.lane.b32.xlu0 %v11015_v48, %s13036_s3  ;;  %s8089_s3 = smov 67  }
 0x79d   :  { %v11214_v2 = vpop.permute.xlu1 %7203  ;;  %v11216_v61 = vpop.permute.xlu0 %7178 }
 0x79e   :  { %13285 = vst [vmem:[#allocation17_spill] sm:$0xff] %v11214_v2  ;;  %13286 = vst [vmem:[#allocation15_spill] sm:$0xff] %v11216_v61 }
 0x79f   :  { %7528 = vrot.lane.b32.xlu1 %v11007_v47, %s8085_s6  ;;  %7438 = vrot.lane.b32.xlu0 %v11015_v48, %s13251_s28 }
 0x7a1   :  { %v11222_v30 = vpop.permute.xlu1 %7213  ;;  %v11224_v14 = vpop.permute.xlu0 %7188 }
 0x7a2   :  { %13287 = vst [vmem:[#allocation14_spill] sm:$0xff] %v11222_v30  ;;  %13288 = vst [vmem:[#allocation20_spill] sm:$0xff] %v11224_v14 }
 0x7a3   :  { %7533 = vrot.lane.b32.xlu1 %v11015_v48, %s13271_s0  ;;  %7443 = vrot.lane.b32.xlu0 %v11015_v48, %s13249_s9  ;;  %s8087_s0 = smov 63  }
 0x7a5   :  { %v11230_v37 = vpop.permute.xlu1 %7223  ;;  %v11232_v56 = vpop.permute.xlu0 %7198 }
 0x7a6   :  { %13289 = vst [vmem:[#allocation21_spill] sm:$0xff] %v11230_v37  ;;  %13290 = vst [vmem:[#allocation19_spill] sm:$0xff] %v11232_v56 }
 0x7a7   :  { %7548 = vrot.lane.b32.xlu1 %v11015_v48, %s13274_s16  ;;  %7453 = vrot.lane.b32.xlu0 %v11015_v48, %s13253_s30  ;;  %s13297_s16 = smov 70   ;;  %s13317_s30 = smov 88  }
 0x7a9   :  { %v11238_v5 = vpop.permute.xlu1 %7233  ;;  %v11240_v13 = vpop.permute.xlu0 %7208 }
 0x7aa   :  { %13291 = vst [vmem:[#allocation18_spill] sm:$0xff] %v11238_v5  ;;  %13292 = vst [vmem:[#allocation24_spill] sm:$0xff] %v11240_v13 }
 0x7ab   :  { %7563 = vrot.lane.b32.xlu1 %v10996_v26, %s8086_s11  ;;  %7463 = vrot.lane.b32.xlu0 %v11015_v48, %s13255_s7  ;;  %s13325_s7 = smov 48  }
 0x7ad   :  { %v11246_v17 = vpop.permute.xlu0 %7218  ;;  %v11248_v9 = vpop.permute.xlu1 %7263 }
 0x7ae   :  { %13293 = vst [vmem:[#allocation25_spill] sm:$0xff] %v11246_v17 }
 0x7af   :  { %7568 = vrot.lane.b32.xlu1 %v11007_v47, %s8086_s11  ;;  %7473 = vrot.lane.b32.xlu0 %v11015_v48, %s13260_s14  ;;  %s13332_s14 = smov 76  }
 0x7b1   :  { %v11254_v31 = vpop.permute.xlu0 %7228  ;;  %v11256_v10 = vpop.permute.xlu1 %7273 }
 0x7b2   :  { %13294 = vst [vmem:[#allocation23_spill] sm:$0xff] %v11254_v31 }
 0x7b3   :  { %7573 = vrot.lane.b32.xlu1 %v11015_v48, %s13276_s4  ;;  %7483 = vrot.lane.b32.xlu0 %v11015_v48, %s13256_s5  ;;  %s8094_s4 = smov 52   ;;  %s8095_s5 = smov 46  }
 0x7b5   :  { %v11262_v34 = vpop.permute.xlu0 %7238  ;;  %v11264_v45 = vpop.permute.xlu1 %7283 }
 0x7b6   :  { %13295 = vst [vmem:[#allocation22_spill] sm:$0xff] %v11262_v34 }
 0x7b7   :  { %7593 = vrot.lane.b32.xlu1 %v10996_v26, %s8087_s0  ;;  %7493 = vrot.lane.b32.xlu0 %v11015_v48, %s13296_s29  ;;  %s8097_s29 = smov 40  }
 0x7b9   :  { %v11270_v54 = vpop.permute.xlu1 %7293  ;;  %v11272_v52 = vpop.permute.xlu0 %7243 }
 0x7bb   :  { %7598 = vrot.lane.b32.xlu1 %v11015_v48, %s13277_s19  ;;  %7503 = vrot.lane.b32.xlu0 %v11015_v48, %s13257_s24  ;;  %s8088_s19 = smov 61   ;;  %s13326_s24 = smov 78  }
 0x7bd   :  { %v11278_v4 = vpop.permute.xlu1 %7303  ;;  %v11280_v40 = vpop.permute.xlu0 %7248 }
 0x7bf   :  { %7603 = vrot.lane.b32.xlu1 %v7602_v1, %s13258_s12  ;;  %7513 = vrot.lane.b32.xlu0 %v11015_v48, %s13261_s13  ;;  %s13312_s12 = smov 91   ;;  %s13361_s13 = smov 50  }
 0x7c1   :  { %v11288_v6 = vpop.permute.xlu1 %7313  ;;  %v11290_v55 = vpop.permute.xlu0 %7253 }
 0x7c3   :  { %7608 = vrot.lane.b32.xlu1 %v11007_v47, %s8087_s0  ;;  %7518 = vrot.lane.b32.xlu0 %v11007_v47, %s13297_s16 }
 0x7c5   :  { %v11296_v19 = vpop.permute.xlu1 %7323  ;;  %v11298_v29 = vpop.permute.xlu0 %7258 }
 0x7c7   :  { %7623 = vrot.lane.b32.xlu1 %v11015_v48, %s12952_s26  ;;  %7538 = vrot.lane.b32.xlu0 %v11015_v48, %s13263_s23  ;;  %s13307_s26 = smov 53   ;;  %s13309_s23 = sld [smem:[#allocation81_spill]] }
 0x7c9   :  { %v11304_v7 = vpop.permute.xlu1 %7333  ;;  %v11306_v41 = vpop.permute.xlu0 %7268 }
 0x7ca   :  { %13298 = vst [vmem:[#allocation28_spill] sm:$0xff] %v11304_v7 }
 0x7cb   :  { %7638 = vrot.lane.b32.xlu1 %v10996_v26, %s8088_s19  ;;  %7543 = vrot.lane.b32.xlu0 %v10996_v26, %s8089_s3 }
 0x7cd   :  { %v11317_v33 = vpop.permute.xlu1 %7343  ;;  %v11319_v1 = vpop.permute.xlu0 %7278  ;;  %v20_v17 = vstv %s13309_s23 }
 0x7ce   :  { %13300 = vst [vmem:[#allocation26_spill] sm:$0xff] %v11317_v33  ;;  %21 = vst [vmem:[#allocation4] sm:$0x1] %v20_v17 }
 0x7cf   :  { %7643 = vrot.lane.b32.xlu1 %v11015_v48, %s13278_s17  ;;  %7553 = vrot.lane.b32.xlu0 %v11015_v48, %s13264_s8  ;;  %s8090_s17 = smov 65   ;;  %s13363_s8 = smov 43  }
 0x7d1   :  { %v11328_v3 = vpop.permute.xlu1 %7353  ;;  %v11330_v50 = vpop.permute.xlu0 %7288 }
 0x7d2   :  { %13301 = vst [vmem:[#allocation30_spill] sm:$0xff] %v11328_v3  ;;  %13302 = vst [vmem:[#allocation29_spill] sm:$0xff] %v11330_v50  ;;  %v7095_v3 = vunpack.i.l.bf16 %v11124_v38 }
 0x7d3   :  { %7648 = vrot.lane.b32.xlu1 %v11007_v47, %s8088_s19  ;;  %7558 = vrot.lane.b32.xlu0 %v11007_v47, %s8089_s3 }
 0x7d5   :  { %v11336_v34 = vpop.permute.xlu1 %7368  ;;  %v11338_v5 = vpop.permute.xlu0 %7298 }
 0x7d6   :  { %13303 = vst [vmem:[#allocation33_spill] sm:$0xff] %v11336_v34  ;;  %13304 = vst [vmem:[#allocation34_spill] sm:$0xff] %v11338_v5  ;;  %v7125_v5 = vunpack.i.l.bf16 %v11148_v57 }
 0x7d7   :  { %7663 = vrot.lane.b32.xlu1 %v11015_v48, %s12961_s1  ;;  %7578 = vrot.lane.b32.xlu0 %v11015_v48, %s13266_s21 }
 0x7d9   :  { %v11344_v36 = vpop.permute.xlu1 %7378  ;;  %v11346_v31 = vpop.permute.xlu0 %7308 }
 0x7da   :  { %13305 = vst [vmem:[#allocation32_spill] sm:$0xff] %v11344_v36  ;;  %13306 = vst [vmem:[#allocation31_spill] sm:$0xff] %v11346_v31  ;;  %v13323_v36 = vsub.s32 3, %v10011_v8 }
 0x7db   :  { %7678 = vrot.lane.b32.xlu1 %v10996_v26, %s13307_s26  ;;  %7583 = vrot.lane.b32.xlu0 %v10996_v26, %s8090_s17 }
 0x7dc   :  { %v5021_v15 = vrot.slane %v11315_v58, %v13323_v36 }
 0x7dd   :  { %v11352_v63 = vpop.permute.xlu1 %7388  ;;  %v11354_v37 = vpop.permute.xlu0 %7318 }
 0x7de   :  { %13308 = vst [vmem:[#allocation37_spill] sm:$0xff] %v11352_v63  ;;  %5181 = vmatprep.mubr.f32.mxu0 %v5021_v15  ;;  %v7320_v33 = vunpack.i.l.bf16 %v11354_v37 }
 0x7df   :  { %7683 = vrot.lane.b32.xlu1 %v11015_v48, %s12972_s18  ;;  %7588 = vrot.lane.b32.xlu0 %v11007_v47, %s8090_s17  ;;  %s8091_s18 = smov 62  }
 0x7e1   :  { %v11363_v30 = vpop.permute.xlu1 %7398  ;;  %v11365_v13 = vpop.permute.xlu0 %7328 }
 0x7e2   :  { %13310 = vst [vmem:[#allocation38_spill] sm:$0xff] %v11363_v30  ;;  %13311 = vst [vmem:[#allocation36_spill] sm:$0xff] %v11365_v13  ;;  %v7080_v13 = vunpack.i.l.bf16 %v11134_v60 }
 0x7e3   :  { %7688 = vrot.lane.b32.xlu1 %v11007_v47, %s13307_s26  ;;  %7613 = vrot.lane.b32.xlu0 %v11015_v48, %s13312_s12 }
 0x7e5   :  { %v11371_v2 = vpop.permute.xlu1 %7408  ;;  %v11373_v56 = vpop.permute.xlu0 %7338 }
 0x7e6   :  { %13313 = vst [vmem:[#allocation35_spill] sm:$0xff] %v11371_v2  ;;  %13314 = vst [vmem:[#allocation41_spill] sm:$0xff] %v11373_v56  ;;  %v7070_v56 = vunpack.i.l.bf16 %v11126_v16 }
 0x7e7   :  { %7703 = vrot.lane.b32.xlu1 %v11015_v48, %s13281_s25  ;;  %7618 = vrot.lane.b32.xlu0 %v10996_v26, %s8091_s18  ;;  %s13378_s25 = smov 41  }
 0x7e9   :  { %v11379_v17 = vpop.permute.xlu1 %7418  ;;  %v11381_v30 = vpop.permute.xlu0 %7348 }
 0x7ea   :  { %13315 = vst [vmem:[#allocation42_spill] sm:$0xff] %v11379_v17  ;;  %13316 = vst [vmem:[#allocation40_spill] sm:$0xff] %v11381_v30 }
 0x7eb   :  { %7718 = vrot.lane.b32.xlu1 %v10996_v26, %s8092_s27  ;;  %7628 = vrot.lane.b32.xlu0 %v11015_v48, %s13317_s30 }
 0x7ed   :  { %v11387_v2 = vpop.permute.xlu1 %7428  ;;  %v11389_v63 = vpop.permute.xlu0 %7358 }
 0x7ee   :  { %13318 = vst [vmem:[#allocation39_spill] sm:$0xff] %v11387_v2  ;;  %13319 = vst [vmem:[#allocation45_spill] sm:$0xff] %v11389_v63  ;;  %v13335_v63 = vunpack.i.h.bf16 %v11108_v22 }
 0x7ef   :  { %7723 = vrot.lane.b32.xlu1 %v11015_v48, %s12975_s2  ;;  %7633 = vrot.lane.b32.xlu0 %v11007_v47, %s8091_s18  ;;  %s8093_s2 = smov 60  }
 0x7f1   :  { %v11395_v17 = vpop.permute.xlu0 %7363  ;;  %v11397_v53 = vpop.permute.xlu1 %7448 }
 0x7f2   :  { %13320 = vst [vmem:[#allocation46_spill] sm:$0xff] %v11395_v17 }
 0x7f3   :  { %7728 = vrot.lane.b32.xlu1 %v11007_v47, %s8092_s27  ;;  %7653 = vrot.lane.b32.xlu0 %v11015_v48, %s13321_s15 }
 0x7f5   :  { %v11403_v14 = vpop.permute.xlu0 %7373  ;;  %v11405_v2 = vpop.permute.xlu1 %7458 }
 0x7f6   :  { %13322 = vst [vmem:[#allocation44_spill] sm:$0xff] %v11403_v14  ;;  %v12876_v14 = vunpack.i.h.bf16 %v11100_v28 }
 0x7f7   :  { %7743 = vrot.lane.b32.xlu1 %v11015_v48, %s13297_s16  ;;  %7658 = vrot.lane.b32.xlu0 %v10996_v26, %s8093_s2  ;;  %s13431_s16 = smov 36  }
 0x7f8   :  { %v11441_v15 = vsel %vm517_vm4, %v7060_v23, %v12876_v14  ;;  %v7055_v23 = vunpack.i.l.bf16 %v11110_v43 }
 0x7f9   :  { %v11414_v61 = vpop.permute.xlu0 %7383  ;;  %v11416_v34 = vpop.permute.xlu1 %7468 }
 0x7fa   :  { %13324 = vst [vmem:[#allocation43_spill] sm:$0xff] %v11414_v61  ;;  %v7050_v61 = vunpack.i.l.bf16 %v11102_v46 }
 0x7fb   :  { %7758 = vrot.lane.b32.xlu1 %v10996_v26, %s13325_s7  ;;  %7668 = vrot.lane.b32.xlu0 %v11015_v48, %s13326_s24 }
 0x7fd   :  { %v11422_v8 = vpop.permute.xlu0 %7393  ;;  %v11424_v36 = vpop.permute.xlu1 %7478 }
 0x7fe   :  { %13327 = vst [vmem:[#allocation49_spill] sm:$0xff] %v11422_v8  ;;  %13328 = vst [vmem:[#allocation50_spill] sm:$0xff] %v11424_v36  ;;  %v13331_v8 = vunpack.i.h.bf16 %v11102_v46  ;;  %v13339_v36 = vunpack.i.h.bf16 %v11118_v27 }
 0x7ff   :  { %7763 = vrot.lane.b32.xlu1 %v11015_v48, %s8089_s3  ;;  %7673 = vrot.lane.b32.xlu0 %v11007_v47, %s8093_s2  ;;  %s13445_s3 = smov 35  }
 0x800   :  { %v11446_v58 = vsel %vm471_vm2, %v7050_v61, %v13331_v8  ;;  %v7065_v61 = vunpack.i.l.bf16 %v11118_v27  ;;  %v13336_v8 = vunpack.i.h.bf16 %v11110_v43 }
 0x801   :  { %v11434_v17 = vpop.permute.xlu0 %7403  ;;  %v11436_v62 = vpop.permute.xlu1 %7488 }
 0x802   :  { %13329 = vst [vmem:[#allocation48_spill] sm:$0xff] %v11434_v17  ;;  %13330 = vst [vmem:[#allocation47_spill] sm:$0xff] %v11436_v62  ;;  %v7075_v17 = vunpack.i.l.bf16 %v11108_v22  ;;  %v7105_v62 = vunpack.i.l.bf16 %v11132_v25  ;;  %v11497_v50 = vsel %vm3278_vm13, %v7065_v61, %v13339_v36  ;;  %v7321_v36 = vunpack.i.h.bf16 %v11354_v37 }
 0x803   :  { %7768 = vrot.lane.b32.xlu1 %v11007_v47, %s13325_s7  ;;  %7693 = vrot.lane.b32.xlu0 %v11015_v48, %s13332_s14 }
 0x804   :  { %v11481_v14 = vsel %vm563_vm6, %v7075_v17, %v13335_v63  ;;  %v13340_v63 = vunpack.i.h.bf16 %v11124_v38 }
 0x805   :  { %v11462_v30 = vpop.permute.xlu0 %7413  ;;  %v11464_v31 = vpop.permute.xlu1 %7498 }
 0x806   :  { %13333 = vst [vmem:[#allocation53_spill] sm:$0xff] %v11462_v30  ;;  %13334 = vst [vmem:[#allocation54_spill] sm:$0xff] %v11464_v31  ;;  %v11486_v30 = vsel %vm494_vm3, %v7055_v23, %v13336_v8  ;;  %v13337_v31 = vunpack.i.h.bf16 %v11116_v21  ;;  %v11502_v17 = vsel %vm632_vm9, %v7095_v3, %v13340_v63  ;;  %v7115_v8 = vunpack.i.l.bf16 %v11140_v18 }
 0x807   :  { %7783 = vrot.lane.b32.xlu1 %v11015_v48, %s8090_s17  ;;  %7698 = vrot.lane.b32.xlu0 %v10996_v26, %s8094_s4  ;;  %13341 = vst [vmem:[#allocation51_spill] sm:$0xff] %v11502_v17  ;;  %v13344_v3 = vunpack.i.h.bf16 %v11132_v25  ;;  %v13346_v23 = vunpack.i.h.bf16 %v11134_v60  ;;  %s13568_s17 = sld [smem:[#allocation82_spill]] }
 0x808   :  { %v11491_v57 = vsel %vm3375_vm11, %v7085_v35, %v13337_v31  ;;  %v13343_v31 = vunpack.i.h.bf16 %v11126_v16 }
 0x809   :  { %13338 = vst [vmem:[#allocation52_spill] sm:$0xff] %v11491_v57  ;;  %v11506_v21 = vpop.permute.xlu0 %7423  ;;  %v7509_v35 = vpop.permute.xlu1 %7508  ;;  %v11517_v63 = vsel %vm701_vm12, %v7105_v62, %v13344_v3  ;;  %v7245_v62 = vunpack.i.l.bf16 %v11272_v52 }
 0x80a   :  { %13342 = vst [vmem:[#allocation57_spill] sm:$0xff] %v11506_v21  ;;  %v11511_v57 = vsel %vm540_vm5, %v7070_v56, %v13343_v31  ;;  %v7511_v61 = vunpack.i.h.bf16 %v7509_v35  ;;  %v7510_v38 = vunpack.i.l.bf16 %v7509_v35  ;;  %13345 = vst [vmem:[#allocation58_spill] sm:$0xff] %v11517_v63  ;;  %v11522_v21 = vsel %vm586_vm7, %v7080_v13, %v13346_v23 }
 0x80b   :  { %13347 = vst [vmem:[#allocation56_spill] sm:$0xff] %v11522_v21  ;;  %v3572_v56 = vsel %vm3571_vm14, %v7125_v5, %v7126_v20  ;;  %7798 = vrot.lane.b32.xlu1 %v10996_v26, %s8095_s5  ;;  %7708 = vrot.lane.b32.xlu0 %v11015_v48, %s12976_s20  ;;  %v3573_v13 = vsel %vm3571_vm14, %v7126_v20, %v7320_v33  ;;  %v13348_v35 = vunpack.i.h.bf16 %v11140_v18  ;;  %v7090_v31 = vunpack.i.l.bf16 %v11142_v44  ;;  %s13354_s20 = smov 71  }
 0x80c   :  { %v3574_v37 = vsel %vm3571_vm14, %v7321_v36, %v7510_v38  ;;  %v3575_v23 = vsel %vm3571_vm14, %v7510_v38, %v7511_v61  ;;  %v7246_v36 = vunpack.i.h.bf16 %v11272_v52  ;;  %v7100_v38 = vunpack.i.l.bf16 %v11150_v32 }
 0x80d   :  { %v11537_v5 = vsel %vm12895_vm8, %v7115_v8, %v13348_v35  ;;  %v11540_v3 = vpop.permute.xlu1 %7523  ;;  %v7434_v17 = vpop.permute.xlu0 %7433  ;;  %v6113_v63 = vpack.c.bf16 %v3575_v23, %v3573_v13  ;;  %v6115_v25 = vpack.c.bf16 %v3574_v37, %v3572_v56  ;;  %v7135_v8 = vunpack.i.l.bf16 %v11158_v59 }
 0x80e   :  { %13349 = vst [vmem:[#allocation55_spill] sm:$0xff] %v11537_v5  ;;  %v7436_v7 = vunpack.i.h.bf16 %v7434_v17  ;;  %v7435_v20 = vunpack.i.l.bf16 %v7434_v17  ;;  %v7250_v61 = vunpack.i.l.bf16 %v11280_v40  ;;  %v13350_v52 = vunpack.i.h.bf16 %v11102_v46 }
 0x80f   :  { %7803 = vrot.lane.b32.xlu1 %v11015_v48, %s8091_s18  ;;  %6114 = vmatprep.subr.bf16.mxu0 %v6113_v63  ;;  %v7110_v23 = vunpack.i.l.bf16 %v11160_v39  ;;  %v7251_v35 = vunpack.i.h.bf16 %v11280_v40  ;;  %v12897_v21 = vunpack.i.l.bf16 %v11540_v3  ;;  %v13352_v40 = vunpack.i.h.bf16 %v11110_v43 }
 0x810   :  { %v3208_v37 = vsel %vm471_vm2, %v7246_v36, %v7435_v20  ;;  %7713 = vrot.lane.b32.xlu0 %v11007_v47, %s8094_s4  ;;  %6116 = vmatpush1.bf16.msra.mxu0 %v6115_v25  ;;  %v3207_v17 = vsel %vm471_vm2, %v13350_v52, %v7245_v62  ;;  %v3209_v13 = vsel %vm471_vm2, %v7435_v20, %v7436_v7  ;;  %v7255_v62 = vunpack.i.l.bf16 %v11290_v55 }
 0x811   :  { %v11560_v33 = vpop.permute.xlu1 %7528  ;;  %v7439_v63 = vpop.permute.xlu0 %7438  ;;  %v6053_v56 = vpack.c.bf16 %v3209_v13, %v3207_v17  ;;  %v6055_v36 = vpack.c.bf16 %v3208_v37, %v11446_v58  ;;  %v7451_v7 = vunpack.i.h.bf16 %v11397_v53  ;;  %vm12896_vm2 = vcmask 556032  }
 0x812   :  { %13351 = vst [vmem:[#allocation61_spill] sm:$0xff] %v11560_v33  ;;  %v7530_v25 = vunpack.i.l.bf16 %v11560_v33  ;;  %v7441_v46 = vunpack.i.h.bf16 %v7439_v63  ;;  %v7440_v5 = vunpack.i.l.bf16 %v7439_v63  ;;  %v3231_v58 = vsel %vm494_vm3, %v13352_v40, %v7250_v61 }
 0x813   :  { %7808 = vrot.lane.b32.xlu1 %v11007_v47, %s8095_s5  ;;  %6054 = vmatprep.subr.bf16.mxu1 %v6053_v56  ;;  %vm3596_vm14 = vcmask 834560   ;;  %v7450_v20 = vunpack.i.l.bf16 %v11397_v53  ;;  %v13355_v43 = vunpack.i.h.bf16 %v11142_v44  ;;  %v13356_v53 = vunpack.i.h.bf16 %v11150_v32 }
 0x814   :  { %v11576_v37 = vsel %vm12896_vm2, %v7530_v25, %v12897_v21  ;;  %v3232_v52 = vsel %vm494_vm3, %v7251_v35, %v7440_v5  ;;  %7733 = vrot.lane.b32.xlu0 %v11015_v48, %s13354_s20  ;;  %6056 = vmatpush1.bf16.msra.mxu1 %v6055_v36  ;;  %v3233_v56 = vsel %vm494_vm3, %v7440_v5, %v7441_v46  ;;  %vm13357_vm8 = vcmask 941056  }
 0x815   :  { %13353 = vst [vmem:[#allocation62_spill] sm:$0xff] %v11576_v37  ;;  %v11585_v61 = vsel %vm3400_vm15, %v7090_v31, %v13355_v43  ;;  %v11590_v17 = vsel %vm13357_vm8, %v7100_v38, %v13356_v53  ;;  %vm3646_vm2 = vcmask 818176   ;;  %v11592_v13 = vpop.permute.xlu1 %7533  ;;  %v7444_v35 = vpop.permute.xlu0 %7443  ;;  %v6057_v63 = vpack.c.bf16 %v3233_v56, %v3231_v58  ;;  %v13393_v37 = vld [vmem:[#allocation6_spill] sm:$0xff] }
 0x816   :  { %v6059_v25 = vpack.c.bf16 %v3232_v52, %v11486_v30  ;;  %v7256_v36 = vunpack.i.h.bf16 %v11290_v55  ;;  %v7260_v5 = vunpack.i.l.bf16 %v11298_v29  ;;  %v7446_v46 = vunpack.i.h.bf16 %v7444_v35 }
 0x817   :  { %v7445_v40 = vunpack.i.l.bf16 %v7444_v35  ;;  %v13358_v31 = vunpack.i.h.bf16 %v11158_v59  ;;  %v13359_v38 = vunpack.i.h.bf16 %v11160_v39  ;;  %v12898_v58 = vunpack.i.h.bf16 %v11166_v42  ;;  %7823 = vrot.lane.b32.xlu1 %v11015_v48, %s8093_s2  ;;  %6058 = vmatprep.subr.bf16.mxu1 %v6057_v63 }
 0x818   :  { %v13360_v30 = vunpack.i.h.bf16 %v11100_v28  ;;  %v7145_v52 = vunpack.i.l.bf16 %v11166_v42  ;;  %7738 = vrot.lane.b32.xlu0 %v10996_v26, %s13361_s13  ;;  %6060 = vmatpush1.bf16.msra.mxu1 %v6059_v25  ;;  %v3282_v56 = vsel %vm3278_vm13, %v7450_v20, %v7451_v7  ;;  %v12902_v35 = vunpack.i.h.bf16 %v11176_v12 }
 0x819   :  { %v11600_v43 = vsel %vm3621_vm0, %v7135_v8, %v13358_v31  ;;  %v11605_v53 = vsel %vm3497_vm1, %v7110_v23, %v13359_v38  ;;  %v3256_v8 = vsel %vm517_vm4, %v7256_v36, %v7445_v40  ;;  %v3257_v23 = vsel %vm517_vm4, %v7445_v40, %v7446_v46  ;;  %v11621_v31 = vpop.permute.xlu1 %7548  ;;  %v7454_v28 = vpop.permute.xlu0 %7453 }
 0x81a   :  { %v3255_v55 = vsel %vm517_vm4, %v13360_v30, %v7255_v62  ;;  %v7261_v63 = vunpack.i.h.bf16 %v11298_v29  ;;  %v6063_v38 = vpack.c.bf16 %v3256_v8, %v11441_v15  ;;  %vm3696_vm3 = vcmask 793600  }
 0x81b   :  { %v6061_v62 = vpack.c.bf16 %v3257_v23, %v3255_v55  ;;  %v7265_v36 = vunpack.i.l.bf16 %v11248_v9  ;;  %v7456_v30 = vunpack.i.h.bf16 %v7454_v28  ;;  %v7455_v21 = vunpack.i.l.bf16 %v7454_v28  ;;  %7838 = vrot.lane.b32.xlu1 %v10996_v26, %s13363_s8 }
 0x81c   :  { %v13362_v25 = vunpack.i.h.bf16 %v11118_v27  ;;  %v7130_v7 = vunpack.i.l.bf16 %v11176_v12  ;;  %v12899_v40 = vunpack.i.h.bf16 %v11184_v11  ;;  %v3281_v29 = vsel %vm3278_vm13, %v7261_v63, %v7450_v20  ;;  %7748 = vrot.lane.b32.xlu0 %v11015_v48, %s8085_s6  ;;  %s8096_s6 = smov 45  }
 0x81d   :  { %6062 = vmatprep.subr.bf16.mxu1 %v6061_v62  ;;  %v7140_v55 = vunpack.i.l.bf16 %v11184_v11  ;;  %v7461_v8 = vunpack.i.h.bf16 %v11405_v2  ;;  %v7460_v23 = vunpack.i.l.bf16 %v11405_v2  ;;  %v3306_v27 = vsel %vm540_vm5, %v7455_v21, %v7456_v30  ;;  %v11647_v28 = vpop.permute.xlu1 %7563  ;;  %v7464_v2 = vpop.permute.xlu0 %7463 }
 0x81e   :  { %v3280_v46 = vsel %vm3278_vm13, %v13362_v25, %v7260_v5  ;;  %6064 = vmatpush1.bf16.msra.mxu1 %v6063_v38  ;;  %v11642_v20 = vsel %vm3671_vm10, %v7145_v52, %v12898_v58  ;;  %v7266_v63 = vunpack.i.h.bf16 %v11248_v9  ;;  %13364 = vst [vmem:[#allocation60_spill] sm:$0xff] %v11647_v28  ;;  %v7270_v38 = vunpack.i.l.bf16 %v11306_v41 }
 0x81f   :  { %v6065_v15 = vpack.c.bf16 %v3282_v56, %v3280_v46  ;;  %v6067_v30 = vpack.c.bf16 %v3281_v29, %v11497_v50  ;;  %v13365_v25 = vunpack.i.h.bf16 %v11126_v16  ;;  %v11659_v9 = vsel %vm3596_vm14, %v7130_v7, %v12902_v35  ;;  %7843 = vrot.lane.b32.xlu1 %v11015_v48, %s8094_s4 }
 0x820   :  { %v3305_v56 = vsel %vm540_vm5, %v7266_v63, %v7455_v21  ;;  %v11667_v50 = vsel %vm3646_vm2, %v7140_v55, %v12899_v40  ;;  %v7466_v16 = vunpack.i.h.bf16 %v7464_v2  ;;  %7753 = vrot.lane.b32.xlu0 %v11007_v47, %s13361_s13  ;;  %v3330_v7 = vsel %vm563_vm6, %v7460_v23, %v7461_v8 }
 0x821   :  { %6066 = vmatprep.subr.bf16.mxu1 %v6065_v15  ;;  %v3304_v52 = vsel %vm540_vm5, %v13365_v25, %v7265_v36  ;;  %v7465_v36 = vunpack.i.l.bf16 %v7464_v2  ;;  %v12901_v29 = vunpack.i.h.bf16 %v11192_v0  ;;  %v7150_v21 = vunpack.i.l.bf16 %v11192_v0  ;;  %v11676_v25 = vpop.permute.xlu1 %7568  ;;  %v11678_v55 = vpop.permute.xlu0 %7473  ;;  %vm13377_vm5 = vmmov %vm13357_vm8 }
 0x822   :  { %v6069_v15 = vpack.c.bf16 %v3306_v27, %v3304_v52  ;;  %6068 = vmatpush1.bf16.msra.mxu1 %v6067_v30  ;;  %v7275_v63 = vunpack.i.l.bf16 %v11256_v10  ;;  %v7271_v27 = vunpack.i.h.bf16 %v11306_v41  ;;  %13366 = vst [vmem:[#allocation59_spill] sm:$0xff] %v11676_v25  ;;  %v12900_v2 = vunpack.i.l.bf16 %v11647_v28 }
 0x823   :  { %v7570_v52 = vunpack.i.l.bf16 %v11676_v25  ;;  %v6071_v30 = vpack.c.bf16 %v3305_v56, %v11511_v57  ;;  %v13367_v8 = vunpack.i.h.bf16 %v11108_v22  ;;  %v7285_v62 = vunpack.i.l.bf16 %v11264_v45  ;;  %7848 = vrot.lane.b32.xlu1 %v11007_v47, %s13363_s8 }
 0x824   :  { %6070 = vmatprep.subr.bf16.mxu1 %v6069_v15  ;;  %v3329_v58 = vsel %vm563_vm6, %v7271_v27, %v7460_v23  ;;  %vm4211_vm4 = vcmask 539648   ;;  %v7471_v15 = vunpack.i.h.bf16 %v11416_v34  ;;  %v7470_v40 = vunpack.i.l.bf16 %v11416_v34  ;;  %7773 = vrot.lane.b32.xlu0 %v11015_v48, %s8086_s11  ;;  %s13403_s11 = smov 38  }
 0x825   :  { %v3328_v46 = vsel %vm563_vm6, %v13367_v8, %v7270_v38  ;;  %v11695_v57 = vsel %vm4211_vm4, %v7570_v52, %v12900_v2  ;;  %v3354_v22 = vsel %vm586_vm7, %v7465_v36, %v7466_v16  ;;  %v11703_v23 = vsel %vm3696_vm3, %v7150_v21, %v12901_v29 }
 0x826   :  { %v6073_v41 = vpack.c.bf16 %v3330_v7, %v3328_v46  ;;  %13368 = vst [vmem:[#allocation65_spill] sm:$0xff] %v11695_v57  ;;  %6072 = vmatpush1.bf16.msra.mxu1 %v6071_v30  ;;  %v7276_v38 = vunpack.i.h.bf16 %v11256_v10  ;;  %v11708_v46 = vpop.permute.xlu1 %7573  ;;  %v11710_v7 = vpop.permute.xlu0 %7483  ;;  %v7295_v27 = vunpack.i.l.bf16 %v11270_v54  ;;  %v7280_v16 = vunpack.i.l.bf16 %v11319_v1 }
 0x827   :  { %v6075_v52 = vpack.c.bf16 %v3329_v58, %v11481_v14  ;;  %v13369_v21 = vunpack.i.h.bf16 %v11134_v60  ;;  %v7286_v8 = vunpack.i.h.bf16 %v11264_v45  ;;  %v7305_v2 = vunpack.i.l.bf16 %v11278_v4  ;;  %7863 = vrot.lane.b32.xlu1 %v11015_v48, %s13361_s13 }
 0x828   :  { %6074 = vmatprep.subr.bf16.mxu1 %v6073_v41  ;;  %v3353_v10 = vsel %vm586_vm7, %v7276_v38, %v7465_v36  ;;  %v7476_v34 = vunpack.i.h.bf16 %v11678_v55  ;;  %v7475_v56 = vunpack.i.l.bf16 %v11678_v55  ;;  %7778 = vrot.lane.b32.xlu0 %v10996_v26, %s13370_s22  ;;  %v3379_v60 = vsel %vm3375_vm11, %v7470_v40, %v7471_v15  ;;  %v13373_v15 = vld [vmem:[#allocation56_spill] sm:$0xff] }
 0x829   :  { %v3352_v30 = vsel %vm586_vm7, %v13369_v21, %v7275_v63  ;;  %v13371_v14 = vunpack.i.h.bf16 %v11142_v44  ;;  %v7315_v36 = vunpack.i.l.bf16 %v11288_v6  ;;  %v7325_v63 = vunpack.i.l.bf16 %v11296_v19  ;;  %v13374_v44 = vld [vmem:[#allocation9_spill] sm:$0xff] }
 0x82a   :  { %v6077_v41 = vpack.c.bf16 %v3354_v22, %v3352_v30  ;;  %6076 = vmatpush1.bf16.msra.mxu1 %v6075_v52  ;;  %v7281_v22 = vunpack.i.h.bf16 %v11319_v1  ;;  %v11735_v38 = vpop.permute.xlu1 %7593  ;;  %v11737_v55 = vpop.permute.xlu0 %7493  ;;  %v13372_v52 = vld [vmem:[#allocation28_spill] sm:$0xff]  ;;  %v6079_v30 = vpack.c.bf16 %v3353_v10, %v13373_v15  ;;  %v13375_v29 = vunpack.i.h.bf16 %v13374_v44  ;;  %v13380_v15 = vld [vmem:[#allocation29_spill] sm:$0xff] }
 0x82b   :  { %v3402_v45 = vsel %vm3400_vm15, %v13371_v14, %v7285_v62  ;;  %v7335_v21 = vunpack.i.l.bf16 %v13372_v52  ;;  %v13376_v14 = vunpack.i.h.bf16 %v11150_v32  ;;  %7878 = vrot.lane.b32.xlu1 %v10996_v26, %s13378_s25  ;;  %v13379_v35 = vunpack.i.h.bf16 %v11160_v39 }
 0x82c   :  { %6078 = vmatprep.subr.bf16.mxu1 %v6077_v41  ;;  %v3377_v62 = vsel %vm3375_vm11, %v13375_v29, %v7280_v16  ;;  %v3378_v5 = vsel %vm3375_vm11, %v7281_v22, %v7470_v40  ;;  %v7290_v29 = vunpack.i.l.bf16 %v13380_v15  ;;  %v13381_v16 = vld [vmem:[#allocation50_spill] sm:$0xff]  ;;  %7788 = vrot.lane.b32.xlu0 %v11015_v48, %s8087_s0  ;;  %v3404_v40 = vsel %vm3400_vm15, %v7475_v56, %v7476_v34  ;;  %v13386_v22 = vld [vmem:[#allocation52_spill] sm:$0xff]  ;;  %vm13395_vm11 = vmmov %vm13377_vm5  ;;  %s13411_s0 = smov 42  }
 0x82d   :  { %v11747_v58 = vsel %vm13377_vm5, %v13376_v14, %v7295_v27  ;;  %v6081_v41 = vpack.c.bf16 %v3379_v60, %v3377_v62  ;;  %v11756_v10 = vsel %vm3497_vm1, %v13379_v35, %v7305_v2  ;;  %v7481_v32 = vunpack.i.h.bf16 %v13381_v16 }
 0x82e   :  { %v7480_v27 = vunpack.i.l.bf16 %v13381_v16  ;;  %6080 = vmatpush1.bf16.msra.mxu1 %v6079_v30  ;;  %v7326_v60 = vunpack.i.h.bf16 %v11296_v19  ;;  %v11766_v39 = vpop.permute.xlu1 %7598  ;;  %v11768_v35 = vpop.permute.xlu0 %7503  ;;  %v13382_v2 = vunpack.i.h.bf16 %v11176_v12  ;;  %v13383_v62 = vunpack.i.h.bf16 %v11168_v49  ;;  %v13385_v30 = vld [vmem:[#allocation26_spill] sm:$0xff] }
 0x82f   :  { %6082 = vmatprep.subr.bf16.mxu1 %v6081_v41  ;;  %vm13384_vm6 = vcmask 900096   ;;  %v6083_v19 = vpack.c.bf16 %v3378_v5, %v13386_v22  ;;  %v13387_v1 = vunpack.i.h.bf16 %v11184_v11  ;;  %v7291_v12 = vunpack.i.h.bf16 %v13380_v15  ;;  %v13388_v41 = vld [vmem:[#allocation34_spill] sm:$0xff]  ;;  %7883 = vrot.lane.b32.xlu1 %v11015_v48, %s13370_s22  ;;  %v13389_v11 = vld [vmem:[#allocation7_spill] sm:$0xff] }
 0x830   :  { %v3598_v44 = vsel %vm3596_vm14, %v13382_v2, %v7325_v63  ;;  %v11776_v14 = vsel %vm13384_vm6, %v13383_v62, %v7315_v36  ;;  %v7300_v63 = vunpack.i.l.bf16 %v13388_v41  ;;  %v3403_v2 = vsel %vm3400_vm15, %v7286_v8, %v7475_v56  ;;  %7793 = vrot.lane.b32.xlu0 %v11007_v47, %s13370_s22  ;;  %v13391_v56 = vld [vmem:[#allocation36_spill] sm:$0xff]  ;;  %v13392_v22 = vld [vmem:[#allocation47_spill] sm:$0xff] }
 0x831   :  { %v11784_v57 = vsel %vm3646_vm2, %v13387_v1, %v7335_v21  ;;  %v6085_v36 = vpack.c.bf16 %v3404_v40, %v3402_v45  ;;  %vm4261_vm7 = vcmask 515072   ;;  %v7486_v62 = vunpack.i.h.bf16 %v11710_v7 }
 0x832   :  { %v7485_v5 = vunpack.i.l.bf16 %v11710_v7  ;;  %6084 = vmatpush1.bf16.msra.mxu1 %v6083_v19  ;;  %v13390_v21 = vunpack.i.h.bf16 %v13389_v11  ;;  %v3428_v15 = vsel %vm632_vm9, %v7480_v27, %v7481_v32  ;;  %v7330_v8 = vunpack.i.l.bf16 %v13391_v56  ;;  %v11803_v34 = vpop.permute.xlu1 %7603  ;;  %v7514_v7 = vpop.permute.xlu0 %7513 }
 0x833   :  { %v7491_v16 = vunpack.i.h.bf16 %v13392_v22  ;;  %v7536_v45 = vunpack.i.h.bf16 %v11592_v13  ;;  %v7535_v40 = vunpack.i.l.bf16 %v11592_v13  ;;  %6086 = vmatprep.subr.bf16.mxu1 %v6085_v36  ;;  %v7490_v19 = vunpack.i.l.bf16 %v13392_v22  ;;  %7888 = vrot.lane.b32.xlu1 %v11007_v47, %s13378_s25 }
 0x834   :  { %v3426_v1 = vsel %vm632_vm9, %v13390_v21, %v7290_v29  ;;  %v7516_v25 = vunpack.i.h.bf16 %v7514_v7  ;;  %v7515_v11 = vunpack.i.l.bf16 %v7514_v7  ;;  %v6087_v29 = vpack.c.bf16 %v3403_v2, %v11585_v61  ;;  %7813 = vrot.lane.b32.xlu0 %v11015_v48, %s8088_s19  ;;  %v13398_v7 = vld [vmem:[#allocation41_spill] sm:$0xff]  ;;  %s13437_s19 = smov 37  }
 0x835   :  { %v7301_v32 = vunpack.i.h.bf16 %v13388_v41  ;;  %v3427_v21 = vsel %vm632_vm9, %v7291_v12, %v7480_v27  ;;  %v6089_v28 = vpack.c.bf16 %v3428_v15, %v3426_v1  ;;  %v13394_v13 = vunpack.i.h.bf16 %v13393_v37  ;;  %vm13400_vm9 = vmmov %vm13377_vm5 }
 0x836   :  { %v7331_v36 = vunpack.i.h.bf16 %v13391_v56  ;;  %v3599_v22 = vsel %vm3596_vm14, %v7326_v60, %v7515_v11  ;;  %6088 = vmatpush1.bf16.msra.mxu1 %v6087_v29  ;;  %v3600_v61 = vsel %vm3596_vm14, %v7515_v11, %v7516_v25  ;;  %v3452_v27 = vsel %vm13395_vm11, %v7485_v5, %v7486_v62  ;;  %v11821_v41 = vpop.permute.xlu1 %7608  ;;  %v11823_v2 = vpop.permute.xlu0 %7518  ;;  %v13397_v56 = vld [vmem:[#allocation51_spill] sm:$0xff] }
 0x837   :  { %v3474_v33 = vsel %vm701_vm12, %v13394_v13, %v7300_v63  ;;  %v6119_v12 = vpack.c.bf16 %v3599_v22, %v11659_v9  ;;  %6090 = vmatprep.subr.bf16.mxu1 %v6089_v28  ;;  %v6117_v37 = vpack.c.bf16 %v3600_v61, %v3598_v44  ;;  %v13396_v63 = vunpack.i.h.bf16 %v11158_v59  ;;  %7903 = vrot.lane.b32.xlu1 %v11015_v48, %s8096_s6 }
 0x838   :  { %v3625_v1 = vsel %vm3621_vm0, %v7535_v40, %v7536_v45  ;;  %v12910_v15 = vunpack.i.l.bf16 %v11735_v38  ;;  %v7610_v25 = vunpack.i.l.bf16 %v11821_v41  ;;  %v6091_v62 = vpack.c.bf16 %v3427_v21, %v13397_v56  ;;  %7818 = vrot.lane.b32.xlu0 %v10996_v26, %s8096_s6  ;;  %v13402_v21 = vld [vmem:[#allocation54_spill] sm:$0xff] }
 0x839   :  { %v3623_v60 = vsel %vm3621_vm0, %v13396_v63, %v7330_v8  ;;  %v3476_v9 = vsel %vm701_vm12, %v7490_v19, %v7491_v16  ;;  %v7340_v11 = vunpack.i.l.bf16 %v13398_v7  ;;  %v3624_v29 = vsel %vm3621_vm0, %v7331_v36, %v7535_v40  ;;  %6118 = vmatprep.subr.bf16.mxu0 %v6117_v37 }
 0x83a   :  { %v13399_v28 = vunpack.i.h.bf16 %v11270_v54  ;;  %v6093_v44 = vpack.c.bf16 %v3452_v27, %v11747_v58  ;;  %v7496_v8 = vunpack.i.h.bf16 %v11737_v55  ;;  %v7495_v45 = vunpack.i.l.bf16 %v11737_v55  ;;  %6092 = vmatpush1.bf16.msra.mxu1 %v6091_v62  ;;  %6120 = vmatpush1.bf16.msra.mxu0 %v6119_v12  ;;  %v11854_v55 = vpop.permute.xlu1 %7623  ;;  %v7539_v22 = vpop.permute.xlu0 %7538 }
 0x83b   :  { %v11846_v16 = vsel %vm4261_vm7, %v7610_v25, %v12910_v15  ;;  %v6121_v54 = vpack.c.bf16 %v3625_v1, %v3623_v60  ;;  %vm3721_vm13 = vcmask 785408   ;;  %v7501_v13 = vunpack.i.h.bf16 %v13402_v21  ;;  %7918 = vrot.lane.b32.xlu1 %v10996_v26, %s13403_s11 }
 0x83c   :  { %v3451_v59 = vsel %vm13400_vm9, %v13399_v28, %v7485_v5  ;;  %v13401_v5 = vld [vmem:[#allocation31_spill] sm:$0xff]  ;;  %v7551_v58 = vunpack.i.h.bf16 %v11621_v31  ;;  %v7550_v36 = vunpack.i.l.bf16 %v11621_v31  ;;  %6094 = vmatprep.subr.bf16.mxu1 %v6093_v44  ;;  %v7500_v61 = vunpack.i.l.bf16 %v13402_v21  ;;  %7828 = vrot.lane.b32.xlu0 %v11015_v48, %s13307_s26  ;;  %v13408_v44 = vld [vmem:[#allocation58_spill] sm:$0xff] }
 0x83d   :  { %v7311_v40 = vunpack.i.h.bf16 %v13401_v5  ;;  %v7541_v27 = vunpack.i.h.bf16 %v7539_v22  ;;  %v7540_v37 = vunpack.i.l.bf16 %v7539_v22  ;;  %6122 = vmatprep.subr.bf16.mxu0 %v6121_v54  ;;  %v6095_v63 = vpack.c.bf16 %v3451_v59, %v11590_v17 }
 0x83e   :  { %v3475_v60 = vsel %vm701_vm12, %v7301_v32, %v7490_v19  ;;  %v6123_v1 = vpack.c.bf16 %v3624_v29, %v11600_v43  ;;  %v6097_v31 = vpack.c.bf16 %v3476_v9, %v3474_v33  ;;  %v13404_v12 = vunpack.i.h.bf16 %v11166_v42  ;;  %v11875_v19 = vpop.permute.xlu1 %7638  ;;  %v11877_v32 = vpop.permute.xlu0 %7543 }
 0x83f   :  { %v7310_v56 = vunpack.i.l.bf16 %v13401_v5  ;;  %v13405_v62 = vunpack.i.h.bf16 %v13372_v52  ;;  %6096 = vmatpush1.bf16.msra.mxu1 %v6095_v63  ;;  %v3650_v17 = vsel %vm3646_vm2, %v7540_v37, %v7541_v27  ;;  %v3501_v43 = vsel %vm3497_vm1, %v7495_v45, %v7496_v8  ;;  %7923 = vrot.lane.b32.xlu1 %v11015_v48, %s13411_s0 }
 0x840   :  { %v3673_v25 = vsel %vm3671_vm10, %v13404_v12, %v7340_v11  ;;  %v7341_v33 = vunpack.i.h.bf16 %v13398_v7  ;;  %6124 = vmatpush1.bf16.msra.mxu0 %v6123_v1  ;;  %6098 = vmatprep.subr.bf16.mxu1 %v6097_v31  ;;  %v6125_v52 = vpack.c.bf16 %v3650_v17, %v11784_v57  ;;  %v3675_v9 = vsel %vm3671_vm10, %v7550_v36, %v7551_v58  ;;  %v13406_v11 = vld [vmem:[#allocation40_spill] sm:$0xff] }
 0x841   :  { %v3649_v28 = vsel %vm3646_vm2, %v13405_v62, %v7540_v37  ;;  %vm3746_vm12 = vcmask 777216   ;;  %v7350_v29 = vunpack.i.l.bf16 %v13406_v11  ;;  %vm13407_vm8 = vcmask 908288   ;;  %7833 = vrot.lane.b32.xlu0 %v11007_v47, %s8096_s6  ;;  %vm13418_vm2 = vmmov %vm13384_vm6 }
 0x842   :  { %v6127_v42 = vpack.c.bf16 %v3649_v28, %v11667_v50  ;;  %v11883_v59 = vsel %vm13407_vm8, %v7311_v40, %v7500_v61  ;;  %v6099_v7 = vpack.c.bf16 %v3475_v60, %v13408_v44  ;;  %vm13409_vm15 = vmmov %vm13407_vm8  ;;  %v7576_v8 = vunpack.i.h.bf16 %v11708_v46  ;;  %6126 = vmatprep.subr.bf16.mxu0 %v6125_v52  ;;  %v11902_v22 = vpop.permute.xlu1 %7643 }
 0x843   :  { %v3526_v50 = vsel %vm13409_vm15, %v7500_v61, %v7501_v13  ;;  %v7575_v54 = vunpack.i.l.bf16 %v11708_v46  ;;  %v13410_v5 = vunpack.i.h.bf16 %v11278_v4  ;;  %v6101_v21 = vpack.c.bf16 %v3501_v43, %v11756_v10  ;;  %v7554_v61 = vpop.permute.xlu0 %7553  ;;  %vm13413_vm0 = vmmov %vm13407_vm8  ;;  %7928 = vrot.lane.b32.xlu1 %v11007_v47, %s13403_s11 }
 0x844   :  { %v3674_v40 = vsel %vm3671_vm10, %v7341_v33, %v7550_v36  ;;  %v7506_v58 = vunpack.i.h.bf16 %v11768_v35  ;;  %v7505_v13 = vunpack.i.l.bf16 %v11768_v35  ;;  %6100 = vmatpush1.bf16.msra.mxu1 %v6099_v7  ;;  %v6129_v46 = vpack.c.bf16 %v3675_v9, %v3673_v25  ;;  %6128 = vmatpush1.bf16.msra.mxu0 %v6127_v42  ;;  %v13417_v25 = vld [vmem:[#allocation55_spill] sm:$0xff]  ;;  %vm13424_vm5 = vmmov %vm13418_vm2 }
 0x845   :  { %v3500_v57 = vsel %vm3497_vm1, %v13410_v5, %v7495_v45  ;;  %v7346_v4 = vunpack.i.h.bf16 %v13385_v30  ;;  %v7351_v45 = vunpack.i.h.bf16 %v13406_v11  ;;  %6102 = vmatprep.subr.bf16.mxu1 %v6101_v21  ;;  %v13412_v10 = vunpack.i.h.bf16 %v11140_v18  ;;  %7853 = vrot.lane.b32.xlu0 %v11015_v48, %s8092_s27 }
 0x846   :  { %v13414_v35 = vunpack.i.l.bf16 %v13385_v30  ;;  %v13415_v27 = vunpack.i.h.bf16 %v11192_v0  ;;  %v7556_v63 = vunpack.i.h.bf16 %v7554_v61  ;;  %v7555_v60 = vunpack.i.l.bf16 %v7554_v61  ;;  %6130 = vmatprep.subr.bf16.mxu0 %v6129_v46  ;;  %v11929_v43 = vpop.permute.xlu1 %7648  ;;  %v13427_v46 = vld [vmem:[#allocation12_spill] sm:$0xff] }
 0x847   :  { %v3524_v36 = vsel %vm13413_vm0, %v13412_v10, %v7310_v56  ;;  %v6103_v1 = vpack.c.bf16 %v3500_v57, %v11605_v53  ;;  %v13416_v31 = vunpack.i.h.bf16 %v11174_v24  ;;  %vm3771_vm1 = vcmask 760832   ;;  %v11931_v33 = vpop.permute.xlu0 %7558  ;;  %7943 = vrot.lane.b32.xlu1 %v11015_v48, %s8097_s29 }
 0x848   :  { %v3698_v37 = vsel %vm3696_vm3, %v13415_v27, %v13414_v35  ;;  %v6131_v18 = vpack.c.bf16 %v3674_v40, %v11642_v20  ;;  %v6105_v30 = vpack.c.bf16 %v3526_v50, %v3524_v36  ;;  %v6107_v0 = vpack.c.bf16 %v11883_v59, %v13417_v25  ;;  %v13419_v59 = vld [vmem:[#allocation30_spill] sm:$0xff] }
 0x849   :  { %v3723_v12 = vsel %vm3721_vm13, %v13416_v31, %v7350_v29  ;;  %v3725_v56 = vsel %vm3721_vm13, %v7575_v54, %v7576_v8  ;;  %v3699_v62 = vsel %vm3696_vm3, %v7346_v4, %v7555_v60  ;;  %6104 = vmatpush1.bf16.msra.mxu1 %v6103_v1  ;;  %vm4311_vm10 = vcmask 498688   ;;  %7858 = vrot.lane.b32.xlu0 %v10996_v26, %s13411_s0 }
 0x84a   :  { %v3700_v53 = vsel %vm3696_vm3, %v7555_v60, %v7556_v63  ;;  %v3550_v20 = vsel %vm13418_vm2, %v7505_v13, %v7506_v58  ;;  %v3724_v28 = vsel %vm3721_vm13, %v7351_v45, %v7575_v54  ;;  %v6135_v17 = vpack.c.bf16 %v3699_v62, %v11703_v23  ;;  %6132 = vmatpush1.bf16.msra.mxu0 %v6131_v18  ;;  %vm13421_vm3 = vmmov %vm13418_vm2  ;;  %v11974_v36 = vpop.permute.xlu1 %7663  ;;  %v13430_v63 = vld [vmem:[#allocation45_spill] sm:$0xff] }
 0x84b   :  { %vm4186_vm14 = vcmask 547840   ;;  %6106 = vmatprep.subr.bf16.mxu1 %v6105_v30  ;;  %v6133_v42 = vpack.c.bf16 %v3700_v53, %v3698_v37  ;;  %v12907_v52 = vunpack.i.l.bf16 %v11875_v19  ;;  %v7545_v9 = vunpack.i.l.bf16 %v11877_v32  ;;  %7958 = vrot.lane.b32.xlu1 %v10996_v26, %s13431_s16 }
 0x84c   :  { %v7650_v11 = vunpack.i.l.bf16 %v11929_v43  ;;  %v7560_v29 = vunpack.i.l.bf16 %v11931_v33  ;;  %v7355_v44 = vunpack.i.l.bf16 %v13419_v59  ;;  %v13420_v23 = vunpack.i.h.bf16 %v11288_v6 }
 0x84d   :  { %6134 = vmatprep.subr.bf16.mxu0 %v6133_v42  ;;  %v6109_v50 = vpack.c.bf16 %v3550_v20, %v11776_v14  ;;  %v6137_v8 = vpack.c.bf16 %v3725_v56, %v3723_v12  ;;  %v7601_v54 = vunpack.i.h.bf16 %v11766_v39  ;;  %v7600_v5 = vunpack.i.l.bf16 %v11766_v39  ;;  %6108 = vmatpush1.bf16.msra.mxu1 %v6107_v0  ;;  %v13433_v12 = vld [vmem:[#allocation27_spill] sm:$0xff] }
 0x84e   :  { %v3549_v7 = vsel %vm13421_vm3, %v13420_v23, %v7505_v13  ;;  %v11949_v57 = vsel %vm4311_vm10, %v7650_v11, %v12907_v52  ;;  %v11954_v6 = vsel %vm4186_vm14, %v7560_v29, %v7545_v9  ;;  %v13422_v14 = vunpack.i.h.bf16 %v11168_v49  ;;  %6136 = vmatpush1.bf16.msra.mxu0 %v6135_v17  ;;  %7868 = vrot.lane.b32.xlu0 %v11015_v48, %s13325_s7  ;;  %v13436_v23 = vld [vmem:[#allocation46_spill] sm:$0xff] }
 0x84f   :  { %v13423_v21 = vunpack.i.l.bf16 %v11168_v49  ;;  %v13425_v40 = vmov %v13416_v31  ;;  %v13426_v58 = vunpack.i.l.bf16 %v11174_v24  ;;  %v7166_v4 = vunpack.i.h.bf16 %v13427_v46  ;;  %v7579_v49 = vpop.permute.xlu0 %7578  ;;  %6110 = vmatprep.subr.bf16.mxu1 %v6109_v50  ;;  %6138 = vmatprep.subr.bf16.mxu0 %v6137_v8  ;;  %v13432_v31 = vld [vmem:[#allocation8_spill] sm:$0xff] }
 0x850   :  { %v13428_v45 = vunpack.i.h.bf16 %v11200_v51  ;;  %v13429_v61 = vunpack.i.l.bf16 %v11200_v51  ;;  %v7356_v35 = vunpack.i.h.bf16 %v13419_v59  ;;  %v7581_v37 = vunpack.i.h.bf16 %v7579_v49  ;;  %v11993_v51 = vpop.permute.xlu1 %7678  ;;  %v13435_v59 = vld [vmem:[#allocation16_spill] sm:$0xff]  ;;  %7963 = vrot.lane.b32.xlu1 %v11015_v48, %s13437_s19 }
 0x851   :  { %v3547_v39 = vsel %vm13424_vm5, %v13423_v21, %v13422_v14  ;;  %v3722_v13 = vsel %vm3721_vm13, %v13426_v58, %v13425_v40  ;;  %v7580_v24 = vunpack.i.l.bf16 %v7579_v49  ;;  %v7360_v60 = vunpack.i.l.bf16 %v13430_v63  ;;  %v13441_v49 = vld [vmem:[#allocation33_spill] sm:$0xff] }
 0x852   :  { %v3747_v10 = vsel %vm3746_vm12, %v13429_v61, %v13428_v45  ;;  %v6111_v27 = vpack.c.bf16 %v3549_v7, %v3547_v39  ;;  %v6139_v1 = vpack.c.bf16 %v3724_v28, %v3722_v13  ;;  %v5009_v18 = vrot.slane %v13433_v12, %v13432_v31  ;;  %7873 = vrot.lane.b32.xlu0 %v11007_v47, %s13411_s0 }
 0x853   :  { %v13434_v30 = vmov %v13428_v45  ;;  %v7165_v0 = vunpack.i.l.bf16 %v13427_v46  ;;  %v3749_v56 = vsel %vm3746_vm12, %v7356_v35, %v7580_v24  ;;  %v3750_v62 = vsel %vm3746_vm12, %v7580_v24, %v7581_v37  ;;  %v11995_v42 = vpop.permute.xlu0 %7583  ;;  %v13440_v45 = vld [vmem:[#allocation13_spill] sm:$0xff] }
 0x854   :  { %v3748_v25 = vsel %vm3746_vm12, %v13434_v30, %v7355_v44  ;;  %6112 = vmatpush1.bf16.msra.mxu1 %v6111_v27  ;;  %v3775_v53 = vsel %vm3771_vm1, %v7600_v5, %v7601_v54  ;;  %v7606_v20 = vunpack.i.h.bf16 %v11803_v34  ;;  %v7605_v28 = vunpack.i.l.bf16 %v11803_v34  ;;  %6140 = vmatpush1.bf16.msra.mxu0 %v6139_v1  ;;  %v12007_v14 = vpop.permute.xlu1 %7683 }
 0x855   :  { %v6143_v17 = vpack.c.bf16 %v3749_v56, %v3747_v10  ;;  %v6141_v11 = vpack.c.bf16 %v3750_v62, %v3748_v25  ;;  %v7361_v29 = vunpack.i.h.bf16 %v13430_v63  ;;  %v7171_v44 = vunpack.i.h.bf16 %v13435_v59  ;;  %7968 = vrot.lane.b32.xlu1 %v11007_v47, %s13431_s16  ;;  %v13444_v56 = vld [vmem:[#allocation15_spill] sm:$0xff] }
 0x856   :  { %v7365_v7 = vunpack.i.l.bf16 %v13436_v23  ;;  %v3773_v50 = vsel %vm3771_vm1, %v7166_v4, %v7360_v60  ;;  %v3772_v54 = vsel %vm3771_vm1, %v7165_v0, %v7166_v4  ;;  %vm13438_vm6 = vcmask 752640   ;;  %7893 = vrot.lane.b32.xlu0 %v11015_v48, %s8095_s5 }
 0x857   :  { %5111 = vmatmul.mubr.f32.vlgmr.msra.gmra.mrb[16].mxu1 %v5009_v18  ;;  %v3774_v34 = vsel %vm3771_vm1, %v7361_v29, %v7600_v5  ;;  %6142 = vmatprep.subr.bf16.mxu0 %v6141_v11  ;;  %v6145_v8 = vpack.c.bf16 %v3775_v53, %v3773_v50  ;;  %v12009_v21 = vpop.permute.xlu0 %7588  ;;  %v3797_v39 = vsel %vm13438_vm6, %v7171_v44, %v7605_v28  ;;  %vm13439_vm11 = vmmov %vm13438_vm6  ;;  %v7170_v58 = vunpack.i.l.bf16 %v13435_v59 }
 0x858   :  { %6144 = vmatpush1.bf16.msra.mxu0 %v6143_v17  ;;  %v3799_v40 = vsel %vm13439_vm11, %v7606_v20, %v7365_v7  ;;  %v7366_v5 = vunpack.i.h.bf16 %v13436_v23  ;;  %v7585_v13 = vunpack.i.l.bf16 %v11995_v42  ;;  %v7590_v46 = vunpack.i.l.bf16 %v12009_v21  ;;  %vm13442_vm13 = vmmov %vm13438_vm6  ;;  %v12032_v1 = vpop.permute.xlu1 %7688  ;;  %v4995_v17 = vld [vmem:[#allocation4] sm:$0x1] }
 0x859   :  { %6146 = vmatprep.subr.bf16.mxu0 %v6145_v8  ;;  %v7176_v4 = vunpack.i.h.bf16 %v13440_v45  ;;  %v7175_v61 = vunpack.i.l.bf16 %v13440_v45  ;;  %v6147_v10 = vpack.c.bf16 %v3774_v34, %v3772_v54  ;;  %vm4236_vm9 = vcmask 531456   ;;  %vm13443_vm12 = vmmov %vm13438_vm6  ;;  %7983 = vrot.lane.b32.xlu1 %v11015_v48, %s13445_s3  ;;  %v13451_v34 = vld [vmem:[#allocation44_spill] sm:$0xff] }
 0x85a   :  { %v7370_v35 = vunpack.i.l.bf16 %v13441_v49  ;;  %v3798_v27 = vsel %vm13442_vm13, %v7366_v5, %v7606_v20  ;;  %v12026_v37 = vsel %vm4236_vm9, %v7590_v46, %v7585_v13  ;;  %v6149_v24 = vpack.c.bf16 %v3799_v40, %v3797_v39  ;;  %7898 = vrot.lane.b32.xlu0 %v10996_v26, %s8097_s29  ;;  %v13452_v39 = vld [vmem:[#allocation11_spill] sm:$0xff]  ;;  %v13454_v46 = vld [vmem:[#allocation32_spill] sm:$0xff] }
 0x85b   :  { %v7626_v63 = vunpack.i.h.bf16 %v11854_v55  ;;  %v7625_v60 = vunpack.i.l.bf16 %v11854_v55  ;;  %v7614_v12 = vpop.permute.xlu0 %7613  ;;  %v3796_v18 = vsel %vm13443_vm12, %v7170_v58, %v7171_v44  ;;  %v7371_v30 = vunpack.i.h.bf16 %v13441_v49 }
 0x85c   :  { %6148 = vmatpush1.bf16.msra.mxu0 %v6147_v10  ;;  %v7616_v25 = vunpack.i.h.bf16 %v7614_v12  ;;  %v7615_v0 = vunpack.i.l.bf16 %v7614_v12  ;;  %v7181_v62 = vunpack.i.h.bf16 %v13444_v56  ;;  %v7180_v53 = vunpack.i.l.bf16 %v13444_v56  ;;  %v12046_v44 = vpop.permute.xlu1 %7703 }
 0x85d   :  { %6150 = vmatprep.subr.bf16.mxu0 %v6149_v24  ;;  %v6151_v20 = vpack.c.bf16 %v3798_v27, %v3796_v18  ;;  %vm13446_vm8 = vcmask 744448   ;;  %vm13450_vm2 = vcmask 736256   ;;  %v7376_v8 = vunpack.i.h.bf16 %v13451_v34  ;;  %4998 = vperm.xlu1 %7046, %v4995_v17  }
 0x85e   :  { %v3820_v55 = vsel %vm13446_vm8, %v7370_v35, %v7175_v61  ;;  %vm13447_vm15 = vmmov %vm13446_vm8  ;;  %v3847_v50 = vsel %vm13450_vm2, %v7625_v60, %v7626_v63  ;;  %v7375_v54 = vunpack.i.l.bf16 %v13451_v34  ;;  %v7186_v40 = vunpack.i.h.bf16 %v13452_v39  ;;  %7908 = vrot.lane.b32.xlu0 %v11015_v48, %s13363_s8 }
 0x85f   :  { %v3822_v28 = vsel %vm13447_vm15, %v7371_v30, %v7615_v0  ;;  %vm13448_vm0 = vmmov %vm13446_vm8  ;;  %v12048_v23 = vpop.permute.xlu0 %7618  ;;  %v7185_v5 = vunpack.i.l.bf16 %v13452_v39  ;;  %v7380_v45 = vunpack.i.l.bf16 %v13454_v46  ;;  %vm3868_vm6 = vcmask 719872  }
 0x860   :  { %v3821_v11 = vsel %vm13448_vm0, %v7175_v61, %v7176_v4  ;;  %vm13449_vm1 = vmmov %vm13448_vm0  ;;  %v6155_v59 = vpack.c.bf16 %v3822_v28, %v3820_v55  ;;  %6152 = vmatpush1.bf16.msra.mxu0 %v6151_v20  ;;  %v7646_v10 = vunpack.i.h.bf16 %v11902_v22  ;;  %v7645_v49 = vunpack.i.l.bf16 %v11902_v22  ;;  %v12062_v35 = vpop.permute.xlu1 %7718 }
 0x861   :  { %v3823_v29 = vsel %vm13449_vm1, %v7615_v0, %v7616_v25  ;;  %vm13453_vm3 = vmmov %vm13450_vm2  ;;  %v7381_v24 = vunpack.i.h.bf16 %v13454_v46  ;;  %vm3893_vm13 = vcmask 711680   ;;  %v3869_v56 = vsel %vm3868_vm6, %v7380_v45, %v7185_v5 }
 0x862   :  { %v6153_v7 = vpack.c.bf16 %v3823_v29, %v3821_v11  ;;  %v3845_v58 = vsel %vm13453_vm3, %v7180_v53, %v7181_v62  ;;  %vm13455_vm5 = vmmov %vm13450_vm2  ;;  %7913 = vrot.lane.b32.xlu0 %v11007_v47, %s8097_s29  ;;  %v3870_v62 = vsel %vm3868_vm6, %v7185_v5, %v7186_v40  ;;  %v3897_v11 = vsel %vm3893_vm13, %v7645_v49, %v7646_v10  ;;  %v13458_v29 = vld [vmem:[#allocation43_spill] sm:$0xff] }
 0x863   :  { %v3846_v4 = vsel %vm13455_vm5, %v7376_v8, %v7625_v60  ;;  %v6157_v61 = vpack.c.bf16 %v3847_v50, %v3845_v58  ;;  %v7629_v27 = vpop.permute.xlu0 %7628  ;;  %vm13456_vm11 = vmmov %vm13450_vm2  ;;  %v13457_v60 = vld [vmem:[#allocation20_spill] sm:$0xff]  ;;  %v12908_v50 = vunpack.i.l.bf16 %v12048_v23  ;;  %v13459_v8 = vld [vmem:[#allocation10_spill] sm:$0xff]  ;;  %vm4286_vm12 = vcmask 506880  }
 0x864   :  { %6154 = vmatprep.subr.bf16.mxu0 %v6153_v7  ;;  %v3844_v63 = vsel %vm13456_vm11, %v7375_v54, %v7180_v53  ;;  %v7631_v12 = vunpack.i.h.bf16 %v7629_v27  ;;  %v7630_v18 = vunpack.i.l.bf16 %v7629_v27  ;;  %v7191_v30 = vunpack.i.h.bf16 %v13457_v60  ;;  %v12074_v55 = vpop.permute.xlu1 %7723  ;;  %v13460_v58 = vld [vmem:[#allocation37_spill] sm:$0xff] }
 0x865   :  { %6156 = vmatpush1.bf16.msra.mxu0 %v6155_v59  ;;  %v7190_v25 = vunpack.i.l.bf16 %v13457_v60  ;;  %v6159_v0 = vpack.c.bf16 %v3846_v4, %v3844_v63  ;;  %v7386_v59 = vunpack.i.h.bf16 %v13458_v29  ;;  %v7385_v7 = vunpack.i.l.bf16 %v13458_v29  ;;  %v13461_v60 = vld [vmem:[#allocation19_spill] sm:$0xff] }
 0x866   :  { %6158 = vmatprep.subr.bf16.mxu0 %v6157_v61  ;;  %v3871_v22 = vsel %vm3868_vm6, %v7381_v24, %v7630_v18  ;;  %v3872_v53 = vsel %vm3868_vm6, %v7630_v18, %v7631_v12  ;;  %v7196_v54 = vunpack.i.h.bf16 %v13459_v8  ;;  %v7195_v39 = vunpack.i.l.bf16 %v13459_v8  ;;  %7933 = vrot.lane.b32.xlu0 %v11015_v48, %s13378_s25  ;;  %v13468_v8 = vld [vmem:[#allocation17_spill] sm:$0xff] }
 0x867   :  { %v6163_v20 = vpack.c.bf16 %v3871_v22, %v3869_v56  ;;  %v12076_v28 = vpop.permute.xlu0 %7633  ;;  %v6161_v17 = vpack.c.bf16 %v3872_v53, %v3870_v62  ;;  %v3895_v40 = vsel %vm3893_vm13, %v7190_v25, %v7191_v30  ;;  %v7390_v5 = vunpack.i.l.bf16 %v13460_v58 }
 0x868   :  { %v7635_v34 = vunpack.i.l.bf16 %v12076_v28  ;;  %v3896_v46 = vsel %vm3893_vm13, %v7386_v59, %v7645_v49  ;;  %v6165_v4 = vpack.c.bf16 %v3897_v11, %v3895_v40  ;;  %v7666_v61 = vunpack.i.h.bf16 %v11974_v36  ;;  %v12097_v27 = vpop.permute.xlu1 %7728  ;;  %v13467_v59 = vld [vmem:[#allocation49_spill] sm:$0xff] }
 0x869   :  { %6160 = vmatpush1.bf16.msra.mxu0 %v6159_v0  ;;  %v7665_v10 = vunpack.i.l.bf16 %v11974_v36  ;;  %v7391_v63 = vunpack.i.h.bf16 %v13460_v58  ;;  %v3894_v49 = vsel %vm3893_vm13, %v7385_v7, %v7190_v25  ;;  %v7201_v30 = vunpack.i.h.bf16 %v13461_v60  ;;  %v13470_v58 = vld [vmem:[#allocation38_spill] sm:$0xff] }
 0x86a   :  { %6162 = vmatprep.subr.bf16.mxu0 %v6161_v17  ;;  %v12091_v45 = vsel %vm4286_vm12, %v7635_v34, %v12908_v50  ;;  %v7200_v0 = vunpack.i.l.bf16 %v13461_v60  ;;  %v6167_v56 = vpack.c.bf16 %v3896_v46, %v3894_v49  ;;  %vm13462_vm8 = vcmask 703488   ;;  %7938 = vrot.lane.b32.xlu0 %v10996_v26, %s13437_s19 }
 0x86b   :  { %v7654_v24 = vpop.permute.xlu0 %7653  ;;  %v3918_v22 = vsel %vm13462_vm8, %v7390_v5, %v7195_v39  ;;  %vm13463_vm15 = vmmov %vm13462_vm8  ;;  %vm13466_vm2 = vcmask 695296   ;;  %v7396_v7 = vunpack.i.h.bf16 %v13467_v59  ;;  %v7395_v34 = vunpack.i.l.bf16 %v13467_v59 }
 0x86c   :  { %v7656_v12 = vunpack.i.h.bf16 %v7654_v24  ;;  %v7655_v18 = vunpack.i.l.bf16 %v7654_v24  ;;  %vm13464_vm0 = vmmov %vm13462_vm8  ;;  %v3945_v29 = vsel %vm13466_vm2, %v7665_v10, %v7666_v61  ;;  %v7206_v40 = vunpack.i.h.bf16 %v13468_v8 }
 0x86d   :  { %6164 = vmatpush1.bf16.msra.mxu0 %v6163_v20  ;;  %v3919_v62 = vsel %vm13464_vm0, %v7195_v39, %v7196_v54  ;;  %vm13465_vm1 = vmmov %vm13464_vm0  ;;  %v12109_v20 = vpop.permute.xlu1 %7743  ;;  %v7205_v39 = vunpack.i.l.bf16 %v13468_v8  ;;  %v7400_v5 = vunpack.i.l.bf16 %v13470_v58  ;;  %v7686_v61 = vunpack.i.h.bf16 %v12007_v14 }
 0x86e   :  { %6166 = vmatprep.subr.bf16.mxu0 %v6165_v4  ;;  %v3920_v36 = vsel %vm13463_vm15, %v7391_v63, %v7655_v18  ;;  %v3921_v53 = vsel %vm13465_vm1, %v7655_v18, %v7656_v12  ;;  %vm13469_vm3 = vmmov %vm13466_vm2  ;;  %7948 = vrot.lane.b32.xlu0 %v11015_v48, %s13403_s11  ;;  %v7685_v24 = vunpack.i.l.bf16 %v12007_v14  ;;  %v13472_v12 = vld [vmem:[#allocation5_spill] sm:$0xff]  ;;  %v7401_v60 = vunpack.i.h.bf16 %v13470_v58 }
 0x86f   :  { %v6171_v25 = vpack.c.bf16 %v3920_v36, %v3918_v22  ;;  %v12111_v17 = vpop.permute.xlu0 %7658  ;;  %v6169_v11 = vpack.c.bf16 %v3921_v53, %v3919_v62  ;;  %v3943_v54 = vsel %vm13469_vm3, %v7200_v0, %v7201_v30  ;;  %vm13471_vm5 = vmmov %vm13466_vm2  ;;  %v5028_v18 = vsub.s32 5, %v13472_v12  ;;  %v12133_v22 = vld [vmem:[%s12527_s10] sm:$0xff] }
 0x870   :  { %v3944_v46 = vsel %vm13471_vm5, %v7396_v7, %v7665_v10  ;;  %v6173_v4 = vpack.c.bf16 %v3945_v29, %v3943_v54  ;;  %vm13473_vm6 = vmmov %vm13466_vm2  ;;  %v13474_v14 = vsub.s32 2, %v13472_v12  ;;  %v13475_v62 = vld [vmem:[#allocation24_spill] sm:$0xff]  ;;  %vm13476_vm11 = vcmask 637952  }
 0x871   :  { %6168 = vmatpush1.bf16.msra.mxu0 %v6167_v56  ;;  %v12125_v63 = vpop.permute.xlu1 %7758  ;;  %v3942_v30 = vsel %vm13473_vm6, %v7395_v34, %v7200_v0  ;;  %v7211_v53 = vunpack.i.h.bf16 %v13475_v62  ;;  %v3966_v29 = vsel %vm13476_vm11, %v7400_v5, %v7205_v39  ;;  %vm13477_vm13 = vmmov %vm13476_vm11  ;;  %vm13480_vm0 = vcmask 629760  }
 0x872   :  { %6170 = vmatprep.subr.bf16.mxu0 %v6169_v11  ;;  %v5017_v36 = vrot.slane %v12133_v22, %v13474_v14  ;;  %v6175_v11 = vpack.c.bf16 %v3944_v46, %v3942_v30  ;;  %7953 = vrot.lane.b32.xlu0 %v11007_v47, %s13437_s19  ;;  %vm13478_vm8 = vmmov %vm13476_vm11  ;;  %v3993_v46 = vsel %vm13480_vm0, %v7685_v24, %v7686_v61  ;;  %v7561_v30 = vunpack.i.h.bf16 %v11931_v33 }
 0x873   :  { %v7669_v49 = vpop.permute.xlu0 %7668  ;;  %v3967_v59 = vsel %vm13478_vm8, %v7205_v39, %v7206_v40  ;;  %vm13479_vm15 = vmmov %vm13478_vm8  ;;  %v5029_v5 = vrot.slane %v12133_v22, %v5028_v18  ;;  %v13482_v39 = vld [vmem:[#allocation14_spill] sm:$0xff]  ;;  %vm4014_vm3 = vcmask 621568   ;;  %vm4039_vm6 = vcmask 613376  }
 0x874   :  { %v7671_v56 = vunpack.i.h.bf16 %v7669_v49  ;;  %v7670_v10 = vunpack.i.l.bf16 %v7669_v49  ;;  %vm13483_vm1 = vmmov %vm13480_vm0  ;;  %vm13492_vm11 = vcmask 596992  }
 0x875   :  { %6172 = vmatpush1.bf16.msra.mxu0 %v6171_v25  ;;  %v7210_v25 = vunpack.i.l.bf16 %v13475_v62  ;;  %v12146_v8 = vpop.permute.xlu1 %7763  ;;  %v13484_v62 = vld [vmem:[#allocation35_spill] sm:$0xff]  ;;  %vm13485_vm2 = vmmov %vm13480_vm0 }
 0x876   :  { %6174 = vmatprep.subr.bf16.mxu0 %v6173_v4  ;;  %v3968_v0 = vsel %vm13477_vm13, %v7401_v60, %v7670_v10  ;;  %v3969_v7 = vsel %vm13479_vm15, %v7670_v10, %v7671_v56  ;;  %v13481_v4 = vld [vmem:[#allocation48_spill] sm:$0xff]  ;;  %v7765_v40 = vunpack.i.l.bf16 %v12146_v8  ;;  %v7216_v56 = vunpack.i.h.bf16 %v13482_v39  ;;  %7973 = vrot.lane.b32.xlu0 %v11015_v48, %s13431_s16  ;;  %vm13486_vm5 = vmmov %vm13480_vm0 }
 0x877   :  { %v6179_v34 = vpack.c.bf16 %v3968_v0, %v3966_v29  ;;  %v12148_v54 = vpop.permute.xlu0 %7673  ;;  %v6177_v58 = vpack.c.bf16 %v3969_v7, %v3967_v59  ;;  %v7406_v49 = vunpack.i.h.bf16 %v13481_v4  ;;  %v7405_v60 = vunpack.i.l.bf16 %v13481_v4  ;;  %vm13493_vm13 = vmmov %vm13492_vm11 }
 0x878   :  { %v7215_v10 = vunpack.i.l.bf16 %v13482_v39  ;;  %v3991_v14 = vsel %vm13483_vm1, %v7210_v25, %v7211_v53  ;;  %v12164_v18 = vsel %vm4186_vm14, %v7561_v30, %v7765_v40  ;;  %v7706_v29 = vunpack.i.h.bf16 %v12046_v44  ;;  %vm13494_vm8 = vmmov %vm13492_vm11 }
 0x879   :  { %6176 = vmatpush1.bf16.msra.mxu0 %v6175_v11  ;;  %v7410_v11 = vunpack.i.l.bf16 %v13484_v62  ;;  %v3992_v61 = vsel %vm13485_vm2, %v7406_v49, %v7685_v24  ;;  %v6181_v33 = vpack.c.bf16 %v3993_v46, %v3991_v14  ;;  %v7705_v0 = vunpack.i.l.bf16 %v12046_v44  ;;  %v12172_v24 = vpop.permute.xlu1 %7768  ;;  %v13487_v46 = vld [vmem:[#allocation25_spill] sm:$0xff]  ;;  %vm13495_vm15 = vmmov %vm13494_vm8 }
 0x87a   :  { %6178 = vmatprep.subr.bf16.mxu0 %v6177_v58  ;;  %v6215_v53 = vpack.c.bf16 %v12164_v18, %v11954_v6  ;;  %v7411_v7 = vunpack.i.h.bf16 %v13484_v62  ;;  %v3990_v58 = vsel %vm13486_vm5, %v7405_v60, %v7210_v25  ;;  %v7221_v4 = vunpack.i.h.bf16 %v13487_v46  ;;  %7978 = vrot.lane.b32.xlu0 %v10996_v26, %s13445_s3 }
 0x87b   :  { %v7694_v59 = vpop.permute.xlu0 %7693  ;;  %v7220_v49 = vunpack.i.l.bf16 %v13487_v46  ;;  %v6183_v44 = vpack.c.bf16 %v3992_v61, %v3990_v58  ;;  %v4015_v30 = vsel %vm4014_vm3, %v7410_v11, %v7215_v10  ;;  %v4043_v61 = vsel %vm4039_vm6, %v7705_v0, %v7706_v29 }
 0x87c   :  { %5182 = vmatmul.mubr.f32.vlgmr.msra.gmra.mrb[12].mxu0 %v5017_v36  ;;  %v7696_v48 = vunpack.i.h.bf16 %v7694_v59  ;;  %v7695_v36 = vunpack.i.l.bf16 %v7694_v59  ;;  %vm13496_vm0 = vcmask 588800   ;;  %vm4136_vm5 = vcmask 572416  }
 0x87d   :  { %6180 = vmatpush1.bf16.msra.mxu0 %v6179_v34  ;;  %5252 = vmatprep.mubr.f32.mxu0 %v5029_v5  ;;  %v4016_v5 = vsel %vm4014_vm3, %v7215_v10, %v7216_v56  ;;  %v12184_v39 = vpop.permute.xlu1 %7783  ;;  %v13489_v56 = vld [vmem:[#allocation21_spill] sm:$0xff]  ;;  %vm13499_vm1 = vmmov %vm13496_vm0 }
 0x87e   :  { %6182 = vmatprep.subr.bf16.mxu0 %v6181_v33  ;;  %v4017_v34 = vsel %vm4014_vm3, %v7411_v7, %v7695_v36  ;;  %v4018_v25 = vsel %vm4014_vm3, %v7695_v36, %v7696_v48  ;;  %v13488_v33 = vld [vmem:[#allocation53_spill] sm:$0xff]  ;;  %v7591_v7 = vunpack.i.h.bf16 %v12009_v21  ;;  %v7785_v26 = vunpack.i.l.bf16 %v12184_v39  ;;  %v13490_v36 = vld [vmem:[#allocation42_spill] sm:$0xff]  ;;  %7988 = vrot.lane.b32.xlu0 %v11007_v47, %s13445_s3  ;;  %v13491_v47 = vld [vmem:[#allocation23_spill] sm:$0xff] }
 0x87f   :  { %v6187_v60 = vpack.c.bf16 %v4017_v34, %v4015_v30  ;;  %v12186_v14 = vpop.permute.xlu0 %7698  ;;  %v6185_v62 = vpack.c.bf16 %v4018_v25, %v4016_v5  ;;  %v7416_v11 = vunpack.i.h.bf16 %v13488_v33  ;;  %v7415_v59 = vunpack.i.l.bf16 %v13488_v33  ;;  %vm13500_vm2 = vmmov %vm13496_vm0 }
 0x880   :  { %v7226_v10 = vunpack.i.h.bf16 %v13489_v56  ;;  %v7225_v58 = vunpack.i.l.bf16 %v13489_v56  ;;  %v4041_v48 = vsel %vm4039_vm6, %v7220_v49, %v7221_v4  ;;  %v7420_v46 = vunpack.i.l.bf16 %v13490_v36  ;;  %vm13503_vm3 = vmmov %vm13496_vm0 }
 0x881   :  { %6184 = vmatpush1.bf16.msra.mxu0 %v6183_v44  ;;  %v4042_v44 = vsel %vm4039_vm6, %v7416_v11, %v7705_v0  ;;  %v12201_v29 = vsel %vm4236_vm9, %v7591_v7, %v7785_v26  ;;  %v6189_v21 = vpack.c.bf16 %v4043_v61, %v4041_v48  ;;  %v7726_v30 = vunpack.i.h.bf16 %v12074_v55  ;;  %v12209_v5 = vpop.permute.xlu1 %7798 }
 0x882   :  { %6186 = vmatprep.subr.bf16.mxu0 %v6185_v62  ;;  %v7725_v34 = vunpack.i.l.bf16 %v12074_v55  ;;  %v6223_v4 = vpack.c.bf16 %v12201_v29, %v12026_v37  ;;  %v7421_v25 = vunpack.i.h.bf16 %v13490_v36  ;;  %v4040_v62 = vsel %vm4039_vm6, %v7415_v59, %v7220_v49 }
 0x883   :  { %v7709_v0 = vpop.permute.xlu0 %7708  ;;  %v7231_v61 = vunpack.i.h.bf16 %v13491_v47  ;;  %v7230_v7 = vunpack.i.l.bf16 %v13491_v47  ;;  %v6191_v56 = vpack.c.bf16 %v4042_v44, %v4040_v62  ;;  %v4064_v55 = vsel %vm13492_vm11, %v7420_v46, %v7225_v58 }
 0x884   :  { %v7711_v33 = vunpack.i.h.bf16 %v7709_v0  ;;  %v7710_v11 = vunpack.i.l.bf16 %v7709_v0  ;;  %v4091_v59 = vsel %vm13496_vm0, %v7725_v34, %v7726_v30  ;;  %v7636_v44 = vunpack.i.h.bf16 %v12076_v28  ;;  %v13501_v28 = vld [vmem:[#allocation39_spill] sm:$0xff] }
 0x885   :  { %6188 = vmatpush1.bf16.msra.mxu0 %v6187_v60  ;;  %v4065_v60 = vsel %vm13494_vm8, %v7225_v58, %v7226_v10  ;;  %v12219_v36 = vpop.permute.xlu1 %7803  ;;  %v13498_v10 = vld [vmem:[#allocation18_spill] sm:$0xff]  ;;  %v4089_v62 = vsel %vm13499_vm1, %v7230_v7, %v7231_v61  ;;  %vm13504_vm6 = vcmask 580608  }
 0x886   :  { %6190 = vmatprep.subr.bf16.mxu0 %v6189_v21  ;;  %v4066_v48 = vsel %vm13493_vm13, %v7421_v25, %v7710_v11  ;;  %v4067_v52 = vsel %vm13495_vm15, %v7710_v11, %v7711_v33  ;;  %v13497_v21 = vld [vmem:[#allocation57_spill] sm:$0xff]  ;;  %v12909_v46 = vunpack.i.l.bf16 %v12219_v36  ;;  %v7236_v58 = vunpack.i.h.bf16 %v13498_v10  ;;  %vm13505_vm11 = vmmov %vm13504_vm6 }
 0x887   :  { %v6195_v50 = vpack.c.bf16 %v4066_v48, %v4064_v55  ;;  %v6193_v49 = vpack.c.bf16 %v4067_v52, %v4065_v60  ;;  %v7426_v0 = vunpack.i.h.bf16 %v13497_v21  ;;  %v7425_v47 = vunpack.i.l.bf16 %v13497_v21  ;;  %v12226_v25 = vpop.permute.xlu0 %7713  ;;  %vm13506_vm13 = vmmov %vm13504_vm6 }
 0x888   :  { %v7235_v33 = vunpack.i.l.bf16 %v13498_v10  ;;  %v12235_v30 = vsel %vm4286_vm12, %v7636_v44, %v12909_v46  ;;  %v6197_v11 = vpack.c.bf16 %v4091_v59, %v4089_v62  ;;  %v7746_v55 = vunpack.i.h.bf16 %v12109_v20  ;;  %vm13507_vm8 = vmmov %vm13504_vm6 }
 0x889   :  { %6192 = vmatpush1.bf16.msra.mxu0 %v6191_v56  ;;  %v4090_v52 = vsel %vm13500_vm2, %v7426_v0, %v7725_v34  ;;  %v7430_v56 = vunpack.i.l.bf16 %v13501_v28  ;;  %v7745_v48 = vunpack.i.l.bf16 %v12109_v20  ;;  %v12242_v61 = vpop.permute.xlu1 %7808  ;;  %v4088_v0 = vsel %vm13503_vm3, %v7425_v47, %v7230_v7 }
 0x88a   :  { %6194 = vmatprep.subr.bf16.mxu0 %v6193_v49  ;;  %v13502_v49 = vld [vmem:[#allocation22_spill] sm:$0xff]  ;;  %v7431_v59 = vunpack.i.h.bf16 %v13501_v28  ;;  %v6199_v10 = vpack.c.bf16 %v4090_v52, %v4088_v0  ;;  %v4113_v20 = vsel %vm13504_vm6, %v7235_v33, %v7236_v58  ;;  %v7521_v47 = vunpack.i.h.bf16 %v11823_v2 }
 0x88b   :  { %v7241_v34 = vunpack.i.h.bf16 %v13502_v49  ;;  %v7240_v21 = vunpack.i.l.bf16 %v13502_v49  ;;  %v7734_v44 = vpop.permute.xlu0 %7733  ;;  %v4140_v7 = vsel %vm4136_vm5, %v7745_v48, %v7746_v55  ;;  %v7520_v52 = vunpack.i.l.bf16 %v11823_v2 }
 0x88c   :  { %v7736_v62 = vunpack.i.h.bf16 %v7734_v44  ;;  %v7735_v46 = vunpack.i.l.bf16 %v7734_v44  ;;  %v7526_v44 = vunpack.i.h.bf16 %v11540_v3  ;;  %vm13509_vm15 = vcmask 556032  }
 0x88d   :  { %6196 = vmatpush1.bf16.msra.mxu0 %v6195_v50  ;;  %v4112_v50 = vsel %vm13505_vm11, %v7430_v56, %v7235_v33  ;;  %v12251_v15 = vpop.permute.xlu1 %7823  ;;  %v4138_v58 = vsel %vm4136_vm5, %v7240_v21, %v7241_v34  ;;  %v4139_v33 = vsel %vm4136_vm5, %v7521_v47, %v7745_v48  ;;  %v4137_v2 = vsel %vm4136_vm5, %v7520_v52, %v7240_v21  ;;  %vm13511_vm0 = vmmov %vm13509_vm15  ;;  %v13513_v52 = vld [vmem:[#allocation62_spill] sm:$0xff] }
 0x88e   :  { %6198 = vmatprep.subr.bf16.mxu0 %v6197_v11  ;;  %v4114_v60 = vsel %vm13506_vm13, %v7431_v59, %v7735_v46  ;;  %v4115_v49 = vsel %vm13507_vm8, %v7735_v46, %v7736_v62  ;;  %v6205_v56 = vpack.c.bf16 %v4140_v7, %v4138_v58  ;;  %v7766_v46 = vunpack.i.h.bf16 %v12146_v8  ;;  %v13508_v59 = vld [vmem:[#allocation61_spill] sm:$0xff]  ;;  %vm13512_vm1 = vmmov %vm13511_vm0 }
 0x88f   :  { %v6203_v11 = vpack.c.bf16 %v4114_v60, %v4112_v50  ;;  %v12257_v28 = vpop.permute.xlu0 %7738  ;;  %v6201_v0 = vpack.c.bf16 %v4115_v49, %v4113_v20  ;;  %v7546_v62 = vunpack.i.h.bf16 %v11877_v32  ;;  %v6207_v34 = vpack.c.bf16 %v4139_v33, %v4137_v2 }
 0x890   :  { %v13510_v49 = vunpack.i.l.bf16 %v11540_v3  ;;  %v4190_v21 = vsel %vm4186_vm14, %v7765_v40, %v7766_v46  ;;  %v13515_v40 = vld [vmem:[#allocation59_spill] sm:$0xff]  ;;  %v7586_v2 = vunpack.i.h.bf16 %v11995_v42  ;;  %vm4410_vm2 = vcmask 416768  }
 0x891   :  { %6200 = vmatpush1.bf16.msra.mxu0 %v6199_v10  ;;  %v12263_v55 = vpop.permute.xlu1 %7838  ;;  %v7531_v10 = vunpack.i.h.bf16 %v13508_v59  ;;  %v7571_v46 = vunpack.i.h.bf16 %v13515_v40  ;;  %vm13527_vm3 = vcmask 408576   ;;  %vm13531_vm13 = vcmask 392192  }
 0x892   :  { %6202 = vmatprep.subr.bf16.mxu0 %v6201_v0  ;;  %v4163_v7 = vsel %vm13511_vm0, %v13510_v49, %v7526_v44  ;;  %v13514_v44 = vld [vmem:[#allocation60_spill] sm:$0xff]  ;;  %v13517_v49 = vld [vmem:[#allocation65_spill] sm:$0xff]  ;;  %v4238_v6 = vsel %vm4236_vm9, %v7585_v13, %v7586_v2  ;;  %v13518_v13 = vunpack.i.l.bf16 %v11735_v38  ;;  %v13520_v2 = vunpack.i.l.bf16 %v12048_v23  ;;  %vm13528_vm5 = vmmov %vm13527_vm3 }
 0x893   :  { %v7749_v60 = vpop.permute.xlu0 %7748  ;;  %v7566_v59 = vunpack.i.h.bf16 %v13514_v44  ;;  %vm13529_vm6 = vmmov %vm13527_vm3 }
 0x894   :  { %v7751_v20 = vunpack.i.h.bf16 %v7749_v60  ;;  %v7750_v48 = vunpack.i.l.bf16 %v7749_v60  ;;  %vm13530_vm11 = vmmov %vm13527_vm3 }
 0x895   :  { %6204 = vmatpush1.bf16.msra.mxu0 %v6203_v11  ;;  %v12277_v0 = vpop.permute.xlu1 %7843  ;;  %vm13532_vm8 = vmmov %vm13531_vm13 }
 0x896   :  { %6206 = vmatprep.subr.bf16.mxu0 %v6205_v56  ;;  %v4164_v50 = vsel %vm13509_vm15, %v7531_v10, %v7750_v48  ;;  %v4165_v47 = vsel %vm13512_vm1, %v7750_v48, %v7751_v20  ;;  %v4188_v56 = vsel %vm4186_vm14, %v7545_v9, %v7546_v62  ;;  %v7786_v10 = vunpack.i.h.bf16 %v12184_v39  ;;  %vm13533_vm15 = vmmov %vm13532_vm8 }
 0x897   :  { %v6211_v11 = vpack.c.bf16 %v4164_v50, %v13513_v52  ;;  %v12279_v58 = vpop.permute.xlu0 %7753  ;;  %v6209_v33 = vpack.c.bf16 %v4165_v47, %v4163_v7  ;;  %v6213_v3 = vpack.c.bf16 %v4190_v21, %v4188_v56  ;;  %v13516_v9 = vunpack.i.l.bf16 %v13514_v44  ;;  %vm13534_vm0 = vmmov %vm13532_vm8 }
 0x898   :  { %v4240_v50 = vsel %vm4236_vm9, %v7785_v26, %v7786_v10  ;;  %v7806_v52 = vunpack.i.h.bf16 %v12219_v36  ;;  %v7611_v26 = vunpack.i.h.bf16 %v11821_v41  ;;  %v13519_v10 = vunpack.i.l.bf16 %v12219_v36 }
 0x899   :  { %6208 = vmatpush1.bf16.msra.mxu0 %v6207_v34  ;;  %v12288_v20 = vpop.permute.xlu1 %7848  ;;  %v4213_v62 = vsel %vm4211_vm4, %v13516_v9, %v7566_v59  ;;  %v6221_v18 = vpack.c.bf16 %v4240_v50, %v4238_v6  ;;  %v7825_v36 = vunpack.i.l.bf16 %v12251_v15  ;;  %v13521_v50 = vpack.c.bf16 %v12235_v30, %v12091_v45 }
 0x89a   :  { %6210 = vmatprep.subr.bf16.mxu0 %v6209_v33  ;;  %v7621_v33 = vunpack.i.h.bf16 %v12048_v23  ;;  %v4290_v41 = vsel %vm4286_vm12, %v13519_v10, %v7806_v52  ;;  %v7660_v23 = vunpack.i.l.bf16 %v12111_v17  ;;  %v7681_v30 = vunpack.i.h.bf16 %v11993_v51 }
 0x89b   :  { %v7774_v8 = vpop.permute.xlu0 %7773  ;;  %v5024_v52 = vsub.s32 4, %v13472_v12  ;;  %vm13535_vm1 = vcmask 384000  }
 0x89c   :  { %v7776_v60 = vunpack.i.h.bf16 %v7774_v8  ;;  %v7775_v34 = vunpack.i.l.bf16 %v7774_v8  ;;  %v4288_v37 = vsel %vm4286_vm12, %v13520_v2, %v7621_v33 }
 0x89d   :  { %6212 = vmatpush1.bf16.msra.mxu0 %v6211_v11  ;;  %v12309_v11 = vpop.permute.xlu1 %7863 }
 0x89e   :  { %6214 = vmatprep.subr.bf16.mxu0 %v6213_v3  ;;  %v4214_v32 = vsel %vm4211_vm4, %v7571_v46, %v7775_v34  ;;  %v4215_v48 = vsel %vm4211_vm4, %v7775_v34, %v7776_v60  ;;  %v7826_v60 = vunpack.i.h.bf16 %v12251_v15  ;;  %vm4336_vm4 = vcmask 490496  }
 0x89f   :  { %v6219_v7 = vpack.c.bf16 %v4214_v32, %v13517_v49  ;;  %v12302_v47 = vpop.permute.xlu0 %7778  ;;  %v6217_v21 = vpack.c.bf16 %v4215_v48, %v4213_v62  ;;  %v7661_v32 = vunpack.i.h.bf16 %v12111_v17  ;;  %v13522_v15 = vunpack.i.l.bf16 %v11875_v19 }
 0x8a0   :  { %v7675_v17 = vunpack.i.l.bf16 %v12148_v54 }
 0x8a1   :  { %6216 = vmatpush1.bf16.msra.mxu0 %v6215_v53  ;;  %v7596_v53 = vunpack.i.h.bf16 %v11735_v38  ;;  %v12330_v29 = vpop.permute.xlu1 %7878  ;;  %v6229_v38 = vpack.c.bf16 %v4290_v41, %v4288_v37 }
 0x8a2   :  { %6218 = vmatprep.subr.bf16.mxu0 %v6217_v21  ;;  %v7676_v21 = vunpack.i.h.bf16 %v12148_v54 }
 0x8a3   :  { %v7789_v39 = vpop.permute.xlu0 %7788  ;;  %v4263_v44 = vsel %vm4261_vm7, %v13518_v13, %v7596_v53  ;;  %v4337_v13 = vsel %vm4336_vm4, %v7675_v17, %v7660_v23 }
 0x8a4   :  { %v7791_v56 = vunpack.i.h.bf16 %v7789_v39  ;;  %v7790_v3 = vunpack.i.l.bf16 %v7789_v39  ;;  %v7680_v39 = vunpack.i.l.bf16 %v11993_v51  ;;  %v4339_v33 = vsel %vm4336_vm4, %v7676_v21, %v7825_v36 }
 0x8a5   :  { %6220 = vmatpush1.bf16.msra.mxu0 %v6219_v7  ;;  %v4340_v7 = vsel %vm4336_vm4, %v7825_v36, %v7826_v60  ;;  %v12349_v6 = vpop.permute.xlu1 %7883  ;;  %v6239_v10 = vpack.c.bf16 %v4339_v33, %v4337_v13  ;;  %v7716_v60 = vunpack.i.h.bf16 %v12226_v25  ;;  %v7715_v36 = vunpack.i.l.bf16 %v12226_v25 }
 0x8a6   :  { %6222 = vmatprep.subr.bf16.mxu0 %v6221_v18  ;;  %v4264_v42 = vsel %vm4261_vm7, %v7611_v26, %v7790_v3  ;;  %v4265_v59 = vsel %vm4261_vm7, %v7790_v3, %v7791_v56  ;;  %v7690_v26 = vunpack.i.l.bf16 %v12032_v1  ;;  %v7846_v56 = vunpack.i.h.bf16 %v12277_v0 }
 0x8a7   :  { %v6227_v8 = vpack.c.bf16 %v4264_v42, %v11846_v16  ;;  %v12325_v40 = vpop.permute.xlu0 %7793  ;;  %v6225_v46 = vpack.c.bf16 %v4265_v59, %v4263_v44  ;;  %v7651_v16 = vunpack.i.h.bf16 %v11929_v43  ;;  %v5036_v3 = vsub.s32 7, %v13472_v12 }
 0x8a8   :  { %v7691_v42 = vunpack.i.h.bf16 %v12032_v1  ;;  %v7701_v44 = vunpack.i.h.bf16 %v12186_v14  ;;  %v7700_v59 = vunpack.i.l.bf16 %v12186_v14  ;;  %vm13523_vm7 = vcmask 433152  }
 0x8a9   :  { %6224 = vmatpush1.bf16.msra.mxu0 %v6223_v4  ;;  %v7641_v4 = vunpack.i.h.bf16 %v11875_v19  ;;  %v4338_v19 = vsel %vm4336_vm4, %v7660_v23, %v7661_v32  ;;  %vm13524_vm14 = vmmov %vm13523_vm7  ;;  %v5025_v1 = vrot.slane %v12133_v22, %v5024_v52  ;;  %v5037_v14 = vrot.slane %v12133_v22, %v5036_v3 }
 0x8aa   :  { %6226 = vmatprep.subr.bf16.mxu0 %v6225_v46  ;;  %v6237_v54 = vpack.c.bf16 %v4340_v7, %v4338_v19  ;;  %v4361_v46 = vsel %vm13523_vm7, %v7690_v26, %v7680_v39  ;;  %v4362_v2 = vsel %vm13524_vm14, %v7680_v39, %v7681_v30  ;;  %vm13525_vm9 = vmmov %vm13523_vm7  ;;  %v7866_v25 = vunpack.i.h.bf16 %v12309_v11 }
 0x8ab   :  { %v7814_v34 = vpop.permute.xlu0 %7813  ;;  %v4313_v49 = vsel %vm4311_vm10, %v13522_v15, %v7641_v4  ;;  %vm13526_vm12 = vmmov %vm13523_vm7  ;;  %v7730_v15 = vunpack.i.l.bf16 %v12097_v27  ;;  %v7756_v33 = vunpack.i.h.bf16 %v12279_v58  ;;  %v7760_v13 = vunpack.i.l.bf16 %v12125_v63 }
 0x8ac   :  { %v7816_v9 = vunpack.i.h.bf16 %v7814_v34  ;;  %v7815_v62 = vunpack.i.l.bf16 %v7814_v34  ;;  %vm4507_vm4 = vcmask 375808   ;;  %vm13536_vm7 = vmmov %vm13535_vm1 }
 0x8ad   :  { %6228 = vmatpush1.bf16.msra.mxu0 %v6227_v8  ;;  %vm13538_vm14 = vmmov %vm13535_vm1 }
 0x8ae   :  { %6230 = vmatprep.subr.bf16.mxu0 %v6229_v38  ;;  %v4314_v48 = vsel %vm4311_vm10, %v7651_v16, %v7815_v62  ;;  %v4315_v43 = vsel %vm4311_vm10, %v7815_v62, %v7816_v9  ;;  %vm4385_vm10 = vcmask 424960   ;;  %v7721_v9 = vunpack.i.h.bf16 %v12062_v35 }
 0x8af   :  { %v6235_v18 = vpack.c.bf16 %v4314_v48, %v11949_v57  ;;  %v12352_v53 = vpop.permute.xlu0 %7818  ;;  %v6233_v45 = vpack.c.bf16 %v4315_v43, %v4313_v49  ;;  %v7845_v57 = vunpack.i.l.bf16 %v12277_v0  ;;  %v12368_v0 = vpop.permute.xlu1 %7888  ;;  %v4387_v23 = vsel %vm4385_vm10, %v7700_v59, %v7701_v44 }
 0x8b0   :  { %v7720_v62 = vunpack.i.l.bf16 %v12062_v35  ;;  %v7865_v49 = vunpack.i.l.bf16 %v12309_v11  ;;  %v7731_v43 = vunpack.i.h.bf16 %v12097_v27  ;;  %v4386_v7 = vsel %vm4385_vm10, %v7715_v36, %v7700_v59 }
 0x8b1   :  { %6232 = vmatpush1.bf16.msra.mxu0 %v13521_v50  ;;  %v4389_v4 = vsel %vm4385_vm10, %v7845_v57, %v7846_v56  ;;  %v4388_v48 = vsel %vm4385_vm10, %v7716_v60, %v7845_v57  ;;  %v7741_v35 = vunpack.i.h.bf16 %v12257_v28  ;;  %v7795_v60 = vunpack.i.l.bf16 %v12325_v40  ;;  %vm13537_vm10 = vmmov %vm13535_vm1 }
 0x8b2   :  { %6234 = vmatprep.subr.bf16.mxu0 %v6233_v45  ;;  %v6245_v50 = vpack.c.bf16 %v4389_v4, %v4387_v23  ;;  %v6247_v45 = vpack.c.bf16 %v4388_v48, %v4386_v7  ;;  %v4412_v52 = vsel %vm4410_vm2, %v7720_v62, %v7721_v9  ;;  %v4411_v11 = vsel %vm4410_vm2, %v7730_v15, %v7720_v62 }
 0x8b3   :  { %v7829_v51 = vpop.permute.xlu0 %7828  ;;  %v12390_v21 = vpop.permute.xlu1 %7903  ;;  %v4438_v26 = vsel %vm13527_vm3, %v7865_v49, %v7866_v25  ;;  %v4437_v44 = vsel %vm13529_vm6, %v7756_v33, %v7865_v49  ;;  %v7801_v48 = vunpack.i.h.bf16 %v12209_v5  ;;  %v7810_v15 = vunpack.i.l.bf16 %v12242_v61 }
 0x8b4   :  { %v7831_v41 = vunpack.i.h.bf16 %v7829_v51  ;;  %v7830_v8 = vunpack.i.l.bf16 %v7829_v51  ;;  %v7906_v7 = vunpack.i.h.bf16 %v12390_v21  ;;  %vm13543_vm6 = vcmask 343040  }
 0x8b5   :  { %6236 = vmatpush1.bf16.msra.mxu0 %v6235_v18  ;;  %v7740_v18 = vunpack.i.l.bf16 %v12257_v28 }
 0x8b6   :  { %6238 = vmatprep.subr.bf16.mxu0 %v6237_v54  ;;  %v4363_v37 = vsel %vm13525_vm9, %v7691_v42, %v7830_v8  ;;  %v4364_v38 = vsel %vm13526_vm12, %v7830_v8, %v7831_v41  ;;  %v7755_v54 = vunpack.i.l.bf16 %v12279_v58  ;;  %v7761_v42 = vunpack.i.h.bf16 %v12125_v63 }
 0x8b7   :  { %v6243_v16 = vpack.c.bf16 %v4363_v37, %v4361_v46  ;;  %v12378_v34 = vpop.permute.xlu0 %7833  ;;  %v6241_v32 = vpack.c.bf16 %v4364_v38, %v4362_v2  ;;  %v4436_v3 = vsel %vm13528_vm5, %v7740_v18, %v7741_v35  ;;  %v12406_v51 = vpop.permute.xlu1 %7918  ;;  %v7886_v58 = vunpack.i.h.bf16 %v12349_v6 }
 0x8b8   :  { %v6253_v59 = vpack.c.bf16 %v4438_v26, %v4436_v3  ;;  %v7885_v41 = vunpack.i.l.bf16 %v12349_v6  ;;  %v7771_v8 = vunpack.i.h.bf16 %v12172_v24  ;;  %v4435_v46 = vsel %vm13530_vm11, %v7755_v54, %v7740_v18  ;;  %vm13544_vm11 = vmmov %vm13543_vm6 }
 0x8b9   :  { %6240 = vmatpush1.bf16.msra.mxu0 %v6239_v10  ;;  %v7770_v10 = vunpack.i.l.bf16 %v12172_v24  ;;  %v7781_v2 = vunpack.i.h.bf16 %v12302_v47  ;;  %v7780_v37 = vunpack.i.l.bf16 %v12302_v47  ;;  %v4460_v6 = vsel %vm13531_vm13, %v7760_v13, %v7761_v42  ;;  %vm13545_vm13 = vmmov %vm13543_vm6 }
 0x8ba   :  { %6242 = vmatprep.subr.bf16.mxu0 %v6241_v32  ;;  %v4486_v32 = vsel %vm13535_vm1, %v7885_v41, %v7886_v58  ;;  %v7905_v35 = vunpack.i.l.bf16 %v12390_v21  ;;  %v7820_v18 = vunpack.i.l.bf16 %v12352_v53  ;;  %vm4532_vm9 = vcmask 367616  }
 0x8bb   :  { %v7854_v17 = vpop.permute.xlu0 %7853  ;;  %v4459_v36 = vsel %vm13532_vm8, %v7770_v10, %v7760_v13  ;;  %v12422_v23 = vpop.permute.xlu1 %7923  ;;  %v4483_v49 = vsel %vm13538_vm14, %v7795_v60, %v7780_v37  ;;  %v7841_v42 = vunpack.i.h.bf16 %v12263_v55  ;;  %v7850_v10 = vunpack.i.l.bf16 %v12288_v20  ;;  %vm13546_vm8 = vmmov %vm13543_vm6 }
 0x8bc   :  { %5253 = vmatmul.mubr.f32.vlgmr.msra.gmra.mrb[12].mxu0 %v5025_v1  ;;  %v7856_v30 = vunpack.i.h.bf16 %v7854_v17  ;;  %v7855_v19 = vunpack.i.l.bf16 %v7854_v17  ;;  %v6255_v1 = vpack.c.bf16 %v4437_v44, %v4435_v46  ;;  %v7821_v17 = vunpack.i.h.bf16 %v12352_v53 }
 0x8bd   :  { %6244 = vmatpush1.bf16.msra.mxu0 %v6243_v16  ;;  %5323 = vmatprep.mubr.f32.mxu0 %v5037_v14  ;;  %v7796_v14 = vunpack.i.h.bf16 %v12325_v40  ;;  %v7800_v40 = vunpack.i.l.bf16 %v12209_v5  ;;  %v4536_v54 = vsel %vm4532_vm9, %v7905_v35, %v7906_v7  ;;  %v7926_v46 = vunpack.i.h.bf16 %v12422_v23 }
 0x8be   :  { %6246 = vmatprep.subr.bf16.mxu0 %v6245_v50  ;;  %v4413_v39 = vsel %vm4410_vm2, %v7731_v43, %v7855_v19  ;;  %v4414_v27 = vsel %vm4410_vm2, %v7855_v19, %v7856_v30  ;;  %v4484_v50 = vsel %vm13536_vm7, %v7780_v37, %v7781_v2  ;;  %vm13539_vm12 = vcmask 351232  }
 0x8bf   :  { %v6251_v56 = vpack.c.bf16 %v4413_v39, %v4411_v11  ;;  %v12400_v28 = vpop.permute.xlu0 %7858  ;;  %v6249_v57 = vpack.c.bf16 %v4414_v27, %v4412_v52  ;;  %v4485_v25 = vsel %vm13537_vm10, %v7796_v14, %v7885_v41  ;;  %v6261_v43 = vpack.c.bf16 %v4486_v32, %v4484_v50  ;;  %v12440_v21 = vpop.permute.xlu1 %7928  ;;  %vm13540_vm2 = vmmov %vm13539_vm12 }
 0x8c0   :  { %v6263_v30 = vpack.c.bf16 %v4485_v25, %v4483_v49  ;;  %v4508_v11 = vsel %vm4507_vm4, %v7810_v15, %v7800_v40  ;;  %v7836_v39 = vunpack.i.h.bf16 %v12378_v34  ;;  %v7835_v27 = vunpack.i.l.bf16 %v12378_v34  ;;  %vm13541_vm3 = vmmov %vm13540_vm2 }
 0x8c1   :  { %6248 = vmatpush1.bf16.msra.mxu0 %v6247_v45  ;;  %v7811_v45 = vunpack.i.h.bf16 %v12242_v61  ;;  %v4509_v26 = vsel %vm4507_vm4, %v7800_v40, %v7801_v48  ;;  %v4534_v61 = vsel %vm4532_vm9, %v7820_v18, %v7821_v17  ;;  %v7840_v34 = vunpack.i.l.bf16 %v12263_v55  ;;  %vm13542_vm5 = vmmov %vm13540_vm2 }
 0x8c2   :  { %6250 = vmatprep.subr.bf16.mxu0 %v6249_v57  ;;  %v4535_v13 = vsel %vm4532_vm9, %v7836_v39, %v7905_v35  ;;  %v4533_v44 = vsel %vm4532_vm9, %v7835_v27, %v7820_v18  ;;  %v7861_v58 = vunpack.i.h.bf16 %v12400_v28  ;;  %v7860_v41 = vunpack.i.l.bf16 %v12400_v28 }
 0x8c3   :  { %v7869_v63 = vpop.permute.xlu0 %7868  ;;  %v7944_v2 = vpop.permute.xlu1 %7943  ;;  %v7925_v55 = vunpack.i.l.bf16 %v12422_v23  ;;  %v4558_v60 = vsel %vm13539_vm12, %v7840_v34, %v7841_v42  ;;  %v4557_v28 = vsel %vm13540_vm2, %v7850_v10, %v7840_v34  ;;  %v7881_v23 = vunpack.i.h.bf16 %v12330_v29 }
 0x8c4   :  { %v7871_v38 = vunpack.i.h.bf16 %v7869_v63  ;;  %v7870_v4 = vunpack.i.l.bf16 %v7869_v63  ;;  %v7890_v15 = vunpack.i.l.bf16 %v12368_v0  ;;  %v7946_v7 = vunpack.i.h.bf16 %v7944_v2 }
 0x8c5   :  { %6252 = vmatpush1.bf16.msra.mxu0 %v6251_v56  ;;  %v7930_v34 = vunpack.i.l.bf16 %v12440_v21  ;;  %vm13551_vm10 = vcmask 310272   ;;  %vm13555_vm2 = vcmask 302080  }
 0x8c6   :  { %6254 = vmatprep.subr.bf16.mxu0 %v6253_v59  ;;  %v4461_v24 = vsel %vm13533_vm15, %v7771_v8, %v7870_v4  ;;  %v4462_v16 = vsel %vm13534_vm0, %v7870_v4, %v7871_v38  ;;  %v6269_v59 = vpack.c.bf16 %v4536_v54, %v4534_v61  ;;  %v7851_v8 = vunpack.i.h.bf16 %v12288_v20  ;;  %vm13552_vm14 = vmmov %vm13551_vm10 }
 0x8c7   :  { %v6259_v47 = vpack.c.bf16 %v4461_v24, %v4459_v36  ;;  %v12424_v9 = vpop.permute.xlu0 %7873  ;;  %v6257_v62 = vpack.c.bf16 %v4462_v16, %v4460_v6  ;;  %v4582_v36 = vsel %vm13543_vm6, %v7860_v41, %v7861_v58  ;;  %vm4629_vm15 = vcmask 326656   ;;  %vm13553_vm9 = vmmov %vm13551_vm10 }
 0x8c8   :  { %v7876_v4 = vunpack.i.h.bf16 %v12424_v9  ;;  %v7875_v14 = vunpack.i.l.bf16 %v12424_v9  ;;  %v7880_v9 = vunpack.i.l.bf16 %v12330_v29  ;;  %v7945_v29 = vunpack.i.l.bf16 %v7944_v2  ;;  %vm13554_vm12 = vmmov %vm13553_vm9 }
 0x8c9   :  { %6256 = vmatpush1.bf16.msra.mxu0 %v6255_v1  ;;  %v6271_v1 = vpack.c.bf16 %v4535_v13, %v4533_v44  ;;  %vm13547_vm0 = vcmask 334848   ;;  %v7921_v61 = vunpack.i.h.bf16 %v12406_v51  ;;  %vm13558_vm6 = vmmov %vm13555_vm2 }
 0x8ca   :  { %6258 = vmatprep.subr.bf16.mxu0 %v6257_v62  ;;  %v12469_v62 = vpop.permute.xlu1 %7958  ;;  %v4583_v48 = vsel %vm13545_vm13, %v7876_v4, %v7925_v55  ;;  %v4581_v40 = vsel %vm13546_vm8, %v7875_v14, %v7860_v41  ;;  %vm13548_vm1 = vmmov %vm13547_vm0  ;;  %v4633_v54 = vsel %vm4629_vm15, %v7945_v29, %v7946_v7 }
 0x8cb   :  { %v7894_v5 = vpop.permute.xlu0 %7893  ;;  %v6279_v17 = vpack.c.bf16 %v4583_v48, %v4581_v40  ;;  %vm13550_vm7 = vmmov %vm13547_vm0 }
 0x8cc   :  { %v7896_v19 = vunpack.i.h.bf16 %v7894_v5  ;;  %v7895_v52 = vunpack.i.l.bf16 %v7894_v5 }
 0x8cd   :  { %6260 = vmatpush1.bf16.msra.mxu0 %v6259_v47  ;;  %v4584_v47 = vsel %vm13544_vm11, %v7925_v55, %v7926_v46  ;;  %vm13559_vm11 = vcmask 293888  }
 0x8ce   :  { %6262 = vmatprep.subr.bf16.mxu0 %v6261_v43  ;;  %v4510_v53 = vsel %vm4507_vm4, %v7811_v45, %v7895_v52  ;;  %v4511_v33 = vsel %vm4507_vm4, %v7895_v52, %v7896_v19  ;;  %v6277_v50 = vpack.c.bf16 %v4584_v47, %v4582_v36  ;;  %v7891_v43 = vunpack.i.h.bf16 %v12368_v0  ;;  %vm13549_vm4 = vmmov %vm13547_vm0  ;;  %v7964_v27 = vpop.permute.xlu1 %7963 }
 0x8cf   :  { %v6267_v56 = vpack.c.bf16 %v4510_v53, %v4508_v11  ;;  %v12447_v57 = vpop.permute.xlu0 %7898  ;;  %v6265_v3 = vpack.c.bf16 %v4511_v33, %v4509_v26  ;;  %v4606_v19 = vsel %vm13547_vm0, %v7880_v9, %v7881_v23  ;;  %v4605_v52 = vsel %vm13548_vm1, %v7890_v15, %v7880_v9  ;;  %vm13560_vm13 = vmmov %vm13559_vm11 }
 0x8d0   :  { %v7901_v25 = vunpack.i.h.bf16 %v12447_v57  ;;  %v7900_v49 = vunpack.i.l.bf16 %v12447_v57  ;;  %v7966_v10 = vunpack.i.h.bf16 %v7964_v27  ;;  %v7965_v41 = vunpack.i.l.bf16 %v7964_v27  ;;  %vm13561_vm8 = vmmov %vm13559_vm11 }
 0x8d1   :  { %6264 = vmatpush1.bf16.msra.mxu0 %v6263_v30  ;;  %v7960_v36 = vunpack.i.l.bf16 %v12469_v62  ;;  %vm13563_vm0 = vcmask 285696   ;;  %v5032_v27 = vsub.s32 6, %v13472_v12 }
 0x8d2   :  { %6266 = vmatprep.subr.bf16.mxu0 %v6265_v3  ;;  %v4631_v0 = vsel %vm4629_vm15, %v7900_v49, %v7901_v25  ;;  %v7969_v2 = vpop.permute.xlu1 %7968  ;;  %vm13564_vm1 = vmmov %vm13563_vm0 }
 0x8d3   :  { %v7909_v63 = vpop.permute.xlu0 %7908  ;;  %v6285_v42 = vpack.c.bf16 %v4633_v54, %v4631_v0  ;;  %v7971_v40 = vunpack.i.h.bf16 %v7969_v2 }
 0x8d4   :  { %v7911_v37 = vunpack.i.h.bf16 %v7909_v63  ;;  %v7910_v38 = vunpack.i.l.bf16 %v7909_v63 }
 0x8d5   :  { %6268 = vmatpush1.bf16.msra.mxu0 %v6267_v56  ;;  %v7920_v56 = vunpack.i.l.bf16 %v12406_v51 }
 0x8d6   :  { %6270 = vmatprep.subr.bf16.mxu0 %v6269_v59  ;;  %v4559_v20 = vsel %vm13541_vm3, %v7851_v8, %v7910_v38  ;;  %v4560_v6 = vsel %vm13542_vm5, %v7910_v38, %v7911_v37  ;;  %v7931_v59 = vunpack.i.h.bf16 %v12440_v21  ;;  %vm13556_vm3 = vmmov %vm13555_vm2  ;;  %v7984_v47 = vpop.permute.xlu1 %7983 }
 0x8d7   :  { %v6275_v24 = vpack.c.bf16 %v4559_v20, %v4557_v28  ;;  %v7914_v16 = vpop.permute.xlu0 %7913  ;;  %v6273_v32 = vpack.c.bf16 %v4560_v6, %v4558_v60  ;;  %v4655_v63 = vsel %vm13551_vm10, %v7920_v56, %v7921_v61  ;;  %v4654_v55 = vsel %vm13552_vm14, %v7930_v34, %v7920_v56  ;;  %vm13557_vm5 = vmmov %vm13555_vm2 }
 0x8d8   :  { %v7916_v45 = vunpack.i.h.bf16 %v7914_v16  ;;  %v7915_v30 = vunpack.i.l.bf16 %v7914_v16  ;;  %v4681_v20 = vsel %vm13556_vm3, %v7965_v41, %v7966_v10  ;;  %v7961_v6 = vunpack.i.h.bf16 %v12469_v62 }
 0x8d9   :  { %6272 = vmatpush1.bf16.msra.mxu0 %v6271_v1  ;;  %v7986_v62 = vunpack.i.h.bf16 %v7984_v47  ;;  %v5033_v61 = vrot.slane %v12133_v22, %v5032_v27 }
 0x8da   :  { %6274 = vmatprep.subr.bf16.mxu0 %v6273_v32  ;;  %v4632_v57 = vsel %vm4629_vm15, %v7916_v45, %v7945_v29  ;;  %v4630_v3 = vsel %vm4629_vm15, %v7915_v30, %v7900_v49  ;;  %v4703_v49 = vsel %vm13560_vm13, %v7960_v36, %v7961_v6  ;;  %vm13562_vm15 = vmmov %vm13561_vm8 }
 0x8db   :  { %v7934_v35 = vpop.permute.xlu0 %7933  ;;  %v6287_v8 = vpack.c.bf16 %v4632_v57, %v4630_v3  ;;  %v8098_v3 = vmov 1966171168  }
 0x8dc   :  { %v7936_v18 = vunpack.i.h.bf16 %v7934_v35  ;;  %v7935_v5 = vunpack.i.l.bf16 %v7934_v35  ;;  %v4999_v57 = vpop.permute.xlu1 %4998 }
 0x8dd   :  { %6276 = vmatpush1.bf16.msra.mxu0 %v6275_v24  ;;  %v7970_v24 = vunpack.i.l.bf16 %v7969_v2  ;;  %v5004_v34 = vrot.slane %v4999_v57, %v13432_v31  ;;  %v13567_v2 = vlaneseq }
 0x8de   :  { %6278 = vmatprep.subr.bf16.mxu0 %v6277_v50  ;;  %v4607_v11 = vsel %vm13549_vm4, %v7891_v43, %v7935_v5  ;;  %v4608_v39 = vsel %vm13550_vm7, %v7935_v5, %v7936_v18  ;;  %v7985_v43 = vunpack.i.l.bf16 %v7984_v47  ;;  %vm13565_vm4 = vmmov %vm13563_vm0 }
 0x8df   :  { %v6283_v26 = vpack.c.bf16 %v4607_v11, %v4605_v52  ;;  %v7939_v53 = vpop.permute.xlu0 %7938  ;;  %v6281_v33 = vpack.c.bf16 %v4608_v39, %v4606_v19  ;;  %v4702_v25 = vsel %vm13559_vm11, %v7970_v24, %v7960_v36  ;;  %vm13566_vm7 = vmmov %vm13563_vm0  ;;  %vm5350_vm10 = vcmp.lt.s32.totalorder %v13567_v2, 256 }
 0x8e0   :  { %v7941_v13 = vunpack.i.h.bf16 %v7939_v53  ;;  %v7940_v44 = vunpack.i.l.bf16 %v7939_v53  ;;  %v4729_v19 = vsel %vm13564_vm1, %v7985_v43, %v7986_v62 }
 0x8e1   :  { %6280 = vmatpush1.bf16.msra.mxu0 %v6279_v17 }
 0x8e2   :  { %6282 = vmatprep.subr.bf16.mxu0 %v6281_v33  ;;  %v4679_v38 = vsel %vm13555_vm2, %v7940_v44, %v7941_v13 }
 0x8e3   :  { %v7949_v58 = vpop.permute.xlu0 %7948  ;;  %v6293_v16 = vpack.c.bf16 %v4681_v20, %v4679_v38 }
 0x8e4   :  { %v7951_v46 = vunpack.i.h.bf16 %v7949_v58  ;;  %v7950_v51 = vunpack.i.l.bf16 %v7949_v58 }
 0x8e5   :  { %6284 = vmatpush1.bf16.msra.mxu0 %v6283_v26 }
 0x8e6   :  { %6286 = vmatprep.subr.bf16.mxu0 %v6285_v42  ;;  %v4656_v1 = vsel %vm13553_vm9, %v7931_v59, %v7950_v51  ;;  %v4657_v37 = vsel %vm13554_vm12, %v7950_v51, %v7951_v46  ;;  %v5334_v42 = vunpack.c.l.s4 %v8098_v3 }
 0x8e7   :  { %v6291_v21 = vpack.c.bf16 %v4656_v1, %v4654_v55  ;;  %v7954_v4 = vpop.permute.xlu0 %7953  ;;  %v6289_v14 = vpack.c.bf16 %v4657_v37, %v4655_v63 }
 0x8e8   :  { %v7956_v60 = vunpack.i.h.bf16 %v7954_v4  ;;  %v7955_v28 = vunpack.i.l.bf16 %v7954_v4  ;;  %v5335_v13 = vunpack.c.0.s8 %v5334_v42 }
 0x8e9   :  { %6288 = vmatpush1.bf16.msra.mxu0 %v6287_v8 }
 0x8ea   :  { %6290 = vmatprep.subr.bf16.mxu0 %v6289_v14  ;;  %v4680_v32 = vsel %vm13557_vm5, %v7956_v60, %v7965_v41  ;;  %v4678_v23 = vsel %vm13558_vm6, %v7955_v28, %v7940_v44  ;;  %v5338_v46 = vsub.s32 %v5335_v13, %v13472_v12 }
 0x8eb   :  { %v6295_v9 = vpack.c.bf16 %v4680_v32, %v4678_v23  ;;  %v7974_v48 = vpop.permute.xlu0 %7973 }
 0x8ec   :  { %v7976_v50 = vunpack.i.h.bf16 %v7974_v48  ;;  %v7975_v15 = vunpack.i.l.bf16 %v7974_v48 }
 0x8ed   :  { %6292 = vmatpush1.bf16.msra.mxu0 %v6291_v21 }
 0x8ee   :  { %6294 = vmatprep.subr.bf16.mxu0 %v6293_v16  ;;  %v4704_v7 = vsel %vm13561_vm8, %v7971_v40, %v7975_v15  ;;  %v4705_v35 = vsel %vm13562_vm15, %v7975_v15, %v7976_v50 }
 0x8ef   :  { %v6299_v29 = vpack.c.bf16 %v4704_v7, %v4702_v25  ;;  %v7979_v17 = vpop.permute.xlu0 %7978  ;;  %v6297_v18 = vpack.c.bf16 %v4705_v35, %v4703_v49 }
 0x8f0   :  { %v7981_v5 = vunpack.i.h.bf16 %v7979_v17  ;;  %v7980_v45 = vunpack.i.l.bf16 %v7979_v17 }
 0x8f1   :  { %6296 = vmatpush1.bf16.msra.mxu0 %v6295_v9 }
 0x8f2   :  { %6298 = vmatprep.subr.bf16.mxu0 %v6297_v18  ;;  %v4727_v30 = vsel %vm13563_vm0, %v7980_v45, %v7981_v5 }
 0x8f3   :  { %v7989_v52 = vpop.permute.xlu0 %7988  ;;  %v6301_v11 = vpack.c.bf16 %v4729_v19, %v4727_v30 }
 0x8f4   :  { %v7991_v39 = vunpack.i.h.bf16 %v7989_v52  ;;  %v7990_v0 = vunpack.i.l.bf16 %v7989_v52 }
 0x8f5   :  { %6300 = vmatpush1.bf16.msra.mxu0 %v6299_v29 }
 0x8f6   :  { %6302 = vmatprep.subr.bf16.mxu0 %v6301_v11  ;;  %v4728_v26 = vsel %vm13565_vm4, %v7991_v39, %v7985_v43  ;;  %v4726_v53 = vsel %vm13566_vm7, %v7990_v0, %v7980_v45 }
 0x8f7   :  { %v6303_v33 = vpack.c.bf16 %v4728_v26, %v4726_v53 }
 0x8f9   :  { %6304 = vmatpush1.bf16.msra.mxu0 %v6303_v33 }
 0x8fc   :  { %5324 = vmatmul.mubr.f32.vlgmr.msra.gmra.mrb[12].mxu0 %v5033_v61 }
 0x92a   :  { %v5112_v54 = vpop.f32.mrb[16].mxu1 }
 0x92b   :  { %v5114_v56 = vpop.f32.mrb[17].mxu1  ;;  %v5113_v44 = vadd.f32 %v5112_v54, %v5004_v34 }
 0x92c   :  { %v5115_v59 = vadd.f32 %v5114_v56, %v5004_v34 }
 0x9cf   :  { %v5325_v10 = vpop.f32.mrb[12].mxu0 }
 0x9d0   :  { %v6318_v58 = vadd.f32 %v5325_v10, %v5113_v44  ;;  %v5327_v41 = vpop.f32.mrb[13].mxu0 }
 0x9d1   :  { %v6320_v8 = vadd.f32 %v5327_v41, %v5115_v59 }
 0x9d3   :  { %v5332_v51 = vcombine.low %v6318_v58, %v6320_v8 }
 0x9d5   :  { %v5339_v22 = vrot.slane %v5332_v51, %v5338_v46 }
 0x9d7   :  { %v5346_v63 = vrot.slane %v5339_v22, %v5338_v46 }
 0x9d9   :  { %5352 = vst.msk [vmem:[%s13568_s17] sm:$0x3] %vm5350_vm10, %v5346_v63 }

</bundles_post_ra>
